<compile_context>
chip_gen: v6e
topology: v6e:2x2x1
jax: 0.10.0
libtpu: 0.0.40
codegen_flags: <defaults>
</compile_context>

<pallas_src>
import jax
import jax.numpy as jnp
from jax.experimental import pallas as pl
from jax.experimental.pallas import tpu as pltpu

LATENT = 128
H1 = 512
H2 = 1024
OUT = 784
OUT_PAD = 896  # 7 * 128, lane-dense output


def generator_kernel(x_ref, w1_ref, b1_ref, w2_ref, b2_ref, w3_ref, b3_ref, o_ref):
    # fc1 + relu (bf16 inputs, f32 accumulate)
    h1 = jnp.dot(x_ref[...], w1_ref[...], preferred_element_type=jnp.float32) + b1_ref[...]
    h1 = jnp.maximum(h1, 0.0).astype(jnp.bfloat16)
    # fc2 + relu
    h2 = jnp.dot(h1, w2_ref[...], preferred_element_type=jnp.float32) + b2_ref[...]
    h2 = jnp.maximum(h2, 0.0).astype(jnp.bfloat16)
    # fc3 + tanh (output columns padded to 896; pad columns are exactly tanh(0)=0
    # only after slicing in the wrapper — they are dropped there anyway)
    h3 = jnp.dot(h2, w3_ref[...], preferred_element_type=jnp.float32) + b3_ref[...]
    o_ref[...] = jnp.tanh(h3)


def generator_forward(x, params, *, tb=128):
    """x: (B, 128) float32 -> (B, 1, 28, 28) float32 (same as the PyTorch module)."""
    w1, b1, w2, b2, w3, b3 = params  # weights bf16 (in,out); biases f32 (1,out); fc3 padded to 896
    B = x.shape[0]
    n_tiles = pl.cdiv(B, tb)
    Bp = n_tiles * tb

    x_bf = x.astype(jnp.bfloat16)
    if Bp != B:
        x_bf = jnp.pad(x_bf, ((0, Bp - B), (0, 0)))

    # Batch tiles move with the grid; weights/biases always map to block 0 so the
    # pipeliner keeps them resident in VMEM across the whole batch grid.
    resident = lambda shape: pl.BlockSpec(shape, lambda i: (0, 0))

    out_flat = pl.pallas_call(
        generator_kernel,
        out_shape=jax.ShapeDtypeStruct((Bp, OUT_PAD), jnp.float32),
        grid=(n_tiles,),
        in_specs=[
            pl.BlockSpec((tb, LATENT), lambda i: (i, 0)),
            resident(w1.shape), resident(b1.shape),
            resident(w2.shape), resident(b2.shape),
            resident(w3.shape), resident(b3.shape),
        ],
        out_specs=pl.BlockSpec((tb, OUT_PAD), lambda i: (i, 0)),
        compiler_params=pltpu.CompilerParams(
            dimension_semantics=("parallel",),
            vmem_limit_bytes=32 * 1024 * 1024,
        ),
    )(x_bf, w1, b1, w2, b2, w3, b3)

    # Drop batch padding and the lane-padding columns, then the view(-1,1,28,28) glue.
    return out_flat[:B, :OUT].reshape(-1, 1, 28, 28)


def init_params(key):
    """Deterministic init mimicking nn.Linear's default U(-1/sqrt(fan_in), +1/sqrt(fan_in)).

    Weights are stored (in, out) and cast to bf16 for the MXU; biases stay f32.
    fc3 weight/bias are zero-padded from 784 to 896 output columns.
    """
    def linear(key, fan_in, fan_out):
        kw, kb = jax.random.split(key)
        bound = 1.0 / jnp.sqrt(fan_in)
        w = jax.random.uniform(kw, (fan_in, fan_out), jnp.float32, -bound, bound)
        b = jax.random.uniform(kb, (1, fan_out), jnp.float32, -bound, bound)
        return w.astype(jnp.bfloat16), b

    k1, k2, k3 = jax.random.split(key, 3)
    w1, b1 = linear(k1, LATENT, H1)
    w2, b2 = linear(k2, H1, H2)
    w3, b3 = linear(k3, H2, OUT)
    # Pad fc3 to a lane-dense 896-wide output (zeros in the padded columns).
    w3 = jnp.pad(w3, ((0, 0), (0, OUT_PAD - OUT)))
    b3 = jnp.pad(b3, ((0, 0), (0, OUT_PAD - OUT)))
    return (w1, b1, w2, b2, w3, b3)


def reference_forward(x, params):
    """Pure-JAX reference with identical numerics (bf16 weights, f32 accumulation)."""
    w1, b1, w2, b2, w3, b3 = params
    xb = x.astype(jnp.bfloat16)
    h1 = jnp.maximum(jnp.dot(xb, w1, preferred_element_type=jnp.float32) + b1, 0.0)
    h1 = h1.astype(jnp.bfloat16)
    h2 = jnp.maximum(jnp.dot(h1, w2, preferred_element_type=jnp.float32) + b2, 0.0)
    h2 = h2.astype(jnp.bfloat16)
    h3 = jnp.dot(h2, w3, preferred_element_type=jnp.float32) + b3
    return jnp.tanh(h3)[:, :OUT].reshape(-1, 1, 28, 28)


if __name__ == "__main__":
    key = jax.random.PRNGKey(0)
    k_params, k_x = jax.random.split(key)

    params = init_params(k_params)
    batch = 8  # small demo batch; wrapper pads rows up to the TB=128 MXU tile
    x = jax.random.normal(k_x, (batch, LATENT), jnp.float32)  # latent noise

    out = generator_forward(x, params)
    out = jax.block_until_ready(out)

    ref = reference_forward(x, params)

    assert out.shape == (batch, 1, 28, 28), out.shape
    assert out.dtype == jnp.float32
    assert jnp.allclose(out, ref, atol=2e-3, rtol=2e-3), float(jnp.max(jnp.abs(out - ref)))

    print("KERNEL_OK")
</pallas_src>

<mosaic_0001>
module attributes {stable_mosaic.version = 11 : i64} {
  func.func @generator_kernel(%arg0: i32, %arg1: memref<128x128xbf16, #tpu.memory_space<vmem>>, %arg2: memref<128x512xbf16, #tpu.memory_space<vmem>>, %arg3: memref<1x512xf32, #tpu.memory_space<vmem>>, %arg4: memref<512x1024xbf16, #tpu.memory_space<vmem>>, %arg5: memref<1x1024xf32, #tpu.memory_space<vmem>>, %arg6: memref<1024x896xbf16, #tpu.memory_space<vmem>>, %arg7: memref<1x896xf32, #tpu.memory_space<vmem>>, %arg8: memref<128x896xf32, #tpu.memory_space<vmem>>) attributes {dimension_semantics = [#tpu.dimension_semantics<parallel>], iteration_bounds = array<i64: 1>, scalar_prefetch = 0 : i64, scratch_operands = 0 : i64, tpu.core_type = #tpu.core_type<tc>, window_params = [{transform_indices = @transform_0, window_bounds = array<i64: 128, 128>}, {pipeline_mode = #tpu.pipeline_mode<synchronous>, transform_indices = @transform_1, window_bounds = array<i64: 128, 512>}, {pipeline_mode = #tpu.pipeline_mode<synchronous>, transform_indices = @transform_2, window_bounds = array<i64: 1, 512>}, {pipeline_mode = #tpu.pipeline_mode<synchronous>, transform_indices = @transform_3, window_bounds = array<i64: 512, 1024>}, {pipeline_mode = #tpu.pipeline_mode<synchronous>, transform_indices = @transform_4, window_bounds = array<i64: 1, 1024>}, {pipeline_mode = #tpu.pipeline_mode<synchronous>, transform_indices = @transform_5, window_bounds = array<i64: 1024, 896>}, {pipeline_mode = #tpu.pipeline_mode<synchronous>, transform_indices = @transform_6, window_bounds = array<i64: 1, 896>}, {transform_indices = @transform_7, window_bounds = array<i64: 128, 896>}]} {
    %c0 = arith.constant 0 : index
    %c0_0 = arith.constant 0 : index
    %0 = vector.load %arg1[%c0, %c0_0] : memref<128x128xbf16, #tpu.memory_space<vmem>>, vector<128x128xbf16>
    %c0_1 = arith.constant 0 : index
    %c0_2 = arith.constant 0 : index
    %1 = vector.load %arg2[%c0_1, %c0_2] : memref<128x512xbf16, #tpu.memory_space<vmem>>, vector<128x512xbf16>
    %cst = arith.constant dense<0.000000e+00> : vector<128x512xf32>
    %2 = tpu.matmul %0, %1, %cst {dimension_numbers = #tpu.dot_dimension_numbers<[1], [0], [0], [1], [0, 0, 1, 1], [], []>} : vector<128x128xbf16>, vector<128x512xbf16>, vector<128x512xf32> -> vector<128x512xf32>
    %c0_3 = arith.constant 0 : index
    %c0_4 = arith.constant 0 : index
    %3 = vector.load %arg3[%c0_3, %c0_4] : memref<1x512xf32, #tpu.memory_space<vmem>>, vector<1x512xf32>
    %4 = vector.broadcast %3 : vector<1x512xf32> to vector<128x512xf32>
    %5 = arith.addf %2, %4 : vector<128x512xf32>
    %cst_5 = arith.constant 0.000000e+00 : f32
    %6 = vector.broadcast %cst_5 : f32 to vector<128x512xf32>
    %7 = arith.maximumf %5, %6 : vector<128x512xf32>
    %8 = arith.truncf %7 : vector<128x512xf32> to vector<128x512xbf16>
    %c0_6 = arith.constant 0 : index
    %c0_7 = arith.constant 0 : index
    %9 = vector.load %arg4[%c0_6, %c0_7] : memref<512x1024xbf16, #tpu.memory_space<vmem>>, vector<512x1024xbf16>
    %cst_8 = arith.constant dense<0.000000e+00> : vector<128x1024xf32>
    %10 = tpu.matmul %8, %9, %cst_8 {dimension_numbers = #tpu.dot_dimension_numbers<[1], [0], [0], [1], [0, 0, 1, 1], [], []>} : vector<128x512xbf16>, vector<512x1024xbf16>, vector<128x1024xf32> -> vector<128x1024xf32>
    %c0_9 = arith.constant 0 : index
    %c0_10 = arith.constant 0 : index
    %11 = vector.load %arg5[%c0_9, %c0_10] : memref<1x1024xf32, #tpu.memory_space<vmem>>, vector<1x1024xf32>
    %12 = vector.broadcast %11 : vector<1x1024xf32> to vector<128x1024xf32>
    %13 = arith.addf %10, %12 : vector<128x1024xf32>
    %cst_11 = arith.constant 0.000000e+00 : f32
    %14 = vector.broadcast %cst_11 : f32 to vector<128x1024xf32>
    %15 = arith.maximumf %13, %14 : vector<128x1024xf32>
    %16 = arith.truncf %15 : vector<128x1024xf32> to vector<128x1024xbf16>
    %c0_12 = arith.constant 0 : index
    %c0_13 = arith.constant 0 : index
    %17 = vector.load %arg6[%c0_12, %c0_13] : memref<1024x896xbf16, #tpu.memory_space<vmem>>, vector<1024x896xbf16>
    %cst_14 = arith.constant dense<0.000000e+00> : vector<128x896xf32>
    %18 = tpu.matmul %16, %17, %cst_14 {dimension_numbers = #tpu.dot_dimension_numbers<[1], [0], [0], [1], [0, 0, 1, 1], [], []>} : vector<128x1024xbf16>, vector<1024x896xbf16>, vector<128x896xf32> -> vector<128x896xf32>
    %c0_15 = arith.constant 0 : index
    %c0_16 = arith.constant 0 : index
    %19 = vector.load %arg7[%c0_15, %c0_16] : memref<1x896xf32, #tpu.memory_space<vmem>>, vector<1x896xf32>
    %20 = vector.broadcast %19 : vector<1x896xf32> to vector<128x896xf32>
    %21 = arith.addf %18, %20 : vector<128x896xf32>
    %22 = math.tanh %21 : vector<128x896xf32>
    %c0_17 = arith.constant 0 : index
    %c0_18 = arith.constant 0 : index
    %23 = vector.load %arg8[%c0_17, %c0_18] : memref<128x896xf32, #tpu.memory_space<vmem>>, vector<128x896xf32>
    tpu.vector_store %arg8[%c0_17, %c0_18], %22 {strides = array<i32>} : memref<128x896xf32, #tpu.memory_space<vmem>>, vector<128x896xf32>,
    return
  }
  func.func @transform_0(%arg0: i32) -> (i32, i32) {
    %c0_i32 = arith.constant 0 : i32
    %c0_i32_0 = arith.constant 0 : i32
    return %arg0, %c0_i32 : i32, i32
  }
  func.func @transform_1(%arg0: i32) -> (i32, i32) {
    %c0_i32 = arith.constant 0 : i32
    %c0_i32_0 = arith.constant 0 : i32
    %c0_i32_1 = arith.constant 0 : i32
    return %c0_i32, %c0_i32_0 : i32, i32
  }
  func.func @transform_2(%arg0: i32) -> (i32, i32) {
    %c0_i32 = arith.constant 0 : i32
    %c0_i32_0 = arith.constant 0 : i32
    %c0_i32_1 = arith.constant 0 : i32
    return %c0_i32, %c0_i32_0 : i32, i32
  }
  func.func @transform_3(%arg0: i32) -> (i32, i32) {
    %c0_i32 = arith.constant 0 : i32
    %c0_i32_0 = arith.constant 0 : i32
    %c0_i32_1 = arith.constant 0 : i32
    return %c0_i32, %c0_i32_0 : i32, i32
  }
  func.func @transform_4(%arg0: i32) -> (i32, i32) {
    %c0_i32 = arith.constant 0 : i32
    %c0_i32_0 = arith.constant 0 : i32
    %c0_i32_1 = arith.constant 0 : i32
    return %c0_i32, %c0_i32_0 : i32, i32
  }
  func.func @transform_5(%arg0: i32) -> (i32, i32) {
    %c0_i32 = arith.constant 0 : i32
    %c0_i32_0 = arith.constant 0 : i32
    %c0_i32_1 = arith.constant 0 : i32
    return %c0_i32, %c0_i32_0 : i32, i32
  }
  func.func @transform_6(%arg0: i32) -> (i32, i32) {
    %c0_i32 = arith.constant 0 : i32
    %c0_i32_0 = arith.constant 0 : i32
    %c0_i32_1 = arith.constant 0 : i32
    return %c0_i32, %c0_i32_0 : i32, i32
  }
  func.func @transform_7(%arg0: i32) -> (i32, i32) {
    %c0_i32 = arith.constant 0 : i32
    %c0_i32_0 = arith.constant 0 : i32
    return %arg0, %c0_i32 : i32, i32
  }
}

</mosaic_0001>

<bundles_post_ra>
// kernel: tpu_custom_call.1
= control target key start
LH: loop header
LB: loop body
LE: loop exit
PB: predicated region body
PF: predicated region fallthrough
CT: control target
= control target key end

     0   :  { %12 = vsyncpa [#allocation3], 0  ;;  %s12962_s0 = inlined_call_operand.hbm [shape: bf16[128,128], index: 0, kind: input, shape index: {}]   ;;  %s12963_s1 = inlined_call_operand.hbm [shape: bf16[128,512], index: 1, kind: input, shape index: {}]   ;;  %s12964_s2 = inlined_call_operand.hbm [shape: f32[1,512], index: 2, kind: input, shape index: {}]   ;;  %s12965_s3 = inlined_call_operand.hbm [shape: bf16[512,1024], index: 3, kind: input, shape index: {}]   ;;  %s12966_s4 = inlined_call_operand.hbm [shape: f32[1,1024], index: 4, kind: input, shape index: {}]   ;;  %s12967_s5 = inlined_call_operand.hbm [shape: bf16[1024,896], index: 5, kind: input, shape index: {}]   ;;  %s12968_s6 = inlined_call_operand.hbm [shape: f32[1,896], index: 6, kind: input, shape index: {}]   ;;  %s12969_s7 = inlined_call_operand.hbm [shape: f32[128,896], index: 7, kind: output, shape index: {}]  }
   0x1   :  { %13 = vsyncpa [#allocation6], 0 }
   0x2   :  { %14 = vsyncpa [#allocation9], 0 }
   0x3   :  { %15 = vsyncpa [#allocation12], 0 }
   0x4   :  { %16 = vsyncpa [#allocation4], 0  ;;  %s10344_s24 = smov [#allocation5]  }
   0x5   :  { %s34_s25 = sshll.u32 %s10344_s24, 4  ;;  %s35_s25 = int_to_ptr.vmem [resolvable:$true] %s34_s25 }
   0x6   :  { %s10182_s26 = scalar_lea.vmem %s35_s25, 4096  ;;  %p10187_p1 = scmp.lt.s32.totalorder %s35_s25, %s35_s25 }
   0x7   :  { %p10183_p0 = scmp.ne.s32.totalorder %s35_s25, %s10182_s26  ;;  %p10188_p2 = scmp.lt.s32.totalorder %s10182_s26, %s10182_s26 }
   0x9   :  { %p10189_p3 = por %p10188_p2, %p10187_p1 }
   0xb   :  { %p10190_p4 = pnand %p10189_p3, %p10183_p0 }
   0xd   :  { %10193 = shalt.err (!%p10190_p4)
}
   0xe   :  { %s10345_s27 = smov 256   ;;  %s10346_s28 = smov 16  }
   0xf   :  { %40 = dma.hbm_to_vmem [thread:$0]  %s12963_s1, 4096, %s35_s25, [#allocation6], %s10345_s27, %s10345_s27, %s10346_s28  }
  0x10   :  { %s10347_s8 = smov [#allocation8]  }
  0x11   :  { %s56_s9 = sshll.u32 %s10347_s8, 4  ;;  %s57_s9 = int_to_ptr.vmem [resolvable:$true] %s56_s9 }
  0x12   :  { %s10202_s10 = scalar_lea.vmem %s57_s9, 32768  ;;  %p10207_p6 = scmp.lt.s32.totalorder %s57_s9, %s57_s9 }
  0x13   :  { %p10203_p5 = scmp.ne.s32.totalorder %s57_s9, %s10202_s10  ;;  %p10208_p7 = scmp.lt.s32.totalorder %s10202_s10, %s10202_s10 }
  0x15   :  { %p10209_p8 = por %p10208_p7, %p10207_p6 }
  0x17   :  { %p10210_p9 = pnand %p10209_p8, %p10203_p5 }
  0x19   :  { %10213 = shalt.err (!%p10210_p9)
}
  0x1a   :  { %s10348_s11 = smov 512   ;;  %s10349_s12 = smov 32  }
  0x1b   :  { %62 = dma.hbm_to_vmem [thread:$0]  %s12965_s3, 32768, %s57_s9, [#allocation9], %s10348_s11, %s10348_s11, %s10349_s12  }
  0x1c   :  { %s10350_s15 = smov [#allocation11]  }
  0x1d   :  { %s78_s16 = sshll.u32 %s10350_s15, 4  ;;  %s79_s16 = int_to_ptr.vmem [resolvable:$true] %s78_s16 }
  0x1e   :  { %s10222_s1 = scalar_lea.vmem %s79_s16, 57344  ;;  %p10227_p11 = scmp.lt.s32.totalorder %s79_s16, %s79_s16 }
  0x1f   :  { %p10223_p10 = scmp.ne.s32.totalorder %s79_s16, %s10222_s1  ;;  %p10228_p12 = scmp.lt.s32.totalorder %s10222_s1, %s10222_s1 }
  0x21   :  { %p10229_p13 = por %p10228_p12, %p10227_p11 }
  0x23   :  { %p10230_p0 = pnand %p10229_p13, %p10223_p10 }
  0x25   :  { %10233 = shalt.err (!%p10230_p0)
}
  0x26   :  { %s10351_s17 = smov 448   ;;  %s10352_s18 = smov 28  }
  0x27   :  { %84 = dma.hbm_to_vmem [thread:$0]  %s12967_s5, 57344, %s79_s16, [#allocation12], %s10351_s17, %s10351_s17, %s10352_s18  }
  0x28   :  { %s10353_s21 = smov [#allocation2]  }
  0x29   :  { %s22_s22 = sshll.u32 %s10353_s21, 4  ;;  %s23_s22 = int_to_ptr.vmem [resolvable:$true] %s22_s22 }
  0x2a   :  { %s10242_s3 = scalar_lea.vmem %s23_s22, 1024  ;;  %p10247_p2 = scmp.lt.s32.totalorder %s23_s22, %s23_s22 }
  0x2b   :  { %p10243_p1 = scmp.ne.s32.totalorder %s23_s22, %s10242_s3  ;;  %p10248_p3 = scmp.lt.s32.totalorder %s10242_s3, %s10242_s3 }
  0x2d   :  { %p10249_p4 = por %p10248_p3, %p10247_p2 }
  0x2f   :  { %p10250_p5 = pnand %p10249_p4, %p10243_p1 }
  0x31   :  { %10253 = shalt.err (!%p10250_p5)
}
  0x32   :  { %s10354_s23 = smov 64   ;;  %s10355_s24 = smov 4  }
  0x33   :  { %28 = dma.hbm_to_vmem [thread:$0]  %s12962_s0, 1024, %s23_s22, [#allocation3], %s10354_s23, %s10354_s23, %s10355_s24  }
  0x34   :  { %s10356_s27 = smov [#allocation7]   ;;  %s10357_s29 = smov [#allocation10]  }
  0x35   :  { %s47_s28 = sshll.u32 %s10356_s27, 4  ;;  %s69_s5 = sshll.u32 %s10357_s29, 4  ;;  %s48_s28 = int_to_ptr.vmem [resolvable:$true] %s47_s28  ;;  %s70_s5 = int_to_ptr.vmem [resolvable:$true] %s69_s5 }
  0x36   :  { %s10262_s30 = scalar_lea.vmem %s48_s28, 64  ;;  %p10267_p7 = scmp.lt.s32.totalorder %s48_s28, %s48_s28 }
  0x37   :  { %p10263_p6 = scmp.ne.s32.totalorder %s48_s28, %s10262_s30  ;;  %p10268_p8 = scmp.lt.s32.totalorder %s10262_s30, %s10262_s30 }
  0x39   :  { %p10269_p9 = por %p10268_p8, %p10267_p7 }
  0x3b   :  { %p10270_p10 = pnand %p10269_p9, %p10263_p6 }
  0x3d   :  { %10273 = shalt.err (!%p10270_p10)
}
  0x3e   :  { %50 = dma.hbm_to_vmem [thread:$0]  %s12964_s2, 64, %s48_s28, [#allocation6]  }
  0x3f   :  { %s10282_s10 = scalar_lea.vmem %s70_s5, 128  ;;  %p10287_p12 = scmp.lt.s32.totalorder %s70_s5, %s70_s5 }
  0x40   :  { %p10283_p11 = scmp.ne.s32.totalorder %s70_s5, %s10282_s10  ;;  %p10288_p13 = scmp.lt.s32.totalorder %s10282_s10, %s10282_s10 }
  0x42   :  { %p10289_p0 = por %p10288_p13, %p10287_p12 }
  0x44   :  { %p10290_p1 = pnand %p10289_p0, %p10283_p11 }
  0x46   :  { %10293 = shalt.err (!%p10290_p1)
}
  0x47   :  { %72 = dma.hbm_to_vmem [thread:$0]  %s12966_s4, 128, %s70_s5, [#allocation9]  }
  0x48   :  { %s10358_s12 = smov [#allocation13]  }
  0x49   :  { %s91_s13 = sshll.u32 %s10358_s12, 4  ;;  %s92_s13 = int_to_ptr.vmem [resolvable:$true] %s91_s13 }
  0x4a   :  { %s10302_s14 = scalar_lea.vmem %s92_s13, 112  ;;  %s10306_s15 = scalar_lea.vmem %s92_s13, 128 }
  0x4b   :  { %p10303_p2 = scmp.ne.s32.totalorder %s92_s13, %s10302_s14  ;;  %p10307_p3 = scmp.lt.s32.totalorder %s92_s13, %s92_s13 }
  0x4c   :  { %p10308_p4 = scmp.lt.s32.totalorder %s10306_s15, %s10302_s14 }
  0x4e   :  { %p10309_p5 = por %p10308_p4, %p10307_p3 }
  0x50   :  { %p10310_p6 = pnand %p10309_p5, %p10303_p2 }
  0x52   :  { %10313 = shalt.err (!%p10310_p6)
}
  0x53   :  { %94 = dma.hbm_to_vmem [thread:$0]  %s12968_s6, 112, %s92_s13, [#allocation12]  }
  0x54   :  { %10334 = dma.done.wait [#allocation3], 1024  }
  0x55   :  { %10335 = vsyncadd [#allocation3], 4294966272 }
  0x56   :  { %10336 = dma.done.wait [#allocation6], 4160  }
  0x57   :  { %10337 = vsyncadd [#allocation6], 4294963136 }
  0x58   :  { %10338 = dma.done.wait [#allocation9], 32896  }
  0x59   :  { %10339 = vsyncadd [#allocation9], 4294934400 }
  0x5a   :  { %10340 = dma.done.wait [#allocation12], 57456  }
  0x5b   :  { %10341 = vsyncadd [#allocation12], 4294909840  ;;  %v10359_v0 = vmov 0   ;;  %v9251_v1 = vld [vmem:[#allocation5 + $0xe4] ss:$16 sps:$4 sm:$0xff]   ;;  %v9300_v54 = vld [vmem:[#allocation2 + $0x8] sm:$0xff]  }
  0x5c   :  { %427 = vmatprep.mubr.bf16.mxu0 %v10359_v0  ;;  %540 = vmatprep.mubr.bf16.mxu1 %v10359_v0  ;;  %v9253_v2 = vld [vmem:[#allocation5 + $0xec] ss:$16 sps:$4 sm:$0xff]   ;;  %v9255_v3 = vld [vmem:[#allocation5 + $0xe0] ss:$16 sps:$4 sm:$0xff]   ;;  %v9256_v4 = vld [vmem:[#allocation5 + $0xe8] ss:$16 sps:$4 sm:$0xff]  }
  0x5d   :  { %395 = vmatprep.subr.bf16.mxu0 %v9251_v1  ;;  %508 = vmatprep.subr.bf16.mxu1 %v9253_v2  ;;  %v9257_v5 = vld [vmem:[#allocation5 + $0xc4] ss:$16 sps:$4 sm:$0xff]   ;;  %v9259_v6 = vld [vmem:[#allocation5 + $0xcc] ss:$16 sps:$4 sm:$0xff]   ;;  %v9261_v7 = vld [vmem:[#allocation5 + $0xc0] ss:$16 sps:$4 sm:$0xff]  }
  0x5e   :  { %396 = vmatpush1.bf16.msra.mxu0 %v9255_v3  ;;  %509 = vmatpush1.bf16.msra.mxu1 %v9256_v4  ;;  %v9262_v8 = vld [vmem:[#allocation5 + $0xc8] ss:$16 sps:$4 sm:$0xff]   ;;  %v9263_v9 = vld [vmem:[#allocation5 + $0xa4] ss:$16 sps:$4 sm:$0xff]   ;;  %v9265_v10 = vld [vmem:[#allocation5 + $0xac] ss:$16 sps:$4 sm:$0xff]  }
  0x5f   :  { %397 = vmatprep.subr.bf16.mxu0 %v9257_v5  ;;  %510 = vmatprep.subr.bf16.mxu1 %v9259_v6  ;;  %v9267_v11 = vld [vmem:[#allocation5 + $0xa0] ss:$16 sps:$4 sm:$0xff]   ;;  %v9268_v12 = vld [vmem:[#allocation5 + $0xa8] ss:$16 sps:$4 sm:$0xff]   ;;  %v9269_v13 = vld [vmem:[#allocation5 + $0x84] ss:$16 sps:$4 sm:$0xff]  }
  0x60   :  { %v9271_v14 = vld [vmem:[#allocation5 + $0x8c] ss:$16 sps:$4 sm:$0xff]   ;;  %v9273_v15 = vld [vmem:[#allocation5 + $0x80] ss:$16 sps:$4 sm:$0xff]   ;;  %v9274_v16 = vld [vmem:[#allocation5 + $0x88] ss:$16 sps:$4 sm:$0xff]  }
  0x61   :  { %v9275_v17 = vld [vmem:[#allocation5 + $0x64] ss:$16 sps:$4 sm:$0xff]   ;;  %v9277_v18 = vld [vmem:[#allocation5 + $0x6c] ss:$16 sps:$4 sm:$0xff]   ;;  %v9279_v19 = vld [vmem:[#allocation5 + $0x60] ss:$16 sps:$4 sm:$0xff]  }
  0x62   :  { %398 = vmatpush1.bf16.msra.mxu0 %v9261_v7  ;;  %511 = vmatpush1.bf16.msra.mxu1 %v9262_v8  ;;  %v9280_v20 = vld [vmem:[#allocation5 + $0x68] ss:$16 sps:$4 sm:$0xff]   ;;  %v9281_v21 = vld [vmem:[#allocation5 + $0x44] ss:$16 sps:$4 sm:$0xff]   ;;  %v9283_v22 = vld [vmem:[#allocation5 + $0x4c] ss:$16 sps:$4 sm:$0xff]  }
  0x63   :  { %399 = vmatprep.subr.bf16.mxu0 %v9263_v9  ;;  %512 = vmatprep.subr.bf16.mxu1 %v9265_v10  ;;  %v9285_v23 = vld [vmem:[#allocation5 + $0x40] ss:$16 sps:$4 sm:$0xff]   ;;  %v9286_v24 = vld [vmem:[#allocation5 + $0x48] ss:$16 sps:$4 sm:$0xff]   ;;  %v9287_v25 = vld [vmem:[#allocation5 + $0x24] ss:$16 sps:$4 sm:$0xff]  }
  0x64   :  { %v9289_v26 = vld [vmem:[#allocation5 + $0x2c] ss:$16 sps:$4 sm:$0xff]   ;;  %v9291_v27 = vld [vmem:[#allocation5 + $0x20] ss:$16 sps:$4 sm:$0xff]   ;;  %v9292_v28 = vld [vmem:[#allocation5 + $0x28] ss:$16 sps:$4 sm:$0xff]  }
  0x65   :  { %v9293_v29 = vld [vmem:[#allocation5 + $0x4] ss:$16 sps:$4 sm:$0xff]   ;;  %v9295_v30 = vld [vmem:[#allocation5 + $0xc] ss:$16 sps:$4 sm:$0xff]   ;;  %v9297_v31 = vld [vmem:[#allocation5] ss:$16 sps:$4 sm:$0xff]  }
  0x66   :  { %400 = vmatpush1.bf16.msra.mxu0 %v9267_v11  ;;  %513 = vmatpush1.bf16.msra.mxu1 %v9268_v12  ;;  %v9298_v32 = vld [vmem:[#allocation5 + $0x8] ss:$16 sps:$4 sm:$0xff]   ;;  %v9299_v33 = vld [vmem:[#allocation2] sm:$0xff]   ;;  %v9301_v6 = vld [vmem:[#allocation2 + $0x10] sm:$0xff]   ;;  %s10360_s4 = smov [#allocation14]  }
  0x67   :  { %401 = vmatprep.subr.bf16.mxu0 %v9269_v13  ;;  %514 = vmatprep.subr.bf16.mxu1 %v9271_v14  ;;  %v773_v34 = vld [vmem:[#allocation8 + $0x1c0] sm:$0xff]  ;;  %s8217_s6 = sshll.u32 %s10360_s4, 4  ;;  %s8218_s6 = int_to_ptr.vmem [resolvable:$true] %s8217_s6 }
  0x68   :  { %v777_v35 = vld [vmem:[#allocation8 + $0x1e0] sm:$0xff]  ;;  %s10314_s1 = scalar_lea.vmem %s8218_s6, 14336  ;;  %p10319_p8 = scmp.lt.s32.totalorder %s8218_s6, %s8218_s6 }
  0x69   :  { %v8329_v36 = vcombine.high %v773_v34, %v777_v35  ;;  %v901_v37 = vld [vmem:[#allocation8 + $0x5c0] sm:$0xff]  ;;  %v8328_v44 = vcombine.low %v773_v34, %v777_v35  ;;  %p10315_p7 = scmp.ne.s32.totalorder %s8218_s6, %s10314_s1  ;;  %p10320_p9 = scmp.lt.s32.totalorder %s10314_s1, %s10314_s1 }
  0x6a   :  { %402 = vmatpush1.bf16.msra.mxu0 %v9273_v15  ;;  %515 = vmatpush1.bf16.msra.mxu1 %v9274_v16  ;;  %v905_v38 = vld [vmem:[#allocation8 + $0x5e0] sm:$0xff] }
  0x6b   :  { %403 = vmatprep.subr.bf16.mxu0 %v9275_v17  ;;  %516 = vmatprep.subr.bf16.mxu1 %v9277_v18  ;;  %v765_v39 = vld [vmem:[#allocation8 + $0x180] sm:$0xff]  ;;  %v8457_v40 = vcombine.high %v901_v37, %v905_v38  ;;  %v8456_v45 = vcombine.low %v901_v37, %v905_v38  ;;  %p10321_p10 = por %p10320_p9, %p10319_p8 }
  0x6c   :  { %v769_v41 = vld [vmem:[#allocation8 + $0x1a0] sm:$0xff] }
  0x6d   :  { %v893_v42 = vld [vmem:[#allocation8 + $0x580] sm:$0xff]  ;;  %v8321_v46 = vcombine.high %v765_v39, %v769_v41  ;;  %v8320_v52 = vcombine.low %v765_v39, %v769_v41  ;;  %p10322_p11 = pnand %p10321_p10, %p10315_p7 }
  0x6e   :  { %404 = vmatpush1.bf16.msra.mxu0 %v9279_v19  ;;  %517 = vmatpush1.bf16.msra.mxu1 %v9280_v20  ;;  %v897_v43 = vld [vmem:[#allocation8 + $0x5a0] sm:$0xff] }
  0x6f   :  { %405 = vmatprep.subr.bf16.mxu0 %v9281_v21  ;;  %518 = vmatprep.subr.bf16.mxu1 %v9283_v22  ;;  %v8449_v47 = vcombine.high %v893_v42, %v897_v43  ;;  %v757_v48 = vld [vmem:[#allocation8 + $0x140] sm:$0xff]  ;;  %v8448_v53 = vcombine.low %v893_v42, %v897_v43 }
  0x70   :  { %v761_v49 = vld [vmem:[#allocation8 + $0x160] sm:$0xff] }
  0x71   :  { %v885_v50 = vld [vmem:[#allocation8 + $0x540] sm:$0xff]  ;;  %v8313_v55 = vcombine.high %v757_v48, %v761_v49  ;;  %v8312_v61 = vcombine.low %v757_v48, %v761_v49 }
  0x72   :  { %406 = vmatpush1.bf16.msra.mxu0 %v9285_v23  ;;  %519 = vmatpush1.bf16.msra.mxu1 %v9286_v24  ;;  %v889_v51 = vld [vmem:[#allocation8 + $0x560] sm:$0xff]  ;;  %v9302_v23 = vld [vmem:[#allocation2 + $0x18] sm:$0xff]  }
  0x73   :  { %407 = vmatprep.subr.bf16.mxu0 %v9287_v25  ;;  %520 = vmatprep.subr.bf16.mxu1 %v9289_v26  ;;  %v8441_v56 = vcombine.high %v885_v50, %v889_v51  ;;  %v749_v57 = vld [vmem:[#allocation8 + $0x100] sm:$0xff]  ;;  %v8440_v62 = vcombine.low %v885_v50, %v889_v51 }
  0x74   :  { %v753_v58 = vld [vmem:[#allocation8 + $0x120] sm:$0xff] }
  0x75   :  { %v877_v59 = vld [vmem:[#allocation8 + $0x500] sm:$0xff]  ;;  %v8305_v63 = vcombine.high %v749_v57, %v753_v58  ;;  %v8304_v7 = vcombine.low %v749_v57, %v753_v58 }
  0x76   :  { %408 = vmatpush1.bf16.msra.mxu0 %v9291_v27  ;;  %521 = vmatpush1.bf16.msra.mxu1 %v9292_v28  ;;  %v881_v60 = vld [vmem:[#allocation8 + $0x520] sm:$0xff] }
  0x77   :  { %409 = vmatprep.subr.bf16.mxu0 %v9293_v29  ;;  %522 = vmatprep.subr.bf16.mxu1 %v9295_v30  ;;  %v8433_v1 = vcombine.high %v877_v59, %v881_v60  ;;  %v741_v2 = vld [vmem:[#allocation8 + $0xc0] sm:$0xff]  ;;  %v8432_v8 = vcombine.low %v877_v59, %v881_v60 }
  0x78   :  { %v745_v3 = vld [vmem:[#allocation8 + $0xe0] sm:$0xff] }
  0x79   :  { %v869_v4 = vld [vmem:[#allocation8 + $0x4c0] sm:$0xff]  ;;  %v8297_v10 = vcombine.high %v741_v2, %v745_v3  ;;  %v8296_v15 = vcombine.low %v741_v2, %v745_v3 }
  0x7a   :  { %410 = vmatpush1.bf16.msra.mxu0 %v9297_v31  ;;  %523 = vmatpush1.bf16.msra.mxu1 %v9298_v32  ;;  %v873_v5 = vld [vmem:[#allocation8 + $0x4e0] sm:$0xff] }
  0x7b   :  { %2295 = vmatprep.subr.bf16.mxu0 %v8329_v36  ;;  %2408 = vmatprep.subr.bf16.mxu1 %v8457_v40  ;;  %v733_v9 = vld [vmem:[#allocation8 + $0x80] sm:$0xff]  ;;  %v8425_v11 = vcombine.high %v869_v4, %v873_v5  ;;  %v8424_v16 = vcombine.low %v869_v4, %v873_v5 }
  0x7c   :  { %v737_v12 = vld [vmem:[#allocation8 + $0xa0] sm:$0xff] }
  0x7d   :  { %428 = vmatmul.mubr.bf16.vlgmr.msra.gmra.mxu0 %v9299_v33  ;;  %541 = vmatmul.mubr.bf16.vlgmr.msra.gmra.mxu1 %v9299_v33  ;;  %v861_v13 = vld [vmem:[#allocation8 + $0x480] sm:$0xff]  ;;  %v8289_v21 = vcombine.high %v733_v9, %v737_v12  ;;  %v8288_v24 = vcombine.low %v733_v9, %v737_v12 }
  0x7e   :  { %437 = vmatprep.mubr.bf16.mxu0 %v10359_v0  ;;  %550 = vmatprep.mubr.bf16.mxu1 %v10359_v0  ;;  %v865_v14 = vld [vmem:[#allocation8 + $0x4a0] sm:$0xff] }
  0x7f   :  { %2296 = vmatpush1.bf16.msra.mxu0 %v8328_v44  ;;  %2409 = vmatpush1.bf16.msra.mxu1 %v8456_v45  ;;  %v725_v17 = vld [vmem:[#allocation8 + $0x40] sm:$0xff]  ;;  %v8417_v22 = vcombine.high %v861_v13, %v865_v14  ;;  %v8416_v25 = vcombine.low %v861_v13, %v865_v14 }
  0x80   :  { %2297 = vmatprep.subr.bf16.mxu0 %v8321_v46  ;;  %2410 = vmatprep.subr.bf16.mxu1 %v8449_v47  ;;  %v729_v18 = vld [vmem:[#allocation8 + $0x60] sm:$0xff] }
  0x81   :  { %v853_v19 = vld [vmem:[#allocation8 + $0x440] sm:$0xff]  ;;  %v8281_v30 = vcombine.high %v725_v17, %v729_v18  ;;  %v8280_v32 = vcombine.low %v725_v17, %v729_v18  ;;  %v9306_v18 = vld [vmem:[#allocation2 + $0x38] sm:$0xff]  }
  0x82   :  { %v857_v20 = vld [vmem:[#allocation8 + $0x460] sm:$0xff] }
  0x83   :  { %2298 = vmatpush1.bf16.msra.mxu0 %v8320_v52  ;;  %2411 = vmatpush1.bf16.msra.mxu1 %v8448_v53  ;;  %v717_v26 = vld [vmem:[#allocation8] sm:$0xff]  ;;  %v8409_v31 = vcombine.high %v853_v19, %v857_v20  ;;  %v8408_v33 = vcombine.low %v853_v19, %v857_v20 }
  0x84   :  { %2299 = vmatprep.subr.bf16.mxu0 %v8313_v55  ;;  %2412 = vmatprep.subr.bf16.mxu1 %v8441_v56  ;;  %v721_v27 = vld [vmem:[#allocation8 + $0x20] sm:$0xff] }
  0x85   :  { %438 = vmatmul.mubr.bf16.gmra.mxu0 %v9300_v54  ;;  %551 = vmatmul.mubr.bf16.gmra.mxu1 %v9300_v54  ;;  %v845_v28 = vld [vmem:[#allocation8 + $0x400] sm:$0xff]  ;;  %v8273_v38 = vcombine.high %v717_v26, %v721_v27  ;;  %v8272_v41 = vcombine.low %v717_v26, %v721_v27 }
  0x86   :  { %447 = vmatprep.mubr.bf16.mxu0 %v10359_v0  ;;  %560 = vmatprep.mubr.bf16.mxu1 %v10359_v0  ;;  %v849_v29 = vld [vmem:[#allocation8 + $0x420] sm:$0xff] }
  0x87   :  { %2300 = vmatpush1.bf16.msra.mxu0 %v8312_v61  ;;  %2413 = vmatpush1.bf16.msra.mxu1 %v8440_v62  ;;  %v837_v34 = vld [vmem:[#allocation8 + $0x3c0] sm:$0xff]  ;;  %v8401_v39 = vcombine.high %v845_v28, %v849_v29  ;;  %v8400_v42 = vcombine.low %v845_v28, %v849_v29 }
  0x88   :  { %2301 = vmatprep.subr.bf16.mxu0 %v8305_v63  ;;  %2414 = vmatprep.subr.bf16.mxu1 %v8433_v1  ;;  %v841_v35 = vld [vmem:[#allocation8 + $0x3e0] sm:$0xff] }
  0x89   :  { %v965_v36 = vld [vmem:[#allocation8 + $0x7c0] sm:$0xff]  ;;  %v8393_v47 = vcombine.high %v837_v34, %v841_v35  ;;  %v8392_v49 = vcombine.low %v837_v34, %v841_v35 }
  0x8a   :  { %v969_v37 = vld [vmem:[#allocation8 + $0x7e0] sm:$0xff] }
  0x8b   :  { %2302 = vmatpush1.bf16.msra.mxu0 %v8304_v7  ;;  %2415 = vmatpush1.bf16.msra.mxu1 %v8432_v8  ;;  %v9303_v40 = vld [vmem:[#allocation2 + $0x20] sm:$0xff]   ;;  %v8521_v48 = vcombine.high %v965_v36, %v969_v37  ;;  %v8520_v50 = vcombine.low %v965_v36, %v969_v37  ;;  %v9304_v57 = vld [vmem:[#allocation2 + $0x28] sm:$0xff]  }
  0x8c   :  { %2303 = vmatprep.subr.bf16.mxu0 %v8297_v10  ;;  %2416 = vmatprep.subr.bf16.mxu1 %v8425_v11  ;;  %v829_v43 = vld [vmem:[#allocation8 + $0x380] sm:$0xff]  ;;  %v9305_v11 = vld [vmem:[#allocation2 + $0x30] sm:$0xff]  }
  0x8d   :  { %448 = vmatmul.mubr.bf16.gmra.mxu0 %v9301_v6  ;;  %561 = vmatmul.mubr.bf16.gmra.mxu1 %v9301_v6  ;;  %v833_v44 = vld [vmem:[#allocation8 + $0x3a0] sm:$0xff] }
  0x8e   :  { %457 = vmatprep.mubr.bf16.mxu0 %v10359_v0  ;;  %570 = vmatprep.mubr.bf16.mxu1 %v10359_v0  ;;  %v957_v45 = vld [vmem:[#allocation8 + $0x780] sm:$0xff]  ;;  %v8385_v55 = vcombine.high %v829_v43, %v833_v44  ;;  %v8384_v58 = vcombine.low %v829_v43, %v833_v44  ;;  %v10442_v43 = vld [vmem:[#allocation8 + $0x1e8] sm:$0xff] }
  0x8f   :  { %2304 = vmatpush1.bf16.msra.mxu0 %v8296_v15  ;;  %2417 = vmatpush1.bf16.msra.mxu1 %v8424_v16  ;;  %v961_v46 = vld [vmem:[#allocation8 + $0x7a0] sm:$0xff]  ;;  %v10444_v44 = vld [vmem:[#allocation8 + $0x5c8] sm:$0xff] }
  0x90   :  { %2305 = vmatprep.subr.bf16.mxu0 %v8289_v21  ;;  %2418 = vmatprep.subr.bf16.mxu1 %v8417_v22  ;;  %v821_v51 = vld [vmem:[#allocation8 + $0x340] sm:$0xff]  ;;  %v8513_v56 = vcombine.high %v957_v45, %v961_v46  ;;  %v8512_v59 = vcombine.low %v957_v45, %v961_v46  ;;  %v10448_v46 = vld [vmem:[#allocation8 + $0x5e8] sm:$0xff] }
  0x91   :  { %v825_v52 = vld [vmem:[#allocation8 + $0x360] sm:$0xff] }
  0x92   :  { %v949_v53 = vld [vmem:[#allocation8 + $0x740] sm:$0xff]  ;;  %v8377_v1 = vcombine.high %v821_v51, %v825_v52  ;;  %v8376_v3 = vcombine.low %v821_v51, %v825_v52  ;;  %v165_v52 = vld [vmem:[#allocation7] sm:$0xf] }
  0x93   :  { %2306 = vmatpush1.bf16.msra.mxu0 %v8288_v24  ;;  %2419 = vmatpush1.bf16.msra.mxu1 %v8416_v25  ;;  %v953_v54 = vld [vmem:[#allocation8 + $0x760] sm:$0xff] }
  0x94   :  { %2307 = vmatprep.subr.bf16.mxu0 %v8281_v30  ;;  %2420 = vmatprep.subr.bf16.mxu1 %v8409_v31  ;;  %v813_v60 = vld [vmem:[#allocation8 + $0x300] sm:$0xff]  ;;  %v8505_v2 = vcombine.high %v949_v53, %v953_v54  ;;  %v8504_v4 = vcombine.low %v949_v53, %v953_v54 }
  0x95   :  { %458 = vmatmul.mubr.bf16.gmra.mxu0 %v9302_v23  ;;  %571 = vmatmul.mubr.bf16.gmra.mxu1 %v9302_v23  ;;  %v817_v61 = vld [vmem:[#allocation8 + $0x320] sm:$0xff] }
  0x96   :  { %467 = vmatprep.mubr.bf16.mxu0 %v10359_v0  ;;  %580 = vmatprep.mubr.bf16.mxu1 %v10359_v0  ;;  %v941_v62 = vld [vmem:[#allocation8 + $0x700] sm:$0xff]  ;;  %v8369_v9 = vcombine.high %v813_v60, %v817_v61  ;;  %v8368_v12 = vcombine.low %v813_v60, %v817_v61 }
  0x97   :  { %2308 = vmatpush1.bf16.msra.mxu0 %v8280_v32  ;;  %2421 = vmatpush1.bf16.msra.mxu1 %v8408_v33  ;;  %v945_v63 = vld [vmem:[#allocation8 + $0x720] sm:$0xff] }
  0x98   :  { %2309 = vmatprep.subr.bf16.mxu0 %v8273_v38  ;;  %2422 = vmatprep.subr.bf16.mxu1 %v8401_v39  ;;  %v805_v5 = vld [vmem:[#allocation8 + $0x2c0] sm:$0xff]  ;;  %v8497_v10 = vcombine.high %v941_v62, %v945_v63  ;;  %v8496_v13 = vcombine.low %v941_v62, %v945_v63 }
  0x99   :  { %v809_v6 = vld [vmem:[#allocation8 + $0x2e0] sm:$0xff] }
  0x9a   :  { %v933_v7 = vld [vmem:[#allocation8 + $0x6c0] sm:$0xff]  ;;  %v8361_v14 = vcombine.high %v805_v5, %v809_v6  ;;  %v8360_v16 = vcombine.low %v805_v5, %v809_v6 }
  0x9b   :  { %2310 = vmatpush1.bf16.msra.mxu0 %v8272_v41  ;;  %2423 = vmatpush1.bf16.msra.mxu1 %v8400_v42  ;;  %v937_v8 = vld [vmem:[#allocation8 + $0x6e0] sm:$0xff]  ;;  %v10440_v42 = vld [vmem:[#allocation8 + $0x1c8] sm:$0xff] }
  0x9c   :  { %2311 = vmatprep.subr.bf16.mxu0 %v8393_v47  ;;  %2424 = vmatprep.subr.bf16.mxu1 %v8521_v48  ;;  %v8489_v15 = vcombine.high %v933_v7, %v937_v8  ;;  %v8488_v17 = vcombine.low %v933_v7, %v937_v8  ;;  %v797_v19 = vld [vmem:[#allocation8 + $0x280] sm:$0xff]  ;;  %v8331_v45 = vcombine.high %v10440_v42, %v10442_v43 }
  0x9d   :  { %468 = vmatmul.mubr.bf16.gmra.mxu0 %v9303_v40  ;;  %581 = vmatmul.mubr.bf16.gmra.mxu1 %v9303_v40  ;;  %v801_v20 = vld [vmem:[#allocation8 + $0x2a0] sm:$0xff]  ;;  %v8330_v47 = vcombine.low %v10440_v42, %v10442_v43  ;;  %v8458_v48 = vcombine.low %v10444_v44, %v10448_v46 }
  0x9e   :  { %477 = vmatprep.mubr.bf16.mxu0 %v10359_v0  ;;  %590 = vmatprep.mubr.bf16.mxu1 %v10359_v0  ;;  %v925_v21 = vld [vmem:[#allocation8 + $0x680] sm:$0xff]  ;;  %v8353_v22 = vcombine.high %v797_v19, %v801_v20  ;;  %v8352_v24 = vcombine.low %v797_v19, %v801_v20 }
  0x9f   :  { %2312 = vmatpush2.bf16.msra.mxu0 %v8392_v49  ;;  %2425 = vmatpush2.bf16.msra.mxu1 %v8520_v50  ;;  %v929_v23 = vld [vmem:[#allocation8 + $0x6a0] sm:$0xff]  ;;  %v8459_v49 = vcombine.high %v10444_v44, %v10448_v46  ;;  %v167_v50 = vlaneseq }
  0xa0   :  { %2313 = vmatprep.subr.bf16.mxu0 %v8385_v55  ;;  %2426 = vmatprep.subr.bf16.mxu1 %v8513_v56  ;;  %v8480_v25 = vcombine.low %v925_v21, %v929_v23  ;;  %v8481_v26 = vcombine.high %v925_v21, %v929_v23  ;;  %v789_v27 = vld [vmem:[#allocation8 + $0x240] sm:$0xff] }
  0xa1   :  { %v793_v28 = vld [vmem:[#allocation8 + $0x260] sm:$0xff]  ;;  %v10456_v51 = vshrl.u32 %v167_v50, 7  ;;  %v10522_v50 = vld [vmem:[#allocation8 + $0x568] sm:$0xff] }
  0xa2   :  { %v917_v29 = vld [vmem:[#allocation8 + $0x640] sm:$0xff]  ;;  %v8344_v31 = vcombine.low %v789_v27, %v793_v28 }
  0xa3   :  { %2314 = vmatpush2.bf16.msra.mxu0 %v8384_v58  ;;  %2427 = vmatpush2.bf16.msra.mxu1 %v8512_v59  ;;  %v921_v30 = vld [vmem:[#allocation8 + $0x660] sm:$0xff]  ;;  %13092 = vst [vmem:[#allocation20_spill] sm:$0xff] %v10456_v51  ;;  %v10459_v53 = vsub.s32 1, %v10456_v51  ;;  %v10462_v54 = vsub.s32 3, %v10456_v51  ;;  %v10465_v55 = vsub.s32 0, %v10456_v51  ;;  %v10468_v56 = vsub.s32 2, %v10456_v51 }
  0xa4   :  { %2315 = vmatprep.subr.bf16.mxu0 %v8377_v1  ;;  %2428 = vmatprep.subr.bf16.mxu1 %v8505_v2  ;;  %v8472_v32 = vcombine.low %v917_v29, %v921_v30  ;;  %v8473_v33 = vcombine.high %v917_v29, %v921_v30  ;;  %v781_v34 = vld [vmem:[#allocation8 + $0x200] sm:$0xff] }
  0xa5   :  { %478 = vmatmul.mubr.bf16.gmra.mxu0 %v9304_v57  ;;  %591 = vmatmul.mubr.bf16.gmra.mxu1 %v9304_v57  ;;  %v785_v35 = vld [vmem:[#allocation8 + $0x220] sm:$0xff]  ;;  %13093 = vst [vmem:[#allocation21_spill] sm:$0xff] %v10459_v53  ;;  %13094 = vst [vmem:[#allocation22_spill] sm:$0xff] %v10462_v54  ;;  %v10471_v59 = vrot.slane %v165_v52, %v10459_v53  ;;  %v10474_v60 = vrot.slane %v165_v52, %v10462_v54 }
  0xa6   :  { %487 = vmatprep.mubr.bf16.mxu0 %v10359_v0  ;;  %600 = vmatprep.mubr.bf16.mxu1 %v10359_v0  ;;  %v909_v36 = vld [vmem:[#allocation8 + $0x600] sm:$0xff]  ;;  %v8337_v37 = vcombine.high %v781_v34, %v785_v35  ;;  %v8336_v39 = vcombine.low %v781_v34, %v785_v35  ;;  %13095 = vst [vmem:[#allocation23_spill] sm:$0xff] %v10465_v55  ;;  %13096 = vst [vmem:[#allocation24_spill] sm:$0xff] %v10468_v56 }
  0xa7   :  { %2316 = vmatpush2.bf16.msra.mxu0 %v8376_v3  ;;  %2429 = vmatpush2.bf16.msra.mxu1 %v8504_v4  ;;  %v913_v38 = vld [vmem:[#allocation8 + $0x620] sm:$0xff]  ;;  %v10477_v61 = vrot.slane %v165_v52, %v10465_v55  ;;  %v10480_v62 = vrot.slane %v165_v52, %v10468_v56 }
  0xa8   :  { %2317 = vmatprep.subr.bf16.mxu0 %v8369_v9  ;;  %2430 = vmatprep.subr.bf16.mxu1 %v8497_v10  ;;  %v8464_v40 = vcombine.low %v909_v36, %v913_v38  ;;  %v8465_v41 = vcombine.high %v909_v36, %v913_v38  ;;  %v10511_v38 = vld [vmem:[#allocation8 + $0x148] sm:$0xff] }
  0xab   :  { %2318 = vmatpush2.bf16.msra.mxu0 %v8368_v12  ;;  %2431 = vmatpush2.bf16.msra.mxu1 %v8496_v13  ;;  %v10488_v12 = vld [vmem:[#allocation8 + $0x188] sm:$0xff] }
  0xac   :  { %2319 = vmatprep.subr.bf16.mxu0 %v8361_v14  ;;  %2432 = vmatprep.subr.bf16.mxu1 %v8489_v15  ;;  %v10490_v13 = vld [vmem:[#allocation8 + $0x1a8] sm:$0xff] }
  0xad   :  { %488 = vmatmul.mubr.bf16.gmra.mxu0 %v9305_v11  ;;  %601 = vmatmul.mubr.bf16.gmra.mxu1 %v9305_v11 }
  0xae   :  { %497 = vmatprep.mubr.bf16.mxu0 %v10359_v0  ;;  %610 = vmatprep.mubr.bf16.mxu1 %v10359_v0  ;;  %v8345_v0 = vcombine.high %v789_v27, %v793_v28 }
  0xaf   :  { %2320 = vmatpush2.bf16.msra.mxu0 %v8360_v16  ;;  %2433 = vmatpush2.bf16.msra.mxu1 %v8488_v17 }
  0xb0   :  { %2321 = vmatprep.subr.bf16.mxu0 %v8353_v22  ;;  %2434 = vmatprep.subr.bf16.mxu1 %v8481_v26 }
  0xb3   :  { %2322 = vmatpush2.bf16.msra.mxu0 %v8352_v24  ;;  %2435 = vmatpush2.bf16.msra.mxu1 %v8480_v25  ;;  %v10494_v24 = vld [vmem:[#allocation8 + $0x588] sm:$0xff] }
  0xb4   :  { %2323 = vmatprep.subr.bf16.mxu0 %v8345_v0  ;;  %2436 = vmatprep.subr.bf16.mxu1 %v8473_v33  ;;  %v10496_v25 = vld [vmem:[#allocation8 + $0x5a8] sm:$0xff] }
  0xb5   :  { %498 = vmatmul.mubr.bf16.gmra.mxu0 %v9306_v18  ;;  %611 = vmatmul.mubr.bf16.gmra.mxu1 %v9306_v18 }
  0xb7   :  { %2324 = vmatpush2.bf16.msra.mxu0 %v8344_v31  ;;  %2437 = vmatpush2.bf16.msra.mxu1 %v8472_v32  ;;  %v8323_v31 = vcombine.high %v10488_v12, %v10490_v13 }
  0xb8   :  { %2325 = vmatprep.subr.bf16.mxu0 %v8337_v37  ;;  %2438 = vmatprep.subr.bf16.mxu1 %v8465_v41  ;;  %v8451_v37 = vcombine.high %v10494_v24, %v10496_v25 }
  0xbb   :  { %2326 = vmatpush2.bf16.msra.mxu0 %v8336_v39  ;;  %2439 = vmatpush2.bf16.msra.mxu1 %v8464_v40 }
  0xbc   :  { %2521 = vmatprep.subr.bf16.mxu0 %v8331_v45  ;;  %2634 = vmatprep.subr.bf16.mxu1 %v8459_v49  ;;  %v10518_v45 = vld [vmem:[#allocation8 + $0x168] sm:$0xff] }
  0xbd   :  { %v10520_v49 = vld [vmem:[#allocation8 + $0x548] sm:$0xff] }
 0x13d   :  { %v429_v57 = vpop.f32.mrf.mxu0  ;;  %v542_v58 = vpop.f32.mrf.mxu1 }
 0x13e   :  { %v430_v8 = vadd.f32 %v429_v57, %v10477_v61  ;;  %v543_v9 = vadd.f32 %v542_v58, %v10480_v62 }
 0x13f   :  { %v431_v63 = vpop.f32.mrf.mxu0  ;;  %v544_v1 = vpop.f32.mrf.mxu1 }
 0x140   :  { %v432_v4 = vadd.f32 %v431_v63, %v10471_v59  ;;  %v545_v5 = vadd.f32 %v544_v1, %v10474_v60  ;;  %v621_v26 = vmax.f32 %v430_v8, 0.0  ;;  %v623_v27 = vmax.f32 %v543_v9, 0.0 }
 0x141   :  { %v433_v2 = vpop.f32.mrf.mxu0  ;;  %v546_v3 = vpop.f32.mrf.mxu1  ;;  %v8322_v1 = vcombine.low %v10488_v12, %v10490_v13  ;;  %v8450_v12 = vcombine.low %v10494_v24, %v10496_v25  ;;  %v8314_v13 = vcombine.low %v10511_v38, %v10518_v45 }
 0x142   :  { %v434_v6 = vadd.f32 %v433_v2, %v10477_v61  ;;  %v547_v7 = vadd.f32 %v546_v3, %v10480_v62  ;;  %v622_v20 = vmax.f32 %v432_v4, 0.0  ;;  %v624_v21 = vmax.f32 %v545_v5, 0.0  ;;  %v10530_v2 = vld [vmem:[#allocation8 + $0x108] sm:$0xff] }
 0x143   :  { %v435_v10 = vpop.f32.mrf.mxu0  ;;  %v548_v11 = vpop.f32.mrf.mxu1  ;;  %v10532_v3 = vld [vmem:[#allocation8 + $0x128] sm:$0xff] }
 0x144   :  { %v625_v14 = vmax.f32 %v434_v6, 0.0  ;;  %v627_v15 = vmax.f32 %v547_v7, 0.0  ;;  %v436_v16 = vadd.f32 %v435_v10, %v10471_v59  ;;  %v549_v17 = vadd.f32 %v548_v11, %v10474_v60  ;;  %v10534_v4 = vld [vmem:[#allocation8 + $0x508] sm:$0xff] }
 0x145   :  { %v439_v18 = vpop.f32.mrf.mxu0  ;;  %v552_v19 = vpop.f32.mrf.mxu1  ;;  %v10536_v5 = vld [vmem:[#allocation8 + $0x528] sm:$0xff] }
 0x146   :  { %v626_v22 = vmax.f32 %v436_v16, 0.0  ;;  %v628_v23 = vmax.f32 %v549_v17, 0.0  ;;  %v10504_v32 = vpack.c.bf16 %v625_v14, %v621_v26  ;;  %v10506_v33 = vpack.c.bf16 %v627_v15, %v623_v27 }
 0x147   :  { %v441_v28 = vpop.f32.mrf.mxu0  ;;  %v554_v29 = vpop.f32.mrf.mxu1  ;;  %v440_v52 = vadd.f32 %v439_v18, %v10477_v61  ;;  %v553_v57 = vadd.f32 %v552_v19, %v10480_v62  ;;  %v8315_v14 = vcombine.high %v10511_v38, %v10518_v45  ;;  %v8442_v17 = vcombine.low %v10520_v49, %v10522_v50 }
 0x148   :  { %v10498_v0 = vpack.c.bf16 %v626_v22, %v622_v20  ;;  %v10500_v30 = vpack.c.bf16 %v628_v23, %v624_v21  ;;  %v442_v34 = vadd.f32 %v441_v28, %v10471_v59  ;;  %v555_v39 = vadd.f32 %v554_v29, %v10474_v60  ;;  %v10569_v28 = vld [vmem:[#allocation8 + $0xc8] sm:$0xff] }
 0x149   :  { %v443_v35 = vpop.f32.mrf.mxu0  ;;  %v556_v36 = vpop.f32.mrf.mxu1  ;;  %v629_v16 = vmax.f32 %v440_v52, 0.0  ;;  %v631_v44 = vmax.f32 %v553_v57, 0.0  ;;  %v8443_v18 = vcombine.high %v10520_v49, %v10522_v50  ;;  %v8307_v21 = vcombine.high %v10530_v2, %v10532_v3  ;;  %v10588_v49 = vld [vmem:[#allocation8 + $0x88] sm:$0xff] }
 0x14a   :  { %v444_v40 = vadd.f32 %v443_v35, %v10477_v61  ;;  %v557_v41 = vadd.f32 %v556_v36, %v10480_v62  ;;  %2327 = vmatprep.mubr.bf16.mxu0 %v10498_v0  ;;  %2440 = vmatprep.mubr.bf16.mxu1 %v10500_v30  ;;  %v630_v15 = vmax.f32 %v442_v34, 0.0  ;;  %v632_v42 = vmax.f32 %v555_v39, 0.0  ;;  %v10576_v35 = vld [vmem:[#allocation8 + $0xe8] sm:$0xff] }
 0x14b   :  { %v445_v58 = vpop.f32.mrf.mxu0  ;;  %v558_v63 = vpop.f32.mrf.mxu1  ;;  %2328 = vmatmul.mubr.bf16.vlgmr.msra.gmra.mxu0 %v10504_v32  ;;  %2441 = vmatmul.mubr.bf16.vlgmr.msra.gmra.mxu1 %v10506_v33  ;;  %v8435_v22 = vcombine.high %v10534_v4, %v10536_v5  ;;  %v10578_v36 = vld [vmem:[#allocation8 + $0x4c8] sm:$0xff]  ;;  %v8306_v45 = vcombine.low %v10530_v2, %v10532_v3  ;;  %v8434_v2 = vcombine.low %v10534_v4, %v10536_v5 }
 0x14c   :  { %v633_v6 = vmax.f32 %v444_v40, 0.0  ;;  %v635_v7 = vmax.f32 %v557_v41, 0.0  ;;  %v446_v8 = vadd.f32 %v445_v58, %v10471_v59  ;;  %v559_v9 = vadd.f32 %v558_v63, %v10474_v60  ;;  %2522 = vmatpush1.bf16.msra.mxu0 %v8330_v47  ;;  %2635 = vmatpush1.bf16.msra.mxu1 %v8458_v48  ;;  %v10590_v50 = vld [vmem:[#allocation8 + $0xa8] sm:$0xff] }
 0x14d   :  { %v449_v10 = vpop.f32.mrf.mxu0  ;;  %v562_v11 = vpop.f32.mrf.mxu1  ;;  %2523 = vmatprep.subr.bf16.mxu0 %v8323_v31  ;;  %2636 = vmatprep.subr.bf16.mxu1 %v8451_v37  ;;  %v10580_v37 = vld [vmem:[#allocation8 + $0x4e8] sm:$0xff]  ;;  %v8298_v3 = vcombine.low %v10569_v28, %v10576_v35 }
 0x14e   :  { %v634_v43 = vmax.f32 %v446_v8, 0.0  ;;  %v636_v47 = vmax.f32 %v559_v9, 0.0  ;;  %v10564_v23 = vpack.c.bf16 %v633_v6, %v629_v16  ;;  %v10566_v24 = vpack.c.bf16 %v635_v7, %v631_v44  ;;  %v10592_v52 = vld [vmem:[#allocation8 + $0x488] sm:$0xff] }
 0x14f   :  { %v451_v46 = vpop.f32.mrf.mxu0  ;;  %v564_v48 = vpop.f32.mrf.mxu1  ;;  %v450_v38 = vadd.f32 %v449_v10, %v10477_v61  ;;  %v563_v39 = vadd.f32 %v562_v11, %v10480_v62  ;;  %v10594_v57 = vld [vmem:[#allocation8 + $0x4a8] sm:$0xff]  ;;  %v8299_v9 = vcombine.high %v10569_v28, %v10576_v35  ;;  %v8427_v4 = vcombine.high %v10578_v36, %v10580_v37 }
 0x150   :  { %v10556_v19 = vpack.c.bf16 %v634_v43, %v630_v15  ;;  %v10558_v20 = vpack.c.bf16 %v636_v47, %v632_v42  ;;  %2524 = vmatpush1.bf16.msra.mxu0 %v8322_v1  ;;  %v452_v25 = vadd.f32 %v451_v46, %v10471_v59  ;;  %2637 = vmatpush1.bf16.msra.mxu1 %v8450_v12 }
 0x151   :  { %v453_v26 = vpop.f32.mrf.mxu0  ;;  %v566_v27 = vpop.f32.mrf.mxu1  ;;  %2525 = vmatprep.subr.bf16.mxu0 %v8315_v14  ;;  %v565_v29 = vadd.f32 %v564_v48, %v10474_v60  ;;  %2638 = vmatprep.subr.bf16.mxu1 %v8443_v18  ;;  %v639_v15 = vmax.f32 %v563_v39, 0.0  ;;  %v8426_v47 = vcombine.low %v10578_v36, %v10580_v37  ;;  %v8291_v44 = vcombine.high %v10588_v49, %v10590_v50 }
 0x152   :  { %v454_v31 = vadd.f32 %v453_v26, %v10477_v61  ;;  %v567_v34 = vadd.f32 %v566_v27, %v10480_v62  ;;  %2337 = vmatprep.mubr.bf16.mxu0 %v10556_v19  ;;  %2450 = vmatprep.mubr.bf16.mxu1 %v10558_v20  ;;  %v638_v10 = vmax.f32 %v452_v25, 0.0  ;;  %v8419_v46 = vcombine.high %v10592_v52, %v10594_v57  ;;  %v10621_v25 = vld [vmem:[#allocation8 + $0x48] sm:$0xff] }
 0x153   :  { %v455_v40 = vpop.f32.mrf.mxu0  ;;  %v568_v41 = vpop.f32.mrf.mxu1  ;;  %2338 = vmatmul.mubr.bf16.gmra.mxu0 %v10564_v23  ;;  %2451 = vmatmul.mubr.bf16.gmra.mxu1 %v10566_v24  ;;  %v640_v11 = vmax.f32 %v565_v29, 0.0  ;;  %v10628_v29 = vld [vmem:[#allocation8 + $0x68] sm:$0xff]  ;;  %v8290_v39 = vcombine.low %v10588_v49, %v10590_v50  ;;  %v8418_v49 = vcombine.low %v10592_v52, %v10594_v57 }
 0x154   :  { %v641_v58 = vmax.f32 %v454_v31, 0.0  ;;  %v643_v63 = vmax.f32 %v567_v34, 0.0  ;;  %v456_v1 = vadd.f32 %v455_v40, %v10471_v59  ;;  %v569_v6 = vadd.f32 %v568_v41, %v10474_v60  ;;  %2526 = vmatpush1.bf16.msra.mxu0 %v8314_v13  ;;  %2639 = vmatpush1.bf16.msra.mxu1 %v8442_v17  ;;  %v10630_v31 = vld [vmem:[#allocation8 + $0x448] sm:$0xff] }
 0x155   :  { %v459_v7 = vpop.f32.mrf.mxu0  ;;  %v572_v8 = vpop.f32.mrf.mxu1  ;;  %2527 = vmatprep.subr.bf16.mxu0 %v8307_v21  ;;  %2640 = vmatprep.subr.bf16.mxu1 %v8435_v22  ;;  %v637_v13 = vmax.f32 %v450_v38, 0.0  ;;  %v10632_v34 = vld [vmem:[#allocation8 + $0x468] sm:$0xff]  ;;  %v8282_v50 = vcombine.low %v10621_v25, %v10628_v29 }
 0x156   :  { %v642_v12 = vmax.f32 %v456_v1, 0.0  ;;  %v644_v14 = vmax.f32 %v569_v6, 0.0  ;;  %v10618_v17 = vpack.c.bf16 %v643_v63, %v639_v15  ;;  %v460_v35 = vadd.f32 %v459_v7, %v10477_v61  ;;  %v10640_v40 = vld [vmem:[#allocation8 + $0x8] sm:$0xff] }
 0x157   :  { %v461_v42 = vpop.f32.mrf.mxu0  ;;  %v574_v43 = vpop.f32.mrf.mxu1  ;;  %v10616_v48 = vpack.c.bf16 %v641_v58, %v637_v13  ;;  %v573_v36 = vadd.f32 %v572_v8, %v10480_v62  ;;  %v10642_v41 = vld [vmem:[#allocation8 + $0x28] sm:$0xff]  ;;  %v8411_v52 = vcombine.high %v10630_v31, %v10632_v34 }
 0x158   :  { %v10608_v5 = vpack.c.bf16 %v642_v12, %v638_v10  ;;  %v10610_v16 = vpack.c.bf16 %v644_v14, %v640_v11  ;;  %2528 = vmatpush1.bf16.msra.mxu0 %v8306_v45  ;;  %v462_v18 = vadd.f32 %v461_v42, %v10471_v59  ;;  %2641 = vmatpush1.bf16.msra.mxu1 %v8434_v2  ;;  %v10644_v45 = vld [vmem:[#allocation8 + $0x408] sm:$0xff] }
 0x159   :  { %v463_v21 = vpop.f32.mrf.mxu0  ;;  %v576_v22 = vpop.f32.mrf.mxu1  ;;  %2529 = vmatprep.subr.bf16.mxu0 %v8299_v9  ;;  %v575_v26 = vadd.f32 %v574_v43, %v10474_v60  ;;  %v10646_v58 = vld [vmem:[#allocation8 + $0x428] sm:$0xff]  ;;  %2642 = vmatprep.subr.bf16.mxu1 %v8427_v4  ;;  %v8283_v9 = vcombine.high %v10621_v25, %v10628_v29  ;;  %v647_v13 = vmax.f32 %v573_v36, 0.0  ;;  %v8410_v43 = vcombine.low %v10630_v31, %v10632_v34 }
 0x15a   :  { %v464_v27 = vadd.f32 %v463_v21, %v10477_v61  ;;  %v577_v28 = vadd.f32 %v576_v22, %v10480_v62  ;;  %2347 = vmatprep.mubr.bf16.mxu0 %v10608_v5  ;;  %2460 = vmatprep.mubr.bf16.mxu1 %v10610_v16  ;;  %v646_v10 = vmax.f32 %v462_v18, 0.0  ;;  %v8275_v4 = vcombine.high %v10640_v40, %v10642_v41  ;;  %v10680_v31 = vld [vmem:[#allocation8 + $0x3e8] sm:$0xff] }
 0x15b   :  { %v465_v37 = vpop.f32.mrf.mxu0  ;;  %v578_v38 = vpop.f32.mrf.mxu1  ;;  %2348 = vmatmul.mubr.bf16.gmra.mxu0 %v10616_v48  ;;  %2461 = vmatmul.mubr.bf16.gmra.mxu1 %v10618_v17  ;;  %v648_v11 = vmax.f32 %v575_v26, 0.0  ;;  %v10673_v26 = vld [vmem:[#allocation8 + $0x3c8] sm:$0xff] }
 0x15c   :  { %v649_v63 = vmax.f32 %v464_v27, 0.0  ;;  %v651_v1 = vmax.f32 %v577_v28, 0.0  ;;  %v466_v6 = vadd.f32 %v465_v37, %v10471_v59  ;;  %v579_v7 = vadd.f32 %v578_v38, %v10474_v60  ;;  %2530 = vmatpush1.bf16.msra.mxu0 %v8298_v3  ;;  %2643 = vmatpush1.bf16.msra.mxu1 %v8426_v47  ;;  %v10682_v34 = vld [vmem:[#allocation8 + $0x7c8] sm:$0xff] }
 0x15d   :  { %v469_v8 = vpop.f32.mrf.mxu0  ;;  %v582_v2 = vpop.f32.mrf.mxu1  ;;  %2531 = vmatprep.subr.bf16.mxu0 %v8291_v44  ;;  %2644 = vmatprep.subr.bf16.mxu1 %v8419_v46  ;;  %v645_v3 = vmax.f32 %v460_v35, 0.0  ;;  %v8403_v44 = vcombine.high %v10644_v45, %v10646_v58  ;;  %v10684_v35 = vld [vmem:[#allocation8 + $0x7e8] sm:$0xff] }
 0x15e   :  { %v650_v12 = vmax.f32 %v466_v6, 0.0  ;;  %v652_v14 = vmax.f32 %v579_v7, 0.0  ;;  %v10670_v18 = vpack.c.bf16 %v651_v1, %v647_v13  ;;  %v470_v36 = vadd.f32 %v469_v8, %v10477_v61  ;;  %v10692_v1 = vld [vmem:[#allocation8 + $0x388] sm:$0xff] }
 0x15f   :  { %v471_v15 = vpop.f32.mrf.mxu0  ;;  %v584_v42 = vpop.f32.mrf.mxu1  ;;  %v10668_v46 = vpack.c.bf16 %v649_v63, %v645_v3  ;;  %v583_v37 = vadd.f32 %v582_v2, %v10480_v62  ;;  %v8274_v63 = vcombine.low %v10640_v40, %v10642_v41  ;;  %v10694_v6 = vld [vmem:[#allocation8 + $0x3a8] sm:$0xff]  ;;  %v8402_v40 = vcombine.low %v10644_v45, %v10646_v58 }
 0x160   :  { %v10660_v57 = vpack.c.bf16 %v650_v12, %v646_v10  ;;  %v10662_v47 = vpack.c.bf16 %v652_v14, %v648_v11  ;;  %2532 = vmatpush1.bf16.msra.mxu0 %v8290_v39  ;;  %v472_v21 = vadd.f32 %v471_v15, %v10471_v59  ;;  %2645 = vmatpush1.bf16.msra.mxu1 %v8418_v49  ;;  %v10696_v7 = vld [vmem:[#allocation8 + $0x788] sm:$0xff] }
 0x161   :  { %v473_v22 = vpop.f32.mrf.mxu0  ;;  %v586_v25 = vpop.f32.mrf.mxu1  ;;  %2533 = vmatprep.subr.bf16.mxu0 %v8283_v9  ;;  %v585_v27 = vadd.f32 %v584_v42, %v10474_v60  ;;  %v10698_v49 = vld [vmem:[#allocation8 + $0x7a8] sm:$0xff]  ;;  %2646 = vmatprep.subr.bf16.mxu1 %v8411_v52  ;;  %v8394_v41 = vcombine.low %v10673_v26, %v10680_v31  ;;  %v8395_v14 = vcombine.high %v10673_v26, %v10680_v31  ;;  %v655_v52 = vmax.f32 %v583_v37, 0.0 }
 0x162   :  { %v474_v28 = vadd.f32 %v473_v22, %v10477_v61  ;;  %v587_v29 = vadd.f32 %v586_v25, %v10480_v62  ;;  %2357 = vmatprep.mubr.bf16.mxu0 %v10660_v57  ;;  %2470 = vmatprep.mubr.bf16.mxu1 %v10662_v47  ;;  %v654_v3 = vmax.f32 %v472_v21, 0.0  ;;  %v8523_v45 = vcombine.high %v10682_v34, %v10684_v35 }
 0x163   :  { %v475_v38 = vpop.f32.mrf.mxu0  ;;  %v588_v39 = vpop.f32.mrf.mxu1  ;;  %2358 = vmatmul.mubr.bf16.gmra.mxu0 %v10668_v46  ;;  %2471 = vmatmul.mubr.bf16.gmra.mxu1 %v10670_v18  ;;  %v656_v13 = vmax.f32 %v585_v27, 0.0  ;;  %v8387_v21 = vcombine.high %v10692_v1, %v10694_v6 }
 0x164   :  { %v657_v8 = vmax.f32 %v474_v28, 0.0  ;;  %v659_v9 = vmax.f32 %v587_v29, 0.0  ;;  %v476_v2 = vadd.f32 %v475_v38, %v10471_v59  ;;  %v589_v10 = vadd.f32 %v588_v39, %v10474_v60  ;;  %2534 = vmatpush1.bf16.msra.mxu0 %v8282_v50  ;;  %2647 = vmatpush1.bf16.msra.mxu1 %v8410_v43  ;;  %v10732_v38 = vld [vmem:[#allocation8 + $0x368] sm:$0xff] }
 0x165   :  { %v479_v11 = vpop.f32.mrf.mxu0  ;;  %v592_v12 = vpop.f32.mrf.mxu1  ;;  %2535 = vmatprep.subr.bf16.mxu0 %v8275_v4  ;;  %2648 = vmatprep.subr.bf16.mxu1 %v8403_v44  ;;  %v653_v50 = vmax.f32 %v470_v36, 0.0  ;;  %v8522_v4 = vcombine.low %v10682_v34, %v10684_v35  ;;  %v8515_v44 = vcombine.high %v10696_v7, %v10698_v49  ;;  %v10725_v34 = vld [vmem:[#allocation8 + $0x348] sm:$0xff] }
 0x166   :  { %v658_v15 = vmax.f32 %v476_v2, 0.0  ;;  %v660_v42 = vmax.f32 %v589_v10, 0.0  ;;  %v10722_v27 = vpack.c.bf16 %v659_v9, %v655_v52  ;;  %v10734_v39 = vld [vmem:[#allocation8 + $0x748] sm:$0xff]  ;;  %v593_v9 = vadd.f32 %v592_v12, %v10480_v62 }
 0x167   :  { %v481_v43 = vpop.f32.mrf.mxu0  ;;  %v594_v22 = vpop.f32.mrf.mxu1  ;;  %v10720_v26 = vpack.c.bf16 %v657_v8, %v653_v50  ;;  %v480_v8 = vadd.f32 %v479_v11, %v10477_v61 }
 0x168   :  { %v10712_v58 = vpack.c.bf16 %v658_v15, %v654_v3  ;;  %v10714_v25 = vpack.c.bf16 %v660_v42, %v656_v13  ;;  %2536 = vmatpush1.bf16.msra.mxu0 %v8274_v63  ;;  %v482_v28 = vadd.f32 %v481_v43, %v10471_v59  ;;  %2649 = vmatpush1.bf16.msra.mxu1 %v8402_v40  ;;  %v10736_v63 = vld [vmem:[#allocation8 + $0x768] sm:$0xff] }
 0x169   :  { %v483_v29 = vpop.f32.mrf.mxu0  ;;  %v596_v31 = vpop.f32.mrf.mxu1  ;;  %2537 = vmatprep.subr.bf16.mxu0 %v8395_v14  ;;  %v595_v35 = vadd.f32 %v594_v22, %v10474_v60  ;;  %v8386_v40 = vcombine.low %v10692_v1, %v10694_v6  ;;  %v10744_v14 = vld [vmem:[#allocation8 + $0x308] sm:$0xff]  ;;  %2650 = vmatprep.subr.bf16.mxu1 %v8523_v45  ;;  %v8514_v1 = vcombine.low %v10696_v7, %v10698_v49  ;;  %v663_v45 = vmax.f32 %v593_v9, 0.0 }
 0x16a   :  { %v484_v36 = vadd.f32 %v483_v29, %v10477_v61  ;;  %v597_v37 = vadd.f32 %v596_v31, %v10480_v62  ;;  %2367 = vmatprep.mubr.bf16.mxu0 %v10712_v58  ;;  %2480 = vmatprep.mubr.bf16.mxu1 %v10714_v25  ;;  %v10746_v3 = vld [vmem:[#allocation8 + $0x328] sm:$0xff]  ;;  %v8378_v6 = vcombine.low %v10725_v34, %v10732_v38  ;;  %v662_v29 = vmax.f32 %v482_v28, 0.0 }
 0x16b   :  { %v485_v2 = vpop.f32.mrf.mxu0  ;;  %v598_v10 = vpop.f32.mrf.mxu1  ;;  %2368 = vmatmul.mubr.bf16.gmra.mxu0 %v10720_v26  ;;  %2481 = vmatmul.mubr.bf16.gmra.mxu1 %v10722_v27  ;;  %v10748_v13 = vld [vmem:[#allocation8 + $0x708] sm:$0xff]  ;;  %v8379_v22 = vcombine.high %v10725_v34, %v10732_v38  ;;  %v664_v31 = vmax.f32 %v595_v35, 0.0  ;;  %v8507_v7 = vcombine.high %v10734_v39, %v10736_v63  ;;  %v8371_v28 = vcombine.high %v10744_v14, %v10746_v3 }
 0x16c   :  { %v10750_v15 = vld [vmem:[#allocation8 + $0x728] sm:$0xff]  ;;  %v665_v11 = vmax.f32 %v484_v36, 0.0  ;;  %v667_v42 = vmax.f32 %v597_v37, 0.0  ;;  %v486_v12 = vadd.f32 %v485_v2, %v10471_v59  ;;  %v599_v50 = vadd.f32 %v598_v10, %v10474_v60  ;;  %2538 = vmatpush2.bf16.msra.mxu0 %v8394_v41  ;;  %2651 = vmatpush2.bf16.msra.mxu1 %v8522_v4 }
 0x16d   :  { %v489_v52 = vpop.f32.mrf.mxu0  ;;  %v602_v43 = vpop.f32.mrf.mxu1  ;;  %2539 = vmatprep.subr.bf16.mxu0 %v8387_v21  ;;  %2652 = vmatprep.subr.bf16.mxu1 %v8515_v44  ;;  %v661_v41 = vmax.f32 %v480_v8, 0.0  ;;  %v8506_v21 = vcombine.low %v10734_v39, %v10736_v63  ;;  %v8499_v44 = vcombine.high %v10748_v13, %v10750_v15  ;;  %v10777_v63 = vld [vmem:[#allocation8 + $0x2c8] sm:$0xff] }
 0x16e   :  { %v666_v36 = vmax.f32 %v486_v12, 0.0  ;;  %v668_v37 = vmax.f32 %v599_v50, 0.0  ;;  %v10774_v35 = vpack.c.bf16 %v667_v42, %v663_v45  ;;  %v10786_v42 = vld [vmem:[#allocation8 + $0x6c8] sm:$0xff] }
 0x16f   :  { %v491_v4 = vpop.f32.mrf.mxu0  ;;  %v604_v2 = vpop.f32.mrf.mxu1  ;;  %v10772_v34 = vpack.c.bf16 %v665_v11, %v661_v41  ;;  %v10784_v11 = vld [vmem:[#allocation8 + $0x2e8] sm:$0xff] }
 0x170   :  { %v10764_v49 = vpack.c.bf16 %v666_v36, %v662_v29  ;;  %v10766_v10 = vpack.c.bf16 %v668_v37, %v664_v31  ;;  %2540 = vmatpush2.bf16.msra.mxu0 %v8386_v40  ;;  %v492_v38 = vadd.f32 %v491_v4, %v10471_v59  ;;  %2653 = vmatpush2.bf16.msra.mxu1 %v8514_v1  ;;  %v10788_v50 = vld [vmem:[#allocation8 + $0x6e8] sm:$0xff] }
 0x171   :  { %v493_v8 = vpop.f32.mrf.mxu0  ;;  %v606_v39 = vpop.f32.mrf.mxu1  ;;  %2541 = vmatprep.subr.bf16.mxu0 %v8379_v22  ;;  %v605_v9 = vadd.f32 %v604_v2, %v10474_v60  ;;  %v490_v1 = vadd.f32 %v489_v52, %v10477_v61  ;;  %v603_v22 = vadd.f32 %v602_v43, %v10480_v62  ;;  %v8370_v36 = vcombine.low %v10744_v14, %v10746_v3  ;;  %v10796_v37 = vld [vmem:[#allocation8 + $0x288] sm:$0xff] }
 0x172   :  { %v494_v40 = vadd.f32 %v493_v8, %v10477_v61  ;;  %v607_v12 = vadd.f32 %v606_v39, %v10480_v62  ;;  %2377 = vmatprep.mubr.bf16.mxu0 %v10764_v49  ;;  %2490 = vmatprep.mubr.bf16.mxu1 %v10766_v10  ;;  %v10798_v41 = vld [vmem:[#allocation8 + $0x2a8] sm:$0xff]  ;;  %v8498_v43 = vcombine.low %v10748_v13, %v10750_v15 }
 0x173   :  { %v495_v29 = vpop.f32.mrf.mxu0  ;;  %v608_v31 = vpop.f32.mrf.mxu1  ;;  %2378 = vmatmul.mubr.bf16.gmra.mxu0 %v10772_v34  ;;  %2491 = vmatmul.mubr.bf16.gmra.mxu1 %v10774_v35  ;;  %v10800_v45 = vld [vmem:[#allocation8 + $0x688] sm:$0xff]  ;;  %v8362_v51 = vcombine.low %v10777_v63, %v10784_v11  ;;  %v669_v13 = vmax.f32 %v490_v1, 0.0  ;;  %v671_v15 = vmax.f32 %v603_v22, 0.0 }
 0x174   :  { %v496_v4 = vadd.f32 %v495_v29, %v10471_v59  ;;  %v609_v52 = vadd.f32 %v608_v31, %v10474_v60  ;;  %2542 = vmatpush2.bf16.msra.mxu0 %v8378_v6  ;;  %2654 = vmatprep.subr.bf16.mxu1 %v8507_v7  ;;  %v10806_v2 = vld [vmem:[#allocation8 + $0x6a8] sm:$0xff]  ;;  %v673_v8 = vmax.f32 %v494_v40, 0.0  ;;  %v675_v39 = vmax.f32 %v607_v12, 0.0 }
 0x175   :  { %2655 = vmatpush2.bf16.msra.mxu1 %v8506_v21  ;;  %v499_v14 = vpop.f32.mrf.mxu0  ;;  %v612_v3 = vpop.f32.mrf.mxu1  ;;  %2543 = vmatprep.subr.bf16.mxu0 %v8371_v28  ;;  %v8363_v29 = vcombine.high %v10777_v63, %v10784_v11  ;;  %v670_v31 = vmax.f32 %v492_v38, 0.0  ;;  %v672_v6 = vmax.f32 %v605_v9, 0.0  ;;  %v8490_v21 = vcombine.low %v10786_v42, %v10788_v50 }
 0x176   :  { %v674_v7 = vmax.f32 %v496_v4, 0.0  ;;  %v676_v56 = vmax.f32 %v609_v52, 0.0  ;;  %2656 = vmatprep.subr.bf16.mxu1 %v8499_v44  ;;  %v8491_v28 = vcombine.high %v10786_v42, %v10788_v50  ;;  %v8355_v38 = vcombine.high %v10796_v37, %v10798_v41  ;;  %v794_v4 = vld [vmem:[#allocation8 + $0x268] sm:$0xff] }
 0x177   :  { %v501_v54 = vpop.f32.mrf.mxu0  ;;  %v614_v40 = vpop.f32.mrf.mxu1  ;;  %v8483_v44 = vcombine.high %v10800_v45, %v10806_v2  ;;  %v10824_v63 = vpack.c.bf16 %v673_v8, %v669_v13  ;;  %v10826_v9 = vpack.c.bf16 %v675_v39, %v671_v15  ;;  %v500_v52 = vadd.f32 %v499_v14, %v10477_v61  ;;  %v918_v14 = vld [vmem:[#allocation8 + $0x648] sm:$0xff] }
 0x178   :  { %v10816_v12 = vpack.c.bf16 %v674_v7, %v670_v31  ;;  %v10818_v55 = vpack.c.bf16 %v676_v56, %v672_v6  ;;  %2544 = vmatpush2.bf16.msra.mxu0 %v8370_v36  ;;  %v502_v11 = vadd.f32 %v501_v54, %v10471_v59  ;;  %v615_v56 = vadd.f32 %v614_v40, %v10474_v60  ;;  %v790_v36 = vld [vmem:[#allocation8 + $0x248] sm:$0xff] }
 0x179   :  { %2657 = vmatpush2.bf16.msra.mxu1 %v8498_v43  ;;  %v503_v1 = vpop.f32.mrf.mxu0  ;;  %v616_v42 = vpop.f32.mrf.mxu1  ;;  %2545 = vmatprep.subr.bf16.mxu0 %v8363_v29  ;;  %v613_v54 = vadd.f32 %v612_v3, %v10480_v62  ;;  %v8354_v31 = vcombine.low %v10796_v37, %v10798_v41  ;;  %v922_v3 = vld [vmem:[#allocation8 + $0x668] sm:$0xff] }
 0x17a   :  { %v504_v50 = vadd.f32 %v503_v1, %v10477_v61  ;;  %v617_v22 = vadd.f32 %v616_v42, %v10480_v62  ;;  %2387 = vmatprep.mubr.bf16.mxu0 %v10816_v12  ;;  %2500 = vmatprep.mubr.bf16.mxu1 %v10818_v55  ;;  %v8482_v61 = vcombine.low %v10800_v45, %v10806_v2  ;;  %v678_v13 = vmax.f32 %v502_v11, 0.0  ;;  %v786_v1 = vld [vmem:[#allocation8 + $0x228] sm:$0xff] }
 0x17b   :  { %v505_v43 = vpop.f32.mrf.mxu0  ;;  %v618_v8 = vpop.f32.mrf.mxu1  ;;  %2388 = vmatmul.mubr.bf16.gmra.mxu0 %v10824_v63  ;;  %2501 = vmatmul.mubr.bf16.gmra.mxu1 %v10826_v9  ;;  %v8347_v62 = vcombine.high %v790_v36, %v794_v4  ;;  %v680_v15 = vmax.f32 %v615_v56, 0.0  ;;  %v910_v45 = vld [vmem:[#allocation8 + $0x608] sm:$0xff] }
 0x17c   :  { %v506_v39 = vadd.f32 %v505_v43, %v10471_v59  ;;  %v619_v29 = vadd.f32 %v618_v8, %v10474_v60  ;;  %2546 = vmatpush2.bf16.msra.mxu0 %v8362_v51  ;;  %2658 = vmatprep.subr.bf16.mxu1 %v8491_v28  ;;  %v681_v6 = vmax.f32 %v504_v50, 0.0  ;;  %v683_v7 = vmax.f32 %v617_v22, 0.0  ;;  %v782_v28 = vld [vmem:[#allocation8 + $0x208] sm:$0xff]  ;;  %v775_v50 = vld [vmem:[#allocation8 + $0x1d0] sm:$0xff] }
 0x17d   :  { %2659 = vmatpush2.bf16.msra.mxu1 %v8490_v21  ;;  %2547 = vmatprep.subr.bf16.mxu0 %v8355_v38  ;;  %v677_v51 = vmax.f32 %v500_v52, 0.0  ;;  %v679_v60 = vmax.f32 %v613_v54, 0.0  ;;  %v8346_v21 = vcombine.low %v790_v36, %v794_v4  ;;  %v8475_v38 = vcombine.high %v918_v14, %v922_v3  ;;  %v914_v2 = vld [vmem:[#allocation8 + $0x628] sm:$0xff]  ;;  %v779_v22 = vld [vmem:[#allocation8 + $0x1f0] sm:$0xff] }
 0x17e   :  { %v682_v59 = vmax.f32 %v506_v39, 0.0  ;;  %v684_v40 = vmax.f32 %v619_v29, 0.0  ;;  %2660 = vmatprep.subr.bf16.mxu1 %v8483_v44  ;;  %v8474_v44 = vcombine.low %v918_v14, %v922_v3  ;;  %v8339_v56 = vcombine.high %v782_v28, %v786_v1  ;;  %v903_v4 = vld [vmem:[#allocation8 + $0x5d0] sm:$0xff] }
 0x17f   :  { %v10848_v42 = vpack.c.bf16 %v681_v6, %v677_v51  ;;  %v10850_v11 = vpack.c.bf16 %v683_v7, %v679_v60  ;;  %v8467_v36 = vcombine.high %v910_v45, %v914_v2  ;;  %v907_v52 = vld [vmem:[#allocation8 + $0x5f0] sm:$0xff]  ;;  %v8338_v54 = vcombine.low %v782_v28, %v786_v1 }
 0x180   :  { %v10844_v37 = vpack.c.bf16 %v682_v59, %v678_v13  ;;  %v10846_v41 = vpack.c.bf16 %v684_v40, %v680_v15  ;;  %2548 = vmatpush2.bf16.msra.mxu0 %v8354_v31  ;;  %v8466_v43 = vcombine.low %v910_v45, %v914_v2  ;;  %v8333_v8 = vcombine.high %v775_v50, %v779_v22  ;;  %v767_v29 = vld [vmem:[#allocation8 + $0x190] sm:$0xff] }
 0x181   :  { %2661 = vmatpush2.bf16.msra.mxu1 %v8482_v61  ;;  %2549 = vmatprep.subr.bf16.mxu0 %v8347_v62  ;;  %v8461_v39 = vcombine.high %v903_v4, %v907_v52  ;;  %v771_v31 = vld [vmem:[#allocation8 + $0x1b0] sm:$0xff]  ;;  %v8332_v6 = vcombine.low %v775_v50, %v779_v22  ;;  %v8460_v62 = vcombine.low %v903_v4, %v907_v52 }
 0x182   :  { %2397 = vmatprep.mubr.bf16.mxu0 %v10844_v37  ;;  %2510 = vmatprep.mubr.bf16.mxu1 %v10846_v41  ;;  %v895_v7 = vld [vmem:[#allocation8 + $0x590] sm:$0xff]  ;;  %v8325_v14 = vcombine.high %v767_v29, %v771_v31  ;;  %v8324_v59 = vcombine.low %v767_v29, %v771_v31 }
 0x183   :  { %2398 = vmatmul.mubr.bf16.gmra.mxu0 %v10848_v42  ;;  %2511 = vmatmul.mubr.bf16.gmra.mxu1 %v10850_v11  ;;  %v899_v61 = vld [vmem:[#allocation8 + $0x5b0] sm:$0xff] }
 0x184   :  { %2550 = vmatpush2.bf16.msra.mxu0 %v8346_v21  ;;  %2662 = vmatprep.subr.bf16.mxu1 %v8475_v38  ;;  %v759_v3 = vld [vmem:[#allocation8 + $0x150] sm:$0xff]  ;;  %v8453_v15 = vcombine.high %v895_v7, %v899_v61  ;;  %v8452_v28 = vcombine.low %v895_v7, %v899_v61 }
 0x185   :  { %2553 = vmatprep.mubr.bf16.mxu0 %v10498_v0  ;;  %2663 = vmatpush2.bf16.msra.mxu1 %v8474_v44  ;;  %v763_v13 = vld [vmem:[#allocation8 + $0x170] sm:$0xff] }
 0x186   :  { %2666 = vmatprep.mubr.bf16.mxu1 %v10500_v30  ;;  %2551 = vmatprep.subr.bf16.mxu0 %v8339_v56  ;;  %v887_v40 = vld [vmem:[#allocation8 + $0x550] sm:$0xff]  ;;  %v8317_v60 = vcombine.high %v759_v3, %v763_v13  ;;  %v8316_v45 = vcombine.low %v759_v3, %v763_v13 }
 0x187   :  { %2664 = vmatprep.subr.bf16.mxu1 %v8467_v36  ;;  %v891_v51 = vld [vmem:[#allocation8 + $0x570] sm:$0xff] }
 0x188   :  { %2552 = vmatpush2.bf16.msra.mxu0 %v8338_v54  ;;  %v8445_v1 = vcombine.high %v887_v40, %v891_v51  ;;  %v751_v21 = vld [vmem:[#allocation8 + $0x110] sm:$0xff]  ;;  %v8444_v56 = vcombine.low %v887_v40, %v891_v51 }
 0x189   :  { %2665 = vmatpush2.bf16.msra.mxu1 %v8466_v43  ;;  %2747 = vmatprep.subr.bf16.mxu0 %v8333_v8  ;;  %v755_v38 = vld [vmem:[#allocation8 + $0x130] sm:$0xff] }
 0x18a   :  { %2860 = vmatprep.subr.bf16.mxu1 %v8461_v39  ;;  %v879_v2 = vld [vmem:[#allocation8 + $0x510] sm:$0xff]  ;;  %v8309_v50 = vcombine.high %v751_v21, %v755_v38  ;;  %v8308_v52 = vcombine.low %v751_v21, %v755_v38 }
 0x18b   :  { %2554 = vmatmul.mubr.bf16.vlgmr.msra.gmra.mxu0 %v10504_v32  ;;  %v883_v44 = vld [vmem:[#allocation8 + $0x530] sm:$0xff] }
 0x18c   :  { %2667 = vmatmul.mubr.bf16.vlgmr.msra.gmra.mxu1 %v10506_v33  ;;  %2748 = vmatpush1.bf16.msra.mxu0 %v8332_v6  ;;  %v743_v22 = vld [vmem:[#allocation8 + $0xd0] sm:$0xff]  ;;  %v8437_v4 = vcombine.high %v879_v2, %v883_v44  ;;  %v8436_v39 = vcombine.low %v879_v2, %v883_v44 }
 0x18d   :  { %2563 = vmatprep.mubr.bf16.mxu0 %v10556_v19  ;;  %2676 = vmatprep.mubr.bf16.mxu1 %v10558_v20  ;;  %v747_v36 = vld [vmem:[#allocation8 + $0xf0] sm:$0xff] }
 0x18e   :  { %2861 = vmatpush1.bf16.msra.mxu1 %v8460_v62  ;;  %2749 = vmatprep.subr.bf16.mxu0 %v8325_v14  ;;  %v871_v54 = vld [vmem:[#allocation8 + $0x4d0] sm:$0xff]  ;;  %v8301_v8 = vcombine.high %v743_v22, %v747_v36  ;;  %v8300_v7 = vcombine.low %v743_v22, %v747_v36 }
 0x18f   :  { %2862 = vmatprep.subr.bf16.mxu1 %v8453_v15  ;;  %v875_v43 = vld [vmem:[#allocation8 + $0x4f0] sm:$0xff] }
 0x190   :  { %2750 = vmatpush1.bf16.msra.mxu0 %v8324_v59  ;;  %v8429_v29 = vcombine.high %v871_v54, %v875_v43  ;;  %v735_v31 = vld [vmem:[#allocation8 + $0x90] sm:$0xff]  ;;  %v8428_v14 = vcombine.low %v871_v54, %v875_v43 }
 0x191   :  { %2751 = vmatprep.subr.bf16.mxu0 %v8317_v60  ;;  %v739_v6 = vld [vmem:[#allocation8 + $0xb0] sm:$0xff] }
 0x192   :  { %2863 = vmatpush1.bf16.msra.mxu1 %v8452_v28  ;;  %v863_v61 = vld [vmem:[#allocation8 + $0x490] sm:$0xff]  ;;  %v8293_v3 = vcombine.high %v735_v31, %v739_v6  ;;  %v8292_v40 = vcombine.low %v735_v31, %v739_v6 }
 0x193   :  { %2564 = vmatmul.mubr.bf16.gmra.mxu0 %v10564_v23  ;;  %2864 = vmatprep.subr.bf16.mxu1 %v8445_v1  ;;  %v867_v62 = vld [vmem:[#allocation8 + $0x4b0] sm:$0xff] }
 0x194   :  { %2677 = vmatmul.mubr.bf16.gmra.mxu1 %v10566_v24  ;;  %2752 = vmatpush1.bf16.msra.mxu0 %v8316_v45  ;;  %v727_v13 = vld [vmem:[#allocation8 + $0x50] sm:$0xff]  ;;  %v8421_v59 = vcombine.high %v863_v61, %v867_v62  ;;  %v8420_v1 = vcombine.low %v863_v61, %v867_v62 }
 0x195   :  { %2573 = vmatprep.mubr.bf16.mxu0 %v10608_v5  ;;  %2686 = vmatprep.mubr.bf16.mxu1 %v10610_v16  ;;  %v731_v15 = vld [vmem:[#allocation8 + $0x70] sm:$0xff] }
 0x196   :  { %2865 = vmatpush1.bf16.msra.mxu1 %v8444_v56  ;;  %2753 = vmatprep.subr.bf16.mxu0 %v8309_v50  ;;  %v855_v51 = vld [vmem:[#allocation8 + $0x450] sm:$0xff]  ;;  %v8285_v28 = vcombine.high %v727_v13, %v731_v15  ;;  %v8284_v2 = vcombine.low %v727_v13, %v731_v15 }
 0x197   :  { %2866 = vmatprep.subr.bf16.mxu1 %v8437_v4  ;;  %v859_v60 = vld [vmem:[#allocation8 + $0x470] sm:$0xff] }
 0x198   :  { %2754 = vmatpush1.bf16.msra.mxu0 %v8308_v52  ;;  %v8413_v21 = vcombine.high %v855_v51, %v859_v60  ;;  %v719_v38 = vld [vmem:[#allocation8 + $0x10] sm:$0xff]  ;;  %v8412_v50 = vcombine.low %v855_v51, %v859_v60 }
 0x199   :  { %2755 = vmatprep.subr.bf16.mxu0 %v8301_v8  ;;  %v723_v45 = vld [vmem:[#allocation8 + $0x30] sm:$0xff] }
 0x19a   :  { %2867 = vmatpush1.bf16.msra.mxu1 %v8436_v39  ;;  %v847_v44 = vld [vmem:[#allocation8 + $0x410] sm:$0xff]  ;;  %v8277_v22 = vcombine.high %v719_v38, %v723_v45  ;;  %v8276_v54 = vcombine.low %v719_v38, %v723_v45 }
 0x19b   :  { %2574 = vmatmul.mubr.bf16.gmra.mxu0 %v10616_v48  ;;  %2868 = vmatprep.subr.bf16.mxu1 %v8429_v29  ;;  %v851_v56 = vld [vmem:[#allocation8 + $0x430] sm:$0xff] }
 0x19c   :  { %2687 = vmatmul.mubr.bf16.gmra.mxu1 %v10618_v17  ;;  %2756 = vmatpush1.bf16.msra.mxu0 %v8300_v7  ;;  %v839_v36 = vld [vmem:[#allocation8 + $0x3d0] sm:$0xff]  ;;  %v8405_v52 = vcombine.high %v847_v44, %v851_v56  ;;  %v8404_v29 = vcombine.low %v847_v44, %v851_v56 }
 0x19d   :  { %2583 = vmatprep.mubr.bf16.mxu0 %v10660_v57  ;;  %2696 = vmatprep.mubr.bf16.mxu1 %v10662_v47  ;;  %v843_v4 = vld [vmem:[#allocation8 + $0x3f0] sm:$0xff] }
 0x19e   :  { %2869 = vmatpush1.bf16.msra.mxu1 %v8428_v14  ;;  %2757 = vmatprep.subr.bf16.mxu0 %v8293_v3  ;;  %v967_v43 = vld [vmem:[#allocation8 + $0x7d0] sm:$0xff]  ;;  %v8397_v39 = vcombine.high %v839_v36, %v843_v4  ;;  %v8396_v61 = vcombine.low %v839_v36, %v843_v4 }
 0x19f   :  { %2870 = vmatprep.subr.bf16.mxu1 %v8421_v59  ;;  %v971_v8 = vld [vmem:[#allocation8 + $0x7f0] sm:$0xff] }
 0x1a0   :  { %2758 = vmatpush1.bf16.msra.mxu0 %v8292_v40  ;;  %v8525_v31 = vcombine.high %v967_v43, %v971_v8  ;;  %v831_v6 = vld [vmem:[#allocation8 + $0x390] sm:$0xff]  ;;  %v8524_v3 = vcombine.low %v967_v43, %v971_v8 }
 0x1a1   :  { %2759 = vmatprep.subr.bf16.mxu0 %v8285_v28  ;;  %v835_v7 = vld [vmem:[#allocation8 + $0x3b0] sm:$0xff] }
 0x1a2   :  { %2871 = vmatpush1.bf16.msra.mxu1 %v8420_v1  ;;  %v959_v62 = vld [vmem:[#allocation8 + $0x790] sm:$0xff]  ;;  %v8389_v13 = vcombine.high %v831_v6, %v835_v7  ;;  %v8388_v51 = vcombine.low %v831_v6, %v835_v7 }
 0x1a3   :  { %2584 = vmatmul.mubr.bf16.gmra.mxu0 %v10668_v46  ;;  %2872 = vmatprep.subr.bf16.mxu1 %v8413_v21  ;;  %v963_v14 = vld [vmem:[#allocation8 + $0x7b0] sm:$0xff] }
 0x1a4   :  { %2697 = vmatmul.mubr.bf16.gmra.mxu1 %v10670_v18  ;;  %2760 = vmatpush1.bf16.msra.mxu0 %v8284_v2  ;;  %v823_v15 = vld [vmem:[#allocation8 + $0x350] sm:$0xff]  ;;  %v8517_v40 = vcombine.high %v959_v62, %v963_v14  ;;  %v8516_v21 = vcombine.low %v959_v62, %v963_v14 }
 0x1a5   :  { %2593 = vmatprep.mubr.bf16.mxu0 %v10712_v58  ;;  %2706 = vmatprep.mubr.bf16.mxu1 %v10714_v25  ;;  %v827_v59 = vld [vmem:[#allocation8 + $0x370] sm:$0xff] }
 0x1a6   :  { %2873 = vmatpush1.bf16.msra.mxu1 %v8412_v50  ;;  %2761 = vmatprep.subr.bf16.mxu0 %v8277_v22  ;;  %v951_v60 = vld [vmem:[#allocation8 + $0x750] sm:$0xff]  ;;  %v8381_v1 = vcombine.high %v823_v15, %v827_v59  ;;  %v8380_v44 = vcombine.low %v823_v15, %v827_v59 }
 0x1a7   :  { %2874 = vmatprep.subr.bf16.mxu1 %v8405_v52  ;;  %v955_v28 = vld [vmem:[#allocation8 + $0x770] sm:$0xff] }
 0x1a8   :  { %2762 = vmatpush1.bf16.msra.mxu0 %v8276_v54  ;;  %v8509_v38 = vcombine.high %v951_v60, %v955_v28  ;;  %v815_v45 = vld [vmem:[#allocation8 + $0x310] sm:$0xff]  ;;  %v8508_v22 = vcombine.low %v951_v60, %v955_v28 }
 0x1a9   :  { %2763 = vmatprep.subr.bf16.mxu0 %v8397_v39  ;;  %v819_v2 = vld [vmem:[#allocation8 + $0x330] sm:$0xff] }
 0x1aa   :  { %2875 = vmatpush1.bf16.msra.mxu1 %v8404_v29  ;;  %v943_v56 = vld [vmem:[#allocation8 + $0x710] sm:$0xff]  ;;  %v8373_v36 = vcombine.high %v815_v45, %v819_v2  ;;  %v8372_v43 = vcombine.low %v815_v45, %v819_v2 }
 0x1ab   :  { %2594 = vmatmul.mubr.bf16.gmra.mxu0 %v10720_v26  ;;  %2876 = vmatprep.subr.bf16.mxu1 %v8525_v31  ;;  %v947_v50 = vld [vmem:[#allocation8 + $0x730] sm:$0xff] }
 0x1ac   :  { %2707 = vmatmul.mubr.bf16.gmra.mxu1 %v10722_v27  ;;  %2764 = vmatpush2.bf16.msra.mxu0 %v8396_v61  ;;  %v807_v4 = vld [vmem:[#allocation8 + $0x2d0] sm:$0xff]  ;;  %v8501_v54 = vcombine.high %v943_v56, %v947_v50  ;;  %v8500_v31 = vcombine.low %v943_v56, %v947_v50 }
 0x1ad   :  { %2603 = vmatprep.mubr.bf16.mxu0 %v10764_v49  ;;  %2716 = vmatprep.mubr.bf16.mxu1 %v10766_v10  ;;  %v811_v52 = vld [vmem:[#allocation8 + $0x2f0] sm:$0xff] }
 0x1ae   :  { %2877 = vmatpush2.bf16.msra.mxu1 %v8524_v3  ;;  %2765 = vmatprep.subr.bf16.mxu0 %v8389_v13  ;;  %v935_v8 = vld [vmem:[#allocation8 + $0x6d0] sm:$0xff]  ;;  %v8365_v29 = vcombine.high %v807_v4, %v811_v52  ;;  %v8364_v62 = vcombine.low %v807_v4, %v811_v52  ;;  %v776_v52 = vld [vmem:[#allocation8 + $0x1d8] sm:$0xff] }
 0x1af   :  { %2878 = vmatprep.subr.bf16.mxu1 %v8517_v40  ;;  %v939_v39 = vld [vmem:[#allocation8 + $0x6f0] sm:$0xff] }
 0x1b0   :  { %2766 = vmatpush2.bf16.msra.mxu0 %v8388_v51  ;;  %v8493_v6 = vcombine.high %v935_v8, %v939_v39  ;;  %v799_v7 = vld [vmem:[#allocation8 + $0x290] sm:$0xff]  ;;  %v8492_v13 = vcombine.low %v935_v8, %v939_v39  ;;  %v904_v39 = vld [vmem:[#allocation8 + $0x5d8] sm:$0xff] }
 0x1b1   :  { %2767 = vmatprep.subr.bf16.mxu0 %v8381_v1  ;;  %v803_v61 = vld [vmem:[#allocation8 + $0x2b0] sm:$0xff] }
 0x1b2   :  { %2879 = vmatpush2.bf16.msra.mxu1 %v8516_v21  ;;  %v927_v14 = vld [vmem:[#allocation8 + $0x690] sm:$0xff]  ;;  %v8357_v15 = vcombine.high %v799_v7, %v803_v61  ;;  %v8356_v60 = vcombine.low %v799_v7, %v803_v61  ;;  %v768_v7 = vld [vmem:[#allocation8 + $0x198] sm:$0xff] }
 0x1b3   :  { %2604 = vmatmul.mubr.bf16.gmra.mxu0 %v10772_v34  ;;  %2880 = vmatprep.subr.bf16.mxu1 %v8509_v38  ;;  %v931_v3 = vld [vmem:[#allocation8 + $0x6b0] sm:$0xff]  ;;  %v772_v61 = vld [vmem:[#allocation8 + $0x1b8] sm:$0xff] }
 0x1b4   :  { %2717 = vmatmul.mubr.bf16.gmra.mxu1 %v10774_v35  ;;  %2768 = vmatpush2.bf16.msra.mxu0 %v8380_v44  ;;  %v791_v59 = vld [vmem:[#allocation8 + $0x250] sm:$0xff]  ;;  %v8485_v51 = vcombine.high %v927_v14, %v931_v3  ;;  %v8484_v38 = vcombine.low %v927_v14, %v931_v3  ;;  %v896_v3 = vld [vmem:[#allocation8 + $0x598] sm:$0xff] }
 0x1b5   :  { %2613 = vmatprep.mubr.bf16.mxu0 %v10816_v12  ;;  %2726 = vmatprep.mubr.bf16.mxu1 %v10818_v55  ;;  %v795_v40 = vld [vmem:[#allocation8 + $0x270] sm:$0xff] }
 0x1b6   :  { %2881 = vmatpush2.bf16.msra.mxu1 %v8508_v22  ;;  %2769 = vmatprep.subr.bf16.mxu0 %v8373_v36  ;;  %v919_v28 = vld [vmem:[#allocation8 + $0x650] sm:$0xff]  ;;  %v8349_v21 = vcombine.high %v791_v59, %v795_v40  ;;  %v8348_v56 = vcombine.low %v791_v59, %v795_v40  ;;  %v760_v40 = vld [vmem:[#allocation8 + $0x158] sm:$0xff] }
 0x1b7   :  { %2882 = vmatprep.subr.bf16.mxu1 %v8501_v54  ;;  %v923_v1 = vld [vmem:[#allocation8 + $0x670] sm:$0xff]  ;;  %v780_v54 = vld [vmem:[#allocation8 + $0x1f8] sm:$0xff] }
 0x1b8   :  { %2770 = vmatpush2.bf16.msra.mxu0 %v8372_v43  ;;  %v8477_v45 = vcombine.high %v919_v28, %v923_v1  ;;  %v783_v2 = vld [vmem:[#allocation8 + $0x210] sm:$0xff]  ;;  %v8476_v36 = vcombine.low %v919_v28, %v923_v1  ;;  %v8334_v14 = vcombine.low %v776_v52, %v780_v54  ;;  %v8326_v28 = vcombine.low %v768_v7, %v772_v61  ;;  %v888_v1 = vld [vmem:[#allocation8 + $0x558] sm:$0xff] }
 0x1b9   :  { %2771 = vmatprep.subr.bf16.mxu0 %v8365_v29  ;;  %v787_v44 = vld [vmem:[#allocation8 + $0x230] sm:$0xff]  ;;  %v908_v29 = vld [vmem:[#allocation8 + $0x5f8] sm:$0xff] }
 0x1ba   :  { %2883 = vmatpush2.bf16.msra.mxu1 %v8500_v31  ;;  %v911_v50 = vld [vmem:[#allocation8 + $0x610] sm:$0xff]  ;;  %v8341_v4 = vcombine.high %v783_v2, %v787_v44  ;;  %v8340_v8 = vcombine.low %v783_v2, %v787_v44  ;;  %v8335_v31 = vcombine.high %v776_v52, %v780_v54  ;;  %v8462_v59 = vcombine.low %v904_v39, %v908_v29  ;;  %v752_v2 = vld [vmem:[#allocation8 + $0x118] sm:$0xff] }
 0x1bb   :  { %2614 = vmatmul.mubr.bf16.gmra.mxu0 %v10824_v63  ;;  %2884 = vmatprep.subr.bf16.mxu1 %v8493_v6  ;;  %v915_v22 = vld [vmem:[#allocation8 + $0x630] sm:$0xff]  ;;  %v756_v44 = vld [vmem:[#allocation8 + $0x138] sm:$0xff] }
 0x1bc   :  { %2727 = vmatmul.mubr.bf16.gmra.mxu1 %v10826_v9  ;;  %2772 = vmatpush2.bf16.msra.mxu0 %v8364_v62  ;;  %v8469_v43 = vcombine.high %v911_v50, %v915_v22  ;;  %v8468_v6 = vcombine.low %v911_v50, %v915_v22  ;;  %v8463_v62 = vcombine.high %v904_v39, %v908_v29  ;;  %v880_v22 = vld [vmem:[#allocation8 + $0x518] sm:$0xff] }
 0x1bd   :  { %2623 = vmatprep.mubr.bf16.mxu0 %v10844_v37  ;;  %2736 = vmatprep.mubr.bf16.mxu1 %v10846_v41  ;;  %v744_v54 = vld [vmem:[#allocation8 + $0xd8] sm:$0xff]  ;;  %v8310_v39 = vcombine.low %v752_v2, %v756_v44 }
 0x1be   :  { %2885 = vmatpush2.bf16.msra.mxu1 %v8492_v13  ;;  %2773 = vmatprep.subr.bf16.mxu0 %v8357_v15  ;;  %v900_v13 = vld [vmem:[#allocation8 + $0x5b8] sm:$0xff]  ;;  %v8327_v15 = vcombine.high %v768_v7, %v772_v61 }
 0x1bf   :  { %2886 = vmatprep.subr.bf16.mxu1 %v8485_v51  ;;  %v764_v51 = vld [vmem:[#allocation8 + $0x178] sm:$0xff] }
 0x1c0   :  { %2774 = vmatpush2.bf16.msra.mxu0 %v8356_v60  ;;  %v8455_v60 = vcombine.high %v896_v3, %v900_v13  ;;  %v8318_v50 = vcombine.low %v760_v40, %v764_v51  ;;  %v872_v29 = vld [vmem:[#allocation8 + $0x4d8] sm:$0xff] }
 0x1c1   :  { %2775 = vmatprep.subr.bf16.mxu0 %v8349_v21  ;;  %v892_v21 = vld [vmem:[#allocation8 + $0x578] sm:$0xff] }
 0x1c2   :  { %2887 = vmatpush2.bf16.msra.mxu1 %v8484_v38  ;;  %v8319_v38 = vcombine.high %v760_v40, %v764_v51  ;;  %v8446_v52 = vcombine.low %v888_v1, %v892_v21  ;;  %v736_v61 = vld [vmem:[#allocation8 + $0x98] sm:$0xff] }
 0x1c3   :  { %2624 = vmatmul.mubr.bf16.gmra.mxu0 %v10848_v42  ;;  %2888 = vmatprep.subr.bf16.mxu1 %v8477_v45  ;;  %v8454_v45 = vcombine.low %v896_v3, %v900_v13  ;;  %v864_v13 = vld [vmem:[#allocation8 + $0x498] sm:$0xff] }
 0x1c4   :  { %2737 = vmatmul.mubr.bf16.gmra.mxu1 %v10850_v11  ;;  %2776 = vmatpush2.bf16.msra.mxu0 %v8348_v56  ;;  %v8447_v56 = vcombine.high %v888_v1, %v892_v21  ;;  %v728_v51 = vld [vmem:[#allocation8 + $0x58] sm:$0xff] }
 0x1c5   :  { %2779 = vmatprep.mubr.bf16.mxu0 %v10498_v0  ;;  %2892 = vmatprep.mubr.bf16.mxu1 %v10500_v30  ;;  %v856_v21 = vld [vmem:[#allocation8 + $0x458] sm:$0xff] }
 0x1c6   :  { %2889 = vmatpush2.bf16.msra.mxu1 %v8476_v36  ;;  %2777 = vmatprep.subr.bf16.mxu0 %v8341_v4  ;;  %v884_v36 = vld [vmem:[#allocation8 + $0x538] sm:$0xff]  ;;  %v8311_v4 = vcombine.high %v752_v2, %v756_v44 }
 0x1c7   :  { %2890 = vmatprep.subr.bf16.mxu1 %v8469_v43  ;;  %v748_v43 = vld [vmem:[#allocation8 + $0xf8] sm:$0xff]  ;;  %v8438_v7 = vcombine.low %v880_v22, %v884_v36 }
 0x1c8   :  { %2778 = vmatpush2.bf16.msra.mxu0 %v8340_v8  ;;  %v8439_v8 = vcombine.high %v880_v22, %v884_v36  ;;  %v8302_v3 = vcombine.low %v744_v54, %v748_v43  ;;  %v720_v44 = vld [vmem:[#allocation8 + $0x18] sm:$0xff] }
 0x1c9   :  { %2973 = vmatprep.subr.bf16.mxu0 %v8335_v31  ;;  %v876_v31 = vld [vmem:[#allocation8 + $0x4f8] sm:$0xff] }
 0x1ca   :  { %2891 = vmatpush2.bf16.msra.mxu1 %v8468_v6  ;;  %v8303_v6 = vcombine.high %v744_v54, %v748_v43  ;;  %v8430_v40 = vcombine.low %v872_v29, %v876_v31  ;;  %v848_v36 = vld [vmem:[#allocation8 + $0x418] sm:$0xff] }
 0x1cb   :  { %2780 = vmatmul.mubr.bf16.vlgmr.msra.gmra.mxu0 %v10504_v32  ;;  %3086 = vmatprep.subr.bf16.mxu1 %v8463_v62  ;;  %v740_v62 = vld [vmem:[#allocation8 + $0xb8] sm:$0xff] }
 0x1cc   :  { %2974 = vmatpush1.bf16.msra.mxu0 %v8334_v14  ;;  %2789 = vmatprep.mubr.bf16.mxu0 %v10556_v19  ;;  %v8431_v14 = vcombine.high %v872_v29, %v876_v31  ;;  %v8294_v1 = vcombine.low %v736_v61, %v740_v62  ;;  %v840_v43 = vld [vmem:[#allocation8 + $0x3d8] sm:$0xff] }
 0x1cd   :  { %2893 = vmatmul.mubr.bf16.vlgmr.msra.gmra.mxu1 %v10506_v33  ;;  %2975 = vmatprep.subr.bf16.mxu0 %v8327_v15  ;;  %v868_v15 = vld [vmem:[#allocation8 + $0x4b8] sm:$0xff] }
 0x1ce   :  { %2902 = vmatprep.mubr.bf16.mxu1 %v10558_v20  ;;  %3087 = vmatpush1.bf16.msra.mxu1 %v8462_v59  ;;  %v8295_v59 = vcombine.high %v736_v61, %v740_v62  ;;  %v8422_v2 = vcombine.low %v864_v13, %v868_v15  ;;  %v968_v31 = vld [vmem:[#allocation8 + $0x7d8] sm:$0xff] }
 0x1cf   :  { %3088 = vmatprep.subr.bf16.mxu1 %v8455_v60  ;;  %v732_v60 = vld [vmem:[#allocation8 + $0x78] sm:$0xff] }
 0x1d0   :  { %2976 = vmatpush1.bf16.msra.mxu0 %v8326_v28  ;;  %v8423_v28 = vcombine.high %v864_v13, %v868_v15  ;;  %v8286_v22 = vcombine.low %v728_v51, %v732_v60  ;;  %v832_v62 = vld [vmem:[#allocation8 + $0x398] sm:$0xff] }
 0x1d1   :  { %2977 = vmatprep.subr.bf16.mxu0 %v8319_v38  ;;  %v860_v38 = vld [vmem:[#allocation8 + $0x478] sm:$0xff] }
 0x1d2   :  { %3089 = vmatpush1.bf16.msra.mxu1 %v8454_v45  ;;  %v8287_v45 = vcombine.high %v728_v51, %v732_v60  ;;  %v8414_v54 = vcombine.low %v856_v21, %v860_v38  ;;  %v960_v15 = vld [vmem:[#allocation8 + $0x798] sm:$0xff] }
 0x1d3   :  { %2790 = vmatmul.mubr.bf16.gmra.mxu0 %v10564_v23  ;;  %3090 = vmatprep.subr.bf16.mxu1 %v8447_v56  ;;  %v724_v56 = vld [vmem:[#allocation8 + $0x38] sm:$0xff] }
 0x1d4   :  { %2978 = vmatpush1.bf16.msra.mxu0 %v8318_v50  ;;  %2799 = vmatprep.mubr.bf16.mxu0 %v10608_v5  ;;  %v8415_v50 = vcombine.high %v856_v21, %v860_v38  ;;  %v8278_v29 = vcombine.low %v720_v44, %v724_v56  ;;  %v824_v60 = vld [vmem:[#allocation8 + $0x358] sm:$0xff] }
 0x1d5   :  { %2903 = vmatmul.mubr.bf16.gmra.mxu1 %v10566_v24  ;;  %2979 = vmatprep.subr.bf16.mxu0 %v8311_v4  ;;  %v852_v4 = vld [vmem:[#allocation8 + $0x438] sm:$0xff] }
 0x1d6   :  { %2912 = vmatprep.mubr.bf16.mxu1 %v10610_v16  ;;  %3091 = vmatpush1.bf16.msra.mxu1 %v8446_v52  ;;  %v8279_v52 = vcombine.high %v720_v44, %v724_v56  ;;  %v8406_v61 = vcombine.low %v848_v36, %v852_v4  ;;  %v952_v38 = vld [vmem:[#allocation8 + $0x758] sm:$0xff] }
 0x1d7   :  { %3092 = vmatprep.subr.bf16.mxu1 %v8439_v8  ;;  %v844_v8 = vld [vmem:[#allocation8 + $0x3f8] sm:$0xff] }
 0x1d8   :  { %2980 = vmatpush1.bf16.msra.mxu0 %v8310_v39  ;;  %v8407_v39 = vcombine.high %v848_v36, %v852_v4  ;;  %v8398_v13 = vcombine.low %v840_v43, %v844_v8  ;;  %v816_v56 = vld [vmem:[#allocation8 + $0x318] sm:$0xff] }
 0x1d9   :  { %2981 = vmatprep.subr.bf16.mxu0 %v8303_v6  ;;  %v972_v6 = vld [vmem:[#allocation8 + $0x7f8] sm:$0xff] }
 0x1da   :  { %3093 = vmatpush1.bf16.msra.mxu1 %v8438_v7  ;;  %v8399_v7 = vcombine.high %v840_v43, %v844_v8  ;;  %v8526_v51 = vcombine.low %v968_v31, %v972_v6  ;;  %v944_v4 = vld [vmem:[#allocation8 + $0x718] sm:$0xff] }
 0x1db   :  { %2800 = vmatmul.mubr.bf16.gmra.mxu0 %v10616_v48  ;;  %3094 = vmatprep.subr.bf16.mxu1 %v8431_v14  ;;  %v836_v14 = vld [vmem:[#allocation8 + $0x3b8] sm:$0xff] }
 0x1dc   :  { %2982 = vmatpush1.bf16.msra.mxu0 %v8302_v3  ;;  %2809 = vmatprep.mubr.bf16.mxu0 %v10660_v57  ;;  %v8527_v3 = vcombine.high %v968_v31, %v972_v6  ;;  %v8390_v21 = vcombine.low %v832_v62, %v836_v14  ;;  %v808_v8 = vld [vmem:[#allocation8 + $0x2d8] sm:$0xff] }
 0x1dd   :  { %2913 = vmatmul.mubr.bf16.gmra.mxu1 %v10618_v17  ;;  %2983 = vmatprep.subr.bf16.mxu0 %v8295_v59  ;;  %v964_v59 = vld [vmem:[#allocation8 + $0x7b8] sm:$0xff] }
 0x1de   :  { %2922 = vmatprep.mubr.bf16.mxu1 %v10662_v47  ;;  %3095 = vmatpush1.bf16.msra.mxu1 %v8430_v40  ;;  %v8391_v40 = vcombine.high %v832_v62, %v836_v14  ;;  %v8518_v44 = vcombine.low %v960_v15, %v964_v59  ;;  %v936_v6 = vld [vmem:[#allocation8 + $0x6d8] sm:$0xff] }
 0x1df   :  { %3096 = vmatprep.subr.bf16.mxu1 %v8423_v28  ;;  %v828_v28 = vld [vmem:[#allocation8 + $0x378] sm:$0xff] }
 0x1e0   :  { %2984 = vmatpush1.bf16.msra.mxu0 %v8294_v1  ;;  %v8519_v1 = vcombine.high %v960_v15, %v964_v59  ;;  %v8382_v36 = vcombine.low %v824_v60, %v828_v28  ;;  %v800_v14 = vld [vmem:[#allocation8 + $0x298] sm:$0xff] }
 0x1e1   :  { %2985 = vmatprep.subr.bf16.mxu0 %v8287_v45  ;;  %v956_v45 = vld [vmem:[#allocation8 + $0x778] sm:$0xff] }
 0x1e2   :  { %3097 = vmatpush1.bf16.msra.mxu1 %v8422_v2  ;;  %v8383_v2 = vcombine.high %v824_v60, %v828_v28  ;;  %v8510_v43 = vcombine.low %v952_v38, %v956_v45  ;;  %v928_v59 = vld [vmem:[#allocation8 + $0x698] sm:$0xff] }
 0x1e3   :  { %2810 = vmatmul.mubr.bf16.gmra.mxu0 %v10668_v46  ;;  %3098 = vmatprep.subr.bf16.mxu1 %v8415_v50  ;;  %v820_v50 = vld [vmem:[#allocation8 + $0x338] sm:$0xff] }
 0x1e4   :  { %2986 = vmatpush1.bf16.msra.mxu0 %v8286_v22  ;;  %2819 = vmatprep.mubr.bf16.mxu0 %v10712_v58  ;;  %v8511_v22 = vcombine.high %v952_v38, %v956_v45  ;;  %v8374_v31 = vcombine.low %v816_v56, %v820_v50  ;;  %v792_v28 = vld [vmem:[#allocation8 + $0x258] sm:$0xff] }
 0x1e5   :  { %2923 = vmatmul.mubr.bf16.gmra.mxu1 %v10670_v18  ;;  %2987 = vmatprep.subr.bf16.mxu0 %v8279_v52  ;;  %v948_v52 = vld [vmem:[#allocation8 + $0x738] sm:$0xff] }
 0x1e6   :  { %2932 = vmatprep.mubr.bf16.mxu1 %v10714_v25  ;;  %3099 = vmatpush1.bf16.msra.mxu1 %v8414_v54  ;;  %v8375_v54 = vcombine.high %v816_v56, %v820_v50  ;;  %v8502_v62 = vcombine.low %v944_v4, %v948_v52  ;;  %v920_v45 = vld [vmem:[#allocation8 + $0x658] sm:$0xff] }
 0x1e7   :  { %3100 = vmatprep.subr.bf16.mxu1 %v8407_v39  ;;  %v812_v39 = vld [vmem:[#allocation8 + $0x2f8] sm:$0xff] }
 0x1e8   :  { %2988 = vmatpush1.bf16.msra.mxu0 %v8278_v29  ;;  %v8503_v29 = vcombine.high %v944_v4, %v948_v52  ;;  %v8366_v15 = vcombine.low %v808_v8, %v812_v39  ;;  %v784_v50 = vld [vmem:[#allocation8 + $0x218] sm:$0xff] }
 0x1e9   :  { %2989 = vmatprep.subr.bf16.mxu0 %v8399_v7  ;;  %v940_v7 = vld [vmem:[#allocation8 + $0x6f8] sm:$0xff] }
 0x1ea   :  { %3101 = vmatpush1.bf16.msra.mxu1 %v8406_v61  ;;  %v8367_v61 = vcombine.high %v808_v8, %v812_v39  ;;  %v8494_v60 = vcombine.low %v936_v6, %v940_v7  ;;  %v912_v52 = vld [vmem:[#allocation8 + $0x618] sm:$0xff] }
 0x1eb   :  { %2820 = vmatmul.mubr.bf16.gmra.mxu0 %v10720_v26  ;;  %3102 = vmatprep.subr.bf16.mxu1 %v8527_v3  ;;  %v804_v3 = vld [vmem:[#allocation8 + $0x2b8] sm:$0xff] }
 0x1ec   :  { %2990 = vmatpush2.bf16.msra.mxu0 %v8398_v13  ;;  %2829 = vmatprep.mubr.bf16.mxu0 %v10764_v49  ;;  %v8495_v13 = vcombine.high %v936_v6, %v940_v7  ;;  %v8358_v38 = vcombine.low %v800_v14, %v804_v3  ;;  %v9324_v7 = vld [vmem:[#allocation11 + $0x50c] ss:$28 sps:$4 sm:$0xff]  }
 0x1ed   :  { %2933 = vmatmul.mubr.bf16.gmra.mxu1 %v10722_v27  ;;  %2991 = vmatprep.subr.bf16.mxu0 %v8391_v40  ;;  %v932_v40 = vld [vmem:[#allocation8 + $0x6b8] sm:$0xff] }
 0x1ee   :  { %2942 = vmatprep.mubr.bf16.mxu1 %v10766_v10  ;;  %3103 = vmatpush2.bf16.msra.mxu1 %v8526_v51  ;;  %v8359_v51 = vcombine.high %v800_v14, %v804_v3  ;;  %v8486_v56 = vcombine.low %v928_v59, %v932_v40  ;;  %v9322_v14 = vld [vmem:[#allocation11 + $0x508] ss:$28 sps:$4 sm:$0xff]  }
 0x1ef   :  { %3104 = vmatprep.subr.bf16.mxu1 %v8519_v1  ;;  %v796_v1 = vld [vmem:[#allocation8 + $0x278] sm:$0xff] }
 0x1f0   :  { %2992 = vmatpush2.bf16.msra.mxu0 %v8390_v21  ;;  %v8487_v21 = vcombine.high %v928_v59, %v932_v40  ;;  %v8350_v4 = vcombine.low %v792_v28, %v796_v1  ;;  %v9315_v40 = vld [vmem:[#allocation11 + $0x11c] ss:$28 sps:$4 sm:$0xff]  }
 0x1f1   :  { %2993 = vmatprep.subr.bf16.mxu0 %v8383_v2  ;;  %v924_v2 = vld [vmem:[#allocation8 + $0x678] sm:$0xff] }
 0x1f2   :  { %3105 = vmatpush2.bf16.msra.mxu1 %v8518_v44  ;;  %v8351_v44 = vcombine.high %v792_v28, %v796_v1  ;;  %v8478_v8 = vcombine.low %v920_v45, %v924_v2  ;;  %v9313_v28 = vld [vmem:[#allocation11 + $0x118] ss:$28 sps:$4 sm:$0xff]  }
 0x1f3   :  { %2830 = vmatmul.mubr.bf16.gmra.mxu0 %v10772_v34  ;;  %3106 = vmatprep.subr.bf16.mxu1 %v8511_v22  ;;  %v788_v22 = vld [vmem:[#allocation8 + $0x238] sm:$0xff] }
 0x1f4   :  { %2994 = vmatpush2.bf16.msra.mxu0 %v8382_v36  ;;  %2839 = vmatprep.mubr.bf16.mxu0 %v10816_v12  ;;  %v8479_v36 = vcombine.high %v920_v45, %v924_v2  ;;  %v9342_v2 = vld [vmem:[#allocation11 + $0x464] ss:$28 sps:$4 sm:$0xff]  }
 0x1f5   :  { %2943 = vmatmul.mubr.bf16.gmra.mxu1 %v10774_v35  ;;  %2995 = vmatprep.subr.bf16.mxu0 %v8375_v54  ;;  %v916_v54 = vld [vmem:[#allocation8 + $0x638] sm:$0xff] }
 0x1f6   :  { %2952 = vmatprep.mubr.bf16.mxu1 %v10818_v55  ;;  %3107 = vmatpush2.bf16.msra.mxu1 %v8510_v43  ;;  %v8343_v43 = vcombine.high %v784_v50, %v788_v22  ;;  %v8471_v39 = vcombine.high %v912_v52, %v916_v54  ;;  %v8470_v6 = vcombine.low %v912_v52, %v916_v54  ;;  %v9319_v52 = vld [vmem:[#allocation11 + $0xa8] ss:$28 sps:$4 sm:$0xff]  }
 0x1f7   :  { %3108 = vmatprep.subr.bf16.mxu1 %v8503_v29  ;;  %v8342_v29 = vcombine.low %v784_v50, %v788_v22  ;;  %v9321_v22 = vld [vmem:[#allocation11 + $0xac] ss:$28 sps:$4 sm:$0xff]  }
 0x1f8   :  { %2996 = vmatpush2.bf16.msra.mxu0 %v8374_v31  ;;  %v9309_v31 = vld [vmem:[#allocation11 + $0x18c] ss:$28 sps:$4 sm:$0xff]  }
 0x1f9   :  { %2997 = vmatprep.subr.bf16.mxu0 %v8367_v61  ;;  %v9307_v61 = vld [vmem:[#allocation11 + $0x188] ss:$28 sps:$4 sm:$0xff]  }
 0x1fa   :  { %3109 = vmatpush2.bf16.msra.mxu1 %v8502_v62  ;;  %v9312_v62 = vld [vmem:[#allocation11 + $0x154] ss:$28 sps:$4 sm:$0xff]  }
 0x1fb   :  { %2840 = vmatmul.mubr.bf16.gmra.mxu0 %v10824_v63  ;;  %3110 = vmatprep.subr.bf16.mxu1 %v8495_v13  ;;  %v9330_v13 = vld [vmem:[#allocation11 + $0x4d4] ss:$28 sps:$4 sm:$0xff]  }
 0x1fc   :  { %2998 = vmatpush2.bf16.msra.mxu0 %v8366_v15  ;;  %2849 = vmatprep.mubr.bf16.mxu0 %v10844_v37 }
 0x1fd   :  { %2953 = vmatmul.mubr.bf16.gmra.mxu1 %v10826_v9  ;;  %2999 = vmatprep.subr.bf16.mxu0 %v8359_v51  ;;  %v9328_v51 = vld [vmem:[#allocation11 + $0x4d0] ss:$28 sps:$4 sm:$0xff]  }
 0x1fe   :  { %2962 = vmatprep.mubr.bf16.mxu1 %v10846_v41  ;;  %3111 = vmatpush2.bf16.msra.mxu1 %v8494_v60 }
 0x1ff   :  { %3112 = vmatprep.subr.bf16.mxu1 %v8487_v21  ;;  %v9318_v21 = vld [vmem:[#allocation11 + $0xe4] ss:$28 sps:$4 sm:$0xff]  }
 0x200   :  { %3000 = vmatpush2.bf16.msra.mxu0 %v8358_v38  ;;  %v9334_v38 = vld [vmem:[#allocation11 + $0x498] ss:$28 sps:$4 sm:$0xff]  }
 0x201   :  { %3001 = vmatprep.subr.bf16.mxu0 %v8351_v44  ;;  %v9316_v44 = vld [vmem:[#allocation11 + $0xe0] ss:$28 sps:$4 sm:$0xff]  }
 0x202   :  { %3113 = vmatpush2.bf16.msra.mxu1 %v8486_v56 }
 0x203   :  { %2850 = vmatmul.mubr.bf16.gmra.mxu0 %v10848_v42  ;;  %3114 = vmatprep.subr.bf16.mxu1 %v8479_v36  ;;  %v9340_v36 = vld [vmem:[#allocation11 + $0x460] ss:$28 sps:$4 sm:$0xff]  }
 0x204   :  { %3002 = vmatpush2.bf16.msra.mxu0 %v8350_v4  ;;  %3005 = vmatprep.mubr.bf16.mxu0 %v10498_v0 }
 0x205   :  { %2963 = vmatmul.mubr.bf16.gmra.mxu1 %v10850_v11  ;;  %3003 = vmatprep.subr.bf16.mxu0 %v8343_v43  ;;  %v9327_v43 = vld [vmem:[#allocation11 + $0x74] ss:$28 sps:$4 sm:$0xff]  }
 0x206   :  { %3115 = vmatpush2.bf16.msra.mxu1 %v8478_v8  ;;  %3118 = vmatprep.mubr.bf16.mxu1 %v10500_v30  ;;  %v9310_v30 = vld [vmem:[#allocation11 + $0x150] ss:$28 sps:$4 sm:$0xff]   ;;  %v9346_v8 = vld [vmem:[#allocation11 + $0x428] ss:$28 sps:$4 sm:$0xff]  }
 0x207   :  { %3116 = vmatprep.subr.bf16.mxu1 %v8471_v39 }
 0x208   :  { %3004 = vmatpush2.bf16.msra.mxu0 %v8342_v29  ;;  %v9354_v29 = vld [vmem:[#allocation11 + $0x3f4] ss:$28 sps:$4 sm:$0xff]  }
 0x209   :  { %6244 = vmatprep.subr.bf16.mxu0 %v9309_v31  ;;  %v9325_v31 = vld [vmem:[#allocation11 + $0x70] ss:$28 sps:$4 sm:$0xff]  }
 0x20a   :  { %3117 = vmatpush2.bf16.msra.mxu1 %v8470_v6 }
 0x20b   :  { %v10922_v3 = vpop.f32.mrf.mxu0  ;;  %v10924_v0 = vpop.f32.mrf.mxu1  ;;  %3006 = vmatmul.mubr.bf16.vlgmr.msra.gmra.mxu0 %v10504_v32  ;;  %6357 = vmatprep.subr.bf16.mxu1 %v9324_v7 }
 0x20c   :  { %3015 = vmatprep.mubr.bf16.mxu0 %v10556_v19  ;;  %6245 = vmatpush1.bf16.msra.mxu0 %v9307_v61  ;;  %v9336_v19 = vld [vmem:[#allocation11 + $0x49c] ss:$28 sps:$4 sm:$0xff]  }
 0x20d   :  { %3119 = vmatmul.mubr.bf16.vlgmr.msra.gmra.mxu1 %v10506_v33  ;;  %v10929_v15 = vpop.f32.mrf.mxu0  ;;  %v10931_v59 = vpop.f32.mrf.mxu1  ;;  %6246 = vmatprep.subr.bf16.mxu0 %v9312_v62  ;;  %v9333_v61 = vld [vmem:[#allocation11 + $0x3c] ss:$28 sps:$4 sm:$0xff]   ;;  %v9352_v62 = vld [vmem:[#allocation11 + $0x3f0] ss:$28 sps:$4 sm:$0xff]  }
 0x20e   :  { %3128 = vmatprep.mubr.bf16.mxu1 %v10558_v20  ;;  %6358 = vmatpush1.bf16.msra.mxu1 %v9322_v14 }
 0x20f   :  { %v10934_v60 = vpop.f32.mrf.mxu0  ;;  %v10936_v32 = vpop.f32.mrf.mxu1  ;;  %6359 = vmatprep.subr.bf16.mxu1 %v9330_v13  ;;  %v9331_v13 = vld [vmem:[#allocation11 + $0x38] ss:$28 sps:$4 sm:$0xff]  }
 0x210   :  { %6247 = vmatpush1.bf16.msra.mxu0 %v9310_v30 }
 0x211   :  { %v10938_v1 = vpop.f32.mrf.mxu0  ;;  %v10940_v33 = vpop.f32.mrf.mxu1  ;;  %6248 = vmatprep.subr.bf16.mxu0 %v9315_v40  ;;  %v9339_v40 = vld [vmem:[#allocation11 + $0x4] ss:$28 sps:$4 sm:$0xff]  }
 0x212   :  { %6360 = vmatpush1.bf16.msra.mxu1 %v9328_v51  ;;  %v9358_v51 = vld [vmem:[#allocation11 + $0x3b8] ss:$28 sps:$4 sm:$0xff]  }
 0x213   :  { %v10942_v45 = vpop.f32.mrf.mxu0  ;;  %v10944_v20 = vpop.f32.mrf.mxu1  ;;  %3016 = vmatmul.mubr.bf16.gmra.mxu0 %v10564_v23  ;;  %6361 = vmatprep.subr.bf16.mxu1 %v9336_v19 }
 0x214   :  { %3025 = vmatprep.mubr.bf16.mxu0 %v10608_v5  ;;  %6249 = vmatpush1.bf16.msra.mxu0 %v9313_v28  ;;  %v9348_v5 = vld [vmem:[#allocation11 + $0x42c] ss:$28 sps:$4 sm:$0xff]   ;;  %v9366_v28 = vld [vmem:[#allocation11 + $0x384] ss:$28 sps:$4 sm:$0xff]  }
 0x215   :  { %3129 = vmatmul.mubr.bf16.gmra.mxu1 %v10566_v24  ;;  %v10949_v56 = vpop.f32.mrf.mxu0  ;;  %v10951_v50 = vpop.f32.mrf.mxu1  ;;  %6250 = vmatprep.subr.bf16.mxu0 %v9318_v21  ;;  %v9337_v21 = vld [vmem:[#allocation11] ss:$28 sps:$4 sm:$0xff]  }
 0x216   :  { %3138 = vmatprep.mubr.bf16.mxu1 %v10610_v16  ;;  %6362 = vmatpush1.bf16.msra.mxu1 %v9334_v38 }
 0x217   :  { %v10954_v4 = vpop.f32.mrf.mxu0  ;;  %v10956_v23 = vpop.f32.mrf.mxu1  ;;  %6363 = vmatprep.subr.bf16.mxu1 %v9342_v2 }
 0x218   :  { %6251 = vmatpush1.bf16.msra.mxu0 %v9316_v44  ;;  %v9345_v44 = vld [vmem:[#allocation11 + $0x34c] ss:$28 sps:$4 sm:$0xff]  }
 0x219   :  { %v10958_v54 = vpop.f32.mrf.mxu0  ;;  %v10960_v24 = vpop.f32.mrf.mxu1  ;;  %6252 = vmatprep.subr.bf16.mxu0 %v9321_v22  ;;  %v9364_v22 = vld [vmem:[#allocation11 + $0x380] ss:$28 sps:$4 sm:$0xff]  }
 0x21a   :  { %6364 = vmatpush1.bf16.msra.mxu1 %v9340_v36 }
 0x21b   :  { %v10962_v39 = vpop.f32.mrf.mxu0  ;;  %v10964_v16 = vpop.f32.mrf.mxu1  ;;  %3026 = vmatmul.mubr.bf16.gmra.mxu0 %v10616_v48  ;;  %6365 = vmatprep.subr.bf16.mxu1 %v9348_v5  ;;  %v9343_v5 = vld [vmem:[#allocation11 + $0x348] ss:$28 sps:$4 sm:$0xff]  }
 0x21c   :  { %3035 = vmatprep.mubr.bf16.mxu0 %v10660_v57  ;;  %6253 = vmatpush1.bf16.msra.mxu0 %v9319_v52  ;;  %v9360_v57 = vld [vmem:[#allocation11 + $0x3bc] ss:$28 sps:$4 sm:$0xff]  }
 0x21d   :  { %3139 = vmatmul.mubr.bf16.gmra.mxu1 %v10618_v17  ;;  %v10969_v6 = vpop.f32.mrf.mxu0  ;;  %v10971_v7 = vpop.f32.mrf.mxu1  ;;  %6254 = vmatprep.subr.bf16.mxu0 %v9327_v43  ;;  %v9351_v43 = vld [vmem:[#allocation11 + $0x314] ss:$28 sps:$4 sm:$0xff]  }
 0x21e   :  { %3148 = vmatprep.mubr.bf16.mxu1 %v10662_v47  ;;  %6366 = vmatpush1.bf16.msra.mxu1 %v9346_v8  ;;  %v9370_v8 = vld [vmem:[#allocation11 + $0x6c8] ss:$28 sps:$4 sm:$0xff]  }
 0x21f   :  { %v10974_v14 = vpop.f32.mrf.mxu0  ;;  %v10976_v48 = vpop.f32.mrf.mxu1  ;;  %6367 = vmatprep.subr.bf16.mxu1 %v9354_v29 }
 0x220   :  { %6255 = vmatpush1.bf16.msra.mxu0 %v9325_v31  ;;  %v9378_v31 = vld [vmem:[#allocation11 + $0x694] ss:$28 sps:$4 sm:$0xff]  }
 0x221   :  { %v10978_v30 = vpop.f32.mrf.mxu0  ;;  %v10980_v17 = vpop.f32.mrf.mxu1  ;;  %6256 = vmatprep.subr.bf16.mxu0 %v9333_v61  ;;  %v9349_v61 = vld [vmem:[#allocation11 + $0x310] ss:$28 sps:$4 sm:$0xff]  }
 0x222   :  { %6368 = vmatpush1.bf16.msra.mxu1 %v9352_v62 }
 0x223   :  { %v10982_v19 = vpop.f32.mrf.mxu0  ;;  %v10984_v47 = vpop.f32.mrf.mxu1  ;;  %3036 = vmatmul.mubr.bf16.gmra.mxu0 %v10668_v46  ;;  %6369 = vmatprep.subr.bf16.mxu1 %v9360_v57 }
 0x224   :  { %3045 = vmatprep.mubr.bf16.mxu0 %v10712_v58  ;;  %6257 = vmatpush1.bf16.msra.mxu0 %v9331_v13  ;;  %v9372_v58 = vld [vmem:[#allocation11 + $0x6cc] ss:$28 sps:$4 sm:$0xff]   ;;  %v9357_v13 = vld [vmem:[#allocation11 + $0x2dc] ss:$28 sps:$4 sm:$0xff]  }
 0x225   :  { %3149 = vmatmul.mubr.bf16.gmra.mxu1 %v10670_v18  ;;  %v10989_v38 = vpop.f32.mrf.mxu0  ;;  %v10991_v2 = vpop.f32.mrf.mxu1  ;;  %6258 = vmatprep.subr.bf16.mxu0 %v9339_v40  ;;  %v9376_v40 = vld [vmem:[#allocation11 + $0x690] ss:$28 sps:$4 sm:$0xff]  }
 0x226   :  { %3158 = vmatprep.mubr.bf16.mxu1 %v10714_v25  ;;  %6370 = vmatpush1.bf16.msra.mxu1 %v9358_v51 }
 0x227   :  { %v10994_v36 = vpop.f32.mrf.mxu0  ;;  %v10996_v46 = vpop.f32.mrf.mxu1  ;;  %6371 = vmatprep.subr.bf16.mxu1 %v9366_v28  ;;  %v9355_v28 = vld [vmem:[#allocation11 + $0x2d8] ss:$28 sps:$4 sm:$0xff]  }
 0x228   :  { %6259 = vmatpush1.bf16.msra.mxu0 %v9337_v21 }
 0x229   :  { %v10998_v52 = vpop.f32.mrf.mxu0  ;;  %v11000_v18 = vpop.f32.mrf.mxu1  ;;  %6260 = vmatprep.subr.bf16.mxu0 %v9345_v44  ;;  %v9363_v44 = vld [vmem:[#allocation11 + $0x2a4] ss:$28 sps:$4 sm:$0xff]  }
 0x22a   :  { %6372 = vmatpush1.bf16.msra.mxu1 %v9364_v22  ;;  %v9382_v22 = vld [vmem:[#allocation11 + $0x658] ss:$28 sps:$4 sm:$0xff]  }
 0x22b   :  { %v11002_v29 = vpop.f32.mrf.mxu0  ;;  %v11004_v25 = vpop.f32.mrf.mxu1  ;;  %3046 = vmatmul.mubr.bf16.gmra.mxu0 %v10720_v26  ;;  %6373 = vmatprep.subr.bf16.mxu1 %v9372_v58  ;;  %v11022_v58 = vld [vmem:[#allocation10] sm:$0xff] }
 0x22c   :  { %3055 = vmatprep.mubr.bf16.mxu0 %v10764_v49  ;;  %6261 = vmatpush2.bf16.msra.mxu0 %v9343_v5  ;;  %v9384_v49 = vld [vmem:[#allocation11 + $0x65c] ss:$28 sps:$4 sm:$0xff]  }
 0x22d   :  { %3159 = vmatmul.mubr.bf16.gmra.mxu1 %v10722_v27  ;;  %v11009_v62 = vpop.f32.mrf.mxu0  ;;  %v11011_v57 = vpop.f32.mrf.mxu1  ;;  %6262 = vmatprep.subr.bf16.mxu0 %v9351_v43  ;;  %v9390_v43 = vld [vmem:[#allocation11 + $0x624] ss:$28 sps:$4 sm:$0xff]  }
 0x22e   :  { %3168 = vmatprep.mubr.bf16.mxu1 %v10766_v10  ;;  %6374 = vmatpush2.bf16.msra.mxu1 %v9370_v8  ;;  %v11031_v8 = vrot.slane %v11022_v58, %v10459_v53 }
 0x22f   :  { %v11014_v51 = vpop.f32.mrf.mxu0  ;;  %v11016_v26 = vpop.f32.mrf.mxu1  ;;  %6375 = vmatprep.subr.bf16.mxu1 %v9378_v31  ;;  %v9361_v31 = vld [vmem:[#allocation11 + $0x2a0] ss:$28 sps:$4 sm:$0xff]  }
 0x230   :  { %6263 = vmatpush2.bf16.msra.mxu0 %v9349_v61 }
 0x231   :  { %v11018_v21 = vpop.f32.mrf.mxu0  ;;  %v11020_v27 = vpop.f32.mrf.mxu1  ;;  %6264 = vmatprep.subr.bf16.mxu0 %v9357_v13 }
 0x232   :  { %6376 = vmatpush2.bf16.msra.mxu1 %v9376_v40  ;;  %v9369_v40 = vld [vmem:[#allocation11 + $0x26c] ss:$28 sps:$4 sm:$0xff]  }
 0x233   :  { %v11024_v10 = vpop.f32.mrf.mxu0  ;;  %v11026_v5 = vpop.f32.mrf.mxu1  ;;  %3056 = vmatmul.mubr.bf16.gmra.mxu0 %v10772_v34  ;;  %6377 = vmatprep.subr.bf16.mxu1 %v9384_v49  ;;  %v2336_v34 = vadd.f32 %v10938_v1, %v11031_v8  ;;  %v9388_v49 = vld [vmem:[#allocation11 + $0x620] ss:$28 sps:$4 sm:$0xff]   ;;  %v9375_v1 = vld [vmem:[#allocation11 + $0x234] ss:$28 sps:$4 sm:$0xff]  }
 0x234   :  { %13097 = vst [vmem:[#allocation25_spill] sm:$0xff] %v11024_v10  ;;  %13098 = vst [vmem:[#allocation26_spill] sm:$0xff] %v11026_v5  ;;  %3065 = vmatprep.mubr.bf16.mxu0 %v10816_v12  ;;  %6265 = vmatpush2.bf16.msra.mxu0 %v9355_v28  ;;  %v9393_v28 = vld [vmem:[#allocation11 + $0x5ec] ss:$28 sps:$4 sm:$0xff]  }
 0x235   :  { %3169 = vmatmul.mubr.bf16.gmra.mxu1 %v10774_v35  ;;  %v11035_v61 = vpop.f32.mrf.mxu0  ;;  %v11037_v13 = vpop.f32.mrf.mxu1  ;;  %6266 = vmatprep.subr.bf16.mxu0 %v9363_v44  ;;  %v2332_v35 = vadd.f32 %v10929_v15, %v11031_v8  ;;  %v9367_v5 = vld [vmem:[#allocation11 + $0x268] ss:$28 sps:$4 sm:$0xff]   ;;  %v9396_v15 = vld [vmem:[#allocation11 + $0x5b4] ss:$28 sps:$4 sm:$0xff]  }
 0x236   :  { %13099 = vst [vmem:[#allocation27_spill] sm:$0xff] %v11037_v13  ;;  %3178 = vmatprep.mubr.bf16.mxu1 %v10818_v55  ;;  %6378 = vmatpush2.bf16.msra.mxu1 %v9382_v22  ;;  %v2449_v55 = vadd.f32 %v10940_v33, %v2336_v34  ;;  %v9391_v22 = vld [vmem:[#allocation11 + $0x5e8] ss:$28 sps:$4 sm:$0xff]   ;;  %v9373_v33 = vld [vmem:[#allocation11 + $0x230] ss:$28 sps:$4 sm:$0xff]  }
 0x237   :  { %v11042_v53 = vpop.f32.mrf.mxu0  ;;  %v11044_v12 = vpop.f32.mrf.mxu1  ;;  %6379 = vmatprep.subr.bf16.mxu1 %v9390_v43  ;;  %v13102_v13 = vld [vmem:[#allocation23_spill] sm:$0xff] }
 0x238   :  { %13100 = vst [vmem:[#allocation28_spill] sm:$0xff] %v11042_v53  ;;  %13101 = vst [vmem:[#allocation29_spill] sm:$0xff] %v11044_v12  ;;  %6267 = vmatpush2.bf16.msra.mxu0 %v9361_v31  ;;  %v11055_v12 = vrot.slane %v11022_v58, %v13102_v13  ;;  %v2445_v31 = vadd.f32 %v10931_v59, %v2332_v35  ;;  %v9381_v13 = vld [vmem:[#allocation11 + $0x1fc] ss:$28 sps:$4 sm:$0xff]  }
 0x239   :  { %v11048_v44 = vpop.f32.mrf.mxu0  ;;  %v11050_v10 = vpop.f32.mrf.mxu1  ;;  %6268 = vmatprep.subr.bf16.mxu0 %v9369_v40 }
 0x23a   :  { %6380 = vmatpush2.bf16.msra.mxu1 %v9388_v49  ;;  %v2334_v40 = vadd.f32 %v10934_v60, %v11055_v12  ;;  %v2330_v59 = vadd.f32 %v10922_v3, %v11055_v12  ;;  %v3200_v35 = vmax.f32 %v2445_v31, 0.0  ;;  %v9387_v3 = vld [vmem:[#allocation11 + $0x1c4] ss:$28 sps:$4 sm:$0xff]  }
 0x23b   :  { %v11057_v43 = vpop.f32.mrf.mxu0  ;;  %v11059_v53 = vpop.f32.mrf.mxu1  ;;  %3066 = vmatmul.mubr.bf16.gmra.mxu0 %v10824_v63  ;;  %6381 = vmatprep.subr.bf16.mxu1 %v9393_v28  ;;  %v3208_v63 = vmax.f32 %v2449_v55, 0.0  ;;  %v2346_v28 = vadd.f32 %v10958_v54, %v11031_v8  ;;  %v9379_v55 = vld [vmem:[#allocation11 + $0x1f8] ss:$28 sps:$4 sm:$0xff]  }
 0x23c   :  { %13103 = vst [vmem:[#allocation30_spill] sm:$0xff] %v11059_v53  ;;  %3075 = vmatprep.mubr.bf16.mxu0 %v10844_v37  ;;  %6269 = vmatpush2.bf16.msra.mxu0 %v9367_v5  ;;  %v9394_v37 = vld [vmem:[#allocation11 + $0x5b0] ss:$28 sps:$4 sm:$0xff]   ;;  %v9399_v5 = vld [vmem:[#allocation11 + $0x57c] ss:$28 sps:$4 sm:$0xff]   ;;  %v2447_v54 = vadd.f32 %v10936_v32, %v2334_v40  ;;  %v2443_v31 = vadd.f32 %v10924_v0, %v2330_v59 }
 0x23d   :  { %3179 = vmatmul.mubr.bf16.gmra.mxu1 %v10826_v9  ;;  %v11067_v34 = vpop.f32.mrf.mxu0  ;;  %v11069_v49 = vpop.f32.mrf.mxu1  ;;  %6270 = vmatprep.subr.bf16.mxu0 %v9375_v1  ;;  %v2342_v1 = vadd.f32 %v10949_v56, %v11031_v8  ;;  %v11087_v53 = vpack.c.bf16 %v3208_v63, %v3200_v35  ;;  %v9402_v32 = vld [vmem:[#allocation11 + $0x544] ss:$28 sps:$4 sm:$0xff]  }
 0x23e   :  { %3188 = vmatprep.mubr.bf16.mxu1 %v10846_v41  ;;  %6382 = vmatpush2.bf16.msra.mxu1 %v9391_v22  ;;  %v3207_v40 = vmax.f32 %v2447_v54, 0.0  ;;  %v3199_v59 = vmax.f32 %v2443_v31, 0.0 }
 0x23f   :  { %v11076_v60 = vpop.f32.mrf.mxu0  ;;  %v11078_v9 = vpop.f32.mrf.mxu1  ;;  %6383 = vmatprep.subr.bf16.mxu1 %v9396_v15  ;;  %13106 = vst [vmem:[#allocation33_spill] sm:$0xff] %v11087_v53  ;;  %v9397_v15 = vld [vmem:[#allocation11 + $0x578] ss:$28 sps:$4 sm:$0xff]  }
 0x240   :  { %13104 = vst [vmem:[#allocation31_spill] sm:$0xff] %v11076_v60  ;;  %13105 = vst [vmem:[#allocation32_spill] sm:$0xff] %v11078_v9  ;;  %6271 = vmatpush2.bf16.msra.mxu0 %v9373_v33  ;;  %v2459_v9 = vadd.f32 %v10960_v24, %v2346_v28  ;;  %v2455_v33 = vadd.f32 %v10951_v50, %v2342_v1  ;;  %v2344_v24 = vadd.f32 %v10954_v4, %v11055_v12 }
 0x241   :  { %v11083_v41 = vpop.f32.mrf.mxu0  ;;  %v11085_v22 = vpop.f32.mrf.mxu1  ;;  %6272 = vmatprep.subr.bf16.mxu0 %v9381_v13  ;;  %v9385_v13 = vld [vmem:[#allocation11 + $0x1c0] ss:$28 sps:$4 sm:$0xff]   ;;  %v2356_v50 = vadd.f32 %v10978_v30, %v11031_v8  ;;  %v11115_v54 = vpack.c.bf16 %v3207_v40, %v3199_v59 }
 0x242   :  { %6384 = vmatpush2.bf16.msra.mxu1 %v9394_v37  ;;  %v3224_v28 = vmax.f32 %v2459_v9, 0.0  ;;  %v9400_v37 = vld [vmem:[#allocation11 + $0x540] ss:$28 sps:$4 sm:$0xff]   ;;  %v3216_v1 = vmax.f32 %v2455_v33, 0.0  ;;  %v9403_v9 = vld [vmem:[#allocation11 + $0x888] ss:$28 sps:$4 sm:$0xff]   ;;  %v2457_v30 = vadd.f32 %v10956_v23, %v2344_v24  ;;  %v2350_v24 = vadd.f32 %v10962_v39, %v11055_v12 }
 0x243   :  { %v11091_v60 = vpop.f32.mrf.mxu0  ;;  %v11093_v56 = vpop.f32.mrf.mxu1  ;;  %3076 = vmatmul.mubr.bf16.gmra.mxu0 %v10848_v42  ;;  %6385 = vmatprep.subr.bf16.mxu1 %v9399_v5  ;;  %v9405_v42 = vld [vmem:[#allocation11 + $0x88c] ss:$28 sps:$4 sm:$0xff]   ;;  %v2340_v5 = vadd.f32 %v10942_v45, %v11055_v12  ;;  %13107 = vst [vmem:[#allocation34_spill] sm:$0xff] %v11115_v54  ;;  %v9408_v45 = vld [vmem:[#allocation11 + $0x854] ss:$28 sps:$4 sm:$0xff]   ;;  %v13109_v33 = vld [vmem:[#allocation22_spill] sm:$0xff] }
 0x244   :  { %6273 = vmatpush2.bf16.msra.mxu0 %v9379_v55  ;;  %6276 = vmatprep.mubr.bf16.mxu0 %v11087_v53  ;;  %v2352_v55 = vadd.f32 %v10969_v6, %v11031_v8  ;;  %v11122_v31 = vpack.c.bf16 %v3224_v28, %v3216_v1  ;;  %v11127_v53 = vrot.slane %v11022_v58, %v13109_v33  ;;  %v9406_v28 = vld [vmem:[#allocation11 + $0x850] ss:$28 sps:$4 sm:$0xff]  }
 0x245   :  { %3189 = vmatmul.mubr.bf16.gmra.mxu1 %v10850_v11  ;;  %v11101_v0 = vpop.f32.mrf.mxu0  ;;  %v11103_v63 = vpop.f32.mrf.mxu1  ;;  %6274 = vmatprep.subr.bf16.mxu0 %v9387_v3  ;;  %v9453_v11 = vld [vmem:[#allocation11 + $0xc0c] ss:$28 sps:$4 sm:$0xff]   ;;  %v2453_v6 = vadd.f32 %v10944_v20, %v2340_v5  ;;  %v2354_v20 = vadd.f32 %v10974_v14, %v11055_v12  ;;  %v9411_v5 = vld [vmem:[#allocation11 + $0x81c] ss:$28 sps:$4 sm:$0xff]   ;;  %v2463_v33 = vadd.f32 %v10964_v16, %v2350_v24 }
 0x246   :  { %6386 = vmatpush2.bf16.msra.mxu1 %v9397_v15  ;;  %13108 = vst [vmem:[#allocation35_spill] sm:$0xff] %v11122_v31 }
 0x247   :  { %v11109_v35 = vpop.f32.mrf.mxu0  ;;  %v11111_v4 = vpop.f32.mrf.mxu1  ;;  %6387 = vmatprep.subr.bf16.mxu1 %v9402_v32  ;;  %v2469_v32 = vadd.f32 %v10980_v17, %v2356_v50  ;;  %v2465_v17 = vadd.f32 %v10971_v7, %v2352_v55  ;;  %v3223_v50 = vmax.f32 %v2457_v30, 0.0  ;;  %v3215_v7 = vmax.f32 %v2453_v6, 0.0 }
 0x248   :  { %6275 = vmatpush2.bf16.msra.mxu0 %v9385_v13  ;;  %v13110_v13 = vld [vmem:[#allocation24_spill] sm:$0xff]  ;;  %v2362_v55 = vadd.f32 %v10989_v38, %v11031_v8  ;;  %v2364_v6 = vadd.f32 %v10994_v36, %v11055_v12  ;;  %v3231_v36 = vmax.f32 %v2463_v33, 0.0  ;;  %v2372_v33 = vadd.f32 %v11009_v62, %v11031_v8 }
 0x249   :  { %v11118_v3 = vpop.f32.mrf.mxu0  ;;  %v11120_v15 = vpop.f32.mrf.mxu1  ;;  %6470 = vmatprep.subr.bf16.mxu0 %v9405_v42  ;;  %v11132_v23 = vrot.slane %v11022_v58, %v13110_v13  ;;  %v3232_v14 = vmax.f32 %v2465_v17, 0.0  ;;  %v9415_v62 = vld [vmem:[#allocation11 + $0x7a8] ss:$28 sps:$4 sm:$0xff]  }
 0x24a   :  { %6388 = vmatpush2.bf16.msra.mxu1 %v9400_v37  ;;  %v2366_v37 = vadd.f32 %v10998_v52, %v11031_v8 }
 0x24b   :  { %v2555_v40 = vpop.f32.mrf.mxu0  ;;  %6277 = vmatmul.mubr.bf16.vlgmr.msra.gmra.mxu0 %v11115_v54  ;;  %6583 = vmatprep.subr.bf16.mxu1 %v9453_v11  ;;  %v3240_v11 = vmax.f32 %v2469_v32, 0.0  ;;  %v2467_v32 = vadd.f32 %v10976_v48, %v2354_v20  ;;  %v2475_v48 = vadd.f32 %v10991_v2, %v2362_v55 }
 0x24c   :  { %v2668_v42 = vpop.f32.mrf.mxu1  ;;  %6286 = vmatprep.mubr.bf16.mxu0 %v11122_v31  ;;  %6471 = vmatpush1.bf16.msra.mxu0 %v9403_v9  ;;  %v2556_v9 = vadd.f32 %v2555_v40, %v11132_v23  ;;  %v11149_v31 = vpack.c.bf16 %v3223_v50, %v3215_v7  ;;  %v2479_v38 = vadd.f32 %v11000_v18, %v2366_v37  ;;  %v9414_v40 = vld [vmem:[#allocation11 + $0x7e4] ss:$28 sps:$4 sm:$0xff]  }
 0x24d   :  { %v2557_v59 = vpop.f32.mrf.mxu0  ;;  %6472 = vmatprep.subr.bf16.mxu0 %v9408_v45  ;;  %v9409_v45 = vld [vmem:[#allocation11 + $0x818] ss:$28 sps:$4 sm:$0xff]   ;;  %v11155_v54 = vpack.c.bf16 %v3240_v11, %v3232_v14  ;;  %v2360_v50 = vadd.f32 %v10982_v19, %v11055_v12  ;;  %v2376_v18 = vadd.f32 %v11018_v21, %v11031_v8  ;;  %v3239_v11 = vmax.f32 %v2467_v32, 0.0 }
 0x24e   :  { %v2558_v39 = vadd.f32 %v2557_v59, %v11127_v53  ;;  %v2670_v1 = vpop.f32.mrf.mxu1  ;;  %13111 = vst [vmem:[#allocation36_spill] sm:$0xff] %v11149_v31  ;;  %v2669_v20 = vadd.f32 %v2668_v42, %v2556_v9  ;;  %v3256_v19 = vmax.f32 %v2479_v38, 0.0  ;;  %v9417_v42 = vld [vmem:[#allocation11 + $0x7ac] ss:$28 sps:$4 sm:$0xff]  }
 0x24f   :  { %v2559_v30 = vpop.f32.mrf.mxu0  ;;  %13112 = vst [vmem:[#allocation37_spill] sm:$0xff] %v11155_v54  ;;  %v2473_v14 = vadd.f32 %v10984_v47, %v2360_v50  ;;  %v9420_v50 = vld [vmem:[#allocation11 + $0x774] ss:$28 sps:$4 sm:$0xff]  }
 0x250   :  { %v2560_v13 = vadd.f32 %v2559_v30, %v11132_v23  ;;  %v2672_v52 = vpop.f32.mrf.mxu1  ;;  %6473 = vmatpush1.bf16.msra.mxu0 %v9406_v28  ;;  %v2671_v16 = vadd.f32 %v2670_v1, %v2558_v39  ;;  %v2477_v39 = vadd.f32 %v10996_v46, %v2364_v6  ;;  %v2489_v6 = vadd.f32 %v11020_v27, %v2376_v18 }
 0x251   :  { %v2561_v59 = vpop.f32.mrf.mxu0  ;;  %6474 = vmatprep.subr.bf16.mxu0 %v9411_v5  ;;  %v2485_v27 = vadd.f32 %v11011_v57, %v2372_v33  ;;  %v2374_v57 = vadd.f32 %v11014_v51, %v11055_v12  ;;  %v9418_v33 = vld [vmem:[#allocation11 + $0x770] ss:$28 sps:$4 sm:$0xff]  }
 0x252   :  { %v2673_v24 = vadd.f32 %v2672_v52, %v2560_v13  ;;  %v2562_v17 = vadd.f32 %v2561_v59, %v11127_v53  ;;  %v2674_v28 = vpop.f32.mrf.mxu1  ;;  %v9412_v13 = vld [vmem:[#allocation11 + $0x7e0] ss:$28 sps:$4 sm:$0xff]   ;;  %v3202_v55 = vmax.f32 %v2671_v16, 0.0  ;;  %v3248_v52 = vmax.f32 %v2475_v48, 0.0  ;;  %v9451_v48 = vld [vmem:[#allocation11 + $0xc08] ss:$28 sps:$4 sm:$0xff]  }
 0x253   :  { %v2565_v7 = vpop.f32.mrf.mxu0  ;;  %6287 = vmatmul.mubr.bf16.gmra.mxu0 %v11149_v31  ;;  %v11175_v16 = vpack.c.bf16 %v3239_v11, %v3231_v36  ;;  %v9459_v36 = vld [vmem:[#allocation11 + $0xbd4] ss:$28 sps:$4 sm:$0xff]   ;;  %v2370_v11 = vadd.f32 %v11002_v29, %v11055_v12  ;;  %v2386_v29 = vadd.f32 %v11048_v44, %v11031_v8 }
 0x254   :  { %v2675_v37 = vadd.f32 %v2674_v28, %v2562_v17  ;;  %v2678_v5 = vpop.f32.mrf.mxu1  ;;  %6296 = vmatprep.mubr.bf16.mxu0 %v11155_v54  ;;  %6475 = vmatpush1.bf16.msra.mxu0 %v9409_v45  ;;  %v3209_v1 = vmax.f32 %v2673_v24, 0.0  ;;  %v3201_v45 = vmax.f32 %v2669_v20, 0.0  ;;  %v2566_v32 = vadd.f32 %v2565_v7, %v11132_v23 }
 0x255   :  { %v2567_v2 = vpop.f32.mrf.mxu0  ;;  %6476 = vmatprep.subr.bf16.mxu0 %v9414_v40  ;;  %13114 = vst [vmem:[#allocation39_spill] sm:$0xff] %v11175_v16  ;;  %v3255_v24 = vmax.f32 %v2477_v39, 0.0  ;;  %v11177_v17 = vpack.c.bf16 %v3256_v19, %v3248_v52 }
 0x256   :  { %v3210_v9 = vmax.f32 %v2675_v37, 0.0  ;;  %v2568_v21 = vadd.f32 %v2567_v2, %v11127_v53  ;;  %v2680_v30 = vpop.f32.mrf.mxu1  ;;  %v11179_v47 = vpack.c.bf16 %v3209_v1, %v3201_v45  ;;  %v2679_v39 = vadd.f32 %v2678_v5, %v2566_v32 }
 0x257   :  { %v2569_v46 = vpop.f32.mrf.mxu0  ;;  %13115 = vst [vmem:[#allocation40_spill] sm:$0xff] %v11177_v17  ;;  %v3272_v1 = vmax.f32 %v2489_v6, 0.0  ;;  %v2483_v6 = vadd.f32 %v11004_v25, %v2370_v11  ;;  %v13118_v25 = vld [vmem:[#allocation28_spill] sm:$0xff] }
 0x258   :  { %v11172_v38 = vpack.c.bf16 %v3210_v9, %v3202_v55  ;;  %v2570_v59 = vadd.f32 %v2569_v46, %v11132_v23  ;;  %v2682_v40 = vpop.f32.mrf.mxu1  ;;  %6477 = vmatpush1.bf16.msra.mxu0 %v9412_v13  ;;  %v2681_v20 = vadd.f32 %v2680_v30, %v2568_v21  ;;  %v3247_v13 = vmax.f32 %v2473_v14, 0.0  ;;  %v9423_v21 = vld [vmem:[#allocation11 + $0x73c] ss:$28 sps:$4 sm:$0xff]   ;;  %v9457_v30 = vld [vmem:[#allocation11 + $0xbd0] ss:$28 sps:$4 sm:$0xff]  }
 0x259   :  { %v2571_v28 = vpop.f32.mrf.mxu0  ;;  %6478 = vmatprep.subr.bf16.mxu0 %v9417_v42  ;;  %v3264_v14 = vmax.f32 %v2485_v27, 0.0  ;;  %v9465_v46 = vld [vmem:[#allocation11 + $0xb9c] ss:$28 sps:$4 sm:$0xff]   ;;  %v3217_v44 = vmax.f32 %v2679_v39, 0.0 }
 0x25a   :  { %13113 = vst [vmem:[#allocation38_spill] sm:$0xff] %v11172_v38  ;;  %v2683_v7 = vadd.f32 %v2682_v40, %v2570_v59  ;;  %v2572_v18 = vadd.f32 %v2571_v28, %v11127_v53  ;;  %v2684_v37 = vpop.f32.mrf.mxu1  ;;  %6389 = vmatprep.mubr.bf16.mxu1 %v11172_v38  ;;  %v11191_v55 = vpack.c.bf16 %v3255_v24, %v3247_v13  ;;  %v3218_v51 = vmax.f32 %v2681_v20, 0.0  ;;  %v9421_v20 = vld [vmem:[#allocation11 + $0x738] ss:$28 sps:$4 sm:$0xff]  }
 0x25b   :  { %v2575_v19 = vpop.f32.mrf.mxu0  ;;  %6297 = vmatmul.mubr.bf16.gmra.mxu0 %v11175_v16  ;;  %6390 = vmatmul.mubr.bf16.vlgmr.msra.gmra.mxu1 %v11179_v47  ;;  %v2382_v59 = vadd.f32 %v11035_v61, %v11031_v8  ;;  %v2487_v24 = vadd.f32 %v11016_v26, %v2374_v57  ;;  %v11201_v28 = vpack.c.bf16 %v3272_v1, %v3264_v14  ;;  %v9463_v26 = vld [vmem:[#allocation11 + $0xb98] ss:$28 sps:$4 sm:$0xff]   ;;  %v9471_v57 = vld [vmem:[#allocation11 + $0xb64] ss:$28 sps:$4 sm:$0xff]  }
 0x25c   :  { %v2685_v2 = vadd.f32 %v2684_v37, %v2572_v18  ;;  %v2688_v42 = vpop.f32.mrf.mxu1  ;;  %6306 = vmatprep.mubr.bf16.mxu0 %v11177_v17  ;;  %6479 = vmatpush1.bf16.msra.mxu0 %v9415_v62  ;;  %13116 = vst [vmem:[#allocation41_spill] sm:$0xff] %v11191_v55  ;;  %v3225_v5 = vmax.f32 %v2683_v7, 0.0  ;;  %v2576_v40 = vadd.f32 %v2575_v19, %v11132_v23  ;;  %v13119_v1 = vld [vmem:[#allocation27_spill] sm:$0xff] }
 0x25d   :  { %v2577_v9 = vpop.f32.mrf.mxu0  ;;  %6480 = vmatprep.subr.bf16.mxu0 %v9420_v50  ;;  %6584 = vmatpush1.bf16.msra.mxu1 %v9451_v48  ;;  %13117 = vst [vmem:[#allocation42_spill] sm:$0xff] %v11201_v28  ;;  %v2384_v7 = vadd.f32 %v13118_v25, %v11055_v12  ;;  %v2499_v61 = vadd.f32 %v11050_v10, %v2386_v29  ;;  %v3271_v29 = vmax.f32 %v2487_v24, 0.0  ;;  %v9424_v14 = vld [vmem:[#allocation11 + $0x700] ss:$28 sps:$4 sm:$0xff]  }
 0x25e   :  { %v3226_v52 = vmax.f32 %v2685_v2, 0.0  ;;  %v2578_v45 = vadd.f32 %v2577_v9, %v11127_v53  ;;  %v2690_v32 = vpop.f32.mrf.mxu1  ;;  %6585 = vmatprep.subr.bf16.mxu1 %v9459_v36  ;;  %v11209_v18 = vpack.c.bf16 %v3225_v5, %v3217_v44  ;;  %v9426_v36 = vld [vmem:[#allocation11 + $0x704] ss:$28 sps:$4 sm:$0xff]   ;;  %v2495_v2 = vadd.f32 %v13119_v1, %v2382_v59  ;;  %v13120_v5 = vld [vmem:[#allocation25_spill] sm:$0xff] }
 0x25f   :  { %v2579_v62 = vpop.f32.mrf.mxu0  ;;  %v2380_v9 = vadd.f32 %v13120_v5, %v11055_v12  ;;  %v9469_v59 = vld [vmem:[#allocation11 + $0xb60] ss:$28 sps:$4 sm:$0xff]   ;;  %v13121_v44 = vld [vmem:[#allocation29_spill] sm:$0xff] }
 0x260   :  { %v11203_v50 = vpack.c.bf16 %v3226_v52, %v3218_v51  ;;  %v2580_v48 = vadd.f32 %v2579_v62, %v11132_v23  ;;  %v2692_v27 = vpop.f32.mrf.mxu1  ;;  %6481 = vmatpush1.bf16.msra.mxu0 %v9418_v33  ;;  %v2691_v13 = vadd.f32 %v2690_v32, %v2578_v45  ;;  %v2689_v33 = vadd.f32 %v2688_v42, %v2576_v40  ;;  %v9429_v51 = vld [vmem:[#allocation11 + $0xa4c] ss:$28 sps:$4 sm:$0xff]  }
 0x261   :  { %v2581_v37 = vpop.f32.mrf.mxu0  ;;  %6482 = vmatprep.subr.bf16.mxu0 %v9423_v21  ;;  %6586 = vmatpush1.bf16.msra.mxu1 %v9457_v30  ;;  %v3263_v52 = vmax.f32 %v2483_v6, 0.0  ;;  %v3288_v45 = vmax.f32 %v2499_v61, 0.0  ;;  %v2396_v42 = vadd.f32 %v11083_v41, %v11031_v8  ;;  %v2497_v40 = vadd.f32 %v13121_v44, %v2384_v7 }
 0x262   :  { %v2693_v11 = vadd.f32 %v2692_v27, %v2580_v48  ;;  %v2582_v39 = vadd.f32 %v2581_v37, %v11127_v53  ;;  %v2694_v19 = vpop.f32.mrf.mxu1  ;;  %6399 = vmatprep.mubr.bf16.mxu1 %v11203_v50  ;;  %6587 = vmatprep.subr.bf16.mxu1 %v9465_v46  ;;  %v3234_v62 = vmax.f32 %v2691_v13, 0.0  ;;  %v3280_v25 = vmax.f32 %v2495_v2, 0.0 }
 0x263   :  { %v2585_v10 = vpop.f32.mrf.mxu0  ;;  %6307 = vmatmul.mubr.bf16.gmra.mxu0 %v11191_v55  ;;  %6400 = vmatmul.mubr.bf16.gmra.mxu1 %v11209_v18  ;;  %v2392_v6 = vadd.f32 %v11067_v34, %v11031_v8  ;;  %v3233_v61 = vmax.f32 %v2689_v33, 0.0  ;;  %v2509_v1 = vadd.f32 %v11085_v22, %v2396_v42  ;;  %v9432_v33 = vld [vmem:[#allocation11 + $0xa14] ss:$28 sps:$4 sm:$0xff]  }
 0x264   :  { %v2695_v21 = vadd.f32 %v2694_v19, %v2582_v39  ;;  %v2698_v30 = vpop.f32.mrf.mxu1  ;;  %6316 = vmatprep.mubr.bf16.mxu0 %v11201_v28  ;;  %6483 = vmatpush1.bf16.msra.mxu0 %v9421_v20  ;;  %v3241_v32 = vmax.f32 %v2693_v11, 0.0  ;;  %v9477_v20 = vld [vmem:[#allocation11 + $0xb2c] ss:$28 sps:$4 sm:$0xff]   ;;  %v2586_v41 = vadd.f32 %v2585_v10, %v11132_v23 }
 0x265   :  { %v2587_v46 = vpop.f32.mrf.mxu0  ;;  %6484 = vmatprep.subr.bf16.mxu0 %v9426_v36  ;;  %6588 = vmatpush1.bf16.msra.mxu1 %v9463_v26  ;;  %v11226_v36 = vpack.c.bf16 %v3271_v29, %v3263_v52  ;;  %v13123_v26 = vld [vmem:[#allocation26_spill] sm:$0xff]  ;;  %v9427_v19 = vld [vmem:[#allocation11 + $0xa48] ss:$28 sps:$4 sm:$0xff]   ;;  %v3287_v29 = vmax.f32 %v2497_v40, 0.0 }
 0x266   :  { %v3242_v24 = vmax.f32 %v2695_v21, 0.0  ;;  %v2588_v48 = vadd.f32 %v2587_v46, %v11127_v53  ;;  %v2700_v27 = vpop.f32.mrf.mxu1  ;;  %6589 = vmatprep.subr.bf16.mxu1 %v9471_v57  ;;  %v2493_v11 = vadd.f32 %v13123_v26, %v2380_v9  ;;  %v11232_v57 = vpack.c.bf16 %v3288_v45, %v3280_v25  ;;  %v9475_v10 = vld [vmem:[#allocation11 + $0xb28] ss:$28 sps:$4 sm:$0xff]  }
 0x267   :  { %v2589_v37 = vpop.f32.mrf.mxu0  ;;  %13122 = vst [vmem:[#allocation28_spill] sm:$0xff] %v11226_v36  ;;  %v11235_v34 = vpack.c.bf16 %v3241_v32, %v3233_v61  ;;  %v2505_v45 = vadd.f32 %v11069_v49, %v2392_v6  ;;  %v2699_v22 = vadd.f32 %v2698_v30, %v2586_v41  ;;  %v2390_v32 = vadd.f32 %v11057_v43, %v11055_v12  ;;  %v13125_v46 = vld [vmem:[#allocation31_spill] sm:$0xff] }
 0x268   :  { %v11229_v7 = vpack.c.bf16 %v3242_v24, %v3234_v62  ;;  %v2590_v13 = vadd.f32 %v2589_v37, %v11132_v23  ;;  %v2702_v39 = vpop.f32.mrf.mxu1  ;;  %6485 = vmatpush1.bf16.msra.mxu0 %v9424_v14  ;;  %13124 = vst [vmem:[#allocation27_spill] sm:$0xff] %v11232_v57  ;;  %v2701_v5 = vadd.f32 %v2700_v27, %v2588_v48  ;;  %v9483_v14 = vld [vmem:[#allocation11 + $0xaf4] ss:$28 sps:$4 sm:$0xff]   ;;  %v3304_v49 = vmax.f32 %v2509_v1, 0.0  ;;  %v9435_v27 = vld [vmem:[#allocation11 + $0x9dc] ss:$28 sps:$4 sm:$0xff]  }
 0x269   :  { %v2591_v2 = vpop.f32.mrf.mxu0  ;;  %6486 = vmatprep.subr.bf16.mxu0 %v9429_v51  ;;  %6590 = vmatpush1.bf16.msra.mxu1 %v9469_v59  ;;  %v3279_v51 = vmax.f32 %v2493_v11, 0.0  ;;  %v2394_v59 = vadd.f32 %v13125_v46, %v11055_v12  ;;  %v9430_v62 = vld [vmem:[#allocation11 + $0xa10] ss:$28 sps:$4 sm:$0xff]   ;;  %v2406_v30 = vadd.f32 %v11118_v3, %v11031_v8  ;;  %v9489_v37 = vld [vmem:[#allocation11 + $0xabc] ss:$28 sps:$4 sm:$0xff]   ;;  %v3296_v26 = vmax.f32 %v2505_v45, 0.0 }
 0x26a   :  { %v2703_v9 = vadd.f32 %v2702_v39, %v2590_v13  ;;  %v2592_v21 = vadd.f32 %v2591_v2, %v11127_v53  ;;  %v2704_v52 = vpop.f32.mrf.mxu1  ;;  %6409 = vmatprep.mubr.bf16.mxu1 %v11229_v7  ;;  %6591 = vmatprep.subr.bf16.mxu1 %v9477_v20  ;;  %v9481_v20 = vld [vmem:[#allocation11 + $0xaf0] ss:$28 sps:$4 sm:$0xff]   ;;  %v3250_v25 = vmax.f32 %v2701_v5, 0.0  ;;  %v2402_v11 = vadd.f32 %v11101_v0, %v11031_v8  ;;  %v9487_v45 = vld [vmem:[#allocation11 + $0xab8] ss:$28 sps:$4 sm:$0xff]  }
 0x26b   :  { %v2595_v42 = vpop.f32.mrf.mxu0  ;;  %6317 = vmatmul.mubr.bf16.gmra.mxu0 %v11226_v36  ;;  %6410 = vmatmul.mubr.bf16.gmra.mxu1 %v11235_v34  ;;  %v11249_v43 = vpack.c.bf16 %v3287_v29, %v3279_v51  ;;  %v3249_v3 = vmax.f32 %v2699_v22, 0.0  ;;  %v13128_v2 = vld [vmem:[#allocation32_spill] sm:$0xff]  ;;  %v9495_v46 = vld [vmem:[#allocation11 + $0xa84] ss:$28 sps:$4 sm:$0xff]  }
 0x26c   :  { %v2705_v44 = vadd.f32 %v2704_v52, %v2592_v21  ;;  %v2708_v40 = vpop.f32.mrf.mxu1  ;;  %6326 = vmatprep.mubr.bf16.mxu0 %v11232_v57  ;;  %6487 = vmatpush2.bf16.msra.mxu0 %v9427_v19  ;;  %v3257_v24 = vmax.f32 %v2703_v9, 0.0  ;;  %v2596_v13 = vadd.f32 %v2595_v42, %v11132_v23  ;;  %v13127_v19 = vld [vmem:[#allocation30_spill] sm:$0xff]  ;;  %v11260_v21 = vpack.c.bf16 %v3304_v49, %v3296_v26 }
 0x26d   :  { %v2597_v48 = vpop.f32.mrf.mxu0  ;;  %6488 = vmatprep.subr.bf16.mxu0 %v9432_v33  ;;  %6592 = vmatpush1.bf16.msra.mxu1 %v9475_v10  ;;  %13126 = vst [vmem:[#allocation25_spill] sm:$0xff] %v11249_v43  ;;  %v2503_v1 = vadd.f32 %v13127_v19, %v2390_v32  ;;  %v2507_v33 = vadd.f32 %v13128_v2, %v2394_v59  ;;  %v9433_v9 = vld [vmem:[#allocation11 + $0x9d8] ss:$28 sps:$4 sm:$0xff]  }
 0x26e   :  { %v3258_v6 = vmax.f32 %v2705_v44, 0.0  ;;  %v2598_v61 = vadd.f32 %v2597_v48, %v11127_v53  ;;  %v2710_v41 = vpop.f32.mrf.mxu1  ;;  %6593 = vmatprep.subr.bf16.mxu1 %v9483_v14  ;;  %13129 = vst [vmem:[#allocation29_spill] sm:$0xff] %v11260_v21  ;;  %v2519_v52 = vadd.f32 %v11120_v15, %v2406_v30  ;;  %v11263_v8 = vpack.c.bf16 %v3257_v24, %v3249_v3  ;;  %v9438_v14 = vld [vmem:[#allocation11 + $0x9a4] ss:$28 sps:$4 sm:$0xff]  }
 0x26f   :  { %v2599_v39 = vpop.f32.mrf.mxu0  ;;  %v2515_v59 = vadd.f32 %v11103_v63, %v2402_v11  ;;  %v2709_v44 = vadd.f32 %v2708_v40, %v2596_v13  ;;  %v9436_v24 = vld [vmem:[#allocation11 + $0x9a0] ss:$28 sps:$4 sm:$0xff]   ;;  %v2404_v48 = vadd.f32 %v11109_v35, %v11055_v12  ;;  %v9441_v63 = vld [vmem:[#allocation11 + $0x96c] ss:$28 sps:$4 sm:$0xff]   ;;  %v2400_v3 = vadd.f32 %v11091_v60, %v11055_v12  ;;  %v9444_v60 = vld [vmem:[#allocation11 + $0x934] ss:$28 sps:$4 sm:$0xff]  }
 0x270   :  { %v11257_v10 = vpack.c.bf16 %v3258_v6, %v3250_v25  ;;  %v2600_v29 = vadd.f32 %v2599_v39, %v11132_v23  ;;  %v2712_v5 = vpop.f32.mrf.mxu1  ;;  %6489 = vmatpush2.bf16.msra.mxu0 %v9430_v62  ;;  %13130 = vst [vmem:[#allocation26_spill] sm:$0xff] %v11263_v8  ;;  %v2711_v22 = vadd.f32 %v2710_v41, %v2598_v61  ;;  %v3303_v62 = vmax.f32 %v2507_v33, 0.0  ;;  %v9493_v40 = vld [vmem:[#allocation11 + $0xa80] ss:$28 sps:$4 sm:$0xff]   ;;  %v9501_v11 = vld [vmem:[#allocation11 + $0xdcc] ss:$28 sps:$4 sm:$0xff]  }
 0x271   :  { %v2601_v0 = vpop.f32.mrf.mxu0  ;;  %6490 = vmatprep.subr.bf16.mxu0 %v9435_v27  ;;  %6594 = vmatpush1.bf16.msra.mxu1 %v9481_v20  ;;  %v3320_v27 = vmax.f32 %v2519_v52, 0.0  ;;  %v3295_v6 = vmax.f32 %v2503_v1, 0.0  ;;  %v3312_v13 = vmax.f32 %v2515_v59, 0.0  ;;  %v3265_v35 = vmax.f32 %v2709_v44, 0.0 }
 0x272   :  { %v2713_v42 = vadd.f32 %v2712_v5, %v2600_v29  ;;  %v2602_v51 = vadd.f32 %v2601_v0, %v11127_v53  ;;  %v2714_v32 = vpop.f32.mrf.mxu1  ;;  %6419 = vmatprep.mubr.bf16.mxu1 %v11257_v10  ;;  %6595 = vmatprep.subr.bf16.mxu1 %v9489_v37  ;;  %v3266_v61 = vmax.f32 %v2711_v22, 0.0  ;;  %v9439_v5 = vld [vmem:[#allocation11 + $0x968] ss:$28 sps:$4 sm:$0xff]  }
 0x273   :  { %v2605_v15 = vpop.f32.mrf.mxu0  ;;  %6327 = vmatmul.mubr.bf16.gmra.mxu0 %v11249_v43  ;;  %6420 = vmatmul.mubr.bf16.gmra.mxu1 %v11263_v8  ;;  %v11277_v2 = vpack.c.bf16 %v3303_v62, %v3295_v6  ;;  %v11283_v52 = vpack.c.bf16 %v3320_v27, %v3312_v13  ;;  %v9442_v62 = vld [vmem:[#allocation11 + $0x930] ss:$28 sps:$4 sm:$0xff]   ;;  %v9447_v27 = vld [vmem:[#allocation11 + $0x8fc] ss:$28 sps:$4 sm:$0xff]  }
 0x274   :  { %v2715_v49 = vadd.f32 %v2714_v32, %v2602_v51  ;;  %v2718_v30 = vpop.f32.mrf.mxu1  ;;  %6336 = vmatprep.mubr.bf16.mxu0 %v11260_v21  ;;  %6491 = vmatpush2.bf16.msra.mxu0 %v9433_v9  ;;  %v3273_v20 = vmax.f32 %v2713_v42, 0.0  ;;  %v2606_v39 = vadd.f32 %v2605_v15, %v11132_v23  ;;  %v2517_v9 = vadd.f32 %v11111_v4, %v2404_v48  ;;  %v9507_v32 = vld [vmem:[#allocation11 + $0xd94] ss:$28 sps:$4 sm:$0xff]  }
 0x275   :  { %v2607_v25 = vpop.f32.mrf.mxu0  ;;  %6492 = vmatprep.subr.bf16.mxu0 %v9438_v14  ;;  %6596 = vmatpush1.bf16.msra.mxu1 %v9487_v45  ;;  %13131 = vst [vmem:[#allocation31_spill] sm:$0xff] %v11277_v2  ;;  %13133 = vst [vmem:[#allocation32_spill] sm:$0xff] %v11283_v52  ;;  %v9499_v14 = vld [vmem:[#allocation11 + $0xdc8] ss:$28 sps:$4 sm:$0xff]   ;;  %v2513_v4 = vadd.f32 %v11093_v56, %v2400_v3  ;;  %v9445_v13 = vld [vmem:[#allocation11 + $0x8f8] ss:$28 sps:$4 sm:$0xff]  }
 0x276   :  { %v3274_v41 = vmax.f32 %v2715_v49, 0.0  ;;  %v2608_v37 = vadd.f32 %v2607_v25, %v11127_v53  ;;  %v2720_v26 = vpop.f32.mrf.mxu1  ;;  %6597 = vmatprep.subr.bf16.mxu1 %v9495_v46  ;;  %v11285_v0 = vpack.c.bf16 %v3273_v20, %v3265_v35  ;;  %v2719_v46 = vadd.f32 %v2718_v30, %v2606_v39  ;;  %v9505_v20 = vld [vmem:[#allocation11 + $0xd90] ss:$28 sps:$4 sm:$0xff]  }
 0x277   :  { %v2609_v19 = vpop.f32.mrf.mxu0  ;;  %v3319_v49 = vmax.f32 %v2517_v9, 0.0  ;;  %v3311_v6 = vmax.f32 %v2513_v4, 0.0 }
 0x278   :  { %v11279_v33 = vpack.c.bf16 %v3274_v41, %v3266_v61  ;;  %v2610_v1 = vadd.f32 %v2609_v19, %v11132_v23  ;;  %v2722_v29 = vpop.f32.mrf.mxu1  ;;  %6493 = vmatpush2.bf16.msra.mxu0 %v9436_v24  ;;  %13134 = vst [vmem:[#allocation43_spill] sm:$0xff] %v11285_v0  ;;  %v2721_v45 = vadd.f32 %v2720_v26, %v2608_v37  ;;  %v3281_v61 = vmax.f32 %v2719_v46, 0.0 }
 0x279   :  { %v2611_v12 = vpop.f32.mrf.mxu0  ;;  %6494 = vmatprep.subr.bf16.mxu0 %v9441_v63  ;;  %6598 = vmatpush1.bf16.msra.mxu1 %v9493_v40  ;;  %v9513_v40 = vld [vmem:[#allocation11 + $0xd5c] ss:$28 sps:$4 sm:$0xff]   ;;  %v11298_v35 = vpack.c.bf16 %v3319_v49, %v3311_v6 }
 0x27a   :  { %13132 = vst [vmem:[#allocation30_spill] sm:$0xff] %v11279_v33  ;;  %v2723_v22 = vadd.f32 %v2722_v29, %v2610_v1  ;;  %v2612_v42 = vadd.f32 %v2611_v12, %v11127_v53  ;;  %v2724_v51 = vpop.f32.mrf.mxu1  ;;  %6429 = vmatprep.mubr.bf16.mxu1 %v11279_v33  ;;  %6599 = vmatprep.subr.bf16.mxu1 %v9501_v11  ;;  %v3282_v56 = vmax.f32 %v2721_v45, 0.0  ;;  %v9450_v1 = vld [vmem:[#allocation11 + $0x8c4] ss:$28 sps:$4 sm:$0xff]   ;;  %v9511_v29 = vld [vmem:[#allocation11 + $0xd58] ss:$28 sps:$4 sm:$0xff]  }
 0x27b   :  { %v2615_v59 = vpop.f32.mrf.mxu0  ;;  %6337 = vmatmul.mubr.bf16.gmra.mxu0 %v11277_v2  ;;  %6430 = vmatmul.mubr.bf16.gmra.mxu1 %v11285_v0  ;;  %13136 = vst [vmem:[#allocation45_spill] sm:$0xff] %v11298_v35  ;;  %v9517_v49 = vld [vmem:[#allocation11 + $0xd20] ss:$28 sps:$4 sm:$0xff]  }
 0x27c   :  { %v2725_v44 = vadd.f32 %v2724_v51, %v2612_v42  ;;  %v2728_v15 = vpop.f32.mrf.mxu1  ;;  %6346 = vmatprep.mubr.bf16.mxu0 %v11283_v52  ;;  %6495 = vmatpush2.bf16.msra.mxu0 %v9439_v5  ;;  %v3289_v24 = vmax.f32 %v2723_v22, 0.0  ;;  %v2616_v41 = vadd.f32 %v2615_v59, %v11132_v23  ;;  %v13138_v59 = vld [vmem:[#allocation20_spill] sm:$0xff] }
 0x27d   :  { %v2617_v48 = vpop.f32.mrf.mxu0  ;;  %6496 = vmatprep.subr.bf16.mxu0 %v9444_v60  ;;  %6600 = vmatpush2.bf16.msra.mxu1 %v9499_v14  ;;  %v9519_v14 = vld [vmem:[#allocation11 + $0xd24] ss:$28 sps:$4 sm:$0xff]  }
 0x27e   :  { %v3290_v30 = vmax.f32 %v2725_v44, 0.0  ;;  %v2618_v25 = vadd.f32 %v2617_v48, %v11127_v53  ;;  %v2730_v63 = vpop.f32.mrf.mxu1  ;;  %6601 = vmatprep.subr.bf16.mxu1 %v9507_v32  ;;  %v11300_v39 = vpack.c.bf16 %v3289_v24, %v3281_v61  ;;  %v2729_v45 = vadd.f32 %v2728_v15, %v2616_v41  ;;  %v9448_v32 = vld [vmem:[#allocation11 + $0x8c0] ss:$28 sps:$4 sm:$0xff]  }
 0x27f   :  { %v2619_v37 = vpop.f32.mrf.mxu0  ;;  %v12985_v44 = vsub.s32 5, %v13138_v59 }
 0x280   :  { %v11295_v26 = vpack.c.bf16 %v3290_v30, %v3282_v56  ;;  %v2620_v11 = vadd.f32 %v2619_v37, %v11132_v23  ;;  %v2732_v3 = vpop.f32.mrf.mxu1  ;;  %6497 = vmatpush2.bf16.msra.mxu0 %v9442_v62  ;;  %13137 = vst [vmem:[#allocation46_spill] sm:$0xff] %v11300_v39  ;;  %v2731_v5 = vadd.f32 %v2730_v63, %v2618_v25  ;;  %v9456_v62 = vld [vmem:[#allocation11 + $0x194] ss:$28 sps:$4 sm:$0xff]   ;;  %v3297_v56 = vmax.f32 %v2729_v45, 0.0 }
 0x281   :  { %v2621_v19 = vpop.f32.mrf.mxu0  ;;  %6498 = vmatprep.subr.bf16.mxu0 %v9447_v27  ;;  %6602 = vmatpush2.bf16.msra.mxu1 %v9505_v20  ;;  %v9525_v20 = vld [vmem:[#allocation11 + $0xcec] ss:$28 sps:$4 sm:$0xff]   ;;  %v12986_v63 = vsub.s32 4, %v13138_v59 }
 0x282   :  { %13135 = vst [vmem:[#allocation44_spill] sm:$0xff] %v11295_v26  ;;  %v2733_v9 = vadd.f32 %v2732_v3, %v2620_v11  ;;  %v2622_v12 = vadd.f32 %v2621_v19, %v11127_v53  ;;  %v2734_v60 = vpop.f32.mrf.mxu1  ;;  %6439 = vmatprep.mubr.bf16.mxu1 %v11295_v26  ;;  %6603 = vmatprep.subr.bf16.mxu1 %v9513_v40  ;;  %v3298_v24 = vmax.f32 %v2731_v5, 0.0  ;;  %v9523_v3 = vld [vmem:[#allocation11 + $0xce8] ss:$28 sps:$4 sm:$0xff]  }
 0x283   :  { %v2625_v22 = vpop.f32.mrf.mxu0  ;;  %6347 = vmatmul.mubr.bf16.gmra.mxu0 %v11298_v35  ;;  %6440 = vmatmul.mubr.bf16.gmra.mxu1 %v11300_v39  ;;  %v11318_v11 = vrot.slane %v11022_v58, %v12985_v44 }
 0x284   :  { %v2735_v42 = vadd.f32 %v2734_v60, %v2622_v12  ;;  %v2738_v51 = vpop.f32.mrf.mxu1  ;;  %6499 = vmatpush2.bf16.msra.mxu0 %v9445_v13  ;;  %v3305_v4 = vmax.f32 %v2733_v9, 0.0  ;;  %v2626_v30 = vadd.f32 %v2625_v22, %v11132_v23  ;;  %v11322_v9 = vld [vmem:[#allocation10] sm:$0xff]  ;;  %v9529_v22 = vld [vmem:[#allocation11 + $0xcb0] ss:$28 sps:$4 sm:$0xff]  }
 0x285   :  { %v2627_v46 = vpop.f32.mrf.mxu0  ;;  %6500 = vmatprep.subr.bf16.mxu0 %v9450_v1  ;;  %6604 = vmatpush2.bf16.msra.mxu1 %v9511_v29  ;;  %v11327_v58 = vrot.slane %v11322_v9, %v12986_v63 }
 0x286   :  { %v3306_v48 = vmax.f32 %v2735_v42, 0.0  ;;  %v2628_v15 = vadd.f32 %v2627_v46, %v11127_v53  ;;  %v2740_v27 = vpop.f32.mrf.mxu1  ;;  %6605 = vmatprep.subr.bf16.mxu1 %v9519_v14  ;;  %v11313_v41 = vpack.c.bf16 %v3305_v4, %v3297_v56  ;;  %v2739_v5 = vadd.f32 %v2738_v51, %v2626_v30  ;;  %v9537_v4 = vld [vmem:[#allocation11 + $0xc7c] ss:$28 sps:$4 sm:$0xff]  }
 0x287   :  { %v2629_v25 = vpop.f32.mrf.mxu0  ;;  %v9535_v30 = vld [vmem:[#allocation11 + $0xc78] ss:$28 sps:$4 sm:$0xff]  }
 0x288   :  { %v11310_v40 = vpack.c.bf16 %v3306_v48, %v3298_v24  ;;  %v2630_v6 = vadd.f32 %v2629_v25, %v11132_v23  ;;  %v2742_v61 = vpop.f32.mrf.mxu1  ;;  %6501 = vmatpush2.bf16.msra.mxu0 %v9448_v32  ;;  %13140 = vst [vmem:[#allocation48_spill] sm:$0xff] %v11313_v41  ;;  %v2741_v13 = vadd.f32 %v2740_v27, %v2628_v15  ;;  %v9531_v23 = vld [vmem:[#allocation11 + $0xcb4] ss:$28 sps:$4 sm:$0xff]   ;;  %v3313_v46 = vmax.f32 %v2739_v5, 0.0 }
 0x289   :  { %v2631_v37 = vpop.f32.mrf.mxu0  ;;  %6696 = vmatprep.subr.bf16.mxu0 %v9456_v62  ;;  %6606 = vmatpush2.bf16.msra.mxu1 %v9517_v49 }
 0x28a   :  { %13139 = vst [vmem:[#allocation47_spill] sm:$0xff] %v11310_v40  ;;  %v2743_v19 = vadd.f32 %v2742_v61, %v2630_v6  ;;  %v2632_v1 = vadd.f32 %v2631_v37, %v11127_v53  ;;  %v2744_v29 = vpop.f32.mrf.mxu1  ;;  %6449 = vmatprep.mubr.bf16.mxu1 %v11310_v40  ;;  %6607 = vmatprep.subr.bf16.mxu1 %v9525_v20  ;;  %v3314_v42 = vmax.f32 %v2741_v13, 0.0  ;;  %v9543_v37 = vld [vmem:[#allocation11 + $0xc44] ss:$28 sps:$4 sm:$0xff]  }
 0x28b   :  { %v2781_v12 = vpop.f32.mrf.mxu0  ;;  %6450 = vmatmul.mubr.bf16.gmra.mxu1 %v11313_v41 }
 0x28c   :  { %v2745_v60 = vadd.f32 %v2744_v29, %v2632_v1  ;;  %v3321_v14 = vmax.f32 %v2743_v19, 0.0  ;;  %v2782_v62 = vadd.f32 %v2781_v12, %v11327_v58  ;;  %v9541_v12 = vld [vmem:[#allocation11 + $0xc40] ss:$28 sps:$4 sm:$0xff]  }
 0x28d   :  { %v2894_v45 = vpop.f32.mrf.mxu1  ;;  %v2783_v53 = vpop.f32.mrf.mxu0  ;;  %6608 = vmatpush2.bf16.msra.mxu1 %v9523_v3 }
 0x28e   :  { %v3322_v32 = vmax.f32 %v2745_v60, 0.0  ;;  %v2784_v51 = vadd.f32 %v2783_v53, %v11318_v11  ;;  %6609 = vmatprep.subr.bf16.mxu1 %v9531_v23  ;;  %v11335_v27 = vpack.c.bf16 %v3321_v14, %v3313_v46  ;;  %v2895_v3 = vadd.f32 %v2894_v45, %v2782_v62  ;;  %v9454_v62 = vld [vmem:[#allocation11 + $0x190] ss:$28 sps:$4 sm:$0xff]  }
 0x28f   :  { %v2896_v49 = vpop.f32.mrf.mxu1  ;;  %v2785_v24 = vpop.f32.mrf.mxu0 }
 0x290   :  { %v11332_v48 = vpack.c.bf16 %v3322_v32, %v3314_v42  ;;  %v2786_v15 = vadd.f32 %v2785_v24, %v11327_v58  ;;  %13142 = vst [vmem:[#allocation50_spill] sm:$0xff] %v11335_v27  ;;  %v2897_v25 = vadd.f32 %v2896_v49, %v2784_v51  ;;  %v3203_v42 = vmax.f32 %v2895_v3, 0.0 }
 0x291   :  { %v2898_v20 = vpop.f32.mrf.mxu1  ;;  %v2787_v56 = vpop.f32.mrf.mxu0  ;;  %6610 = vmatpush2.bf16.msra.mxu1 %v9529_v22  ;;  %v9549_v22 = vld [vmem:[#allocation11 + $0x514] ss:$28 sps:$4 sm:$0xff]  }
 0x292   :  { %13141 = vst [vmem:[#allocation49_spill] sm:$0xff] %v11332_v48  ;;  %v2899_v6 = vadd.f32 %v2898_v20, %v2786_v15  ;;  %v2788_v61 = vadd.f32 %v2787_v56, %v11318_v11  ;;  %6459 = vmatprep.mubr.bf16.mxu1 %v11332_v48  ;;  %6611 = vmatprep.subr.bf16.mxu1 %v9537_v4  ;;  %v3204_v60 = vmax.f32 %v2897_v25, 0.0  ;;  %v9462_v20 = vld [vmem:[#allocation11 + $0x15c] ss:$28 sps:$4 sm:$0xff]  }
 0x293   :  { %v2900_v13 = vpop.f32.mrf.mxu1  ;;  %v2791_v19 = vpop.f32.mrf.mxu0  ;;  %6460 = vmatmul.mubr.bf16.gmra.mxu1 %v11335_v27 }
 0x294   :  { %v2901_v1 = vadd.f32 %v2900_v13, %v2788_v61  ;;  %v3211_v29 = vmax.f32 %v2899_v6, 0.0  ;;  %v2792_v32 = vadd.f32 %v2791_v19, %v11327_v58  ;;  %v9460_v13 = vld [vmem:[#allocation11 + $0x158] ss:$28 sps:$4 sm:$0xff]  }
 0x295   :  { %v2904_v23 = vpop.f32.mrf.mxu1  ;;  %v2793_v5 = vpop.f32.mrf.mxu0  ;;  %6612 = vmatpush2.bf16.msra.mxu1 %v9535_v30 }
 0x296   :  { %v3212_v14 = vmax.f32 %v2901_v1, 0.0  ;;  %v2794_v53 = vadd.f32 %v2793_v5, %v11318_v11  ;;  %6613 = vmatprep.subr.bf16.mxu1 %v9543_v37  ;;  %v11345_v49 = vpack.c.bf16 %v3211_v29, %v3203_v42  ;;  %v2905_v6 = vadd.f32 %v2904_v23, %v2792_v32  ;;  %v9468_v5 = vld [vmem:[#allocation11 + $0x124] ss:$28 sps:$4 sm:$0xff]  }
 0x297   :  { %v2906_v45 = vpop.f32.mrf.mxu1  ;;  %v2795_v51 = vpop.f32.mrf.mxu0 }
 0x298   :  { %v11342_v4 = vpack.c.bf16 %v3212_v14, %v3204_v60  ;;  %v2796_v46 = vadd.f32 %v2795_v51, %v11327_v58  ;;  %v2907_v56 = vadd.f32 %v2906_v45, %v2794_v53  ;;  %v3219_v53 = vmax.f32 %v2905_v6, 0.0  ;;  %v9466_v51 = vld [vmem:[#allocation11 + $0x120] ss:$28 sps:$4 sm:$0xff]  }
 0x299   :  { %v2908_v24 = vpop.f32.mrf.mxu1  ;;  %v2797_v15 = vpop.f32.mrf.mxu0  ;;  %6614 = vmatpush2.bf16.msra.mxu1 %v9541_v12 }
 0x29a   :  { %13143 = vst [vmem:[#allocation51_spill] sm:$0xff] %v11342_v4  ;;  %v2909_v30 = vadd.f32 %v2908_v24, %v2796_v46  ;;  %v2798_v25 = vadd.f32 %v2797_v15, %v11318_v11  ;;  %6502 = vmatprep.mubr.bf16.mxu0 %v11342_v4  ;;  %6809 = vmatprep.subr.bf16.mxu1 %v9549_v22  ;;  %v3220_v12 = vmax.f32 %v2907_v56, 0.0  ;;  %v9474_v15 = vld [vmem:[#allocation11 + $0xec] ss:$28 sps:$4 sm:$0xff]  }
 0x29b   :  { %v2910_v61 = vpop.f32.mrf.mxu1  ;;  %v2801_v37 = vpop.f32.mrf.mxu0  ;;  %6503 = vmatmul.mubr.bf16.vlgmr.msra.gmra.mxu0 %v11345_v49 }
 0x29c   :  { %v2911_v3 = vadd.f32 %v2910_v61, %v2798_v25  ;;  %6697 = vmatpush1.bf16.msra.mxu0 %v9454_v62  ;;  %v3227_v19 = vmax.f32 %v2909_v30, 0.0  ;;  %v2802_v22 = vadd.f32 %v2801_v37, %v11327_v58 }
 0x29d   :  { %v2914_v1 = vpop.f32.mrf.mxu1  ;;  %v2803_v29 = vpop.f32.mrf.mxu0  ;;  %6698 = vmatprep.subr.bf16.mxu0 %v9462_v20 }
 0x29e   :  { %v3228_v60 = vmax.f32 %v2911_v3, 0.0  ;;  %v2804_v14 = vadd.f32 %v2803_v29, %v11318_v11  ;;  %v11355_v46 = vpack.c.bf16 %v3227_v19, %v3219_v53  ;;  %v2915_v25 = vadd.f32 %v2914_v1, %v2802_v22  ;;  %v9472_v3 = vld [vmem:[#allocation11 + $0xe8] ss:$28 sps:$4 sm:$0xff]  }
 0x29f   :  { %v2916_v23 = vpop.f32.mrf.mxu1  ;;  %v2805_v42 = vpop.f32.mrf.mxu0 }
 0x2a0   :  { %v11352_v32 = vpack.c.bf16 %v3228_v60, %v3220_v12  ;;  %v2806_v45 = vadd.f32 %v2805_v42, %v11327_v58  ;;  %6699 = vmatpush1.bf16.msra.mxu0 %v9460_v13  ;;  %13144 = vst [vmem:[#allocation52_spill] sm:$0xff] %v11355_v46  ;;  %v2917_v20 = vadd.f32 %v2916_v23, %v2804_v14  ;;  %v3235_v53 = vmax.f32 %v2915_v25, 0.0 }
 0x2a1   :  { %v2918_v62 = vpop.f32.mrf.mxu1  ;;  %v2807_v24 = vpop.f32.mrf.mxu0  ;;  %6700 = vmatprep.subr.bf16.mxu0 %v9468_v5  ;;  %v9480_v5 = vld [vmem:[#allocation11 + $0xb4] ss:$28 sps:$4 sm:$0xff]  }
 0x2a2   :  { %v2919_v56 = vadd.f32 %v2918_v62, %v2806_v45  ;;  %v2808_v30 = vadd.f32 %v2807_v24, %v11318_v11  ;;  %6512 = vmatprep.mubr.bf16.mxu0 %v11352_v32  ;;  %v3236_v12 = vmax.f32 %v2917_v20, 0.0  ;;  %v9486_v20 = vld [vmem:[#allocation11 + $0x7c] ss:$28 sps:$4 sm:$0xff]  }
 0x2a3   :  { %v2920_v6 = vpop.f32.mrf.mxu1  ;;  %v2811_v61 = vpop.f32.mrf.mxu0  ;;  %6513 = vmatmul.mubr.bf16.gmra.mxu0 %v11355_v46 }
 0x2a4   :  { %v2921_v37 = vadd.f32 %v2920_v6, %v2808_v30  ;;  %6701 = vmatpush1.bf16.msra.mxu0 %v9466_v51  ;;  %v3243_v13 = vmax.f32 %v2919_v56, 0.0  ;;  %v2812_v23 = vadd.f32 %v2811_v61, %v11327_v58  ;;  %v9478_v51 = vld [vmem:[#allocation11 + $0xb0] ss:$28 sps:$4 sm:$0xff]  }
 0x2a5   :  { %v2924_v19 = vpop.f32.mrf.mxu1  ;;  %v2813_v29 = vpop.f32.mrf.mxu0  ;;  %6702 = vmatprep.subr.bf16.mxu0 %v9474_v15 }
 0x2a6   :  { %v3244_v60 = vmax.f32 %v2921_v37, 0.0  ;;  %v2814_v14 = vadd.f32 %v2813_v29, %v11318_v11  ;;  %v11365_v62 = vpack.c.bf16 %v3243_v13, %v3235_v53  ;;  %v2925_v6 = vadd.f32 %v2924_v19, %v2812_v23 }
 0x2a7   :  { %v2926_v1 = vpop.f32.mrf.mxu1  ;;  %v2815_v22 = vpop.f32.mrf.mxu0 }
 0x2a8   :  { %v11362_v42 = vpack.c.bf16 %v3244_v60, %v3236_v12  ;;  %v2816_v45 = vadd.f32 %v2815_v22, %v11327_v58  ;;  %6703 = vmatpush1.bf16.msra.mxu0 %v9472_v3  ;;  %13146 = vst [vmem:[#allocation54_spill] sm:$0xff] %v11365_v62  ;;  %v2927_v56 = vadd.f32 %v2926_v1, %v2814_v14  ;;  %v9484_v3 = vld [vmem:[#allocation11 + $0x78] ss:$28 sps:$4 sm:$0xff]   ;;  %v3251_v22 = vmax.f32 %v2925_v6, 0.0 }
 0x2a9   :  { %v2928_v24 = vpop.f32.mrf.mxu1  ;;  %v2817_v15 = vpop.f32.mrf.mxu0  ;;  %6704 = vmatprep.subr.bf16.mxu0 %v9480_v5  ;;  %v9492_v5 = vld [vmem:[#allocation11 + $0x44] ss:$28 sps:$4 sm:$0xff]  }
 0x2aa   :  { %13145 = vst [vmem:[#allocation53_spill] sm:$0xff] %v11362_v42  ;;  %v2929_v30 = vadd.f32 %v2928_v24, %v2816_v45  ;;  %v2818_v25 = vadd.f32 %v2817_v15, %v11318_v11  ;;  %6522 = vmatprep.mubr.bf16.mxu0 %v11362_v42  ;;  %v3252_v53 = vmax.f32 %v2927_v56, 0.0  ;;  %v9498_v56 = vld [vmem:[#allocation11 + $0xc] ss:$28 sps:$4 sm:$0xff]  }
 0x2ab   :  { %v2930_v61 = vpop.f32.mrf.mxu1  ;;  %v2821_v37 = vpop.f32.mrf.mxu0  ;;  %6523 = vmatmul.mubr.bf16.gmra.mxu0 %v11365_v62 }
 0x2ac   :  { %v2931_v29 = vadd.f32 %v2930_v61, %v2818_v25  ;;  %6705 = vmatpush1.bf16.msra.mxu0 %v9478_v51  ;;  %v3259_v13 = vmax.f32 %v2929_v30, 0.0  ;;  %v2822_v45 = vadd.f32 %v2821_v37, %v11327_v58  ;;  %v9490_v51 = vld [vmem:[#allocation11 + $0x40] ss:$28 sps:$4 sm:$0xff]  }
 0x2ad   :  { %v2934_v12 = vpop.f32.mrf.mxu1  ;;  %v2823_v60 = vpop.f32.mrf.mxu0  ;;  %6706 = vmatprep.subr.bf16.mxu0 %v9486_v20 }
 0x2ae   :  { %v3260_v14 = vmax.f32 %v2931_v29, 0.0  ;;  %v2824_v1 = vadd.f32 %v2823_v60, %v11318_v11  ;;  %v11375_v30 = vpack.c.bf16 %v3259_v13, %v3251_v22  ;;  %v2935_v37 = vadd.f32 %v2934_v12, %v2822_v45 }
 0x2af   :  { %v2936_v19 = vpop.f32.mrf.mxu1  ;;  %v2825_v23 = vpop.f32.mrf.mxu0 }
 0x2b0   :  { %v11372_v24 = vpack.c.bf16 %v3260_v14, %v3252_v53  ;;  %v2826_v15 = vadd.f32 %v2825_v23, %v11327_v58  ;;  %6707 = vmatpush1.bf16.msra.mxu0 %v9484_v3  ;;  %13148 = vst [vmem:[#allocation56_spill] sm:$0xff] %v11375_v30  ;;  %v2937_v61 = vadd.f32 %v2936_v19, %v2824_v1  ;;  %v9496_v3 = vld [vmem:[#allocation11 + $0x8] ss:$28 sps:$4 sm:$0xff]  }
 0x2b1   :  { %v2938_v25 = vpop.f32.mrf.mxu1  ;;  %v2827_v20 = vpop.f32.mrf.mxu0  ;;  %6708 = vmatprep.subr.bf16.mxu0 %v9492_v5  ;;  %v9504_v5 = vld [vmem:[#allocation11 + $0x354] ss:$28 sps:$4 sm:$0xff]  }
 0x2b2   :  { %13147 = vst [vmem:[#allocation55_spill] sm:$0xff] %v11372_v24  ;;  %v2939_v29 = vadd.f32 %v2938_v25, %v2826_v15  ;;  %v2828_v6 = vadd.f32 %v2827_v20, %v11318_v11  ;;  %6532 = vmatprep.mubr.bf16.mxu0 %v11372_v24  ;;  %v3268_v44 = vmax.f32 %v2937_v61, 0.0  ;;  %v3267_v15 = vmax.f32 %v2935_v37, 0.0  ;;  %v9510_v61 = vld [vmem:[#allocation11 + $0x31c] ss:$28 sps:$4 sm:$0xff]  }
 0x2b3   :  { %v2940_v60 = vpop.f32.mrf.mxu1  ;;  %v2831_v53 = vpop.f32.mrf.mxu0  ;;  %6533 = vmatmul.mubr.bf16.gmra.mxu0 %v11375_v30 }
 0x2b4   :  { %v2941_v14 = vadd.f32 %v2940_v60, %v2828_v6  ;;  %6709 = vmatpush1.bf16.msra.mxu0 %v9490_v51  ;;  %v3275_v13 = vmax.f32 %v2939_v29, 0.0  ;;  %v2832_v25 = vadd.f32 %v2831_v53, %v11327_v58  ;;  %v9502_v51 = vld [vmem:[#allocation11 + $0x350] ss:$28 sps:$4 sm:$0xff]  }
 0x2b5   :  { %v2944_v22 = vpop.f32.mrf.mxu1  ;;  %v2833_v23 = vpop.f32.mrf.mxu0  ;;  %6710 = vmatprep.subr.bf16.mxu0 %v9498_v56 }
 0x2b6   :  { %v3276_v1 = vmax.f32 %v2941_v14, 0.0  ;;  %v2834_v19 = vadd.f32 %v2833_v23, %v11318_v11  ;;  %v11385_v29 = vpack.c.bf16 %v3275_v13, %v3267_v15  ;;  %v2945_v53 = vadd.f32 %v2944_v22, %v2832_v25 }
 0x2b7   :  { %v2946_v12 = vpop.f32.mrf.mxu1  ;;  %v2835_v45 = vpop.f32.mrf.mxu0 }
 0x2b8   :  { %v11382_v20 = vpack.c.bf16 %v3276_v1, %v3268_v44  ;;  %v2836_v6 = vadd.f32 %v2835_v45, %v11327_v58  ;;  %6711 = vmatpush1.bf16.msra.mxu0 %v9496_v3  ;;  %13150 = vst [vmem:[#allocation58_spill] sm:$0xff] %v11385_v29  ;;  %v2947_v14 = vadd.f32 %v2946_v12, %v2834_v19  ;;  %v9508_v3 = vld [vmem:[#allocation11 + $0x318] ss:$28 sps:$4 sm:$0xff]  }
 0x2b9   :  { %v2948_v60 = vpop.f32.mrf.mxu1  ;;  %v2837_v56 = vpop.f32.mrf.mxu0  ;;  %6712 = vmatprep.subr.bf16.mxu0 %v9504_v5  ;;  %v9516_v5 = vld [vmem:[#allocation11 + $0x2e4] ss:$28 sps:$4 sm:$0xff]  }
 0x2ba   :  { %13149 = vst [vmem:[#allocation57_spill] sm:$0xff] %v11382_v20  ;;  %v2949_v63 = vadd.f32 %v2948_v60, %v2836_v6  ;;  %v2838_v37 = vadd.f32 %v2837_v56, %v11318_v11  ;;  %6542 = vmatprep.mubr.bf16.mxu0 %v11382_v20  ;;  %v3284_v27 = vmax.f32 %v2947_v14, 0.0  ;;  %v3283_v6 = vmax.f32 %v2945_v53, 0.0  ;;  %v9522_v14 = vld [vmem:[#allocation11 + $0x2ac] ss:$28 sps:$4 sm:$0xff]  }
 0x2bb   :  { %v2950_v23 = vpop.f32.mrf.mxu1  ;;  %v2841_v44 = vpop.f32.mrf.mxu0  ;;  %6543 = vmatmul.mubr.bf16.gmra.mxu0 %v11385_v29 }
 0x2bc   :  { %v2951_v1 = vadd.f32 %v2950_v23, %v2838_v37  ;;  %6713 = vmatpush2.bf16.msra.mxu0 %v9502_v51  ;;  %v3291_v13 = vmax.f32 %v2949_v63, 0.0  ;;  %v2842_v60 = vadd.f32 %v2841_v44, %v11327_v58  ;;  %v9514_v51 = vld [vmem:[#allocation11 + $0x2e0] ss:$28 sps:$4 sm:$0xff]  }
 0x2bd   :  { %v2954_v15 = vpop.f32.mrf.mxu1  ;;  %v2843_v45 = vpop.f32.mrf.mxu0  ;;  %6714 = vmatprep.subr.bf16.mxu0 %v9510_v61 }
 0x2be   :  { %v3292_v19 = vmax.f32 %v2951_v1, 0.0  ;;  %v2844_v12 = vadd.f32 %v2843_v45, %v11318_v11  ;;  %v11395_v63 = vpack.c.bf16 %v3291_v13, %v3283_v6  ;;  %v2955_v44 = vadd.f32 %v2954_v15, %v2842_v60 }
 0x2bf   :  { %v2956_v22 = vpop.f32.mrf.mxu1  ;;  %v2845_v25 = vpop.f32.mrf.mxu0 }
 0x2c0   :  { %v11392_v56 = vpack.c.bf16 %v3292_v19, %v3284_v27  ;;  %v2846_v37 = vadd.f32 %v2845_v25, %v11327_v58  ;;  %6715 = vmatpush2.bf16.msra.mxu0 %v9508_v3  ;;  %13152 = vst [vmem:[#allocation60_spill] sm:$0xff] %v11395_v63  ;;  %v2957_v1 = vadd.f32 %v2956_v22, %v2844_v12  ;;  %v9520_v3 = vld [vmem:[#allocation11 + $0x2a8] ss:$28 sps:$4 sm:$0xff]  }
 0x2c1   :  { %v2958_v23 = vpop.f32.mrf.mxu1  ;;  %v2847_v61 = vpop.f32.mrf.mxu0  ;;  %6716 = vmatprep.subr.bf16.mxu0 %v9516_v5  ;;  %v9528_v5 = vld [vmem:[#allocation11 + $0x274] ss:$28 sps:$4 sm:$0xff]  }
 0x2c2   :  { %13151 = vst [vmem:[#allocation59_spill] sm:$0xff] %v11392_v56  ;;  %v2959_v48 = vadd.f32 %v2958_v23, %v2846_v37  ;;  %v2848_v53 = vadd.f32 %v2847_v61, %v11318_v11  ;;  %6552 = vmatprep.mubr.bf16.mxu0 %v11392_v56  ;;  %v3300_v41 = vmax.f32 %v2957_v1, 0.0  ;;  %v1005_v37 = vsub.s32 7, %v13138_v59 }
 0x2c3   :  { %v2960_v45 = vpop.f32.mrf.mxu1  ;;  %v2851_v27 = vpop.f32.mrf.mxu0  ;;  %6553 = vmatmul.mubr.bf16.gmra.mxu0 %v11395_v63  ;;  %v3299_v23 = vmax.f32 %v2955_v44, 0.0 }
 0x2c4   :  { %v2961_v19 = vadd.f32 %v2960_v45, %v2848_v53  ;;  %6717 = vmatpush2.bf16.msra.mxu0 %v9514_v51  ;;  %v3307_v13 = vmax.f32 %v2959_v48, 0.0  ;;  %v2852_v15 = vadd.f32 %v2851_v27, %v11327_v58  ;;  %v11412_v53 = vrot.slane %v11322_v9, %v1005_v37 }
 0x2c5   :  { %v2964_v6 = vpop.f32.mrf.mxu1  ;;  %v2853_v25 = vpop.f32.mrf.mxu0  ;;  %6718 = vmatprep.subr.bf16.mxu0 %v9522_v14  ;;  %v9526_v14 = vld [vmem:[#allocation11 + $0x270] ss:$28 sps:$4 sm:$0xff]  }
 0x2c6   :  { %v3308_v12 = vmax.f32 %v2961_v19, 0.0  ;;  %v2854_v22 = vadd.f32 %v2853_v25, %v11318_v11  ;;  %v11407_v45 = vpack.c.bf16 %v3307_v13, %v3299_v23  ;;  %v9534_v25 = vld [vmem:[#allocation11 + $0x23c] ss:$28 sps:$4 sm:$0xff]  }
 0x2c7   :  { %v2966_v60 = vpop.f32.mrf.mxu1  ;;  %v2855_v61 = vpop.f32.mrf.mxu0 }
 0x2c8   :  { %v11404_v51 = vpack.c.bf16 %v3308_v12, %v3300_v41  ;;  %v2856_v48 = vadd.f32 %v2855_v61, %v11327_v58  ;;  %6719 = vmatpush2.bf16.msra.mxu0 %v9520_v3  ;;  %13154 = vst [vmem:[#allocation62_spill] sm:$0xff] %v11407_v45  ;;  %v2967_v40 = vadd.f32 %v2966_v60, %v2854_v22  ;;  %v13155_v58 = vsub.s32 6, %v13138_v59  ;;  %v9532_v22 = vld [vmem:[#allocation11 + $0x238] ss:$28 sps:$4 sm:$0xff]   ;;  %v9540_v61 = vld [vmem:[#allocation11 + $0x204] ss:$28 sps:$4 sm:$0xff]  }
 0x2c9   :  { %v2968_v1 = vpop.f32.mrf.mxu1  ;;  %v2857_v19 = vpop.f32.mrf.mxu0  ;;  %6720 = vmatprep.subr.bf16.mxu0 %v9528_v5  ;;  %v2965_v41 = vadd.f32 %v2964_v6, %v2852_v15 }
 0x2ca   :  { %13153 = vst [vmem:[#allocation61_spill] sm:$0xff] %v11404_v51  ;;  %v2969_v44 = vadd.f32 %v2968_v1, %v2856_v48  ;;  %v2858_v27 = vadd.f32 %v2857_v19, %v11318_v11  ;;  %6562 = vmatprep.mubr.bf16.mxu0 %v11404_v51  ;;  %v11417_v3 = vrot.slane %v11322_v9, %v13155_v58  ;;  %v3316_v37 = vmax.f32 %v2967_v40, 0.0  ;;  %v9546_v40 = vld [vmem:[#allocation11 + $0x1cc] ss:$28 sps:$4 sm:$0xff]  }
 0x2cb   :  { %v2970_v12 = vpop.f32.mrf.mxu1  ;;  %v3007_v13 = vpop.f32.mrf.mxu0  ;;  %6563 = vmatmul.mubr.bf16.gmra.mxu0 %v11407_v45  ;;  %v3315_v15 = vmax.f32 %v2965_v41, 0.0 }
 0x2cc   :  { %v2971_v5 = vadd.f32 %v2970_v12, %v2858_v27  ;;  %6721 = vmatpush2.bf16.msra.mxu0 %v9526_v14  ;;  %v3323_v23 = vmax.f32 %v2969_v44, 0.0  ;;  %v3008_v1 = vadd.f32 %v3007_v13, %v11417_v3  ;;  %v9538_v14 = vld [vmem:[#allocation11 + $0x200] ss:$28 sps:$4 sm:$0xff]  }
 0x2cd   :  { %v3120_v11 = vpop.f32.mrf.mxu1  ;;  %v3009_v60 = vpop.f32.mrf.mxu0  ;;  %6722 = vmatprep.subr.bf16.mxu0 %v9534_v25 }
 0x2ce   :  { %v3324_v48 = vmax.f32 %v2971_v5, 0.0  ;;  %v3010_v6 = vadd.f32 %v3009_v60, %v11412_v53  ;;  %v11425_v44 = vpack.c.bf16 %v3323_v23, %v3315_v15  ;;  %v3121_v13 = vadd.f32 %v3120_v11, %v3008_v1  ;;  %v9544_v23 = vld [vmem:[#allocation11 + $0x1c8] ss:$28 sps:$4 sm:$0xff]  }
 0x2cf   :  { %v3122_v9 = vpop.f32.mrf.mxu1  ;;  %v3011_v19 = vpop.f32.mrf.mxu0 }
 0x2d0   :  { %v11422_v58 = vpack.c.bf16 %v3324_v48, %v3316_v37  ;;  %v3012_v27 = vadd.f32 %v3011_v19, %v11417_v3  ;;  %6723 = vmatpush2.bf16.msra.mxu0 %v9532_v22  ;;  %13157 = vst [vmem:[#allocation64_spill] sm:$0xff] %v11425_v44  ;;  %v3123_v5 = vadd.f32 %v3122_v9, %v3010_v6  ;;  %v13158_v22 = vld [vmem:[#allocation33_spill] sm:$0xff] }
 0x2d1   :  { %v3124_v12 = vpop.f32.mrf.mxu1  ;;  %v3013_v25 = vpop.f32.mrf.mxu0  ;;  %6724 = vmatprep.subr.bf16.mxu0 %v9540_v61  ;;  %v9552_v6 = vld [vmem:[#allocation11 + $0x894] ss:$28 sps:$4 sm:$0xff]  }
 0x2d2   :  { %13156 = vst [vmem:[#allocation63_spill] sm:$0xff] %v11422_v58  ;;  %v3125_v59 = vadd.f32 %v3124_v12, %v3012_v27  ;;  %v3014_v41 = vadd.f32 %v3013_v25, %v11412_v53  ;;  %6572 = vmatprep.mubr.bf16.mxu0 %v11422_v58  ;;  %v3206_v9 = vmax.f32 %v3123_v5, 0.0  ;;  %v3205_v25 = vmax.f32 %v3121_v13, 0.0  ;;  %v9555_v5 = vld [vmem:[#allocation11 + $0x4dc] ss:$28 sps:$4 sm:$0xff]  }
 0x2d3   :  { %v3126_v60 = vpop.f32.mrf.mxu1  ;;  %v3017_v37 = vpop.f32.mrf.mxu0  ;;  %6573 = vmatmul.mubr.bf16.gmra.mxu0 %v11425_v44 }
 0x2d4   :  { %v3127_v48 = vadd.f32 %v3126_v60, %v3014_v41  ;;  %6725 = vmatpush2.bf16.msra.mxu0 %v9538_v14  ;;  %6728 = vmatprep.mubr.bf16.mxu0 %v13158_v22  ;;  %v3213_v15 = vmax.f32 %v3125_v59, 0.0  ;;  %v3018_v11 = vadd.f32 %v3017_v37, %v11417_v3  ;;  %v9547_v41 = vld [vmem:[#allocation11 + $0x510] ss:$28 sps:$4 sm:$0xff]   ;;  %v9558_v37 = vld [vmem:[#allocation11 + $0x85c] ss:$28 sps:$4 sm:$0xff]  }
 0x2d5   :  { %v3130_v19 = vpop.f32.mrf.mxu1  ;;  %v3019_v61 = vpop.f32.mrf.mxu0  ;;  %6726 = vmatprep.subr.bf16.mxu0 %v9546_v40  ;;  %v9550_v22 = vld [vmem:[#allocation11 + $0x890] ss:$28 sps:$4 sm:$0xff]  }
 0x2d6   :  { %v3214_v27 = vmax.f32 %v3127_v48, 0.0  ;;  %v3020_v12 = vadd.f32 %v3019_v61, %v11412_v53  ;;  %v11436_v59 = vpack.c.bf16 %v3213_v15, %v3205_v25  ;;  %v13162_v15 = vld [vmem:[#allocation35_spill] sm:$0xff] }
 0x2d7   :  { %v3132_v1 = vpop.f32.mrf.mxu1  ;;  %v3021_v58 = vpop.f32.mrf.mxu0 }
 0x2d8   :  { %v11433_v44 = vpack.c.bf16 %v3214_v27, %v3206_v9  ;;  %v3022_v14 = vadd.f32 %v3021_v58, %v11417_v3  ;;  %6727 = vmatpush2.bf16.msra.mxu0 %v9544_v23  ;;  %13160 = vst [vmem:[#allocation66_spill] sm:$0xff] %v11436_v59  ;;  %v3133_v48 = vadd.f32 %v3132_v1, %v3020_v12  ;;  %v13161_v58 = vld [vmem:[#allocation34_spill] sm:$0xff] }
 0x2d9   :  { %v3134_v60 = vpop.f32.mrf.mxu1  ;;  %v3023_v40 = vpop.f32.mrf.mxu0  ;;  %6922 = vmatprep.subr.bf16.mxu0 %v9552_v6  ;;  %v3131_v9 = vadd.f32 %v3130_v19, %v3018_v11  ;;  %v9553_v6 = vld [vmem:[#allocation11 + $0x4d8] ss:$28 sps:$4 sm:$0xff]  }
 0x2da   :  { %13159 = vst [vmem:[#allocation65_spill] sm:$0xff] %v11433_v44  ;;  %v3135_v61 = vadd.f32 %v3134_v60, %v3022_v14  ;;  %v3024_v13 = vadd.f32 %v3023_v40, %v11412_v53  ;;  %6615 = vmatprep.mubr.bf16.mxu1 %v11433_v44  ;;  %v9556_v14 = vld [vmem:[#allocation11 + $0x858] ss:$28 sps:$4 sm:$0xff]   ;;  %v9561_v60 = vld [vmem:[#allocation11 + $0x4a4] ss:$28 sps:$4 sm:$0xff]   ;;  %v3222_v40 = vmax.f32 %v3133_v48, 0.0 }
 0x2db   :  { %v3136_v27 = vpop.f32.mrf.mxu1  ;;  %v3027_v45 = vpop.f32.mrf.mxu0  ;;  %6616 = vmatmul.mubr.bf16.vlgmr.msra.gmra.mxu1 %v11436_v59  ;;  %6729 = vmatmul.mubr.bf16.vlgmr.msra.gmra.mxu0 %v13161_v58  ;;  %v9564_v59 = vld [vmem:[#allocation11 + $0x824] ss:$28 sps:$4 sm:$0xff]   ;;  %v3221_v44 = vmax.f32 %v3131_v9, 0.0 }
 0x2dc   :  { %v3137_v23 = vadd.f32 %v3136_v27, %v3024_v13  ;;  %6810 = vmatpush1.bf16.msra.mxu1 %v9547_v41  ;;  %6738 = vmatprep.mubr.bf16.mxu0 %v13162_v15  ;;  %v3229_v25 = vmax.f32 %v3135_v61, 0.0  ;;  %v3028_v13 = vadd.f32 %v3027_v45, %v11417_v3 }
 0x2dd   :  { %v3140_v12 = vpop.f32.mrf.mxu1  ;;  %6923 = vmatpush1.bf16.msra.mxu0 %v9550_v22  ;;  %v3029_v1 = vpop.f32.mrf.mxu0  ;;  %6811 = vmatprep.subr.bf16.mxu1 %v9555_v5  ;;  %v9559_v22 = vld [vmem:[#allocation11 + $0x4a0] ss:$28 sps:$4 sm:$0xff]  }
 0x2de   :  { %v3230_v19 = vmax.f32 %v3137_v23, 0.0  ;;  %v3030_v11 = vadd.f32 %v3029_v1, %v11412_v53  ;;  %6924 = vmatprep.subr.bf16.mxu0 %v9558_v37  ;;  %v11448_v5 = vpack.c.bf16 %v3229_v25, %v3221_v44  ;;  %v9562_v23 = vld [vmem:[#allocation11 + $0x820] ss:$28 sps:$4 sm:$0xff]   ;;  %v9567_v37 = vld [vmem:[#allocation11 + $0x46c] ss:$28 sps:$4 sm:$0xff]  }
 0x2df   :  { %v3142_v41 = vpop.f32.mrf.mxu1  ;;  %v3031_v27 = vpop.f32.mrf.mxu0  ;;  %v9565_v25 = vld [vmem:[#allocation11 + $0x468] ss:$28 sps:$4 sm:$0xff]  }
 0x2e0   :  { %v11445_v15 = vpack.c.bf16 %v3230_v19, %v3222_v40  ;;  %v3032_v61 = vadd.f32 %v3031_v27, %v11417_v3  ;;  %6812 = vmatpush1.bf16.msra.mxu1 %v9553_v6  ;;  %13164 = vst [vmem:[#allocation68_spill] sm:$0xff] %v11448_v5  ;;  %v3143_v1 = vadd.f32 %v3142_v41, %v3030_v11  ;;  %v9570_v40 = vld [vmem:[#allocation11 + $0x7ec] ss:$28 sps:$4 sm:$0xff]  }
 0x2e1   :  { %v3144_v58 = vpop.f32.mrf.mxu1  ;;  %6925 = vmatpush1.bf16.msra.mxu0 %v9556_v14  ;;  %v3033_v48 = vpop.f32.mrf.mxu0  ;;  %6813 = vmatprep.subr.bf16.mxu1 %v9561_v60  ;;  %v3141_v19 = vadd.f32 %v3140_v12, %v3028_v13  ;;  %v9568_v11 = vld [vmem:[#allocation11 + $0x7e8] ss:$28 sps:$4 sm:$0xff]  }
 0x2e2   :  { %13163 = vst [vmem:[#allocation67_spill] sm:$0xff] %v11445_v15  ;;  %v3145_v9 = vadd.f32 %v3144_v58, %v3032_v61  ;;  %v3034_v45 = vadd.f32 %v3033_v48, %v11412_v53  ;;  %6625 = vmatprep.mubr.bf16.mxu1 %v11445_v15  ;;  %6926 = vmatprep.subr.bf16.mxu0 %v9564_v59  ;;  %v9573_v59 = vld [vmem:[#allocation11 + $0x434] ss:$28 sps:$4 sm:$0xff]   ;;  %v3238_v41 = vmax.f32 %v3143_v1, 0.0 }
 0x2e3   :  { %v3146_v27 = vpop.f32.mrf.mxu1  ;;  %v3037_v6 = vpop.f32.mrf.mxu0  ;;  %6626 = vmatmul.mubr.bf16.gmra.mxu1 %v11448_v5  ;;  %6739 = vmatmul.mubr.bf16.gmra.mxu0 %v11149_v31  ;;  %v9576_v61 = vld [vmem:[#allocation11 + $0x7b4] ss:$28 sps:$4 sm:$0xff]   ;;  %v3237_v48 = vmax.f32 %v3141_v19, 0.0 }
 0x2e4   :  { %v3147_v44 = vadd.f32 %v3146_v27, %v3034_v45  ;;  %6814 = vmatpush1.bf16.msra.mxu1 %v9559_v22  ;;  %6748 = vmatprep.mubr.bf16.mxu0 %v11155_v54  ;;  %v3245_v14 = vmax.f32 %v3145_v9, 0.0  ;;  %v3038_v45 = vadd.f32 %v3037_v6, %v11417_v3 }
 0x2e5   :  { %v3150_v58 = vpop.f32.mrf.mxu1  ;;  %6927 = vmatpush1.bf16.msra.mxu0 %v9562_v23  ;;  %v3039_v60 = vpop.f32.mrf.mxu0  ;;  %6815 = vmatprep.subr.bf16.mxu1 %v9567_v37  ;;  %v9571_v23 = vld [vmem:[#allocation11 + $0x430] ss:$28 sps:$4 sm:$0xff]  }
 0x2e6   :  { %v3246_v12 = vmax.f32 %v3147_v44, 0.0  ;;  %v3040_v13 = vadd.f32 %v3039_v60, %v11412_v53  ;;  %6928 = vmatprep.subr.bf16.mxu0 %v9570_v40  ;;  %v11460_v37 = vpack.c.bf16 %v3245_v14, %v3237_v48  ;;  %v9574_v44 = vld [vmem:[#allocation11 + $0x7b0] ss:$28 sps:$4 sm:$0xff]   ;;  %v9579_v40 = vld [vmem:[#allocation11 + $0x3fc] ss:$28 sps:$4 sm:$0xff]  }
 0x2e7   :  { %v3152_v22 = vpop.f32.mrf.mxu1  ;;  %v3041_v27 = vpop.f32.mrf.mxu0  ;;  %v9580_v48 = vld [vmem:[#allocation11 + $0x778] ss:$28 sps:$4 sm:$0xff]  }
 0x2e8   :  { %v11457_v54 = vpack.c.bf16 %v3246_v12, %v3238_v41  ;;  %v3042_v9 = vadd.f32 %v3041_v27, %v11417_v3  ;;  %6816 = vmatpush1.bf16.msra.mxu1 %v9565_v25  ;;  %13166 = vst [vmem:[#allocation70_spill] sm:$0xff] %v11460_v37  ;;  %v3153_v60 = vadd.f32 %v3152_v22, %v3040_v13  ;;  %v9582_v41 = vld [vmem:[#allocation11 + $0x77c] ss:$28 sps:$4 sm:$0xff]  }
 0x2e9   :  { %v3154_v31 = vpop.f32.mrf.mxu1  ;;  %6929 = vmatpush1.bf16.msra.mxu0 %v9568_v11  ;;  %v3043_v1 = vpop.f32.mrf.mxu0  ;;  %6817 = vmatprep.subr.bf16.mxu1 %v9573_v59  ;;  %v3151_v12 = vadd.f32 %v3150_v58, %v3038_v45  ;;  %v9577_v11 = vld [vmem:[#allocation11 + $0x3f8] ss:$28 sps:$4 sm:$0xff]  }
 0x2ea   :  { %13165 = vst [vmem:[#allocation69_spill] sm:$0xff] %v11457_v54  ;;  %v3155_v19 = vadd.f32 %v3154_v31, %v3042_v9  ;;  %v3044_v6 = vadd.f32 %v3043_v1, %v11412_v53  ;;  %6635 = vmatprep.mubr.bf16.mxu1 %v11457_v54  ;;  %6930 = vmatprep.subr.bf16.mxu0 %v9576_v61  ;;  %v9585_v61 = vld [vmem:[#allocation11 + $0x3c4] ss:$28 sps:$4 sm:$0xff]   ;;  %v3254_v22 = vmax.f32 %v3153_v60, 0.0 }
 0x2eb   :  { %v3156_v27 = vpop.f32.mrf.mxu1  ;;  %v3047_v25 = vpop.f32.mrf.mxu0  ;;  %6636 = vmatmul.mubr.bf16.gmra.mxu1 %v11460_v37  ;;  %6749 = vmatmul.mubr.bf16.gmra.mxu0 %v11175_v16  ;;  %v9588_v9 = vld [vmem:[#allocation11 + $0x744] ss:$28 sps:$4 sm:$0xff]   ;;  %v3253_v1 = vmax.f32 %v3151_v12, 0.0 }
 0x2ec   :  { %v3157_v14 = vadd.f32 %v3156_v27, %v3044_v6  ;;  %6818 = vmatpush1.bf16.msra.mxu1 %v9571_v23  ;;  %6758 = vmatprep.mubr.bf16.mxu0 %v11177_v17  ;;  %v3261_v59 = vmax.f32 %v3155_v19, 0.0  ;;  %v3048_v6 = vadd.f32 %v3047_v25, %v11417_v3 }
 0x2ed   :  { %v3160_v31 = vpop.f32.mrf.mxu1  ;;  %6931 = vmatpush1.bf16.msra.mxu0 %v9574_v44  ;;  %v3049_v13 = vpop.f32.mrf.mxu0  ;;  %6819 = vmatprep.subr.bf16.mxu1 %v9579_v40  ;;  %v9583_v44 = vld [vmem:[#allocation11 + $0x3c0] ss:$28 sps:$4 sm:$0xff]  }
 0x2ee   :  { %v3262_v58 = vmax.f32 %v3157_v14, 0.0  ;;  %v3050_v45 = vadd.f32 %v3049_v13, %v11412_v53  ;;  %6932 = vmatprep.subr.bf16.mxu0 %v9582_v41  ;;  %v11472_v40 = vpack.c.bf16 %v3261_v59, %v3253_v1  ;;  %v9586_v14 = vld [vmem:[#allocation11 + $0x740] ss:$28 sps:$4 sm:$0xff]   ;;  %v9591_v41 = vld [vmem:[#allocation11 + $0x38c] ss:$28 sps:$4 sm:$0xff]  }
 0x2ef   :  { %v3162_v23 = vpop.f32.mrf.mxu1  ;;  %v3051_v27 = vpop.f32.mrf.mxu0  ;;  %v9592_v1 = vld [vmem:[#allocation11 + $0x708] ss:$28 sps:$4 sm:$0xff]  }
 0x2f0   :  { %v11469_v17 = vpack.c.bf16 %v3262_v58, %v3254_v22  ;;  %v3052_v19 = vadd.f32 %v3051_v27, %v11417_v3  ;;  %6820 = vmatpush1.bf16.msra.mxu1 %v9577_v11  ;;  %13168 = vst [vmem:[#allocation72_spill] sm:$0xff] %v11472_v40  ;;  %v3163_v13 = vadd.f32 %v3162_v23, %v3050_v45  ;;  %v9594_v22 = vld [vmem:[#allocation11 + $0x70c] ss:$28 sps:$4 sm:$0xff]  }
 0x2f1   :  { %v3164_v16 = vpop.f32.mrf.mxu1  ;;  %6933 = vmatpush1.bf16.msra.mxu0 %v9580_v48  ;;  %v3053_v60 = vpop.f32.mrf.mxu0  ;;  %6821 = vmatprep.subr.bf16.mxu1 %v9585_v61  ;;  %v3161_v58 = vadd.f32 %v3160_v31, %v3048_v6  ;;  %v9589_v48 = vld [vmem:[#allocation11 + $0x388] ss:$28 sps:$4 sm:$0xff]  }
 0x2f2   :  { %13167 = vst [vmem:[#allocation71_spill] sm:$0xff] %v11469_v17  ;;  %v3165_v12 = vadd.f32 %v3164_v16, %v3052_v19  ;;  %v3054_v25 = vadd.f32 %v3053_v60, %v11412_v53  ;;  %6645 = vmatprep.mubr.bf16.mxu1 %v11469_v17  ;;  %6934 = vmatprep.subr.bf16.mxu0 %v9588_v9  ;;  %v9597_v9 = vld [vmem:[#allocation11 + $0x6d4] ss:$28 sps:$4 sm:$0xff]   ;;  %v3270_v23 = vmax.f32 %v3163_v13, 0.0 }
 0x2f3   :  { %v3166_v27 = vpop.f32.mrf.mxu1  ;;  %v3057_v11 = vpop.f32.mrf.mxu0  ;;  %6646 = vmatmul.mubr.bf16.gmra.mxu1 %v11472_v40  ;;  %6759 = vmatmul.mubr.bf16.gmra.mxu0 %v11191_v55  ;;  %v9600_v19 = vld [vmem:[#allocation11 + $0xa54] ss:$28 sps:$4 sm:$0xff]   ;;  %v3269_v60 = vmax.f32 %v3161_v58, 0.0 }
 0x2f4   :  { %v3167_v59 = vadd.f32 %v3166_v27, %v3054_v25  ;;  %6822 = vmatpush1.bf16.msra.mxu1 %v9583_v44  ;;  %6768 = vmatprep.mubr.bf16.mxu0 %v11201_v28  ;;  %v3277_v61 = vmax.f32 %v3165_v12, 0.0  ;;  %v3058_v25 = vadd.f32 %v3057_v11, %v11417_v3 }
 0x2f5   :  { %v3170_v16 = vpop.f32.mrf.mxu1  ;;  %6935 = vmatpush1.bf16.msra.mxu0 %v9586_v14  ;;  %v3059_v45 = vpop.f32.mrf.mxu0  ;;  %6823 = vmatprep.subr.bf16.mxu1 %v9591_v41  ;;  %v9595_v14 = vld [vmem:[#allocation11 + $0x6d0] ss:$28 sps:$4 sm:$0xff]  }
 0x2f6   :  { %v3278_v31 = vmax.f32 %v3167_v59, 0.0  ;;  %v3060_v6 = vadd.f32 %v3059_v45, %v11412_v53  ;;  %6936 = vmatprep.subr.bf16.mxu0 %v9594_v22  ;;  %v11484_v41 = vpack.c.bf16 %v3277_v61, %v3269_v60  ;;  %v9598_v59 = vld [vmem:[#allocation11 + $0xa50] ss:$28 sps:$4 sm:$0xff]   ;;  %v9603_v22 = vld [vmem:[#allocation11 + $0x69c] ss:$28 sps:$4 sm:$0xff]  }
 0x2f7   :  { %v3172_v44 = vpop.f32.mrf.mxu1  ;;  %v3061_v27 = vpop.f32.mrf.mxu0  ;;  %v9604_v60 = vld [vmem:[#allocation11 + $0xa18] ss:$28 sps:$4 sm:$0xff]  }
 0x2f8   :  { %v11481_v28 = vpack.c.bf16 %v3278_v31, %v3270_v23  ;;  %v3062_v12 = vadd.f32 %v3061_v27, %v11417_v3  ;;  %6824 = vmatpush1.bf16.msra.mxu1 %v9589_v48  ;;  %13170 = vst [vmem:[#allocation74_spill] sm:$0xff] %v11484_v41  ;;  %v3173_v45 = vadd.f32 %v3172_v44, %v3060_v6  ;;  %v9606_v23 = vld [vmem:[#allocation11 + $0xa1c] ss:$28 sps:$4 sm:$0xff]  }
 0x2f9   :  { %v3174_v55 = vpop.f32.mrf.mxu1  ;;  %6937 = vmatpush1.bf16.msra.mxu0 %v9592_v1  ;;  %v3063_v13 = vpop.f32.mrf.mxu0  ;;  %6825 = vmatprep.subr.bf16.mxu1 %v9597_v9  ;;  %v3171_v31 = vadd.f32 %v3170_v16, %v3058_v25  ;;  %v9601_v1 = vld [vmem:[#allocation11 + $0x698] ss:$28 sps:$4 sm:$0xff]  }
 0x2fa   :  { %13169 = vst [vmem:[#allocation73_spill] sm:$0xff] %v11481_v28  ;;  %v3175_v58 = vadd.f32 %v3174_v55, %v3062_v12  ;;  %v3064_v11 = vadd.f32 %v3063_v13, %v11412_v53  ;;  %6655 = vmatprep.mubr.bf16.mxu1 %v11481_v28  ;;  %6938 = vmatprep.subr.bf16.mxu0 %v9600_v19  ;;  %v9609_v19 = vld [vmem:[#allocation11 + $0x664] ss:$28 sps:$4 sm:$0xff]   ;;  %v3286_v44 = vmax.f32 %v3173_v45, 0.0 }
 0x2fb   :  { %v3176_v27 = vpop.f32.mrf.mxu1  ;;  %v3067_v48 = vpop.f32.mrf.mxu0  ;;  %6656 = vmatmul.mubr.bf16.gmra.mxu1 %v11484_v41  ;;  %6769 = vmatmul.mubr.bf16.gmra.mxu0 %v11226_v36  ;;  %v9612_v12 = vld [vmem:[#allocation11 + $0x9e4] ss:$28 sps:$4 sm:$0xff]   ;;  %v3285_v13 = vmax.f32 %v3171_v31, 0.0 }
 0x2fc   :  { %v3177_v61 = vadd.f32 %v3176_v27, %v3064_v11  ;;  %6826 = vmatpush2.bf16.msra.mxu1 %v9595_v14  ;;  %6778 = vmatprep.mubr.bf16.mxu0 %v11232_v57  ;;  %v3293_v9 = vmax.f32 %v3175_v58, 0.0  ;;  %v3068_v11 = vadd.f32 %v3067_v48, %v11417_v3 }
 0x2fd   :  { %v3180_v55 = vpop.f32.mrf.mxu1  ;;  %6939 = vmatpush2.bf16.msra.mxu0 %v9598_v59  ;;  %v3069_v6 = vpop.f32.mrf.mxu0  ;;  %6827 = vmatprep.subr.bf16.mxu1 %v9603_v22  ;;  %v9607_v59 = vld [vmem:[#allocation11 + $0x660] ss:$28 sps:$4 sm:$0xff]  }
 0x2fe   :  { %v3294_v16 = vmax.f32 %v3177_v61, 0.0  ;;  %v3070_v25 = vadd.f32 %v3069_v6, %v11412_v53  ;;  %6940 = vmatprep.subr.bf16.mxu0 %v9606_v23  ;;  %v11496_v22 = vpack.c.bf16 %v3293_v9, %v3285_v13  ;;  %v9610_v61 = vld [vmem:[#allocation11 + $0x9e0] ss:$28 sps:$4 sm:$0xff]   ;;  %v9615_v23 = vld [vmem:[#allocation11 + $0x62c] ss:$28 sps:$4 sm:$0xff]  }
 0x2ff   :  { %v3182_v14 = vpop.f32.mrf.mxu1  ;;  %v3071_v27 = vpop.f32.mrf.mxu0  ;;  %v9616_v13 = vld [vmem:[#allocation11 + $0x9a8] ss:$28 sps:$4 sm:$0xff]  }
 0x300   :  { %v11493_v57 = vpack.c.bf16 %v3294_v16, %v3286_v44  ;;  %v3072_v58 = vadd.f32 %v3071_v27, %v11417_v3  ;;  %6828 = vmatpush2.bf16.msra.mxu1 %v9601_v1  ;;  %13172 = vst [vmem:[#allocation76_spill] sm:$0xff] %v11496_v22  ;;  %v3183_v6 = vadd.f32 %v3182_v14, %v3070_v25  ;;  %v9618_v44 = vld [vmem:[#allocation11 + $0x9ac] ss:$28 sps:$4 sm:$0xff]  }
 0x301   :  { %v3184_v36 = vpop.f32.mrf.mxu1  ;;  %6941 = vmatpush2.bf16.msra.mxu0 %v9604_v60  ;;  %v3073_v45 = vpop.f32.mrf.mxu0  ;;  %6829 = vmatprep.subr.bf16.mxu1 %v9609_v19  ;;  %v3181_v16 = vadd.f32 %v3180_v55, %v3068_v11  ;;  %v9613_v60 = vld [vmem:[#allocation11 + $0x628] ss:$28 sps:$4 sm:$0xff]  }
 0x302   :  { %13171 = vst [vmem:[#allocation75_spill] sm:$0xff] %v11493_v57  ;;  %v3185_v31 = vadd.f32 %v3184_v36, %v3072_v58  ;;  %v3074_v48 = vadd.f32 %v3073_v45, %v11412_v53  ;;  %6665 = vmatprep.mubr.bf16.mxu1 %v11493_v57  ;;  %6942 = vmatprep.subr.bf16.mxu0 %v9612_v12  ;;  %v9621_v12 = vld [vmem:[#allocation11 + $0x5f4] ss:$28 sps:$4 sm:$0xff]   ;;  %v3302_v14 = vmax.f32 %v3183_v6, 0.0 }
 0x303   :  { %v3186_v27 = vpop.f32.mrf.mxu1  ;;  %v3077_v1 = vpop.f32.mrf.mxu0  ;;  %6666 = vmatmul.mubr.bf16.gmra.mxu1 %v11496_v22  ;;  %6779 = vmatmul.mubr.bf16.gmra.mxu0 %v11249_v43  ;;  %v9624_v58 = vld [vmem:[#allocation11 + $0x974] ss:$28 sps:$4 sm:$0xff]   ;;  %v3301_v45 = vmax.f32 %v3181_v16, 0.0 }
 0x304   :  { %v3187_v9 = vadd.f32 %v3186_v27, %v3074_v48  ;;  %6830 = vmatpush2.bf16.msra.mxu1 %v9607_v59  ;;  %6788 = vmatprep.mubr.bf16.mxu0 %v11260_v21  ;;  %v3309_v19 = vmax.f32 %v3185_v31, 0.0  ;;  %v3078_v48 = vadd.f32 %v3077_v1, %v11417_v3 }
 0x305   :  { %v3190_v36 = vpop.f32.mrf.mxu1  ;;  %6943 = vmatpush2.bf16.msra.mxu0 %v9610_v61  ;;  %v3079_v25 = vpop.f32.mrf.mxu0  ;;  %6831 = vmatprep.subr.bf16.mxu1 %v9615_v23  ;;  %v9619_v61 = vld [vmem:[#allocation11 + $0x5f0] ss:$28 sps:$4 sm:$0xff]  }
 0x306   :  { %v3310_v55 = vmax.f32 %v3187_v9, 0.0  ;;  %v3080_v11 = vadd.f32 %v3079_v25, %v11412_v53  ;;  %6944 = vmatprep.subr.bf16.mxu0 %v9618_v44  ;;  %v11508_v23 = vpack.c.bf16 %v3309_v19, %v3301_v45  ;;  %v9622_v9 = vld [vmem:[#allocation11 + $0x970] ss:$28 sps:$4 sm:$0xff]   ;;  %v9627_v44 = vld [vmem:[#allocation11 + $0x5bc] ss:$28 sps:$4 sm:$0xff]  }
 0x307   :  { %v3192_v59 = vpop.f32.mrf.mxu1  ;;  %v3081_v27 = vpop.f32.mrf.mxu0  ;;  %v9636_v45 = vld [vmem:[#allocation11 + $0x904] ss:$28 sps:$4 sm:$0xff]  }
 0x308   :  { %v11505_v21 = vpack.c.bf16 %v3310_v55, %v3302_v14  ;;  %v3082_v31 = vadd.f32 %v3081_v27, %v11417_v3  ;;  %6832 = vmatpush2.bf16.msra.mxu1 %v9613_v60  ;;  %13174 = vst [vmem:[#allocation78_spill] sm:$0xff] %v11508_v23  ;;  %v3193_v25 = vadd.f32 %v3192_v59, %v3080_v11  ;;  %v9630_v14 = vld [vmem:[#allocation11 + $0x93c] ss:$28 sps:$4 sm:$0xff]   ;;  %v9633_v11 = vld [vmem:[#allocation11 + $0x584] ss:$28 sps:$4 sm:$0xff]  }
 0x309   :  { %v3194_v43 = vpop.f32.mrf.mxu1  ;;  %6945 = vmatpush2.bf16.msra.mxu0 %v9616_v13  ;;  %v3083_v6 = vpop.f32.mrf.mxu0  ;;  %6833 = vmatprep.subr.bf16.mxu1 %v9621_v12  ;;  %v3191_v55 = vadd.f32 %v3190_v36, %v3078_v48  ;;  %v9625_v13 = vld [vmem:[#allocation11 + $0x5b8] ss:$28 sps:$4 sm:$0xff]  }
 0x30a   :  { %13173 = vst [vmem:[#allocation77_spill] sm:$0xff] %v11505_v21  ;;  %v3195_v16 = vadd.f32 %v3194_v43, %v3082_v31  ;;  %v3084_v1 = vadd.f32 %v3083_v6, %v11412_v53  ;;  %6675 = vmatprep.mubr.bf16.mxu1 %v11505_v21  ;;  %6946 = vmatprep.subr.bf16.mxu0 %v9624_v58  ;;  %v9628_v12 = vld [vmem:[#allocation11 + $0x938] ss:$28 sps:$4 sm:$0xff]   ;;  %v3318_v36 = vmax.f32 %v3193_v25, 0.0  ;;  %v9631_v31 = vld [vmem:[#allocation11 + $0x580] ss:$28 sps:$4 sm:$0xff]  }
 0x30b   :  { %v3196_v3 = vpop.f32.mrf.mxu1  ;;  %v11512_v60 = vpop.f32.mrf.mxu0  ;;  %6676 = vmatmul.mubr.bf16.gmra.mxu1 %v11508_v23  ;;  %6789 = vmatmul.mubr.bf16.gmra.mxu0 %v11277_v2  ;;  %v3317_v48 = vmax.f32 %v3191_v55, 0.0  ;;  %v9642_v25 = vld [vmem:[#allocation11 + $0x8cc] ss:$28 sps:$4 sm:$0xff]  }
 0x30c   :  { %v3197_v19 = vadd.f32 %v3196_v3, %v3084_v1  ;;  %6834 = vmatpush2.bf16.msra.mxu1 %v9619_v61  ;;  %6798 = vmatprep.mubr.bf16.mxu0 %v11283_v52  ;;  %v3325_v43 = vmax.f32 %v3195_v16, 0.0  ;;  %v9637_v1 = vld [vmem:[#allocation11 + $0x548] ss:$28 sps:$4 sm:$0xff]   ;;  %v9645_v3 = vld [vmem:[#allocation11 + $0xc14] ss:$28 sps:$4 sm:$0xff]  }
 0x30d   :  { %6947 = vmatpush2.bf16.msra.mxu0 %v9622_v9  ;;  %v11517_v53 = vpop.f32.mrf.mxu0  ;;  %6835 = vmatprep.subr.bf16.mxu1 %v9627_v44  ;;  %v9634_v9 = vld [vmem:[#allocation11 + $0x900] ss:$28 sps:$4 sm:$0xff]   ;;  %v9639_v44 = vld [vmem:[#allocation11 + $0x54c] ss:$28 sps:$4 sm:$0xff]  }
 0x30e   :  { %v3326_v58 = vmax.f32 %v3197_v19, 0.0  ;;  %6948 = vmatprep.subr.bf16.mxu0 %v9630_v14  ;;  %v11523_v61 = vpack.c.bf16 %v3325_v43, %v3317_v48  ;;  %v9640_v55 = vld [vmem:[#allocation11 + $0x8c8] ss:$28 sps:$4 sm:$0xff]   ;;  %v9648_v19 = vld [vmem:[#allocation11 + $0x19c] ss:$28 sps:$4 sm:$0xff]  }
 0x30f   :  { %v11519_v59 = vpop.f32.mrf.mxu0  ;;  %v9643_v43 = vld [vmem:[#allocation11 + $0xc10] ss:$28 sps:$4 sm:$0xff]   ;;  %v9649_v48 = vld [vmem:[#allocation11 + $0xbd8] ss:$28 sps:$4 sm:$0xff]  }
 0x310   :  { %v11521_v27 = vpack.c.bf16 %v3326_v58, %v3318_v36  ;;  %6836 = vmatpush2.bf16.msra.mxu1 %v9625_v13  ;;  %13176 = vst [vmem:[#allocation80_spill] sm:$0xff] %v11523_v61  ;;  %v9651_v36 = vld [vmem:[#allocation11 + $0xbdc] ss:$28 sps:$4 sm:$0xff]  }
 0x311   :  { %6949 = vmatpush2.bf16.msra.mxu0 %v9628_v12  ;;  %v11525_v6 = vpop.f32.mrf.mxu0  ;;  %6837 = vmatprep.subr.bf16.mxu1 %v9633_v11  ;;  %v9646_v11 = vld [vmem:[#allocation11 + $0x198] ss:$28 sps:$4 sm:$0xff]  }
 0x312   :  { %13175 = vst [vmem:[#allocation79_spill] sm:$0xff] %v11521_v27  ;;  %6685 = vmatprep.mubr.bf16.mxu1 %v11521_v27  ;;  %6950 = vmatprep.subr.bf16.mxu0 %v9636_v45  ;;  %v9654_v45 = vld [vmem:[#allocation11 + $0x164] ss:$28 sps:$4 sm:$0xff]  }
 0x313   :  { %v11528_v16 = vpop.f32.mrf.mxu0  ;;  %6686 = vmatmul.mubr.bf16.gmra.mxu1 %v11523_v61  ;;  %6799 = vmatmul.mubr.bf16.gmra.mxu0 %v11298_v35 }
 0x314   :  { %6838 = vmatpush2.bf16.msra.mxu1 %v9631_v31  ;;  %6841 = vmatprep.mubr.bf16.mxu1 %v11172_v38 }
 0x315   :  { %6951 = vmatpush2.bf16.msra.mxu0 %v9634_v9  ;;  %6954 = vmatprep.mubr.bf16.mxu0 %v11342_v4  ;;  %v11534_v14 = vpop.f32.mrf.mxu0 }
 0x316   :  { %6839 = vmatprep.subr.bf16.mxu1 %v9639_v44  ;;  %6952 = vmatprep.subr.bf16.mxu0 %v9642_v25  ;;  %v9657_v44 = vld [vmem:[#allocation11 + $0xba4] ss:$28 sps:$4 sm:$0xff]  }
 0x317   :  { %v11536_v13 = vpop.f32.mrf.mxu0  ;;  %v9652_v25 = vld [vmem:[#allocation11 + $0x160] ss:$28 sps:$4 sm:$0xff]  }
 0x318   :  { %13177 = vst [vmem:[#allocation81_spill] sm:$0xff] %v11536_v13  ;;  %6840 = vmatpush2.bf16.msra.mxu1 %v9637_v1 }
 0x319   :  { %6953 = vmatpush2.bf16.msra.mxu0 %v9640_v55  ;;  %v11538_v12 = vpop.f32.mrf.mxu0  ;;  %7035 = vmatprep.subr.bf16.mxu1 %v9645_v3  ;;  %v9660_v55 = vld [vmem:[#allocation11 + $0x12c] ss:$28 sps:$4 sm:$0xff]   ;;  %v9655_v3 = vld [vmem:[#allocation11 + $0xba0] ss:$28 sps:$4 sm:$0xff]  }
 0x31a   :  { %13178 = vst [vmem:[#allocation82_spill] sm:$0xff] %v11538_v12  ;;  %7148 = vmatprep.subr.bf16.mxu0 %v9648_v19  ;;  %v9663_v12 = vld [vmem:[#allocation11 + $0xb6c] ss:$28 sps:$4 sm:$0xff]  }
 0x31b   :  { %v11540_v58 = vpop.f32.mrf.mxu0  ;;  %6842 = vmatmul.mubr.bf16.vlgmr.msra.gmra.mxu1 %v11179_v47  ;;  %v11544_v31 = vpop.f32.mrf.mxu1 }
 0x31c   :  { %13179 = vst [vmem:[#allocation83_spill] sm:$0xff] %v11540_v58  ;;  %6955 = vmatmul.mubr.bf16.vlgmr.msra.gmra.mxu0 %v11345_v49  ;;  %7036 = vmatpush1.bf16.msra.mxu1 %v9643_v43  ;;  %v9658_v58 = vld [vmem:[#allocation11 + $0x128] ss:$28 sps:$4 sm:$0xff]  }
 0x31d   :  { %6851 = vmatprep.mubr.bf16.mxu1 %v11203_v50  ;;  %6964 = vmatprep.mubr.bf16.mxu0 %v11352_v32  ;;  %v11548_v9 = vpop.f32.mrf.mxu0  ;;  %v11552_v19 = vpop.f32.mrf.mxu1 }
 0x31e   :  { %13180 = vst [vmem:[#allocation84_spill] sm:$0xff] %v11548_v9  ;;  %7149 = vmatpush1.bf16.msra.mxu0 %v9646_v11  ;;  %7037 = vmatprep.subr.bf16.mxu1 %v9651_v36  ;;  %v9666_v11 = vld [vmem:[#allocation11 + $0xf4] ss:$28 sps:$4 sm:$0xff]   ;;  %v9661_v36 = vld [vmem:[#allocation11 + $0xb68] ss:$28 sps:$4 sm:$0xff]  }
 0x31f   :  { %v11550_v1 = vpop.f32.mrf.mxu0  ;;  %7150 = vmatprep.subr.bf16.mxu0 %v9654_v45  ;;  %v11560_v45 = vpop.f32.mrf.mxu1  ;;  %v9670_v9 = vld [vmem:[#allocation11 + $0xb8] ss:$28 sps:$4 sm:$0xff]  }
 0x320   :  { %13181 = vst [vmem:[#allocation85_spill] sm:$0xff] %v11550_v1  ;;  %7038 = vmatpush1.bf16.msra.mxu1 %v9649_v48 }
 0x321   :  { %v11554_v43 = vpop.f32.mrf.mxu0  ;;  %7039 = vmatprep.subr.bf16.mxu1 %v9657_v44  ;;  %v9669_v44 = vld [vmem:[#allocation11 + $0xb34] ss:$28 sps:$4 sm:$0xff]  }
 0x322   :  { %13182 = vst [vmem:[#allocation86_spill] sm:$0xff] %v11554_v43  ;;  %7151 = vmatpush1.bf16.msra.mxu0 %v9652_v25  ;;  %v9664_v25 = vld [vmem:[#allocation11 + $0xf0] ss:$28 sps:$4 sm:$0xff]  }
 0x323   :  { %v11556_v13 = vpop.f32.mrf.mxu0  ;;  %6852 = vmatmul.mubr.bf16.gmra.mxu1 %v11209_v18  ;;  %7152 = vmatprep.subr.bf16.mxu0 %v9660_v55  ;;  %v9672_v55 = vld [vmem:[#allocation11 + $0xbc] ss:$28 sps:$4 sm:$0xff]   ;;  %v9667_v43 = vld [vmem:[#allocation11 + $0xb30] ss:$28 sps:$4 sm:$0xff]  }
 0x324   :  { %13183 = vst [vmem:[#allocation87_spill] sm:$0xff] %v11556_v13  ;;  %6965 = vmatmul.mubr.bf16.gmra.mxu0 %v11355_v46  ;;  %7040 = vmatpush1.bf16.msra.mxu1 %v9655_v3  ;;  %v11568_v3 = vpop.f32.mrf.mxu1 }
 0x325   :  { %6861 = vmatprep.mubr.bf16.mxu1 %v11229_v7  ;;  %6974 = vmatprep.mubr.bf16.mxu0 %v11362_v42  ;;  %v11564_v48 = vpop.f32.mrf.mxu0  ;;  %v9675_v42 = vld [vmem:[#allocation11 + $0xafc] ss:$28 sps:$4 sm:$0xff]  }
 0x326   :  { %13184 = vst [vmem:[#allocation88_spill] sm:$0xff] %v11564_v48  ;;  %7153 = vmatpush1.bf16.msra.mxu0 %v9658_v58  ;;  %7041 = vmatprep.subr.bf16.mxu1 %v9663_v12  ;;  %v9678_v12 = vld [vmem:[#allocation11 + $0x84] ss:$28 sps:$4 sm:$0xff]   ;;  %v9673_v58 = vld [vmem:[#allocation11 + $0xaf8] ss:$28 sps:$4 sm:$0xff]  }
 0x327   :  { %v11566_v13 = vpop.f32.mrf.mxu0  ;;  %7154 = vmatprep.subr.bf16.mxu0 %v9666_v11  ;;  %v11576_v11 = vpop.f32.mrf.mxu1  ;;  %v9682_v48 = vld [vmem:[#allocation11 + $0x48] ss:$28 sps:$4 sm:$0xff]  }
 0x328   :  { %13185 = vst [vmem:[#allocation89_spill] sm:$0xff] %v11566_v13  ;;  %7042 = vmatpush1.bf16.msra.mxu1 %v9661_v36 }
 0x329   :  { %v11570_v1 = vpop.f32.mrf.mxu0  ;;  %7043 = vmatprep.subr.bf16.mxu1 %v9669_v44  ;;  %v9681_v44 = vld [vmem:[#allocation11 + $0xac4] ss:$28 sps:$4 sm:$0xff]  }
 0x32a   :  { %13186 = vst [vmem:[#allocation90_spill] sm:$0xff] %v11570_v1  ;;  %7155 = vmatpush1.bf16.msra.mxu0 %v9664_v25  ;;  %v9676_v25 = vld [vmem:[#allocation11 + $0x80] ss:$28 sps:$4 sm:$0xff]  }
 0x32b   :  { %v11572_v46 = vpop.f32.mrf.mxu0  ;;  %6862 = vmatmul.mubr.bf16.gmra.mxu1 %v11235_v34  ;;  %7156 = vmatprep.subr.bf16.mxu0 %v9672_v55  ;;  %v9684_v55 = vld [vmem:[#allocation11 + $0x4c] ss:$28 sps:$4 sm:$0xff]   ;;  %v9679_v1 = vld [vmem:[#allocation11 + $0xac0] ss:$28 sps:$4 sm:$0xff]  }
 0x32c   :  { %13187 = vst [vmem:[#allocation91_spill] sm:$0xff] %v11572_v46  ;;  %6975 = vmatmul.mubr.bf16.gmra.mxu0 %v11365_v62  ;;  %7044 = vmatpush1.bf16.msra.mxu1 %v9667_v43  ;;  %v11584_v43 = vpop.f32.mrf.mxu1 }
 0x32d   :  { %6871 = vmatprep.mubr.bf16.mxu1 %v11257_v10  ;;  %6984 = vmatprep.mubr.bf16.mxu0 %v11372_v24  ;;  %v11580_v36 = vpop.f32.mrf.mxu0  ;;  %v9687_v24 = vld [vmem:[#allocation11 + $0xa8c] ss:$28 sps:$4 sm:$0xff]  }
 0x32e   :  { %13188 = vst [vmem:[#allocation92_spill] sm:$0xff] %v11580_v36  ;;  %7157 = vmatpush1.bf16.msra.mxu0 %v9670_v9  ;;  %7045 = vmatprep.subr.bf16.mxu1 %v9675_v42  ;;  %v9690_v42 = vld [vmem:[#allocation11 + $0x14] ss:$28 sps:$4 sm:$0xff]   ;;  %v9685_v9 = vld [vmem:[#allocation11 + $0xa88] ss:$28 sps:$4 sm:$0xff]  }
 0x32f   :  { %v11582_v46 = vpop.f32.mrf.mxu0  ;;  %7158 = vmatprep.subr.bf16.mxu0 %v9678_v12  ;;  %v11592_v12 = vpop.f32.mrf.mxu1  ;;  %v9694_v36 = vld [vmem:[#allocation11 + $0x358] ss:$28 sps:$4 sm:$0xff]  }
 0x330   :  { %13189 = vst [vmem:[#allocation93_spill] sm:$0xff] %v11582_v46  ;;  %7046 = vmatpush1.bf16.msra.mxu1 %v9673_v58 }
 0x331   :  { %v11586_v13 = vpop.f32.mrf.mxu0  ;;  %7047 = vmatprep.subr.bf16.mxu1 %v9681_v44  ;;  %v9693_v44 = vld [vmem:[#allocation11 + $0xdd4] ss:$28 sps:$4 sm:$0xff]  }
 0x332   :  { %13190 = vst [vmem:[#allocation94_spill] sm:$0xff] %v11586_v13  ;;  %7159 = vmatpush1.bf16.msra.mxu0 %v9676_v25  ;;  %v9688_v25 = vld [vmem:[#allocation11 + $0x10] ss:$28 sps:$4 sm:$0xff]  }
 0x333   :  { %v11588_v62 = vpop.f32.mrf.mxu0  ;;  %6872 = vmatmul.mubr.bf16.gmra.mxu1 %v11263_v8  ;;  %7160 = vmatprep.subr.bf16.mxu0 %v9684_v55  ;;  %v9696_v55 = vld [vmem:[#allocation11 + $0x35c] ss:$28 sps:$4 sm:$0xff]   ;;  %v9691_v13 = vld [vmem:[#allocation11 + $0xdd0] ss:$28 sps:$4 sm:$0xff]  }
 0x334   :  { %13191 = vst [vmem:[#allocation95_spill] sm:$0xff] %v11588_v62  ;;  %6985 = vmatmul.mubr.bf16.gmra.mxu0 %v11375_v30  ;;  %7048 = vmatpush1.bf16.msra.mxu1 %v9679_v1  ;;  %v11600_v1 = vpop.f32.mrf.mxu1  ;;  %v13213_v30 = vld [vmem:[#allocation33_spill] sm:$0xff] }
 0x335   :  { %6881 = vmatprep.mubr.bf16.mxu1 %v11279_v33  ;;  %6994 = vmatprep.mubr.bf16.mxu0 %v11382_v20  ;;  %v11596_v58 = vpop.f32.mrf.mxu0  ;;  %v9699_v20 = vld [vmem:[#allocation11 + $0xd9c] ss:$28 sps:$4 sm:$0xff]  }
 0x336   :  { %13192 = vst [vmem:[#allocation96_spill] sm:$0xff] %v11596_v58  ;;  %7161 = vmatpush1.bf16.msra.mxu0 %v9682_v48  ;;  %7049 = vmatprep.subr.bf16.mxu1 %v9687_v24  ;;  %v9702_v48 = vld [vmem:[#allocation11 + $0x324] ss:$28 sps:$4 sm:$0xff]   ;;  %v9697_v24 = vld [vmem:[#allocation11 + $0xd98] ss:$28 sps:$4 sm:$0xff]  }
 0x337   :  { %v11598_v62 = vpop.f32.mrf.mxu0  ;;  %7162 = vmatprep.subr.bf16.mxu0 %v9690_v42  ;;  %v11606_v42 = vpop.f32.mrf.mxu1  ;;  %v9706_v58 = vld [vmem:[#allocation11 + $0x2e8] ss:$28 sps:$4 sm:$0xff]  }
 0x338   :  { %13193 = vst [vmem:[#allocation97_spill] sm:$0xff] %v11598_v62  ;;  %7050 = vmatpush1.bf16.msra.mxu1 %v9685_v9 }
 0x339   :  { %v11602_v46 = vpop.f32.mrf.mxu0  ;;  %7051 = vmatprep.subr.bf16.mxu1 %v9693_v44  ;;  %v9705_v44 = vld [vmem:[#allocation11 + $0xd64] ss:$28 sps:$4 sm:$0xff]   ;;  %v11612_v62 = vpop.f32.mrf.mxu1 }
 0x33a   :  { %13194 = vst [vmem:[#allocation98_spill] sm:$0xff] %v11602_v46  ;;  %7163 = vmatpush1.bf16.msra.mxu0 %v9688_v25  ;;  %v9700_v25 = vld [vmem:[#allocation11 + $0x320] ss:$28 sps:$4 sm:$0xff]   ;;  %v9708_v46 = vld [vmem:[#allocation11 + $0x2ec] ss:$28 sps:$4 sm:$0xff]  }
 0x33b   :  { %6882 = vmatmul.mubr.bf16.gmra.mxu1 %v11285_v0  ;;  %7164 = vmatprep.subr.bf16.mxu0 %v9696_v55  ;;  %v11608_v9 = vpop.f32.mrf.mxu0  ;;  %v9703_v55 = vld [vmem:[#allocation11 + $0xd60] ss:$28 sps:$4 sm:$0xff]  }
 0x33c   :  { %6995 = vmatmul.mubr.bf16.gmra.mxu0 %v11385_v29  ;;  %7052 = vmatpush2.bf16.msra.mxu1 %v9691_v13  ;;  %13195 = vst [vmem:[#allocation99_spill] sm:$0xff] %v11608_v9  ;;  %v9711_v9 = vld [vmem:[#allocation11 + $0xd2c] ss:$28 sps:$4 sm:$0xff]   ;;  %v13208_v0 = vld [vmem:[#allocation50_spill] sm:$0xff] }
 0x33d   :  { %6891 = vmatprep.mubr.bf16.mxu1 %v11295_v26  ;;  %7004 = vmatprep.mubr.bf16.mxu0 %v11392_v56  ;;  %v11614_v13 = vpop.f32.mrf.mxu0  ;;  %v9714_v56 = vld [vmem:[#allocation11 + $0x2b4] ss:$28 sps:$4 sm:$0xff]   ;;  %v13200_v29 = vld [vmem:[#allocation48_spill] sm:$0xff]  ;;  %v13205_v26 = vld [vmem:[#allocation63_spill] sm:$0xff] }
 0x33e   :  { %7165 = vmatpush2.bf16.msra.mxu0 %v9694_v36  ;;  %7053 = vmatprep.subr.bf16.mxu1 %v9699_v20  ;;  %13196 = vst [vmem:[#allocation100_spill] sm:$0xff] %v11614_v13  ;;  %v9709_v20 = vld [vmem:[#allocation11 + $0xd28] ss:$28 sps:$4 sm:$0xff]   ;;  %v11618_v36 = vpop.f32.mrf.mxu1  ;;  %v9720_v13 = vld [vmem:[#allocation11 + $0x27c] ss:$28 sps:$4 sm:$0xff]  }
 0x33f   :  { %7166 = vmatprep.subr.bf16.mxu0 %v9702_v48  ;;  %v11620_v48 = vpop.f32.mrf.mxu0 }
 0x340   :  { %7054 = vmatpush2.bf16.msra.mxu1 %v9697_v24  ;;  %13197 = vst [vmem:[#allocation101_spill] sm:$0xff] %v11620_v48  ;;  %v13198_v24 = vld [vmem:[#allocation47_spill] sm:$0xff]  ;;  %v9723_v48 = vld [vmem:[#allocation11 + $0xcbc] ss:$28 sps:$4 sm:$0xff]  }
 0x341   :  { %7055 = vmatprep.subr.bf16.mxu1 %v9705_v44  ;;  %v9717_v44 = vld [vmem:[#allocation11 + $0xcf4] ss:$28 sps:$4 sm:$0xff]  }
 0x342   :  { %7167 = vmatpush2.bf16.msra.mxu0 %v9700_v25  ;;  %v9712_v25 = vld [vmem:[#allocation11 + $0x2b0] ss:$28 sps:$4 sm:$0xff]  }
 0x343   :  { %6892 = vmatmul.mubr.bf16.gmra.mxu1 %v11300_v39  ;;  %7168 = vmatprep.subr.bf16.mxu0 %v9708_v46  ;;  %v9715_v46 = vld [vmem:[#allocation11 + $0xcf0] ss:$28 sps:$4 sm:$0xff]   ;;  %v11624_v39 = vpop.f32.mrf.mxu1 }
 0x344   :  { %7005 = vmatmul.mubr.bf16.gmra.mxu0 %v11395_v63  ;;  %7056 = vmatpush2.bf16.msra.mxu1 %v9703_v55  ;;  %v11626_v55 = vpop.f32.mrf.mxu0  ;;  %v9718_v63 = vld [vmem:[#allocation11 + $0x278] ss:$28 sps:$4 sm:$0xff]  }
 0x345   :  { %6901 = vmatprep.mubr.bf16.mxu1 %v13198_v24  ;;  %7014 = vmatprep.mubr.bf16.mxu0 %v11404_v51  ;;  %13199 = vst [vmem:[#allocation102_spill] sm:$0xff] %v11626_v55  ;;  %v9726_v51 = vld [vmem:[#allocation11 + $0x244] ss:$28 sps:$4 sm:$0xff]   ;;  %v13201_v24 = vld [vmem:[#allocation62_spill] sm:$0xff] }
 0x346   :  { %7169 = vmatpush2.bf16.msra.mxu0 %v9706_v58  ;;  %7057 = vmatprep.subr.bf16.mxu1 %v9711_v9  ;;  %v9721_v58 = vld [vmem:[#allocation11 + $0xcb8] ss:$28 sps:$4 sm:$0xff]   ;;  %v11632_v9 = vpop.f32.mrf.mxu0 }
 0x347   :  { %7170 = vmatprep.subr.bf16.mxu0 %v9714_v56  ;;  %v11630_v56 = vpop.f32.mrf.mxu1  ;;  %13203 = vst [vmem:[#allocation104_spill] sm:$0xff] %v11632_v9  ;;  %v9735_v9 = vld [vmem:[#allocation11 + $0xc4c] ss:$28 sps:$4 sm:$0xff]  }
 0x348   :  { %7058 = vmatpush2.bf16.msra.mxu1 %v9709_v20  ;;  %13202 = vst [vmem:[#allocation103_spill] sm:$0xff] %v11630_v56  ;;  %v13204_v20 = vld [vmem:[#allocation49_spill] sm:$0xff] }
 0x349   :  { %7059 = vmatprep.subr.bf16.mxu1 %v9717_v44  ;;  %v9729_v44 = vld [vmem:[#allocation11 + $0xc84] ss:$28 sps:$4 sm:$0xff]   ;;  %v11636_v55 = vpop.f32.mrf.mxu1 }
 0x34a   :  { %7171 = vmatpush2.bf16.msra.mxu0 %v9712_v25  ;;  %v9724_v25 = vld [vmem:[#allocation11 + $0x240] ss:$28 sps:$4 sm:$0xff]   ;;  %13206 = vst [vmem:[#allocation105_spill] sm:$0xff] %v11636_v55 }
 0x34b   :  { %6902 = vmatmul.mubr.bf16.gmra.mxu1 %v13200_v29  ;;  %7172 = vmatprep.subr.bf16.mxu0 %v9720_v13  ;;  %v9732_v29 = vld [vmem:[#allocation11 + $0x20c] ss:$28 sps:$4 sm:$0xff]   ;;  %v9727_v13 = vld [vmem:[#allocation11 + $0xc80] ss:$28 sps:$4 sm:$0xff]  }
 0x34c   :  { %7015 = vmatmul.mubr.bf16.gmra.mxu0 %v13201_v24  ;;  %7060 = vmatpush2.bf16.msra.mxu1 %v9715_v46  ;;  %v11638_v46 = vpop.f32.mrf.mxu0  ;;  %v9730_v24 = vld [vmem:[#allocation11 + $0x208] ss:$28 sps:$4 sm:$0xff]   ;;  %v9772_v55 = vld [vmem:[#allocation11 + $0x780] ss:$28 sps:$4 sm:$0xff]  }
 0x34d   :  { %6911 = vmatprep.mubr.bf16.mxu1 %v13204_v20  ;;  %7024 = vmatprep.mubr.bf16.mxu0 %v13205_v26  ;;  %13207 = vst [vmem:[#allocation106_spill] sm:$0xff] %v11638_v46  ;;  %v9738_v26 = vld [vmem:[#allocation11 + $0x1d4] ss:$28 sps:$4 sm:$0xff]   ;;  %v13209_v20 = vld [vmem:[#allocation64_spill] sm:$0xff] }
 0x34e   :  { %7173 = vmatpush2.bf16.msra.mxu0 %v9718_v63  ;;  %7061 = vmatprep.subr.bf16.mxu1 %v9723_v48  ;;  %v9733_v63 = vld [vmem:[#allocation11 + $0xc48] ss:$28 sps:$4 sm:$0xff]   ;;  %v11644_v48 = vpop.f32.mrf.mxu0 }
 0x34f   :  { %7174 = vmatprep.subr.bf16.mxu0 %v9726_v51  ;;  %v11642_v51 = vpop.f32.mrf.mxu1  ;;  %13211 = vst [vmem:[#allocation108_spill] sm:$0xff] %v11644_v48  ;;  %v9742_v48 = vld [vmem:[#allocation11 + $0x898] ss:$28 sps:$4 sm:$0xff]  }
 0x350   :  { %7062 = vmatpush2.bf16.msra.mxu1 %v9721_v58  ;;  %13210 = vst [vmem:[#allocation107_spill] sm:$0xff] %v11642_v51  ;;  %v13212_v58 = vld [vmem:[#allocation65_spill] sm:$0xff] }
 0x351   :  { %7063 = vmatprep.subr.bf16.mxu1 %v9729_v44  ;;  %v9741_v44 = vld [vmem:[#allocation11 + $0x51c] ss:$28 sps:$4 sm:$0xff]   ;;  %v11648_v46 = vpop.f32.mrf.mxu1  ;;  %v9760_v51 = vld [vmem:[#allocation11 + $0x7f0] ss:$28 sps:$4 sm:$0xff]  }
 0x352   :  { %7175 = vmatpush2.bf16.msra.mxu0 %v9724_v25  ;;  %v9736_v25 = vld [vmem:[#allocation11 + $0x1d0] ss:$28 sps:$4 sm:$0xff]   ;;  %13214 = vst [vmem:[#allocation109_spill] sm:$0xff] %v11648_v46 }
 0x353   :  { %6912 = vmatmul.mubr.bf16.gmra.mxu1 %v13208_v0  ;;  %7176 = vmatprep.subr.bf16.mxu0 %v9732_v29  ;;  %v9744_v0 = vld [vmem:[#allocation11 + $0x89c] ss:$28 sps:$4 sm:$0xff]  }
 0x354   :  { %7025 = vmatmul.mubr.bf16.gmra.mxu0 %v13209_v20  ;;  %7064 = vmatpush2.bf16.msra.mxu1 %v9727_v13  ;;  %v9739_v29 = vld [vmem:[#allocation11 + $0x518] ss:$28 sps:$4 sm:$0xff]   ;;  %v11650_v13 = vpop.f32.mrf.mxu0  ;;  %v9747_v20 = vld [vmem:[#allocation11 + $0x4e4] ss:$28 sps:$4 sm:$0xff]  }
 0x355   :  { %7067 = vmatprep.mubr.bf16.mxu1 %v13212_v58  ;;  %7180 = vmatprep.mubr.bf16.mxu0 %v13213_v30  ;;  %13215 = vst [vmem:[#allocation110_spill] sm:$0xff] %v11650_v13  ;;  %v13216_v58 = vld [vmem:[#allocation66_spill] sm:$0xff] }
 0x356   :  { %7177 = vmatpush2.bf16.msra.mxu0 %v9730_v24  ;;  %7065 = vmatprep.subr.bf16.mxu1 %v9735_v9  ;;  %v9750_v24 = vld [vmem:[#allocation11 + $0x864] ss:$28 sps:$4 sm:$0xff]   ;;  %v11656_v9 = vpop.f32.mrf.mxu1 }
 0x357   :  { %7178 = vmatprep.subr.bf16.mxu0 %v9738_v26  ;;  %v9745_v26 = vld [vmem:[#allocation11 + $0x4e0] ss:$28 sps:$4 sm:$0xff]   ;;  %13217 = vst [vmem:[#allocation111_spill] sm:$0xff] %v11656_v9  ;;  %v9754_v9 = vld [vmem:[#allocation11 + $0x828] ss:$28 sps:$4 sm:$0xff]  }
 0x358   :  { %7066 = vmatpush2.bf16.msra.mxu1 %v9733_v63  ;;  %v13218_v63 = vld [vmem:[#allocation34_spill] sm:$0xff] }
 0x359   :  { %7261 = vmatprep.subr.bf16.mxu1 %v9741_v44  ;;  %v9753_v44 = vld [vmem:[#allocation11 + $0x4ac] ss:$28 sps:$4 sm:$0xff]   ;;  %v9748_v13 = vld [vmem:[#allocation11 + $0x860] ss:$28 sps:$4 sm:$0xff]  }
 0x35a   :  { %7179 = vmatpush2.bf16.msra.mxu0 %v9736_v25  ;;  %v13219_v25 = vld [vmem:[#allocation35_spill] sm:$0xff] }
 0x35b   :  { %v11652_v33 = vpop.f32.mrf.mxu0  ;;  %7068 = vmatmul.mubr.bf16.vlgmr.msra.gmra.mxu1 %v13216_v58  ;;  %7374 = vmatprep.subr.bf16.mxu0 %v9744_v0  ;;  %v9756_v0 = vld [vmem:[#allocation11 + $0x82c] ss:$28 sps:$4 sm:$0xff]  }
 0x35c   :  { %7262 = vmatpush1.bf16.msra.mxu1 %v9739_v29  ;;  %7077 = vmatprep.mubr.bf16.mxu1 %v11445_v15  ;;  %v9751_v29 = vld [vmem:[#allocation11 + $0x4a8] ss:$28 sps:$4 sm:$0xff]   ;;  %v11664_v15 = vpop.f32.mrf.mxu1 }
 0x35d   :  { %7181 = vmatmul.mubr.bf16.vlgmr.msra.gmra.mxu0 %v13218_v63  ;;  %v11659_v30 = vpop.f32.mrf.mxu0  ;;  %7263 = vmatprep.subr.bf16.mxu1 %v9747_v20  ;;  %13220 = vst [vmem:[#allocation112_spill] sm:$0xff] %v11664_v15  ;;  %v9759_v63 = vld [vmem:[#allocation11 + $0x474] ss:$28 sps:$4 sm:$0xff]  }
 0x35e   :  { %7190 = vmatprep.mubr.bf16.mxu0 %v13219_v25  ;;  %7375 = vmatpush1.bf16.msra.mxu0 %v9742_v48  ;;  %v9762_v48 = vld [vmem:[#allocation11 + $0x7f4] ss:$28 sps:$4 sm:$0xff]   ;;  %v13222_v25 = vld [vmem:[#allocation36_spill] sm:$0xff] }
 0x35f   :  { %v11662_v46 = vpop.f32.mrf.mxu0  ;;  %7376 = vmatprep.subr.bf16.mxu0 %v9750_v24  ;;  %v9757_v24 = vld [vmem:[#allocation11 + $0x470] ss:$28 sps:$4 sm:$0xff]  }
 0x360   :  { %7264 = vmatpush1.bf16.msra.mxu1 %v9745_v26  ;;  %v11672_v26 = vpop.f32.mrf.mxu1 }
 0x361   :  { %v11666_v58 = vpop.f32.mrf.mxu0  ;;  %7265 = vmatprep.subr.bf16.mxu1 %v9753_v44  ;;  %13221 = vst [vmem:[#allocation113_spill] sm:$0xff] %v11672_v26  ;;  %v9765_v44 = vld [vmem:[#allocation11 + $0x43c] ss:$28 sps:$4 sm:$0xff]  }
 0x362   :  { %7377 = vmatpush1.bf16.msra.mxu0 %v9748_v13  ;;  %v13223_v13 = vld [vmem:[#allocation37_spill] sm:$0xff] }
 0x363   :  { %v11668_v20 = vpop.f32.mrf.mxu0  ;;  %7078 = vmatmul.mubr.bf16.gmra.mxu1 %v11448_v5  ;;  %7378 = vmatprep.subr.bf16.mxu0 %v9756_v0  ;;  %v9768_v0 = vld [vmem:[#allocation11 + $0x7bc] ss:$28 sps:$4 sm:$0xff]  }
 0x364   :  { %7266 = vmatpush1.bf16.msra.mxu1 %v9751_v29  ;;  %7087 = vmatprep.mubr.bf16.mxu1 %v11457_v54  ;;  %v9763_v29 = vld [vmem:[#allocation11 + $0x438] ss:$28 sps:$4 sm:$0xff]   ;;  %v11680_v54 = vpop.f32.mrf.mxu1 }
 0x365   :  { %7191 = vmatmul.mubr.bf16.gmra.mxu0 %v13222_v25  ;;  %v11675_v15 = vpop.f32.mrf.mxu0  ;;  %7267 = vmatprep.subr.bf16.mxu1 %v9759_v63  ;;  %13224 = vst [vmem:[#allocation114_spill] sm:$0xff] %v11680_v54  ;;  %v9771_v25 = vld [vmem:[#allocation11 + $0x404] ss:$28 sps:$4 sm:$0xff]   ;;  %v9766_v26 = vld [vmem:[#allocation11 + $0x7b8] ss:$28 sps:$4 sm:$0xff]  }
 0x366   :  { %7200 = vmatprep.mubr.bf16.mxu0 %v13223_v13  ;;  %7379 = vmatpush1.bf16.msra.mxu0 %v9754_v9  ;;  %v9774_v9 = vld [vmem:[#allocation11 + $0x784] ss:$28 sps:$4 sm:$0xff]  }
 0x367   :  { %v11678_v8 = vpop.f32.mrf.mxu0  ;;  %7380 = vmatprep.subr.bf16.mxu0 %v9762_v48  ;;  %v9769_v48 = vld [vmem:[#allocation11 + $0x400] ss:$28 sps:$4 sm:$0xff]  }
 0x368   :  { %7268 = vmatpush1.bf16.msra.mxu1 %v9757_v24  ;;  %v11688_v24 = vpop.f32.mrf.mxu1  ;;  %v13226_v13 = vld [vmem:[#allocation39_spill] sm:$0xff] }
 0x369   :  { %v11682_v5 = vpop.f32.mrf.mxu0  ;;  %7269 = vmatprep.subr.bf16.mxu1 %v9765_v44  ;;  %13225 = vst [vmem:[#allocation115_spill] sm:$0xff] %v11688_v24  ;;  %v9777_v44 = vld [vmem:[#allocation11 + $0x3cc] ss:$28 sps:$4 sm:$0xff]  }
 0x36a   :  { %7381 = vmatpush1.bf16.msra.mxu0 %v9760_v51  ;;  %v13227_v51 = vld [vmem:[#allocation40_spill] sm:$0xff] }
 0x36b   :  { %v11684_v63 = vpop.f32.mrf.mxu0  ;;  %7088 = vmatmul.mubr.bf16.gmra.mxu1 %v11460_v37  ;;  %7382 = vmatprep.subr.bf16.mxu0 %v9768_v0  ;;  %v9780_v0 = vld [vmem:[#allocation11 + $0x74c] ss:$28 sps:$4 sm:$0xff]  }
 0x36c   :  { %7270 = vmatpush1.bf16.msra.mxu1 %v9763_v29  ;;  %7097 = vmatprep.mubr.bf16.mxu1 %v11469_v17  ;;  %v9775_v29 = vld [vmem:[#allocation11 + $0x3c8] ss:$28 sps:$4 sm:$0xff]   ;;  %v11696_v17 = vpop.f32.mrf.mxu1 }
 0x36d   :  { %7201 = vmatmul.mubr.bf16.gmra.mxu0 %v13226_v13  ;;  %v11691_v54 = vpop.f32.mrf.mxu0  ;;  %7271 = vmatprep.subr.bf16.mxu1 %v9771_v25  ;;  %13228 = vst [vmem:[#allocation116_spill] sm:$0xff] %v11696_v17  ;;  %v9783_v13 = vld [vmem:[#allocation11 + $0x394] ss:$28 sps:$4 sm:$0xff]   ;;  %v9778_v24 = vld [vmem:[#allocation11 + $0x748] ss:$28 sps:$4 sm:$0xff]  }
 0x36e   :  { %7210 = vmatprep.mubr.bf16.mxu0 %v13227_v51  ;;  %7383 = vmatpush1.bf16.msra.mxu0 %v9766_v26  ;;  %v9786_v26 = vld [vmem:[#allocation11 + $0x714] ss:$28 sps:$4 sm:$0xff]  }
 0x36f   :  { %v11694_v56 = vpop.f32.mrf.mxu0  ;;  %7384 = vmatprep.subr.bf16.mxu0 %v9774_v9  ;;  %v9781_v9 = vld [vmem:[#allocation11 + $0x390] ss:$28 sps:$4 sm:$0xff]  }
 0x370   :  { %7272 = vmatpush1.bf16.msra.mxu1 %v9769_v48  ;;  %v11704_v48 = vpop.f32.mrf.mxu1  ;;  %v13232_v51 = vld [vmem:[#allocation41_spill] sm:$0xff] }
 0x371   :  { %v11698_v37 = vpop.f32.mrf.mxu0  ;;  %7273 = vmatprep.subr.bf16.mxu1 %v9777_v44  ;;  %13231 = vst [vmem:[#allocation119_spill] sm:$0xff] %v11704_v48  ;;  %v9789_v44 = vld [vmem:[#allocation11 + $0x6dc] ss:$28 sps:$4 sm:$0xff]  }
 0x372   :  { %13229 = vst [vmem:[#allocation117_spill] sm:$0xff] %v11698_v37  ;;  %7385 = vmatpush1.bf16.msra.mxu0 %v9772_v55  ;;  %v13233_v55 = vld [vmem:[#allocation42_spill] sm:$0xff] }
 0x373   :  { %v11700_v25 = vpop.f32.mrf.mxu0  ;;  %7098 = vmatmul.mubr.bf16.gmra.mxu1 %v11472_v40  ;;  %7386 = vmatprep.subr.bf16.mxu0 %v9780_v0  ;;  %v9792_v0 = vld [vmem:[#allocation11 + $0xa5c] ss:$28 sps:$4 sm:$0xff]  }
 0x374   :  { %13230 = vst [vmem:[#allocation118_spill] sm:$0xff] %v11700_v25  ;;  %7274 = vmatpush1.bf16.msra.mxu1 %v9775_v29  ;;  %7107 = vmatprep.mubr.bf16.mxu1 %v11481_v28  ;;  %v9784_v25 = vld [vmem:[#allocation11 + $0x710] ss:$28 sps:$4 sm:$0xff]   ;;  %v9787_v29 = vld [vmem:[#allocation11 + $0x6d8] ss:$28 sps:$4 sm:$0xff]   ;;  %v11712_v28 = vpop.f32.mrf.mxu1 }
 0x375   :  { %7211 = vmatmul.mubr.bf16.gmra.mxu0 %v13232_v51  ;;  %v11707_v17 = vpop.f32.mrf.mxu0  ;;  %7275 = vmatprep.subr.bf16.mxu1 %v9783_v13  ;;  %13234 = vst [vmem:[#allocation120_spill] sm:$0xff] %v11712_v28  ;;  %v9795_v51 = vld [vmem:[#allocation11 + $0x6a4] ss:$28 sps:$4 sm:$0xff]   ;;  %v9790_v48 = vld [vmem:[#allocation11 + $0xa58] ss:$28 sps:$4 sm:$0xff]  }
 0x376   :  { %7220 = vmatprep.mubr.bf16.mxu0 %v13233_v55  ;;  %7387 = vmatpush1.bf16.msra.mxu0 %v9778_v24  ;;  %v9798_v24 = vld [vmem:[#allocation11 + $0xa24] ss:$28 sps:$4 sm:$0xff]   ;;  %v13238_v55 = vld [vmem:[#allocation28_spill] sm:$0xff] }
 0x377   :  { %v11710_v37 = vpop.f32.mrf.mxu0  ;;  %7388 = vmatprep.subr.bf16.mxu0 %v9786_v26  ;;  %v9793_v26 = vld [vmem:[#allocation11 + $0x6a0] ss:$28 sps:$4 sm:$0xff]  }
 0x378   :  { %7276 = vmatpush1.bf16.msra.mxu1 %v9781_v9  ;;  %v11720_v9 = vpop.f32.mrf.mxu1 }
 0x379   :  { %v11714_v40 = vpop.f32.mrf.mxu0  ;;  %7277 = vmatprep.subr.bf16.mxu1 %v9789_v44  ;;  %13237 = vst [vmem:[#allocation123_spill] sm:$0xff] %v11720_v9  ;;  %v9801_v44 = vld [vmem:[#allocation11 + $0x66c] ss:$28 sps:$4 sm:$0xff]  }
 0x37a   :  { %13235 = vst [vmem:[#allocation121_spill] sm:$0xff] %v11714_v40  ;;  %7389 = vmatpush1.bf16.msra.mxu0 %v9784_v25  ;;  %v13239_v25 = vld [vmem:[#allocation27_spill] sm:$0xff] }
 0x37b   :  { %v11716_v13 = vpop.f32.mrf.mxu0  ;;  %7108 = vmatmul.mubr.bf16.gmra.mxu1 %v11484_v41  ;;  %7390 = vmatprep.subr.bf16.mxu0 %v9792_v0  ;;  %v9804_v0 = vld [vmem:[#allocation11 + $0x9ec] ss:$28 sps:$4 sm:$0xff]  }
 0x37c   :  { %13236 = vst [vmem:[#allocation122_spill] sm:$0xff] %v11716_v13  ;;  %7278 = vmatpush2.bf16.msra.mxu1 %v9787_v29  ;;  %7117 = vmatprep.mubr.bf16.mxu1 %v11493_v57  ;;  %v9796_v13 = vld [vmem:[#allocation11 + $0xa20] ss:$28 sps:$4 sm:$0xff]   ;;  %v9799_v29 = vld [vmem:[#allocation11 + $0x668] ss:$28 sps:$4 sm:$0xff]   ;;  %v11728_v57 = vpop.f32.mrf.mxu1 }
 0x37d   :  { %7221 = vmatmul.mubr.bf16.gmra.mxu0 %v13238_v55  ;;  %v11723_v28 = vpop.f32.mrf.mxu0  ;;  %7279 = vmatprep.subr.bf16.mxu1 %v9795_v51  ;;  %13240 = vst [vmem:[#allocation124_spill] sm:$0xff] %v11728_v57  ;;  %v9807_v55 = vld [vmem:[#allocation11 + $0x634] ss:$28 sps:$4 sm:$0xff]   ;;  %v9802_v9 = vld [vmem:[#allocation11 + $0x9e8] ss:$28 sps:$4 sm:$0xff]  }
 0x37e   :  { %7230 = vmatprep.mubr.bf16.mxu0 %v13239_v25  ;;  %7391 = vmatpush2.bf16.msra.mxu0 %v9790_v48  ;;  %v9810_v48 = vld [vmem:[#allocation11 + $0x9b4] ss:$28 sps:$4 sm:$0xff]  }
 0x37f   :  { %v11726_v40 = vpop.f32.mrf.mxu0  ;;  %7392 = vmatprep.subr.bf16.mxu0 %v9798_v24  ;;  %v9805_v24 = vld [vmem:[#allocation11 + $0x630] ss:$28 sps:$4 sm:$0xff]  }
 0x380   :  { %7280 = vmatpush2.bf16.msra.mxu1 %v9793_v26  ;;  %v11736_v26 = vpop.f32.mrf.mxu1  ;;  %v13244_v25 = vld [vmem:[#allocation25_spill] sm:$0xff] }
 0x381   :  { %v11730_v41 = vpop.f32.mrf.mxu0  ;;  %7281 = vmatprep.subr.bf16.mxu1 %v9801_v44  ;;  %13243 = vst [vmem:[#allocation127_spill] sm:$0xff] %v11736_v26  ;;  %v9813_v44 = vld [vmem:[#allocation11 + $0x5fc] ss:$28 sps:$4 sm:$0xff]  }
 0x382   :  { %13241 = vst [vmem:[#allocation125_spill] sm:$0xff] %v11730_v41  ;;  %7393 = vmatpush2.bf16.msra.mxu0 %v9796_v13  ;;  %v13245_v13 = vld [vmem:[#allocation29_spill] sm:$0xff] }
 0x383   :  { %v11732_v51 = vpop.f32.mrf.mxu0  ;;  %7118 = vmatmul.mubr.bf16.gmra.mxu1 %v11496_v22  ;;  %7394 = vmatprep.subr.bf16.mxu0 %v9804_v0  ;;  %v9816_v0 = vld [vmem:[#allocation11 + $0x97c] ss:$28 sps:$4 sm:$0xff]  }
 0x384   :  { %13242 = vst [vmem:[#allocation126_spill] sm:$0xff] %v11732_v51  ;;  %7282 = vmatpush2.bf16.msra.mxu1 %v9799_v29  ;;  %7127 = vmatprep.mubr.bf16.mxu1 %v11505_v21  ;;  %v9808_v51 = vld [vmem:[#allocation11 + $0x9b0] ss:$28 sps:$4 sm:$0xff]   ;;  %v9811_v29 = vld [vmem:[#allocation11 + $0x5f8] ss:$28 sps:$4 sm:$0xff]   ;;  %v11744_v21 = vpop.f32.mrf.mxu1 }
 0x385   :  { %7231 = vmatmul.mubr.bf16.gmra.mxu0 %v13244_v25  ;;  %v11739_v57 = vpop.f32.mrf.mxu0  ;;  %7283 = vmatprep.subr.bf16.mxu1 %v9807_v55  ;;  %13246 = vst [vmem:[#allocation128_spill] sm:$0xff] %v11744_v21  ;;  %v9819_v25 = vld [vmem:[#allocation11 + $0x5c4] ss:$28 sps:$4 sm:$0xff]   ;;  %v9814_v26 = vld [vmem:[#allocation11 + $0x978] ss:$28 sps:$4 sm:$0xff]  }
 0x386   :  { %7240 = vmatprep.mubr.bf16.mxu0 %v13245_v13  ;;  %7395 = vmatpush2.bf16.msra.mxu0 %v9802_v9  ;;  %v9822_v9 = vld [vmem:[#allocation11 + $0x944] ss:$28 sps:$4 sm:$0xff]  }
 0x387   :  { %v11742_v41 = vpop.f32.mrf.mxu0  ;;  %7396 = vmatprep.subr.bf16.mxu0 %v9810_v48  ;;  %v9817_v48 = vld [vmem:[#allocation11 + $0x5c0] ss:$28 sps:$4 sm:$0xff]  }
 0x388   :  { %7284 = vmatpush2.bf16.msra.mxu1 %v9805_v24  ;;  %v11752_v24 = vpop.f32.mrf.mxu1  ;;  %v3903_v21 = vld [vmem:[#allocation13] sm:$0xff] }
 0x389   :  { %v11746_v22 = vpop.f32.mrf.mxu0  ;;  %7285 = vmatprep.subr.bf16.mxu1 %v9813_v44  ;;  %13247 = vst [vmem:[#allocation129_spill] sm:$0xff] %v11752_v24  ;;  %v9825_v44 = vld [vmem:[#allocation11 + $0x58c] ss:$28 sps:$4 sm:$0xff]  }
 0x38a   :  { %7397 = vmatpush2.bf16.msra.mxu0 %v9808_v51  ;;  %v9820_v51 = vld [vmem:[#allocation11 + $0x940] ss:$28 sps:$4 sm:$0xff]  }
 0x38b   :  { %v11748_v55 = vpop.f32.mrf.mxu0  ;;  %7128 = vmatmul.mubr.bf16.gmra.mxu1 %v11508_v23  ;;  %7398 = vmatprep.subr.bf16.mxu0 %v9816_v0  ;;  %v9828_v0 = vld [vmem:[#allocation11 + $0x90c] ss:$28 sps:$4 sm:$0xff]  }
 0x38c   :  { %7286 = vmatpush2.bf16.msra.mxu1 %v9811_v29  ;;  %7137 = vmatprep.mubr.bf16.mxu1 %v11521_v27  ;;  %v9823_v29 = vld [vmem:[#allocation11 + $0x588] ss:$28 sps:$4 sm:$0xff]   ;;  %v11760_v27 = vpop.f32.mrf.mxu1 }
 0x38d   :  { %7241 = vmatmul.mubr.bf16.gmra.mxu0 %v11277_v2  ;;  %v11755_v13 = vpop.f32.mrf.mxu0  ;;  %7287 = vmatprep.subr.bf16.mxu1 %v9819_v25  ;;  %13250 = vst [vmem:[#allocation132_spill] sm:$0xff] %v11760_v27  ;;  %v9831_v2 = vld [vmem:[#allocation11 + $0x554] ss:$28 sps:$4 sm:$0xff]  }
 0x38e   :  { %13248 = vst [vmem:[#allocation130_spill] sm:$0xff] %v11755_v13  ;;  %7250 = vmatprep.mubr.bf16.mxu0 %v11283_v52  ;;  %7399 = vmatpush2.bf16.msra.mxu0 %v9814_v26  ;;  %v13251_v13 = vld [vmem:[#allocation23_spill] sm:$0xff]  ;;  %v9829_v27 = vld [vmem:[#allocation11 + $0x550] ss:$28 sps:$4 sm:$0xff]  }
 0x38f   :  { %v11758_v23 = vpop.f32.mrf.mxu0  ;;  %7400 = vmatprep.subr.bf16.mxu0 %v9822_v9  ;;  %v11765_v25 = vrot.slane %v3903_v21, %v13251_v13  ;;  %v9826_v52 = vld [vmem:[#allocation11 + $0x908] ss:$28 sps:$4 sm:$0xff]   ;;  %v9834_v9 = vld [vmem:[#allocation11 + $0x8d4] ss:$28 sps:$4 sm:$0xff]  }
 0x390   :  { %13249 = vst [vmem:[#allocation131_spill] sm:$0xff] %v11758_v23  ;;  %7288 = vmatpush2.bf16.msra.mxu1 %v9817_v48  ;;  %v13252_v23 = vld [vmem:[#allocation21_spill] sm:$0xff] }
 0x391   :  { %v11762_v24 = vpop.f32.mrf.mxu0  ;;  %7289 = vmatprep.subr.bf16.mxu1 %v9825_v44  ;;  %v11771_v48 = vrot.slane %v3903_v21, %v13252_v23  ;;  %v11774_v44 = vpop.f32.mrf.mxu1  ;;  %v9832_v21 = vld [vmem:[#allocation11 + $0x8d0] ss:$28 sps:$4 sm:$0xff]  }
 0x392   :  { %7401 = vmatpush2.bf16.msra.mxu0 %v9820_v51  ;;  %v9837_v51 = vld [vmem:[#allocation11 + $0xc1c] ss:$28 sps:$4 sm:$0xff]  }
 0x393   :  { %v11767_v26 = vpop.f32.mrf.mxu0  ;;  %7138 = vmatmul.mubr.bf16.gmra.mxu1 %v11523_v61  ;;  %7402 = vmatprep.subr.bf16.mxu0 %v9828_v0  ;;  %v6279_v61 = vadd.f32 %v11512_v60, %v11765_v25  ;;  %v9862_v0 = vld [vmem:[#allocation11 + $0x360] ss:$28 sps:$4 sm:$0xff]   ;;  %v6283_v60 = vadd.f32 %v11519_v59, %v11765_v25 }
 0x394   :  { %7290 = vmatpush2.bf16.msra.mxu1 %v9823_v29  ;;  %7293 = vmatprep.mubr.bf16.mxu1 %v11172_v38  ;;  %v6281_v29 = vadd.f32 %v11517_v53, %v11771_v48  ;;  %v9835_v38 = vld [vmem:[#allocation11 + $0xc18] ss:$28 sps:$4 sm:$0xff]   ;;  %v6285_v53 = vadd.f32 %v11525_v6, %v11771_v48 }
 0x395   :  { %7251 = vmatmul.mubr.bf16.gmra.mxu0 %v11298_v35  ;;  %v11777_v13 = vpop.f32.mrf.mxu0  ;;  %7291 = vmatprep.subr.bf16.mxu1 %v9831_v2  ;;  %v6392_v35 = vadd.f32 %v11544_v31, %v6279_v61  ;;  %v11787_v2 = vpop.f32.mrf.mxu1  ;;  %v9867_v31 = vld [vmem:[#allocation11 + $0x328] ss:$28 sps:$4 sm:$0xff]  }
 0x396   :  { %13253 = vst [vmem:[#allocation23_spill] sm:$0xff] %v11777_v13  ;;  %7403 = vmatpush2.bf16.msra.mxu0 %v9826_v52  ;;  %7406 = vmatprep.mubr.bf16.mxu0 %v11342_v4  ;;  %v9840_v52 = vld [vmem:[#allocation11 + $0xbe4] ss:$28 sps:$4 sm:$0xff]   ;;  %v6394_v4 = vadd.f32 %v11552_v19, %v6281_v29 }
 0x397   :  { %v11782_v23 = vpop.f32.mrf.mxu0  ;;  %7404 = vmatprep.subr.bf16.mxu0 %v9834_v9  ;;  %v6505_v9 = vadd.f32 %v11652_v33, %v6392_v35  ;;  %v9838_v33 = vld [vmem:[#allocation11 + $0xbe0] ss:$28 sps:$4 sm:$0xff]   ;;  %v6289_v35 = vadd.f32 %v11528_v16, %v11765_v25 }
 0x398   :  { %13254 = vst [vmem:[#allocation21_spill] sm:$0xff] %v11782_v23  ;;  %7292 = vmatpush2.bf16.msra.mxu1 %v9829_v27  ;;  %v9863_v23 = vld [vmem:[#allocation11 + $0x1a0] ss:$28 sps:$4 sm:$0xff]   ;;  %v6507_v59 = vadd.f32 %v11659_v30, %v6394_v4  ;;  %v9868_v4 = vld [vmem:[#allocation11 + $0x168] ss:$28 sps:$4 sm:$0xff]   ;;  %v6291_v30 = vadd.f32 %v11534_v14, %v11771_v48 }
 0x399   :  { %v11789_v13 = vpop.f32.mrf.mxu0  ;;  %7487 = vmatprep.subr.bf16.mxu1 %v9837_v51  ;;  %v6396_v51 = vadd.f32 %v11560_v45, %v6283_v60  ;;  %v9872_v60 = vld [vmem:[#allocation11 + $0x2f0] ss:$28 sps:$4 sm:$0xff]  }
 0x39a   :  { %13255 = vst [vmem:[#allocation133_spill] sm:$0xff] %v11789_v13  ;;  %7405 = vmatpush2.bf16.msra.mxu0 %v9832_v21  ;;  %v9843_v21 = vld [vmem:[#allocation11 + $0xbac] ss:$28 sps:$4 sm:$0xff]   ;;  %v9846_v14 = vld [vmem:[#allocation11 + $0xb74] ss:$28 sps:$4 sm:$0xff]  }
 0x39b   :  { %v6617_v27 = vpop.f32.mrf.mxu1  ;;  %v11797_v61 = vpop.f32.mrf.mxu0  ;;  %7294 = vmatmul.mubr.bf16.vlgmr.msra.gmra.mxu1 %v11179_v47  ;;  %8976 = vmatprep.subr.bf16.mxu0 %v9862_v0  ;;  %v6398_v0 = vadd.f32 %v11568_v3, %v6285_v53  ;;  %v6509_v45 = vadd.f32 %v11662_v46, %v6396_v51  ;;  %v6404_v51 = vadd.f32 %v11584_v43, %v6291_v30  ;;  %v13259_v30 = vld [vmem:[#allocation52_spill] sm:$0xff] }
 0x39c   :  { %v6618_v13 = vadd.f32 %v6617_v27, %v6505_v9  ;;  %7488 = vmatpush1.bf16.msra.mxu1 %v9835_v38  ;;  %7303 = vmatprep.mubr.bf16.mxu1 %v11203_v50  ;;  %v13256_v9 = vld [vmem:[#allocation81_spill] sm:$0xff] }
 0x39d   :  { %7407 = vmatmul.mubr.bf16.vlgmr.msra.gmra.mxu0 %v11345_v49  ;;  %v6619_v6 = vpop.f32.mrf.mxu1  ;;  %v11806_v19 = vpop.f32.mrf.mxu0  ;;  %7489 = vmatprep.subr.bf16.mxu1 %v9840_v52  ;;  %v6402_v52 = vadd.f32 %v11576_v11, %v6289_v35  ;;  %v6511_v3 = vadd.f32 %v11666_v58, %v6398_v0  ;;  %v9873_v58 = vld [vmem:[#allocation11 + $0x130] ss:$28 sps:$4 sm:$0xff]   ;;  %v9877_v0 = vld [vmem:[#allocation11 + $0x2b8] ss:$28 sps:$4 sm:$0xff]   ;;  %v6517_v43 = vadd.f32 %v11675_v15, %v6404_v51 }
 0x39e   :  { %9947 = vtanh.f32 %v6618_v13  ;;  %7416 = vmatprep.mubr.bf16.mxu0 %v11352_v32  ;;  %v6620_v38 = vadd.f32 %v6619_v6, %v6507_v59  ;;  %8977 = vmatpush3.bf16.msra.mxu0 %v9863_v23  ;;  %v9841_v13 = vld [vmem:[#allocation11 + $0xba8] ss:$28 sps:$4 sm:$0xff]   ;;  %v6293_v23 = vadd.f32 %v13256_v9, %v11765_v25  ;;  %v13257_v59 = vld [vmem:[#allocation82_spill] sm:$0xff] }
 0x39f   :  { %v6621_v16 = vpop.f32.mrf.mxu1  ;;  %v11813_v29 = vpop.f32.mrf.mxu0  ;;  %8978 = vmatprep.subr.bf16.mxu0 %v9867_v31  ;;  %v6515_v31 = vadd.f32 %v11668_v20, %v6402_v52  ;;  %v13261_v9 = vld [vmem:[#allocation84_spill] sm:$0xff] }
 0x3a0   :  { %9949 = vtanh.f32 %v6620_v38  ;;  %v6622_v46 = vadd.f32 %v6621_v16, %v6509_v45  ;;  %7490 = vmatpush1.bf16.msra.mxu1 %v9838_v33  ;;  %v6295_v33 = vadd.f32 %v13257_v59, %v11771_v48  ;;  %v9844_v45 = vld [vmem:[#allocation11 + $0xb70] ss:$28 sps:$4 sm:$0xff]   ;;  %v13258_v38 = vld [vmem:[#allocation83_spill] sm:$0xff] }
 0x3a1   :  { %v6623_v53 = vpop.f32.mrf.mxu1  ;;  %v11819_v27 = vpop.f32.mrf.mxu0  ;;  %7491 = vmatprep.subr.bf16.mxu1 %v9843_v21  ;;  %v6406_v21 = vadd.f32 %v11592_v12, %v6293_v23  ;;  %v6301_v23 = vadd.f32 %v13261_v9, %v11771_v48  ;;  %v13262_v59 = vld [vmem:[#allocation85_spill] sm:$0xff] }
 0x3a2   :  { %9951 = vtanh.f32 %v6622_v46  ;;  %v6624_v11 = vadd.f32 %v6623_v53, %v6511_v3  ;;  %8979 = vmatpush3.bf16.msra.mxu0 %v9868_v4  ;;  %v6299_v4 = vadd.f32 %v13258_v38, %v11765_v25  ;;  %v6408_v12 = vadd.f32 %v11600_v1, %v6295_v33  ;;  %v13260_v3 = vld [vmem:[#allocation53_spill] sm:$0xff] }
 0x3a3   :  { %v6627_v35 = vpop.f32.mrf.mxu1  ;;  %v11825_v6 = vpop.f32.mrf.mxu0  ;;  %7304 = vmatmul.mubr.bf16.gmra.mxu1 %v11209_v18  ;;  %8980 = vmatprep.subr.bf16.mxu0 %v9872_v60  ;;  %v9849_v60 = vld [vmem:[#allocation11 + $0xb3c] ss:$28 sps:$4 sm:$0xff]   ;;  %v6519_v15 = vadd.f32 %v11678_v8, %v6406_v21  ;;  %v9852_v21 = vld [vmem:[#allocation11 + $0xb04] ss:$28 sps:$4 sm:$0xff]  }
 0x3a4   :  { %9953 = vtanh.f32 %v6624_v11  ;;  %v6628_v20 = vadd.f32 %v6627_v35, %v6515_v31  ;;  %7492 = vmatpush1.bf16.msra.mxu1 %v9841_v13  ;;  %7313 = vmatprep.mubr.bf16.mxu1 %v11229_v7  ;;  %v9878_v13 = vld [vmem:[#allocation11 + $0xf8] ss:$28 sps:$4 sm:$0xff]   ;;  %v9882_v31 = vld [vmem:[#allocation11 + $0x280] ss:$28 sps:$4 sm:$0xff]   ;;  %v6521_v1 = vadd.f32 %v11682_v5, %v6408_v12 }
 0x3a5   :  { %7417 = vmatmul.mubr.bf16.gmra.mxu0 %v13259_v30  ;;  %v6629_v16 = vpop.f32.mrf.mxu1  ;;  %v11834_v52 = vpop.f32.mrf.mxu0  ;;  %7493 = vmatprep.subr.bf16.mxu1 %v9846_v14  ;;  %v6412_v14 = vadd.f32 %v11606_v42, %v6299_v4  ;;  %v9847_v11 = vld [vmem:[#allocation11 + $0xb38] ss:$28 sps:$4 sm:$0xff]   ;;  %v9883_v5 = vld [vmem:[#allocation11 + $0xc0] ss:$28 sps:$4 sm:$0xff]  }
 0x3a6   :  { %9955 = vtanh.f32 %v6628_v20  ;;  %7426 = vmatprep.mubr.bf16.mxu0 %v13260_v3  ;;  %v6630_v46 = vadd.f32 %v6629_v16, %v6517_v43  ;;  %8981 = vmatpush3.bf16.msra.mxu0 %v9873_v58  ;;  %v6303_v58 = vadd.f32 %v13262_v59, %v11765_v25  ;;  %v6414_v43 = vadd.f32 %v11612_v62, %v6301_v23  ;;  %v13265_v23 = vld [vmem:[#allocation54_spill] sm:$0xff] }
 0x3a7   :  { %v6631_v53 = vpop.f32.mrf.mxu1  ;;  %v11841_v51 = vpop.f32.mrf.mxu0  ;;  %8982 = vmatprep.subr.bf16.mxu0 %v9877_v0  ;;  %v6525_v0 = vadd.f32 %v11684_v63, %v6412_v14 }
 0x3a8   :  { %9957 = vtanh.f32 %v6630_v46  ;;  %v6632_v8 = vadd.f32 %v6631_v53, %v6519_v15  ;;  %7494 = vmatpush1.bf16.msra.mxu1 %v9844_v45  ;;  %v13263_v45 = vld [vmem:[#allocation86_spill] sm:$0xff]  ;;  %v6416_v12 = vadd.f32 %v11618_v36, %v6303_v58  ;;  %v6527_v62 = vadd.f32 %v11691_v54, %v6414_v43  ;;  %v9855_v36 = vld [vmem:[#allocation11 + $0xacc] ss:$28 sps:$4 sm:$0xff]  }
 0x3a9   :  { %v6633_v33 = vpop.f32.mrf.mxu1  ;;  %v11847_v35 = vpop.f32.mrf.mxu0  ;;  %7495 = vmatprep.subr.bf16.mxu1 %v9849_v60  ;;  %v6305_v38 = vadd.f32 %v13263_v45, %v11771_v48  ;;  %v9887_v60 = vld [vmem:[#allocation11 + $0x248] ss:$28 sps:$4 sm:$0xff]   ;;  %v9850_v15 = vld [vmem:[#allocation11 + $0xb00] ss:$28 sps:$4 sm:$0xff]  }
 0x3aa   :  { %9959 = vtanh.f32 %v6632_v8  ;;  %v6634_v42 = vadd.f32 %v6633_v33, %v6521_v1  ;;  %8983 = vmatpush3.bf16.msra.mxu0 %v9878_v13  ;;  %v13264_v13 = vld [vmem:[#allocation87_spill] sm:$0xff]  ;;  %v6529_v14 = vadd.f32 %v11694_v56, %v6416_v12  ;;  %v13267_v58 = vld [vmem:[#allocation88_spill] sm:$0xff] }
 0x3ab   :  { %v9948_v20 = vpop.eup %9947  ;;  %v6637_v4 = vpop.f32.mrf.mxu1  ;;  %7314 = vmatmul.mubr.bf16.gmra.mxu1 %v11235_v34  ;;  %8984 = vmatprep.subr.bf16.mxu0 %v9882_v31  ;;  %v6309_v9 = vadd.f32 %v13264_v13, %v11765_v25  ;;  %v6418_v54 = vadd.f32 %v11624_v39, %v6305_v38  ;;  %v13266_v1 = vld [vmem:[#allocation55_spill] sm:$0xff]  ;;  %v6311_v33 = vadd.f32 %v13267_v58, %v11771_v48 }
 0x3ac   :  { %v11853_v16 = vpop.f32.mrf.mxu0  ;;  %8100 = vst [vmem:[#allocation14] sm:$0xff] %v9948_v20  ;;  %9961 = vtanh.f32 %v6634_v42  ;;  %v6638_v63 = vadd.f32 %v6637_v4, %v6525_v0  ;;  %7496 = vmatpush1.bf16.msra.mxu1 %v9847_v11  ;;  %7323 = vmatprep.mubr.bf16.mxu1 %v11257_v10  ;;  %v9888_v11 = vld [vmem:[#allocation11 + $0x88] ss:$28 sps:$4 sm:$0xff]   ;;  %v13269_v20 = vld [vmem:[#allocation117_spill] sm:$0xff] }
 0x3ad   :  { %v9950_v46 = vpop.eup %9949  ;;  %7427 = vmatmul.mubr.bf16.gmra.mxu0 %v13265_v23  ;;  %v6639_v53 = vpop.f32.mrf.mxu1  ;;  %7497 = vmatprep.subr.bf16.mxu1 %v9852_v21  ;;  %v9892_v21 = vld [vmem:[#allocation11 + $0x210] ss:$28 sps:$4 sm:$0xff]   ;;  %v13268_v42 = vld [vmem:[#allocation103_spill] sm:$0xff]  ;;  %v6531_v56 = vadd.f32 %v13269_v20, %v6418_v54 }
 0x3ae   :  { %v11862_v31 = vpop.f32.mrf.mxu0  ;;  %8101 = vst [vmem:[#allocation14 + $0x8] sm:$0xff] %v9950_v46  ;;  %9963 = vtanh.f32 %v6638_v63  ;;  %7436 = vmatprep.mubr.bf16.mxu0 %v13266_v1  ;;  %v6640_v8 = vadd.f32 %v6639_v53, %v6527_v62  ;;  %8985 = vmatpush3.bf16.msra.mxu0 %v9883_v5  ;;  %v6422_v39 = vadd.f32 %v13268_v42, %v6309_v9  ;;  %v9853_v38 = vld [vmem:[#allocation11 + $0xac8] ss:$28 sps:$4 sm:$0xff]   ;;  %v13270_v4 = vld [vmem:[#allocation89_spill] sm:$0xff]  ;;  %v13272_v53 = vld [vmem:[#allocation118_spill] sm:$0xff] }
 0x3af   :  { %v9952_v59 = vpop.eup %9951  ;;  %v6641_v43 = vpop.f32.mrf.mxu1  ;;  %8986 = vmatprep.subr.bf16.mxu0 %v9887_v60  ;;  %v6313_v12 = vadd.f32 %v13270_v4, %v11765_v25  ;;  %v9858_v46 = vld [vmem:[#allocation11 + $0xa94] ss:$28 sps:$4 sm:$0xff]   ;;  %v13274_v42 = vld [vmem:[#allocation26_spill] sm:$0xff]  ;;  %v13275_v20 = vld [vmem:[#allocation107_spill] sm:$0xff] }
 0x3b0   :  { %v11869_v0 = vpop.f32.mrf.mxu0  ;;  %8107 = vst [vmem:[#allocation14 + $0x38] sm:$0xff] %v9952_v59  ;;  %9965 = vtanh.f32 %v6640_v8  ;;  %v6642_v45 = vadd.f32 %v6641_v43, %v6529_v14  ;;  %7498 = vmatpush1.bf16.msra.mxu1 %v9850_v15  ;;  %v13271_v60 = vld [vmem:[#allocation105_spill] sm:$0xff]  ;;  %v6535_v9 = vadd.f32 %v13272_v53, %v6422_v39  ;;  %v13273_v8 = vld [vmem:[#allocation90_spill] sm:$0xff]  ;;  %v13277_v4 = vld [vmem:[#allocation91_spill] sm:$0xff] }
 0x3b1   :  { %v9954_v5 = vpop.eup %9953  ;;  %v6643_v62 = vpop.f32.mrf.mxu1  ;;  %7499 = vmatprep.subr.bf16.mxu1 %v9855_v36  ;;  %v6424_v13 = vadd.f32 %v13271_v60, %v6311_v33  ;;  %v9893_v14 = vld [vmem:[#allocation11 + $0x50] ss:$28 sps:$4 sm:$0xff]   ;;  %v6315_v59 = vadd.f32 %v13273_v8, %v11771_v48  ;;  %v9897_v36 = vld [vmem:[#allocation11 + $0x1d8] ss:$28 sps:$4 sm:$0xff]   ;;  %v6426_v33 = vadd.f32 %v13275_v20, %v6313_v12 }
 0x3b2   :  { %v11875_v63 = vpop.f32.mrf.mxu0  ;;  %8108 = vst [vmem:[#allocation14 + $0x40] sm:$0xff] %v9954_v5  ;;  %9967 = vtanh.f32 %v6642_v45  ;;  %v6644_v54 = vadd.f32 %v6643_v62, %v6531_v56  ;;  %8987 = vmatpush3.bf16.msra.mxu0 %v9888_v11  ;;  %v13276_v11 = vld [vmem:[#allocation30_spill] sm:$0xff]  ;;  %v9856_v45 = vld [vmem:[#allocation11 + $0xa90] ss:$28 sps:$4 sm:$0xff]   ;;  %v6319_v62 = vadd.f32 %v13277_v4, %v11765_v25 }
 0x3b3   :  { %v9956_v15 = vpop.eup %9955  ;;  %v6647_v58 = vpop.f32.mrf.mxu1  ;;  %7324 = vmatmul.mubr.bf16.gmra.mxu1 %v13274_v42  ;;  %8988 = vmatprep.subr.bf16.mxu0 %v9892_v21  ;;  %v6537_v39 = vadd.f32 %v11707_v17, %v6424_v13  ;;  %v13278_v60 = vld [vmem:[#allocation56_spill] sm:$0xff]  ;;  %v9861_v12 = vld [vmem:[#allocation11 + $0xddc] ss:$28 sps:$4 sm:$0xff]   ;;  %v13279_v8 = vld [vmem:[#allocation109_spill] sm:$0xff]  ;;  %v6539_v13 = vadd.f32 %v11710_v37, %v6426_v33 }
 0x3b4   :  { %v11881_v43 = vpop.f32.mrf.mxu0  ;;  %8114 = vst [vmem:[#allocation14 + $0x70] sm:$0xff] %v9956_v15  ;;  %9969 = vtanh.f32 %v6644_v54  ;;  %v6648_v56 = vadd.f32 %v6647_v58, %v6535_v9  ;;  %7500 = vmatpush1.bf16.msra.mxu1 %v9853_v38  ;;  %7333 = vmatprep.mubr.bf16.mxu1 %v13276_v11  ;;  %v6428_v17 = vadd.f32 %v13279_v8, %v6315_v59  ;;  %v13280_v38 = vld [vmem:[#allocation57_spill] sm:$0xff]  ;;  %v13281_v58 = vld [vmem:[#allocation92_spill] sm:$0xff]  ;;  %v13283_v11 = vld [vmem:[#allocation111_spill] sm:$0xff] }
 0x3b5   :  { %v9958_v5 = vpop.eup %9957  ;;  %7437 = vmatmul.mubr.bf16.gmra.mxu0 %v13278_v60  ;;  %v6649_v53 = vpop.f32.mrf.mxu1  ;;  %7501 = vmatprep.subr.bf16.mxu1 %v9858_v46  ;;  %v9898_v54 = vld [vmem:[#allocation11 + $0x18] ss:$28 sps:$4 sm:$0xff]   ;;  %v6321_v20 = vadd.f32 %v13281_v58, %v11771_v48  ;;  %v9909_v46 = vld [vmem:[#allocation11 + $0xa60] ss:$28 sps:$4 sm:$0xff]   ;;  %v6432_v59 = vadd.f32 %v13283_v11, %v6319_v62 }
 0x3b6   :  { %v11890_v21 = vpop.f32.mrf.mxu0  ;;  %8115 = vst [vmem:[#allocation14 + $0x78] sm:$0xff] %v9958_v5  ;;  %9971 = vtanh.f32 %v6648_v56  ;;  %7446 = vmatprep.mubr.bf16.mxu0 %v13280_v38  ;;  %v6650_v9 = vadd.f32 %v6649_v53, %v6537_v39  ;;  %8989 = vmatpush3.bf16.msra.mxu0 %v9893_v14  ;;  %v13284_v8 = vld [vmem:[#allocation121_spill] sm:$0xff]  ;;  %v9866_v38 = vld [vmem:[#allocation11 + $0xda4] ss:$28 sps:$4 sm:$0xff]  }
 0x3b7   :  { %v9960_v15 = vpop.eup %9959  ;;  %v6651_v4 = vpop.f32.mrf.mxu1  ;;  %8990 = vmatprep.subr.bf16.mxu0 %v9897_v36  ;;  %v6541_v37 = vadd.f32 %v13284_v8, %v6428_v17  ;;  %v9859_v39 = vld [vmem:[#allocation11 + $0xdd8] ss:$28 sps:$4 sm:$0xff]   ;;  %v13287_v36 = vld [vmem:[#allocation112_spill] sm:$0xff] }
 0x3b8   :  { %v11897_v60 = vpop.f32.mrf.mxu0  ;;  %8121 = vst [vmem:[#allocation14 + $0xa8] sm:$0xff] %v9960_v15  ;;  %9973 = vtanh.f32 %v6650_v9  ;;  %v6652_v33 = vadd.f32 %v6651_v4, %v6539_v13  ;;  %7502 = vmatpush1.bf16.msra.mxu1 %v9856_v45  ;;  %v13285_v56 = vld [vmem:[#allocation93_spill] sm:$0xff]  ;;  %v6434_v42 = vadd.f32 %v13287_v36, %v6321_v20  ;;  %v13289_v45 = vld [vmem:[#allocation94_spill] sm:$0xff]  ;;  %v13291_v4 = vld [vmem:[#allocation43_spill] sm:$0xff] }
 0x3b9   :  { %13282 = vst [vmem:[#allocation81_spill] sm:$0xff] %v11897_v60  ;;  %v9962_v14 = vpop.eup %9961  ;;  %v6323_v5 = vadd.f32 %v13285_v56, %v11765_v25  ;;  %v6653_v53 = vpop.f32.mrf.mxu1  ;;  %7503 = vmatprep.subr.bf16.mxu1 %v9861_v12  ;;  %v13288_v60 = vld [vmem:[#allocation122_spill] sm:$0xff]  ;;  %v6325_v13 = vadd.f32 %v13289_v45, %v11771_v48  ;;  %v13292_v12 = vld [vmem:[#allocation113_spill] sm:$0xff] }
 0x3ba   :  { %v11903_v58 = vpop.f32.mrf.mxu0  ;;  %v6545_v11 = vadd.f32 %v13288_v60, %v6432_v59  ;;  %8122 = vst [vmem:[#allocation14 + $0xb0] sm:$0xff] %v9962_v14  ;;  %9975 = vtanh.f32 %v6652_v33  ;;  %v6654_v62 = vadd.f32 %v6653_v53, %v6541_v37  ;;  %8991 = vmatpush3.bf16.msra.mxu0 %v9898_v54  ;;  %v6547_v20 = vadd.f32 %v11723_v28, %v6434_v42  ;;  %v13293_v59 = vld [vmem:[#allocation44_spill] sm:$0xff]  ;;  %v9864_v54 = vld [vmem:[#allocation11 + $0xda0] ss:$28 sps:$4 sm:$0xff]  }
 0x3bb   :  { %13286 = vst [vmem:[#allocation82_spill] sm:$0xff] %v11903_v58  ;;  %v9964_v17 = vpop.eup %9963  ;;  %v6657_v9 = vpop.f32.mrf.mxu1  ;;  %7334 = vmatmul.mubr.bf16.gmra.mxu1 %v13291_v4  ;;  %9104 = vmatprep.subr.bf16.mxu0 %v9909_v46  ;;  %v6436_v8 = vadd.f32 %v13292_v12, %v6323_v5  ;;  %v13294_v33 = vld [vmem:[#allocation95_spill] sm:$0xff]  ;;  %v13295_v56 = vld [vmem:[#allocation58_spill] sm:$0xff]  ;;  %v9871_v46 = vld [vmem:[#allocation11 + $0xd6c] ss:$28 sps:$4 sm:$0xff]  }
 0x3bc   :  { %v11909_v15 = vpop.f32.mrf.mxu0  ;;  %8128 = vst [vmem:[#allocation14 + $0xe0] sm:$0xff] %v9964_v17  ;;  %9977 = vtanh.f32 %v6654_v62  ;;  %v6658_v60 = vadd.f32 %v6657_v9, %v6545_v11  ;;  %7504 = vmatpush2.bf16.msra.mxu1 %v9859_v39  ;;  %7343 = vmatprep.mubr.bf16.mxu1 %v13293_v59  ;;  %v6329_v14 = vadd.f32 %v13294_v33, %v11765_v25  ;;  %v13297_v5 = vld [vmem:[#allocation114_spill] sm:$0xff]  ;;  %v13298_v39 = vld [vmem:[#allocation59_spill] sm:$0xff]  ;;  %v13299_v17 = vld [vmem:[#allocation96_spill] sm:$0xff] }
 0x3bd   :  { %13290 = vst [vmem:[#allocation83_spill] sm:$0xff] %v11909_v15  ;;  %v9966_v37 = vpop.eup %9965  ;;  %7447 = vmatmul.mubr.bf16.gmra.mxu0 %v13295_v56  ;;  %v6659_v53 = vpop.f32.mrf.mxu1  ;;  %7505 = vmatprep.subr.bf16.mxu1 %v9866_v38  ;;  %v6438_v28 = vadd.f32 %v13297_v5, %v6325_v13  ;;  %v6549_v42 = vadd.f32 %v11726_v40, %v6436_v8  ;;  %v13301_v33 = vld [vmem:[#allocation115_spill] sm:$0xff]  ;;  %v13302_v38 = vld [vmem:[#allocation125_spill] sm:$0xff]  ;;  %v13306_v4 = vld [vmem:[#allocation126_spill] sm:$0xff] }
 0x3be   :  { %v11918_v36 = vpop.f32.mrf.mxu0  ;;  %8129 = vst [vmem:[#allocation14 + $0xe8] sm:$0xff] %v9966_v37  ;;  %9979 = vtanh.f32 %v6658_v60  ;;  %7456 = vmatprep.mubr.bf16.mxu0 %v13298_v39  ;;  %v6660_v11 = vadd.f32 %v6659_v53, %v6547_v20  ;;  %v6331_v45 = vadd.f32 %v13299_v17, %v11771_v48  ;;  %v6442_v56 = vadd.f32 %v13301_v33, %v6329_v14  ;;  %v9869_v40 = vld [vmem:[#allocation11 + $0xd68] ss:$28 sps:$4 sm:$0xff]   ;;  %v13303_v60 = vld [vmem:[#allocation97_spill] sm:$0xff]  ;;  %v13309_v33 = vld [vmem:[#allocation46_spill] sm:$0xff] }
 0x3bf   :  { %13296 = vst [vmem:[#allocation52_spill] sm:$0xff] %v11918_v36  ;;  %v9968_v62 = vpop.eup %9967  ;;  %v6661_v9 = vpop.f32.mrf.mxu1  ;;  %v6551_v59 = vadd.f32 %v13302_v38, %v6438_v28  ;;  %v6333_v20 = vadd.f32 %v13303_v60, %v11765_v25  ;;  %v9876_v5 = vld [vmem:[#allocation11 + $0xd34] ss:$28 sps:$4 sm:$0xff]   ;;  %v13305_v17 = vld [vmem:[#allocation116_spill] sm:$0xff]  ;;  %v13310_v38 = vld [vmem:[#allocation119_spill] sm:$0xff] }
 0x3c0   :  { %v11925_v12 = vpop.f32.mrf.mxu0  ;;  %8135 = vst [vmem:[#allocation14 + $0x118] sm:$0xff] %v9968_v62  ;;  %9981 = vtanh.f32 %v6660_v11  ;;  %v6662_v13 = vadd.f32 %v6661_v9, %v6549_v42  ;;  %7506 = vmatpush2.bf16.msra.mxu1 %v9864_v54  ;;  %v6444_v39 = vadd.f32 %v13305_v17, %v6331_v45  ;;  %v6555_v14 = vadd.f32 %v13306_v4, %v6442_v56  ;;  %v13307_v54 = vld [vmem:[#allocation98_spill] sm:$0xff]  ;;  %v13311_v4 = vld [vmem:[#allocation47_spill] sm:$0xff]  ;;  %v13368_v36 = vld [vmem:[#allocation73_spill] sm:$0xff] }
 0x3c1   :  { %13300 = vst [vmem:[#allocation53_spill] sm:$0xff] %v11925_v12  ;;  %v9970_v8 = vpop.eup %9969  ;;  %v6663_v37 = vpop.f32.mrf.mxu1  ;;  %7507 = vmatprep.subr.bf16.mxu1 %v9871_v46  ;;  %v6335_v42 = vadd.f32 %v13307_v54, %v11771_v48  ;;  %v6446_v60 = vadd.f32 %v13310_v38, %v6333_v20  ;;  %v9881_v20 = vld [vmem:[#allocation11 + $0xcfc] ss:$28 sps:$4 sm:$0xff]   ;;  %v13315_v38 = vld [vmem:[#allocation120_spill] sm:$0xff]  ;;  %v13369_v15 = vld [vmem:[#allocation41_spill] sm:$0xff] }
 0x3c2   :  { %v11931_v53 = vpop.f32.mrf.mxu0  ;;  %8136 = vst [vmem:[#allocation14 + $0x120] sm:$0xff] %v9970_v8  ;;  %9983 = vtanh.f32 %v6662_v13  ;;  %v6664_v28 = vadd.f32 %v6663_v37, %v6551_v59  ;;  %v6557_v46 = vadd.f32 %v11739_v57, %v6444_v39  ;;  %v9874_v59 = vld [vmem:[#allocation11 + $0xd30] ss:$28 sps:$4 sm:$0xff]   ;;  %v13312_v13 = vld [vmem:[#allocation99_spill] sm:$0xff]  ;;  %v9929_v12 = vld [vmem:[#allocation11 + $0x8d8] ss:$28 sps:$4 sm:$0xff]  }
 0x3c3   :  { %13304 = vst [vmem:[#allocation84_spill] sm:$0xff] %v11931_v53  ;;  %v9972_v11 = vpop.eup %9971  ;;  %v6667_v62 = vpop.f32.mrf.mxu1  ;;  %7344 = vmatmul.mubr.bf16.gmra.mxu1 %v13309_v33  ;;  %v6339_v8 = vadd.f32 %v13312_v13, %v11765_v25  ;;  %v13313_v37 = vld [vmem:[#allocation60_spill] sm:$0xff]  ;;  %v6448_v57 = vadd.f32 %v13315_v38, %v6335_v42  ;;  %v6559_v39 = vadd.f32 %v11742_v41, %v6446_v60  ;;  %v9879_v41 = vld [vmem:[#allocation11 + $0xcf8] ss:$28 sps:$4 sm:$0xff]   ;;  %v9886_v38 = vld [vmem:[#allocation11 + $0xcc4] ss:$28 sps:$4 sm:$0xff]  }
 0x3c4   :  { %v11937_v9 = vpop.f32.mrf.mxu0  ;;  %8142 = vst [vmem:[#allocation14 + $0x150] sm:$0xff] %v9972_v11  ;;  %9985 = vtanh.f32 %v6664_v28  ;;  %v6668_v45 = vadd.f32 %v6667_v62, %v6555_v14  ;;  %7508 = vmatpush2.bf16.msra.mxu1 %v9869_v40  ;;  %7353 = vmatprep.mubr.bf16.mxu1 %v13311_v4  ;;  %v13316_v40 = vld [vmem:[#allocation61_spill] sm:$0xff]  ;;  %v13317_v11 = vld [vmem:[#allocation100_spill] sm:$0xff]  ;;  %v13319_v4 = vld [vmem:[#allocation123_spill] sm:$0xff] }
 0x3c5   :  { %13308 = vst [vmem:[#allocation85_spill] sm:$0xff] %v11937_v9  ;;  %v9974_v56 = vpop.eup %9973  ;;  %7457 = vmatmul.mubr.bf16.gmra.mxu0 %v13313_v37  ;;  %v6669_v17 = vpop.f32.mrf.mxu1  ;;  %7509 = vmatprep.subr.bf16.mxu1 %v9876_v5  ;;  %v6341_v62 = vadd.f32 %v13317_v11, %v11771_v48  ;;  %v6452_v33 = vadd.f32 %v13319_v4, %v6339_v8  ;;  %v13322_v11 = vld [vmem:[#allocation124_spill] sm:$0xff]  ;;  %v9931_v58 = vld [vmem:[#allocation11 + $0xde0] ss:$28 sps:$4 sm:$0xff]  }
 0x3c6   :  { %v11946_v54 = vpop.f32.mrf.mxu0  ;;  %8143 = vst [vmem:[#allocation14 + $0x158] sm:$0xff] %v9974_v56  ;;  %9987 = vtanh.f32 %v6668_v45  ;;  %7466 = vmatprep.mubr.bf16.mxu0 %v13316_v40  ;;  %v6670_v14 = vadd.f32 %v6669_v17, %v6557_v46  ;;  %v6561_v5 = vadd.f32 %v11746_v22, %v6448_v57  ;;  %v13320_v45 = vld [vmem:[#allocation101_spill] sm:$0xff] }
 0x3c7   :  { %13314 = vst [vmem:[#allocation86_spill] sm:$0xff] %v11946_v54  ;;  %v9976_v28 = vpop.eup %9975  ;;  %v6671_v13 = vpop.f32.mrf.mxu1  ;;  %v6343_v46 = vadd.f32 %v13320_v45, %v11765_v25  ;;  %v6454_v40 = vadd.f32 %v13322_v11, %v6341_v62  ;;  %v6565_v4 = vadd.f32 %v11748_v55, %v6452_v33  ;;  %v13328_v55 = vld [vmem:[#allocation49_spill] sm:$0xff]  ;;  %v9884_v33 = vld [vmem:[#allocation11 + $0xcc0] ss:$28 sps:$4 sm:$0xff]  }
 0x3c8   :  { %v11953_v37 = vpop.f32.mrf.mxu0  ;;  %8149 = vst [vmem:[#allocation14 + $0x188] sm:$0xff] %v9976_v28  ;;  %9989 = vtanh.f32 %v6670_v14  ;;  %v6672_v42 = vadd.f32 %v6671_v13, %v6559_v39  ;;  %7510 = vmatpush2.bf16.msra.mxu1 %v9874_v59  ;;  %v13323_v59 = vld [vmem:[#allocation102_spill] sm:$0xff]  ;;  %v13325_v28 = vld [vmem:[#allocation48_spill] sm:$0xff]  ;;  %v13326_v13 = vld [vmem:[#allocation127_spill] sm:$0xff] }
 0x3c9   :  { %13318 = vst [vmem:[#allocation87_spill] sm:$0xff] %v11953_v37  ;;  %v9978_v60 = vpop.eup %9977  ;;  %v6673_v56 = vpop.f32.mrf.mxu1  ;;  %7511 = vmatprep.subr.bf16.mxu1 %v9881_v20  ;;  %v6345_v57 = vadd.f32 %v13323_v59, %v11771_v48  ;;  %v6456_v45 = vadd.f32 %v13326_v13, %v6343_v46  ;;  %v13327_v20 = vld [vmem:[#allocation130_spill] sm:$0xff]  ;;  %v9891_v46 = vld [vmem:[#allocation11 + $0xc8c] ss:$28 sps:$4 sm:$0xff]  }
 0x3ca   :  { %v11959_v17 = vpop.f32.mrf.mxu0  ;;  %8150 = vst [vmem:[#allocation14 + $0x190] sm:$0xff] %v9978_v60  ;;  %9991 = vtanh.f32 %v6672_v42  ;;  %v6674_v22 = vadd.f32 %v6673_v56, %v6561_v5  ;;  %v13329_v42 = vld [vmem:[#allocation104_spill] sm:$0xff]  ;;  %v13330_v56 = vld [vmem:[#allocation62_spill] sm:$0xff] }
 0x3cb   :  { %13321 = vst [vmem:[#allocation54_spill] sm:$0xff] %v11959_v17  ;;  %v9980_v8 = vpop.eup %9979  ;;  %v6677_v39 = vpop.f32.mrf.mxu1  ;;  %7354 = vmatmul.mubr.bf16.gmra.mxu1 %v13325_v28  ;;  %v6567_v17 = vadd.f32 %v13327_v20, %v6454_v40  ;;  %v6349_v60 = vadd.f32 %v13329_v42, %v11765_v25  ;;  %v13332_v13 = vld [vmem:[#allocation128_spill] sm:$0xff]  ;;  %v13335_v20 = vld [vmem:[#allocation106_spill] sm:$0xff]  ;;  %v13337_v28 = vld [vmem:[#allocation129_spill] sm:$0xff] }
 0x3cc   :  { %v11965_v14 = vpop.f32.mrf.mxu0  ;;  %8156 = vst [vmem:[#allocation14 + $0x1c0] sm:$0xff] %v9980_v8  ;;  %9993 = vtanh.f32 %v6674_v22  ;;  %v6678_v62 = vadd.f32 %v6677_v39, %v6565_v4  ;;  %7512 = vmatpush2.bf16.msra.mxu1 %v9879_v41  ;;  %7363 = vmatprep.mubr.bf16.mxu1 %v13328_v55  ;;  %v6458_v40 = vadd.f32 %v13332_v13, %v6345_v57  ;;  %v13333_v8 = vld [vmem:[#allocation131_spill] sm:$0xff]  ;;  %v9927_v54 = vld [vmem:[#allocation11 + $0x910] ss:$28 sps:$4 sm:$0xff]  }
 0x3cd   :  { %13324 = vst [vmem:[#allocation55_spill] sm:$0xff] %v11965_v14  ;;  %v9982_v5 = vpop.eup %9981  ;;  %7467 = vmatmul.mubr.bf16.gmra.mxu0 %v13330_v56  ;;  %v6679_v11 = vpop.f32.mrf.mxu1  ;;  %7513 = vmatprep.subr.bf16.mxu1 %v9886_v38  ;;  %v6569_v22 = vadd.f32 %v13333_v8, %v6456_v45  ;;  %v13334_v41 = vld [vmem:[#allocation63_spill] sm:$0xff]  ;;  %v6351_v42 = vadd.f32 %v13335_v20, %v11771_v48  ;;  %v9896_v8 = vld [vmem:[#allocation11 + $0xc54] ss:$28 sps:$4 sm:$0xff]   ;;  %v13340_v20 = vld [vmem:[#allocation132_spill] sm:$0xff] }
 0x3ce   :  { %v11974_v59 = vpop.f32.mrf.mxu0  ;;  %8157 = vst [vmem:[#allocation14 + $0x1c8] sm:$0xff] %v9982_v5  ;;  %9995 = vtanh.f32 %v6678_v62  ;;  %7476 = vmatprep.mubr.bf16.mxu0 %v13334_v41  ;;  %v6680_v4 = vadd.f32 %v6679_v11, %v6567_v17  ;;  %v6571_v38 = vadd.f32 %v11762_v24, %v6458_v40  ;;  %v9889_v45 = vld [vmem:[#allocation11 + $0xc88] ss:$28 sps:$4 sm:$0xff]  }
 0x3cf   :  { %13331 = vst [vmem:[#allocation88_spill] sm:$0xff] %v11974_v59  ;;  %v9984_v39 = vpop.eup %9983  ;;  %v6681_v55 = vpop.f32.mrf.mxu1  ;;  %v6462_v59 = vadd.f32 %v13337_v28, %v6349_v60  ;;  %v13338_v5 = vld [vmem:[#allocation108_spill] sm:$0xff]  ;;  %v6464_v41 = vadd.f32 %v13340_v20, %v6351_v42  ;;  %v13363_v14 = vld [vmem:[#allocation39_spill] sm:$0xff] }
 0x3d0   :  { %v11981_v56 = vpop.f32.mrf.mxu0  ;;  %8163 = vst [vmem:[#allocation14 + $0x1f8] sm:$0xff] %v9984_v39  ;;  %9997 = vtanh.f32 %v6680_v4  ;;  %v6682_v57 = vadd.f32 %v6681_v55, %v6569_v22  ;;  %7514 = vmatpush2.bf16.msra.mxu1 %v9884_v33  ;;  %v6353_v17 = vadd.f32 %v13338_v5, %v11765_v25  ;;  %v13341_v55 = vld [vmem:[#allocation110_spill] sm:$0xff] }
 0x3d1   :  { %13336 = vst [vmem:[#allocation103_spill] sm:$0xff] %v11981_v56  ;;  %v9986_v62 = vpop.eup %9985  ;;  %v6683_v11 = vpop.f32.mrf.mxu1  ;;  %7515 = vmatprep.subr.bf16.mxu1 %v9891_v46  ;;  %v6575_v28 = vadd.f32 %v11767_v26, %v6462_v59  ;;  %v6355_v33 = vadd.f32 %v13341_v55, %v11771_v48  ;;  %v13343_v25 = vld [vmem:[#allocation50_spill] sm:$0xff]  ;;  %v13344_v46 = vld [vmem:[#allocation23_spill] sm:$0xff]  ;;  %v13345_v26 = vld [vmem:[#allocation65_spill] sm:$0xff] }
 0x3d2   :  { %v11987_v13 = vpop.f32.mrf.mxu0  ;;  %8164 = vst [vmem:[#allocation14 + $0x200] sm:$0xff] %v9986_v62  ;;  %9999 = vtanh.f32 %v6682_v57  ;;  %v6684_v24 = vadd.f32 %v6683_v11, %v6571_v38  ;;  %v6466_v4 = vadd.f32 %v11774_v44, %v6353_v17  ;;  %v6577_v39 = vadd.f32 %v13344_v46, %v6464_v41  ;;  %v9894_v59 = vld [vmem:[#allocation11 + $0xc50] ss:$28 sps:$4 sm:$0xff]   ;;  %v9899_v5 = vld [vmem:[#allocation11 + $0x6e0] ss:$28 sps:$4 sm:$0xff]  }
 0x3d3   :  { %13339 = vst [vmem:[#allocation117_spill] sm:$0xff] %v11987_v13  ;;  %v9988_v60 = vpop.eup %9987  ;;  %v6687_v40 = vpop.f32.mrf.mxu1  ;;  %7364 = vmatmul.mubr.bf16.gmra.mxu1 %v13343_v25  ;;  %v13346_v57 = vld [vmem:[#allocation64_spill] sm:$0xff]  ;;  %v6468_v11 = vadd.f32 %v11787_v2, %v6355_v33  ;;  %v13348_v44 = vld [vmem:[#allocation21_spill] sm:$0xff]  ;;  %v13361_v13 = vld [vmem:[#allocation70_spill] sm:$0xff] }
 0x3d4   :  { %v11993_v22 = vpop.f32.mrf.mxu0  ;;  %8170 = vst [vmem:[#allocation14 + $0x230] sm:$0xff] %v9988_v60  ;;  %10001 = vtanh.f32 %v6684_v24  ;;  %v6688_v42 = vadd.f32 %v6687_v40, %v6575_v28  ;;  %7516 = vmatpush2.bf16.msra.mxu1 %v9889_v45  ;;  %7519 = vmatprep.mubr.bf16.mxu1 %v13345_v26  ;;  %v6579_v17 = vadd.f32 %v13348_v44, %v6466_v4  ;;  %v13349_v41 = vld [vmem:[#allocation33_spill] sm:$0xff]  ;;  %v9901_v4 = vld [vmem:[#allocation11 + $0x6a8] ss:$28 sps:$4 sm:$0xff]   ;;  %v13353_v44 = vld [vmem:[#allocation66_spill] sm:$0xff] }
 0x3d5   :  { %13342 = vst [vmem:[#allocation89_spill] sm:$0xff] %v11993_v22  ;;  %v9990_v38 = vpop.eup %9989  ;;  %7477 = vmatmul.mubr.bf16.gmra.mxu0 %v13346_v57  ;;  %v6689_v48 = vpop.f32.mrf.mxu1  ;;  %7517 = vmatprep.subr.bf16.mxu1 %v9896_v8  ;;  %v13351_v60 = vld [vmem:[#allocation133_spill] sm:$0xff]  ;;  %v9900_v8 = vld [vmem:[#allocation11 + $0x520] ss:$28 sps:$4 sm:$0xff]   ;;  %v9914_v56 = vld [vmem:[#allocation11 + $0x408] ss:$28 sps:$4 sm:$0xff]  }
 0x3d6   :  { %v12000_v62 = vpop.f32.mrf.mxu0  ;;  %8171 = vst [vmem:[#allocation14 + $0x238] sm:$0xff] %v9990_v38  ;;  %10003 = vtanh.f32 %v6688_v42  ;;  %7632 = vmatprep.mubr.bf16.mxu0 %v13349_v41  ;;  %v6690_v45 = vadd.f32 %v6689_v48, %v6577_v39  ;;  %v6581_v55 = vadd.f32 %v13351_v60, %v6468_v11  ;;  %v9910_v42 = vld [vmem:[#allocation11 + $0x8a0] ss:$28 sps:$4 sm:$0xff]   ;;  %v9911_v11 = vld [vmem:[#allocation11 + $0xa28] ss:$28 sps:$4 sm:$0xff]   ;;  %v13358_v57 = vld [vmem:[#allocation69_spill] sm:$0xff] }
 0x3d7   :  { %13347 = vst [vmem:[#allocation105_spill] sm:$0xff] %v12000_v62  ;;  %v9992_v20 = vpop.eup %9991  ;;  %v6691_v28 = vpop.f32.mrf.mxu1  ;;  %v9902_v41 = vld [vmem:[#allocation11 + $0x4e8] ss:$28 sps:$4 sm:$0xff]  }
 0x3d8   :  { %v12005_v24 = vpop.f32.mrf.mxu0  ;;  %8177 = vst [vmem:[#allocation14 + $0x268] sm:$0xff] %v9992_v20  ;;  %10005 = vtanh.f32 %v6690_v45  ;;  %v6692_v40 = vadd.f32 %v6691_v28, %v6579_v17  ;;  %7518 = vmatpush2.bf16.msra.mxu1 %v9894_v59  ;;  %v13354_v17 = vld [vmem:[#allocation67_spill] sm:$0xff]  ;;  %v13355_v45 = vld [vmem:[#allocation34_spill] sm:$0xff]  ;;  %v9903_v28 = vld [vmem:[#allocation11 + $0x670] ss:$28 sps:$4 sm:$0xff]  }
 0x3d9   :  { %13350 = vst [vmem:[#allocation118_spill] sm:$0xff] %v12005_v24  ;;  %v9994_v46 = vpop.eup %9993  ;;  %v6693_v2 = vpop.f32.mrf.mxu1  ;;  %9040 = vmatprep.subr.bf16.mxu1 %v9899_v5  ;;  %v13356_v60 = vld [vmem:[#allocation35_spill] sm:$0xff] }
 0x3da   :  { %v12008_v33 = vpop.f32.mrf.mxu0  ;;  %8178 = vst [vmem:[#allocation14 + $0x270] sm:$0xff] %v9994_v46  ;;  %10007 = vtanh.f32 %v6692_v40  ;;  %v6694_v39 = vadd.f32 %v6693_v2, %v6581_v55  ;;  %v9912_v40 = vld [vmem:[#allocation11 + $0x868] ss:$28 sps:$4 sm:$0xff]  }
 0x3db   :  { %13352 = vst [vmem:[#allocation90_spill] sm:$0xff] %v12008_v33  ;;  %v9996_v38 = vpop.eup %9995  ;;  %v12010_v48 = vpop.f32.mrf.mxu1  ;;  %7520 = vmatmul.mubr.bf16.vlgmr.msra.gmra.mxu1 %v13353_v44  ;;  %v13360_v33 = vld [vmem:[#allocation37_spill] sm:$0xff] }
 0x3dc   :  { %8184 = vst [vmem:[#allocation14 + $0x2a0] sm:$0xff] %v9996_v38  ;;  %10009 = vtanh.f32 %v6694_v39  ;;  %v12013_v59 = vpop.f32.mrf.mxu0  ;;  %9041 = vmatpush3.bf16.msra.mxu1 %v9900_v8  ;;  %7529 = vmatprep.mubr.bf16.mxu1 %v13354_v17  ;;  %v9915_v8 = vld [vmem:[#allocation11 + $0x9f0] ss:$28 sps:$4 sm:$0xff]  }
 0x3dd   :  { %v9998_v5 = vpop.eup %9997  ;;  %7633 = vmatmul.mubr.bf16.vlgmr.msra.gmra.mxu0 %v13355_v45  ;;  %v12017_v20 = vpop.f32.mrf.mxu1  ;;  %9042 = vmatprep.subr.bf16.mxu1 %v9901_v4  ;;  %v9904_v38 = vld [vmem:[#allocation11 + $0x4b0] ss:$28 sps:$4 sm:$0xff]  }
 0x3de   :  { %8185 = vst [vmem:[#allocation14 + $0x2a8] sm:$0xff] %v9998_v5  ;;  %7640 = vmatprep.mubr.bf16.mxu0 %v13356_v60  ;;  %v12020_v55 = vpop.f32.mrf.mxu0  ;;  %9105 = vmatpush3.bf16.msra.mxu0 %v9910_v42  ;;  %v9905_v5 = vld [vmem:[#allocation11 + $0x638] ss:$28 sps:$4 sm:$0xff]   ;;  %v9916_v42 = vld [vmem:[#allocation11 + $0x830] ss:$28 sps:$4 sm:$0xff]  }
 0x3df   :  { %v10000_v46 = vpop.eup %9999  ;;  %v12022_v2 = vpop.f32.mrf.mxu1  ;;  %9106 = vmatprep.subr.bf16.mxu0 %v9911_v11  ;;  %v13357_v11 = vld [vmem:[#allocation68_spill] sm:$0xff] }
 0x3e0   :  { %8191 = vst [vmem:[#allocation14 + $0x2d8] sm:$0xff] %v10000_v46  ;;  %v12024_v39 = vpop.f32.mrf.mxu0  ;;  %9043 = vmatpush3.bf16.msra.mxu1 %v9902_v41  ;;  %v9917_v46 = vld [vmem:[#allocation11 + $0x9b8] ss:$28 sps:$4 sm:$0xff]  }
 0x3e1   :  { %v10002_v45 = vpop.eup %10001  ;;  %v12026_v4 = vpop.f32.mrf.mxu1  ;;  %9044 = vmatprep.subr.bf16.mxu1 %v9903_v28  ;;  %v9906_v28 = vld [vmem:[#allocation11 + $0x478] ss:$28 sps:$4 sm:$0xff]  }
 0x3e2   :  { %8192 = vst [vmem:[#allocation14 + $0x2e0] sm:$0xff] %v10002_v45  ;;  %v12028_v60 = vpop.f32.mrf.mxu0  ;;  %9107 = vmatpush3.bf16.msra.mxu0 %v9912_v40  ;;  %v13359_v45 = vld [vmem:[#allocation36_spill] sm:$0xff]  ;;  %v9907_v40 = vld [vmem:[#allocation11 + $0x600] ss:$28 sps:$4 sm:$0xff]  }
 0x3e3   :  { %v10004_v17 = vpop.eup %10003  ;;  %v12030_v44 = vpop.f32.mrf.mxu1  ;;  %7530 = vmatmul.mubr.bf16.gmra.mxu1 %v13357_v11  ;;  %9108 = vmatprep.subr.bf16.mxu0 %v9915_v8 }
 0x3e4   :  { %8198 = vst [vmem:[#allocation14 + $0x310] sm:$0xff] %v10004_v17  ;;  %v12033_v41 = vpop.f32.mrf.mxu0  ;;  %7539 = vmatprep.mubr.bf16.mxu1 %v13358_v57  ;;  %9045 = vmatpush3.bf16.msra.mxu1 %v9904_v38  ;;  %v9918_v17 = vld [vmem:[#allocation11 + $0x7f8] ss:$28 sps:$4 sm:$0xff]   ;;  %v9921_v38 = vld [vmem:[#allocation11 + $0x980] ss:$28 sps:$4 sm:$0xff]  }
 0x3e5   :  { %v10006_v26 = vpop.eup %10005  ;;  %7641 = vmatmul.mubr.bf16.gmra.mxu0 %v13359_v45  ;;  %v12037_v25 = vpop.f32.mrf.mxu1  ;;  %9046 = vmatprep.subr.bf16.mxu1 %v9905_v5  ;;  %v9908_v45 = vld [vmem:[#allocation11 + $0x440] ss:$28 sps:$4 sm:$0xff]  }
 0x3e6   :  { %8199 = vst [vmem:[#allocation14 + $0x318] sm:$0xff] %v10006_v26  ;;  %7648 = vmatprep.mubr.bf16.mxu0 %v13360_v33  ;;  %v12040_v11 = vpop.f32.mrf.mxu0  ;;  %9109 = vmatpush3.bf16.msra.mxu0 %v9916_v42  ;;  %v9913_v26 = vld [vmem:[#allocation11 + $0x5c8] ss:$28 sps:$4 sm:$0xff]   ;;  %v9922_v42 = vld [vmem:[#allocation11 + $0x7c0] ss:$28 sps:$4 sm:$0xff]  }
 0x3e7   :  { %v10008_v8 = vpop.eup %10007  ;;  %v12042_v24 = vpop.f32.mrf.mxu1  ;;  %9110 = vmatprep.subr.bf16.mxu0 %v9917_v46  ;;  %v9923_v46 = vld [vmem:[#allocation11 + $0x948] ss:$28 sps:$4 sm:$0xff]  }
 0x3e8   :  { %8205 = vst [vmem:[#allocation14 + $0x348] sm:$0xff] %v10008_v8  ;;  %v12044_v57 = vpop.f32.mrf.mxu0  ;;  %9047 = vmatpush3.bf16.msra.mxu1 %v9906_v28  ;;  %v13362_v28 = vld [vmem:[#allocation71_spill] sm:$0xff] }
 0x3e9   :  { %v10010_v62 = vpop.eup %10009  ;;  %v12046_v5 = vpop.f32.mrf.mxu1  ;;  %9048 = vmatprep.subr.bf16.mxu1 %v9907_v40 }
 0x3ea   :  { %8206 = vst [vmem:[#allocation14 + $0x350] sm:$0xff] %v10010_v62  ;;  %v12048_v33 = vpop.f32.mrf.mxu0  ;;  %9111 = vmatpush3.bf16.msra.mxu0 %v9918_v17  ;;  %v9919_v62 = vld [vmem:[#allocation11 + $0x590] ss:$28 sps:$4 sm:$0xff]  }
 0x3eb   :  { %v12050_v22 = vpop.f32.mrf.mxu1  ;;  %7540 = vmatmul.mubr.bf16.gmra.mxu1 %v13361_v13  ;;  %9112 = vmatprep.subr.bf16.mxu0 %v9921_v38  ;;  %v13364_v17 = vld [vmem:[#allocation40_spill] sm:$0xff] }
 0x3ec   :  { %v12053_v8 = vpop.f32.mrf.mxu0  ;;  %7549 = vmatprep.mubr.bf16.mxu1 %v13362_v28  ;;  %9049 = vmatpush3.bf16.msra.mxu1 %v9908_v45  ;;  %v9924_v13 = vld [vmem:[#allocation11 + $0x788] ss:$28 sps:$4 sm:$0xff]   ;;  %v9920_v45 = vld [vmem:[#allocation11 + $0x3d0] ss:$28 sps:$4 sm:$0xff]  }
 0x3ed   :  { %7649 = vmatmul.mubr.bf16.gmra.mxu0 %v13363_v14  ;;  %v12057_v40 = vpop.f32.mrf.mxu1  ;;  %9050 = vmatprep.subr.bf16.mxu1 %v9913_v26  ;;  %v9925_v14 = vld [vmem:[#allocation11 + $0x558] ss:$28 sps:$4 sm:$0xff]  }
 0x3ee   :  { %7656 = vmatprep.mubr.bf16.mxu0 %v13364_v17  ;;  %v12060_v37 = vpop.f32.mrf.mxu0  ;;  %9113 = vmatpush3.bf16.msra.mxu0 %v9922_v42  ;;  %v9928_v17 = vld [vmem:[#allocation11 + $0x750] ss:$28 sps:$4 sm:$0xff]  }
 0x3ef   :  { %v12062_v38 = vpop.f32.mrf.mxu1  ;;  %9114 = vmatprep.subr.bf16.mxu0 %v9923_v46  ;;  %v13366_v42 = vld [vmem:[#allocation72_spill] sm:$0xff] }
 0x3f0   :  { %v12064_v9 = vpop.f32.mrf.mxu0  ;;  %9051 = vmatpush3.bf16.msra.mxu1 %v9914_v56  ;;  %v9926_v56 = vld [vmem:[#allocation11 + $0x398] ss:$28 sps:$4 sm:$0xff]  }
 0x3f1   :  { %v12066_v28 = vpop.f32.mrf.mxu1  ;;  %9052 = vmatprep.subr.bf16.mxu1 %v9919_v62 }
 0x3f2   :  { %v12068_v26 = vpop.f32.mrf.mxu0  ;;  %9115 = vmatpush3.bf16.msra.mxu0 %v9924_v13  ;;  %v13370_v13 = vld [vmem:[#allocation42_spill] sm:$0xff] }
 0x3f3   :  { %13365 = vst [vmem:[#allocation107_spill] sm:$0xff] %v12068_v26  ;;  %v12070_v53 = vpop.f32.mrf.mxu1  ;;  %7550 = vmatmul.mubr.bf16.gmra.mxu1 %v13366_v42  ;;  %9116 = vmatprep.subr.bf16.mxu0 %v9927_v54  ;;  %v9930_v42 = vld [vmem:[#allocation11 + $0x718] ss:$28 sps:$4 sm:$0xff]  }
 0x3f4   :  { %v12073_v46 = vpop.f32.mrf.mxu0  ;;  %7559 = vmatprep.mubr.bf16.mxu1 %v13368_v36  ;;  %9053 = vmatpush3.bf16.msra.mxu1 %v9920_v45  ;;  %v13377_v36 = vld [vmem:[#allocation74_spill] sm:$0xff] }
 0x3f5   :  { %13367 = vst [vmem:[#allocation91_spill] sm:$0xff] %v12073_v46  ;;  %7657 = vmatmul.mubr.bf16.gmra.mxu0 %v13369_v15  ;;  %v12077_v62 = vpop.f32.mrf.mxu1  ;;  %9054 = vmatprep.subr.bf16.mxu1 %v9925_v14 }
 0x3f6   :  { %7664 = vmatprep.mubr.bf16.mxu0 %v13370_v13  ;;  %v12080_v26 = vpop.f32.mrf.mxu0  ;;  %9117 = vmatpush3.bf16.msra.mxu0 %v9928_v17  ;;  %v13379_v17 = vld [vmem:[#allocation75_spill] sm:$0xff] }
 0x3f7   :  { %13371 = vst [vmem:[#allocation109_spill] sm:$0xff] %v12080_v26  ;;  %v12082_v54 = vpop.f32.mrf.mxu1  ;;  %9118 = vmatprep.subr.bf16.mxu0 %v9929_v12  ;;  %v13380_v26 = vld [vmem:[#allocation28_spill] sm:$0xff] }
 0x3f8   :  { %13372 = vst [vmem:[#allocation92_spill] sm:$0xff] %v12082_v54  ;;  %v12084_v46 = vpop.f32.mrf.mxu0  ;;  %9055 = vmatpush3.bf16.msra.mxu1 %v9926_v56  ;;  %v9933_v54 = vld [vmem:[#allocation11 + $0xda8] ss:$28 sps:$4 sm:$0xff]  }
 0x3f9   :  { %13373 = vst [vmem:[#allocation111_spill] sm:$0xff] %v12084_v46  ;;  %v12086_v45 = vpop.f32.mrf.mxu1  ;;  %9168 = vmatprep.subr.bf16.mxu1 %v9931_v58  ;;  %v13382_v46 = vld [vmem:[#allocation27_spill] sm:$0xff] }
 0x3fa   :  { %13374 = vst [vmem:[#allocation121_spill] sm:$0xff] %v12086_v45  ;;  %v12088_v15 = vpop.f32.mrf.mxu0  ;;  %9119 = vmatpush3.bf16.msra.mxu0 %v9930_v42 }
 0x3fb   :  { %13375 = vst [vmem:[#allocation93_spill] sm:$0xff] %v12088_v15  ;;  %v12090_v14 = vpop.f32.mrf.mxu1  ;;  %7560 = vmatmul.mubr.bf16.gmra.mxu1 %v13377_v36 }
 0x3fc   :  { %13376 = vst [vmem:[#allocation112_spill] sm:$0xff] %v12090_v14  ;;  %v12093_v13 = vpop.f32.mrf.mxu0  ;;  %7569 = vmatprep.mubr.bf16.mxu1 %v13379_v17 }
 0x3fd   :  { %13378 = vst [vmem:[#allocation122_spill] sm:$0xff] %v12093_v13  ;;  %7665 = vmatmul.mubr.bf16.gmra.mxu0 %v13380_v26  ;;  %v12097_v12 = vpop.f32.mrf.mxu1  ;;  %v13389_v13 = vld [vmem:[#allocation76_spill] sm:$0xff]  ;;  %v13391_v26 = vld [vmem:[#allocation77_spill] sm:$0xff] }
 0x3fe   :  { %13381 = vst [vmem:[#allocation94_spill] sm:$0xff] %v12097_v12  ;;  %7672 = vmatprep.mubr.bf16.mxu0 %v13382_v46  ;;  %v12100_v56 = vpop.f32.mrf.mxu0  ;;  %v13392_v12 = vld [vmem:[#allocation25_spill] sm:$0xff] }
 0x3ff   :  { %13383 = vst [vmem:[#allocation113_spill] sm:$0xff] %v12100_v56  ;;  %v12102_v58 = vpop.f32.mrf.mxu1  ;;  %v13394_v56 = vld [vmem:[#allocation29_spill] sm:$0xff] }
 0x400   :  { %13384 = vst [vmem:[#allocation95_spill] sm:$0xff] %v12102_v58  ;;  %v12104_v15 = vpop.f32.mrf.mxu0 }
 0x401   :  { %13385 = vst [vmem:[#allocation114_spill] sm:$0xff] %v12104_v15  ;;  %v12106_v42 = vpop.f32.mrf.mxu1 }
 0x402   :  { %13386 = vst [vmem:[#allocation96_spill] sm:$0xff] %v12106_v42  ;;  %v12108_v14 = vpop.f32.mrf.mxu0 }
 0x403   :  { %13387 = vst [vmem:[#allocation115_spill] sm:$0xff] %v12108_v14  ;;  %v12110_v36 = vpop.f32.mrf.mxu1  ;;  %7570 = vmatmul.mubr.bf16.gmra.mxu1 %v13389_v13 }
 0x404   :  { %13388 = vst [vmem:[#allocation125_spill] sm:$0xff] %v12110_v36  ;;  %v12113_v17 = vpop.f32.mrf.mxu0  ;;  %7579 = vmatprep.mubr.bf16.mxu1 %v13391_v26 }
 0x405   :  { %13390 = vst [vmem:[#allocation97_spill] sm:$0xff] %v12113_v17  ;;  %7673 = vmatmul.mubr.bf16.gmra.mxu0 %v13392_v12  ;;  %v12117_v46 = vpop.f32.mrf.mxu1  ;;  %v13401_v17 = vld [vmem:[#allocation78_spill] sm:$0xff]  ;;  %v13403_v12 = vld [vmem:[#allocation79_spill] sm:$0xff] }
 0x406   :  { %13393 = vst [vmem:[#allocation116_spill] sm:$0xff] %v12117_v46  ;;  %7680 = vmatprep.mubr.bf16.mxu0 %v13394_v56  ;;  %v12120_v58 = vpop.f32.mrf.mxu0  ;;  %v13404_v46 = vld [vmem:[#allocation31_spill] sm:$0xff] }
 0x407   :  { %13395 = vst [vmem:[#allocation126_spill] sm:$0xff] %v12120_v58  ;;  %v12122_v15 = vpop.f32.mrf.mxu1  ;;  %v13406_v58 = vld [vmem:[#allocation32_spill] sm:$0xff] }
 0x408   :  { %13396 = vst [vmem:[#allocation98_spill] sm:$0xff] %v12122_v15  ;;  %v12124_v42 = vpop.f32.mrf.mxu0 }
 0x409   :  { %13397 = vst [vmem:[#allocation119_spill] sm:$0xff] %v12124_v42  ;;  %v12126_v14 = vpop.f32.mrf.mxu1 }
 0x40a   :  { %13398 = vst [vmem:[#allocation99_spill] sm:$0xff] %v12126_v14  ;;  %v12128_v36 = vpop.f32.mrf.mxu0  ;;  %v12144_v14 = vld [vmem:[#allocation13] sm:$0xff] }
 0x40b   :  { %13399 = vst [vmem:[#allocation120_spill] sm:$0xff] %v12128_v36  ;;  %v12130_v13 = vpop.f32.mrf.mxu1  ;;  %7580 = vmatmul.mubr.bf16.gmra.mxu1 %v13401_v17  ;;  %13409 = vst [vmem:[#allocation127_spill] sm:$0xff] %v12144_v14  ;;  %v13410_v36 = vld [vmem:[#allocation24_spill] sm:$0xff] }
 0x40c   :  { %13400 = vst [vmem:[#allocation100_spill] sm:$0xff] %v12130_v13  ;;  %v12133_v26 = vpop.f32.mrf.mxu0  ;;  %7589 = vmatprep.mubr.bf16.mxu1 %v13403_v12  ;;  %v12148_v13 = vrot.slane %v12144_v14, %v13410_v36  ;;  %v13413_v12 = vld [vmem:[#allocation22_spill] sm:$0xff] }
 0x40d   :  { %13402 = vst [vmem:[#allocation123_spill] sm:$0xff] %v12133_v26  ;;  %7681 = vmatmul.mubr.bf16.gmra.mxu0 %v13404_v46  ;;  %v12137_v56 = vpop.f32.mrf.mxu1  ;;  %v12156_v46 = vrot.slane %v12144_v14, %v13413_v12  ;;  %v13418_v36 = vld [vmem:[#allocation38_spill] sm:$0xff] }
 0x40e   :  { %13405 = vst [vmem:[#allocation101_spill] sm:$0xff] %v12137_v56  ;;  %7688 = vmatprep.mubr.bf16.mxu0 %v13406_v58  ;;  %v12140_v15 = vpop.f32.mrf.mxu0 }
 0x40f   :  { %13407 = vst [vmem:[#allocation124_spill] sm:$0xff] %v12140_v15  ;;  %v12142_v42 = vpop.f32.mrf.mxu1  ;;  %v13416_v15 = vld [vmem:[#allocation80_spill] sm:$0xff]  ;;  %v6733_v12 = vadd.f32 %v11806_v19, %v12156_v46  ;;  %v6737_v19 = vadd.f32 %v11819_v27, %v12156_v46 }
 0x410   :  { %13408 = vst [vmem:[#allocation102_spill] sm:$0xff] %v12142_v42  ;;  %v12150_v17 = vpop.f32.mrf.mxu0  ;;  %v6731_v42 = vadd.f32 %v11797_v61, %v12148_v13  ;;  %v6735_v61 = vadd.f32 %v11813_v29, %v12148_v13  ;;  %v6741_v29 = vadd.f32 %v11825_v6, %v12148_v13  ;;  %v9934_v27 = vld [vmem:[#allocation11 + $0xbe8] ss:$28 sps:$4 sm:$0xff]  }
 0x411   :  { %13411 = vst [vmem:[#allocation130_spill] sm:$0xff] %v12150_v17  ;;  %v12152_v26 = vpop.f32.mrf.mxu1  ;;  %v13419_v17 = vld [vmem:[#allocation45_spill] sm:$0xff] }
 0x412   :  { %13412 = vst [vmem:[#allocation104_spill] sm:$0xff] %v12152_v26  ;;  %v12158_v56 = vpop.f32.mrf.mxu0  ;;  %v6844_v14 = vadd.f32 %v12010_v48, %v6731_v42  ;;  %v6848_v42 = vadd.f32 %v12022_v2, %v6735_v61 }
 0x413   :  { %13414 = vst [vmem:[#allocation128_spill] sm:$0xff] %v12158_v56  ;;  %v12160_v58 = vpop.f32.mrf.mxu1  ;;  %7590 = vmatmul.mubr.bf16.gmra.mxu1 %v13416_v15  ;;  %v13421_v56 = vld [vmem:[#allocation51_spill] sm:$0xff] }
 0x414   :  { %13415 = vst [vmem:[#allocation131_spill] sm:$0xff] %v12160_v58  ;;  %v12165_v45 = vpop.f32.mrf.mxu0  ;;  %7729 = vmatprep.mubr.bf16.mxu1 %v13418_v36  ;;  %v6846_v36 = vadd.f32 %v12017_v20, %v6733_v12  ;;  %v6957_v48 = vadd.f32 %v12013_v59, %v6844_v14  ;;  %v6850_v12 = vadd.f32 %v12026_v4, %v6737_v19  ;;  %v9935_v14 = vld [vmem:[#allocation11 + $0xd70] ss:$28 sps:$4 sm:$0xff]  }
 0x415   :  { %13417 = vst [vmem:[#allocation106_spill] sm:$0xff] %v12165_v45  ;;  %7689 = vmatmul.mubr.bf16.gmra.mxu0 %v13419_v17  ;;  %v12169_v26 = vpop.f32.mrf.mxu1  ;;  %v9932_v17 = vld [vmem:[#allocation11 + $0xc20] ss:$28 sps:$4 sm:$0xff]   ;;  %v6743_v59 = vadd.f32 %v11834_v52, %v12156_v46 }
 0x416   :  { %13420 = vst [vmem:[#allocation129_spill] sm:$0xff] %v12169_v26  ;;  %7826 = vmatprep.mubr.bf16.mxu0 %v13421_v56  ;;  %v12175_v58 = vpop.f32.mrf.mxu0  ;;  %v6959_v20 = vadd.f32 %v12020_v55, %v6846_v36  ;;  %v6854_v55 = vadd.f32 %v12030_v44, %v6741_v29  ;;  %v6963_v61 = vadd.f32 %v12028_v60, %v6850_v12  ;;  %v9937_v36 = vld [vmem:[#allocation11 + $0xd38] ss:$28 sps:$4 sm:$0xff]  }
 0x417   :  { %13422 = vst [vmem:[#allocation108_spill] sm:$0xff] %v12175_v58  ;;  %v12177_v15 = vpop.f32.mrf.mxu1  ;;  %v6747_v44 = vadd.f32 %v11847_v35, %v12156_v46  ;;  %v6755_v12 = vadd.f32 %v11869_v0, %v12148_v13 }
 0x418   :  { %v12182_v45 = vpop.f32.mrf.mxu0 }
 0x419   :  { %13423 = vst [vmem:[#allocation132_spill] sm:$0xff] %v12182_v45  ;;  %v12184_v26 = vpop.f32.mrf.mxu1 }
 0x41a   :  { %v12190_v56 = vpop.f32.mrf.mxu0 }
 0x41b   :  { %v7069_v58 = vpop.f32.mrf.mxu1  ;;  %7730 = vmatmul.mubr.bf16.vlgmr.msra.gmra.mxu1 %v11179_v47  ;;  %v6961_v47 = vadd.f32 %v12024_v39, %v6848_v42  ;;  %v9936_v39 = vld [vmem:[#allocation11 + $0xbb0] ss:$28 sps:$4 sm:$0xff]   ;;  %v6860_v42 = vadd.f32 %v12046_v5, %v6747_v44 }
 0x41c   :  { %v7070_v45 = vadd.f32 %v7069_v58, %v6957_v48  ;;  %9169 = vmatpush3.bf16.msra.mxu1 %v9932_v17  ;;  %7737 = vmatprep.mubr.bf16.mxu1 %v11203_v50  ;;  %v6745_v50 = vadd.f32 %v11841_v51, %v12148_v13  ;;  %v6967_v51 = vadd.f32 %v12033_v41, %v6854_v55 }
 0x41d   :  { %v12200_v2 = vpop.f32.mrf.mxu0  ;;  %7827 = vmatmul.mubr.bf16.vlgmr.msra.gmra.mxu0 %v11345_v49  ;;  %v7071_v6 = vpop.f32.mrf.mxu1  ;;  %9170 = vmatprep.subr.bf16.mxu1 %v9933_v54  ;;  %v6856_v49 = vadd.f32 %v12037_v25, %v6743_v59  ;;  %v6751_v25 = vadd.f32 %v11853_v16, %v12148_v13  ;;  %v6753_v41 = vadd.f32 %v11862_v31, %v12156_v46 }
 0x41e   :  { %10011 = vtanh.f32 %v7070_v45  ;;  %7834 = vmatprep.mubr.bf16.mxu0 %v11352_v32  ;;  %v7072_v4 = vadd.f32 %v7071_v6, %v6959_v20  ;;  %v6858_v17 = vadd.f32 %v12042_v24, %v6745_v50  ;;  %v9938_v24 = vld [vmem:[#allocation11 + $0xb78] ss:$28 sps:$4 sm:$0xff]   ;;  %v6973_v59 = vadd.f32 %v12048_v33, %v6860_v42 }
 0x41f   :  { %v12208_v58 = vpop.f32.mrf.mxu0  ;;  %v7073_v52 = vpop.f32.mrf.mxu1  ;;  %v6969_v35 = vadd.f32 %v12040_v11, %v6856_v49  ;;  %v6864_v5 = vadd.f32 %v12050_v22, %v6751_v25  ;;  %v6757_v22 = vadd.f32 %v11875_v63, %v12156_v46  ;;  %v6868_v55 = vadd.f32 %v12062_v38, %v6755_v12  ;;  %v9942_v38 = vld [vmem:[#allocation11 + $0xb08] ss:$28 sps:$4 sm:$0xff]  }
 0x420   :  { %10013 = vtanh.f32 %v7072_v4  ;;  %v7074_v54 = vadd.f32 %v7073_v52, %v6961_v47  ;;  %9171 = vmatpush3.bf16.msra.mxu1 %v9934_v27  ;;  %v6971_v11 = vadd.f32 %v12044_v57, %v6858_v17  ;;  %v9940_v57 = vld [vmem:[#allocation11 + $0xb40] ss:$28 sps:$4 sm:$0xff]   ;;  %v9941_v47 = vld [vmem:[#allocation11 + $0xcc8] ss:$28 sps:$4 sm:$0xff]  }
 0x421   :  { %v12214_v45 = vpop.f32.mrf.mxu0  ;;  %v7075_v32 = vpop.f32.mrf.mxu1  ;;  %9172 = vmatprep.subr.bf16.mxu1 %v9935_v14  ;;  %v6977_v0 = vadd.f32 %v12053_v8, %v6864_v5  ;;  %v13429_v5 = vld [vmem:[#allocation83_spill] sm:$0xff] }
 0x422   :  { %10015 = vtanh.f32 %v7074_v54  ;;  %v7076_v60 = vadd.f32 %v7075_v32, %v6963_v61  ;;  %v6870_v61 = vadd.f32 %v12066_v28, %v6757_v22  ;;  %v6981_v28 = vadd.f32 %v12064_v9, %v6868_v55  ;;  %v13424_v32 = vld [vmem:[#allocation81_spill] sm:$0xff] }
 0x423   :  { %v12220_v19 = vpop.f32.mrf.mxu0  ;;  %v7079_v48 = vpop.f32.mrf.mxu1  ;;  %7738 = vmatmul.mubr.bf16.gmra.mxu1 %v11209_v18  ;;  %v9939_v18 = vld [vmem:[#allocation11 + $0xd00] ss:$28 sps:$4 sm:$0xff]  }
 0x424   :  { %10017 = vtanh.f32 %v7076_v60  ;;  %v7080_v29 = vadd.f32 %v7079_v48, %v6967_v51  ;;  %7745 = vmatprep.mubr.bf16.mxu1 %v11229_v7  ;;  %9173 = vmatpush3.bf16.msra.mxu1 %v9936_v39 }
 0x425   :  { %v12228_v20 = vpop.f32.mrf.mxu0  ;;  %7835 = vmatmul.mubr.bf16.gmra.mxu0 %v13259_v30  ;;  %v7081_v16 = vpop.f32.mrf.mxu1  ;;  %9174 = vmatprep.subr.bf16.mxu1 %v9937_v36  ;;  %v6866_v30 = vadd.f32 %v12057_v40, %v6753_v41  ;;  %v6761_v40 = vadd.f32 %v11881_v43, %v12148_v13  ;;  %v6763_v43 = vadd.f32 %v11890_v21, %v12156_v46 }
 0x426   :  { %10019 = vtanh.f32 %v7080_v29  ;;  %7842 = vmatprep.mubr.bf16.mxu0 %v13260_v3  ;;  %v7082_v7 = vadd.f32 %v7081_v16, %v6969_v35  ;;  %v6765_v21 = vadd.f32 %v13424_v32, %v12148_v13  ;;  %v9945_v29 = vld [vmem:[#allocation11 + $0xc58] ss:$28 sps:$4 sm:$0xff]   ;;  %v13428_v16 = vld [vmem:[#allocation92_spill] sm:$0xff] }
 0x427   :  { %v12236_v27 = vpop.f32.mrf.mxu0  ;;  %v7083_v31 = vpop.f32.mrf.mxu1  ;;  %v6979_v63 = vadd.f32 %v12060_v37, %v6866_v30  ;;  %v9943_v37 = vld [vmem:[#allocation11 + $0xc90] ss:$28 sps:$4 sm:$0xff]   ;;  %v6874_v39 = vadd.f32 %v12070_v53, %v6761_v40  ;;  %v6876_v60 = vadd.f32 %v12077_v62, %v6763_v43 }
 0x428   :  { %10021 = vtanh.f32 %v7082_v7  ;;  %v7084_v6 = vadd.f32 %v7083_v31, %v6971_v11  ;;  %9175 = vmatpush3.bf16.msra.mxu1 %v9938_v24  ;;  %v9944_v53 = vld [vmem:[#allocation11 + $0xad0] ss:$28 sps:$4 sm:$0xff]   ;;  %v13427_v24 = vld [vmem:[#allocation91_spill] sm:$0xff]  ;;  %v6771_v7 = vadd.f32 %v13429_v5, %v12148_v13 }
 0x429   :  { %v12242_v14 = vpop.f32.mrf.mxu0  ;;  %v7085_v3 = vpop.f32.mrf.mxu1  ;;  %9176 = vmatprep.subr.bf16.mxu1 %v9939_v18  ;;  %v6987_v41 = vadd.f32 %v13427_v24, %v6874_v39  ;;  %v6878_v18 = vadd.f32 %v13428_v16, %v6765_v21  ;;  %v13431_v30 = vld [vmem:[#allocation109_spill] sm:$0xff] }
 0x42a   :  { %10023 = vtanh.f32 %v7084_v6  ;;  %v7086_v33 = vadd.f32 %v7085_v3, %v6973_v59  ;;  %v13430_v59 = vld [vmem:[#allocation26_spill] sm:$0xff]  ;;  %v6989_v6 = vadd.f32 %v13431_v30, %v6876_v60  ;;  %v13438_v43 = vld [vmem:[#allocation57_spill] sm:$0xff]  ;;  %v13448_v30 = vld [vmem:[#allocation96_spill] sm:$0xff] }
 0x42b   :  { %v10012_v4 = vpop.eup %10011  ;;  %v12248_v50 = vpop.f32.mrf.mxu0  ;;  %7746 = vmatmul.mubr.bf16.gmra.mxu1 %v11235_v34  ;;  %v13440_v32 = vld [vmem:[#allocation93_spill] sm:$0xff] }
 0x42c   :  { %v7089_v52 = vpop.f32.mrf.mxu1  ;;  %8102 = vst [vmem:[#allocation14 + $0x10] sm:$0xff] %v10012_v4  ;;  %10025 = vtanh.f32 %v7086_v33  ;;  %7753 = vmatprep.mubr.bf16.mxu1 %v11257_v10  ;;  %9177 = vmatpush3.bf16.msra.mxu1 %v9940_v57  ;;  %v13432_v57 = vld [vmem:[#allocation121_spill] sm:$0xff]  ;;  %v13434_v33 = vld [vmem:[#allocation52_spill] sm:$0xff] }
 0x42d   :  { %v7090_v8 = vadd.f32 %v7089_v52, %v6977_v0  ;;  %v10014_v49 = vpop.eup %10013  ;;  %v12256_v54 = vpop.f32.mrf.mxu0  ;;  %7843 = vmatmul.mubr.bf16.gmra.mxu0 %v13265_v23  ;;  %9178 = vmatprep.subr.bf16.mxu1 %v9941_v47  ;;  %v13425_v23 = vld [vmem:[#allocation107_spill] sm:$0xff]  ;;  %v13433_v47 = vld [vmem:[#allocation30_spill] sm:$0xff]  ;;  %v6773_v4 = vadd.f32 %v13434_v33, %v12156_v46  ;;  %v13435_v52 = vld [vmem:[#allocation56_spill] sm:$0xff] }
 0x42e   :  { %v7091_v34 = vpop.f32.mrf.mxu1  ;;  %8103 = vst [vmem:[#allocation14 + $0x18] sm:$0xff] %v10014_v49  ;;  %7850 = vmatprep.mubr.bf16.mxu0 %v13266_v1  ;;  %v6983_v17 = vadd.f32 %v13425_v23, %v6870_v61  ;;  %v13426_v1 = vld [vmem:[#allocation82_spill] sm:$0xff]  ;;  %v13436_v61 = vld [vmem:[#allocation111_spill] sm:$0xff] }
 0x42f   :  { %10027 = vtanh.f32 %v7090_v8  ;;  %v7092_v10 = vadd.f32 %v7091_v34, %v6979_v63  ;;  %v10016_v44 = vpop.eup %10015  ;;  %v12264_v36 = vpop.f32.mrf.mxu0  ;;  %v6767_v48 = vadd.f32 %v13426_v1, %v12156_v46  ;;  %v9946_v0 = vld [vmem:[#allocation11 + $0xa98] ss:$28 sps:$4 sm:$0xff]   ;;  %v6991_v8 = vadd.f32 %v13436_v61, %v6878_v18 }
 0x430   :  { %v7093_v51 = vpop.f32.mrf.mxu1  ;;  %8109 = vst [vmem:[#allocation14 + $0x48] sm:$0xff] %v10016_v44  ;;  %9179 = vmatpush3.bf16.msra.mxu1 %v9942_v38  ;;  %v13437_v38 = vld [vmem:[#allocation112_spill] sm:$0xff]  ;;  %v13445_v18 = vld [vmem:[#allocation85_spill] sm:$0xff]  ;;  %v13451_v33 = vld [vmem:[#allocation58_spill] sm:$0xff] }
 0x431   :  { %10029 = vtanh.f32 %v7092_v10  ;;  %v7094_v9 = vadd.f32 %v7093_v51, %v6981_v28  ;;  %v10018_v25 = vpop.eup %10017  ;;  %v12270_v35 = vpop.f32.mrf.mxu0  ;;  %9180 = vmatprep.subr.bf16.mxu1 %v9943_v37  ;;  %v6880_v22 = vadd.f32 %v13432_v57, %v6767_v48  ;;  %v6884_v49 = vadd.f32 %v13437_v38, %v6771_v7  ;;  %v13439_v28 = vld [vmem:[#allocation53_spill] sm:$0xff]  ;;  %v13441_v51 = vld [vmem:[#allocation94_spill] sm:$0xff]  ;;  %v13446_v7 = vld [vmem:[#allocation43_spill] sm:$0xff] }
 0x432   :  { %v7095_v42 = vpop.f32.mrf.mxu1  ;;  %8110 = vst [vmem:[#allocation14 + $0x50] sm:$0xff] %v10018_v25  ;;  %v6775_v39 = vadd.f32 %v13439_v28, %v12148_v13  ;;  %v6886_v23 = vadd.f32 %v13441_v51, %v6773_v4  ;;  %v13443_v48 = vld [vmem:[#allocation122_spill] sm:$0xff]  ;;  %v13453_v61 = vld [vmem:[#allocation125_spill] sm:$0xff]  ;;  %v13454_v38 = vld [vmem:[#allocation59_spill] sm:$0xff] }
 0x433   :  { %10031 = vtanh.f32 %v7094_v9  ;;  %v7096_v62 = vadd.f32 %v7095_v42, %v6983_v17  ;;  %v10020_v11 = vpop.eup %10019  ;;  %v12276_v12 = vpop.f32.mrf.mxu0  ;;  %7754 = vmatmul.mubr.bf16.gmra.mxu1 %v13430_v59  ;;  %v6993_v21 = vadd.f32 %v13440_v32, %v6880_v22  ;;  %v13442_v9 = vld [vmem:[#allocation84_spill] sm:$0xff]  ;;  %v6997_v42 = vadd.f32 %v13443_v48, %v6884_v49  ;;  %v13459_v48 = vld [vmem:[#allocation97_spill] sm:$0xff] }
 0x434   :  { %v7099_v31 = vpop.f32.mrf.mxu1  ;;  %8116 = vst [vmem:[#allocation14 + $0x80] sm:$0xff] %v10020_v11  ;;  %7761 = vmatprep.mubr.bf16.mxu1 %v13433_v47  ;;  %9181 = vmatpush3.bf16.msra.mxu1 %v9944_v53  ;;  %v6777_v53 = vadd.f32 %v13442_v9, %v12156_v46  ;;  %v13449_v22 = vld [vmem:[#allocation44_spill] sm:$0xff]  ;;  %v13450_v47 = vld [vmem:[#allocation86_spill] sm:$0xff] }
 0x435   :  { %10033 = vtanh.f32 %v7096_v62  ;;  %v7100_v3 = vadd.f32 %v7099_v31, %v6987_v41  ;;  %v10022_v55 = vpop.eup %10021  ;;  %v12284_v40 = vpop.f32.mrf.mxu0  ;;  %7851 = vmatmul.mubr.bf16.gmra.mxu0 %v13435_v52  ;;  %9182 = vmatprep.subr.bf16.mxu1 %v9945_v29  ;;  %v13444_v29 = vld [vmem:[#allocation95_spill] sm:$0xff]  ;;  %v6781_v62 = vadd.f32 %v13445_v18, %v12148_v13  ;;  %v13447_v31 = vld [vmem:[#allocation113_spill] sm:$0xff]  ;;  %v13452_v52 = vld [vmem:[#allocation114_spill] sm:$0xff] }
 0x436   :  { %v7101_v63 = vpop.f32.mrf.mxu1  ;;  %8117 = vst [vmem:[#allocation14 + $0x88] sm:$0xff] %v10022_v55  ;;  %7858 = vmatprep.mubr.bf16.mxu0 %v13438_v43  ;;  %v6888_v24 = vadd.f32 %v13444_v29, %v6775_v39  ;;  %v6999_v59 = vadd.f32 %v13447_v31, %v6886_v23  ;;  %v13460_v29 = vld [vmem:[#allocation98_spill] sm:$0xff]  ;;  %v13461_v18 = vld [vmem:[#allocation55_spill] sm:$0xff] }
 0x437   :  { %10035 = vtanh.f32 %v7100_v3  ;;  %v7102_v34 = vadd.f32 %v7101_v63, %v6989_v6  ;;  %v10024_v37 = vpop.eup %10023  ;;  %v12292_v10 = vpop.f32.mrf.mxu0  ;;  %v6890_v6 = vadd.f32 %v13448_v30, %v6777_v53  ;;  %v13463_v31 = vld [vmem:[#allocation46_spill] sm:$0xff] }
 0x438   :  { %v7103_v44 = vpop.f32.mrf.mxu1  ;;  %8123 = vst [vmem:[#allocation14 + $0xb8] sm:$0xff] %v10024_v37  ;;  %9183 = vmatpush3.bf16.msra.mxu1 %v9946_v0  ;;  %v6783_v0 = vadd.f32 %v13450_v47, %v12156_v46  ;;  %v7001_v63 = vadd.f32 %v13452_v52, %v6888_v24  ;;  %v13469_v52 = vld [vmem:[#allocation60_spill] sm:$0xff] }
 0x439   :  { %10037 = vtanh.f32 %v7102_v34  ;;  %v7104_v17 = vadd.f32 %v7103_v44, %v6991_v8  ;;  %v10026_v60 = vpop.eup %10025  ;;  %v12298_v25 = vpop.f32.mrf.mxu0  ;;  %v6894_v8 = vadd.f32 %v13453_v61, %v6781_v62  ;;  %v13455_v34 = vld [vmem:[#allocation87_spill] sm:$0xff]  ;;  %v6791_v62 = vadd.f32 %v13461_v18, %v12148_v13  ;;  %v13480_v18 = vld [vmem:[#allocation102_spill] sm:$0xff] }
 0x43a   :  { %v7105_v1 = vpop.f32.mrf.mxu1  ;;  %8124 = vst [vmem:[#allocation14 + $0xc0] sm:$0xff] %v10026_v60  ;;  %v6785_v37 = vadd.f32 %v13455_v34, %v12148_v13  ;;  %v13456_v44 = vld [vmem:[#allocation115_spill] sm:$0xff]  ;;  %v13458_v60 = vld [vmem:[#allocation54_spill] sm:$0xff] }
 0x43b   :  { %10039 = vtanh.f32 %v7104_v17  ;;  %v7106_v41 = vadd.f32 %v7105_v1, %v6993_v21  ;;  %v12304_v11 = vpop.f32.mrf.mxu0  ;;  %7762 = vmatmul.mubr.bf16.gmra.mxu1 %v13446_v7  ;;  %v7003_v32 = vadd.f32 %v13456_v44, %v6890_v6  ;;  %v13457_v21 = vld [vmem:[#allocation116_spill] sm:$0xff]  ;;  %v6787_v9 = vadd.f32 %v13458_v60, %v12156_v46  ;;  %v13465_v6 = vld [vmem:[#allocation99_spill] sm:$0xff] }
 0x43c   :  { %v10028_v16 = vpop.eup %10027  ;;  %v7109_v5 = vpop.f32.mrf.mxu1  ;;  %7769 = vmatprep.mubr.bf16.mxu1 %v13449_v22  ;;  %v6896_v51 = vadd.f32 %v13457_v21, %v6783_v0  ;;  %v6898_v24 = vadd.f32 %v13460_v29, %v6785_v37  ;;  %v13467_v0 = vld [vmem:[#allocation88_spill] sm:$0xff]  ;;  %v13470_v61 = vld [vmem:[#allocation119_spill] sm:$0xff] }
 0x43d   :  { %8130 = vst [vmem:[#allocation14 + $0xf0] sm:$0xff] %v10028_v16  ;;  %10041 = vtanh.f32 %v7106_v41  ;;  %v7110_v57 = vadd.f32 %v7109_v5, %v6997_v42  ;;  %v12312_v55 = vpop.f32.mrf.mxu0  ;;  %7859 = vmatmul.mubr.bf16.gmra.mxu0 %v13451_v33  ;;  %v7007_v42 = vadd.f32 %v13459_v48, %v6894_v8  ;;  %v6793_v33 = vadd.f32 %v13467_v0, %v12156_v46  ;;  %v13477_v48 = vld [vmem:[#allocation117_spill] sm:$0xff]  ;;  %v13485_v0 = vld [vmem:[#allocation104_spill] sm:$0xff] }
 0x43e   :  { %v10030_v3 = vpop.eup %10029  ;;  %v7111_v4 = vpop.f32.mrf.mxu1  ;;  %7866 = vmatprep.mubr.bf16.mxu0 %v13454_v38  ;;  %v7011_v8 = vadd.f32 %v13470_v61, %v6898_v24  ;;  %v13471_v38 = vld [vmem:[#allocation100_spill] sm:$0xff] }
 0x43f   :  { %8131 = vst [vmem:[#allocation14 + $0xf8] sm:$0xff] %v10030_v3  ;;  %10043 = vtanh.f32 %v7110_v57  ;;  %v7112_v49 = vadd.f32 %v7111_v4, %v6999_v59  ;;  %v12320_v28 = vpop.f32.mrf.mxu0  ;;  %v13464_v59 = vld [vmem:[#allocation126_spill] sm:$0xff]  ;;  %v6900_v57 = vadd.f32 %v13465_v6, %v6787_v9  ;;  %v13466_v3 = vld [vmem:[#allocation47_spill] sm:$0xff] }
 0x440   :  { %v10032_v43 = vpop.eup %10031  ;;  %v7113_v39 = vpop.f32.mrf.mxu1  ;;  %v7009_v30 = vadd.f32 %v13464_v59, %v6896_v51  ;;  %v13475_v51 = vld [vmem:[#allocation120_spill] sm:$0xff]  ;;  %v13481_v59 = vld [vmem:[#allocation89_spill] sm:$0xff] }
 0x441   :  { %8137 = vst [vmem:[#allocation14 + $0x128] sm:$0xff] %v10032_v43  ;;  %10045 = vtanh.f32 %v7112_v49  ;;  %v7114_v23 = vadd.f32 %v7113_v39, %v7001_v63  ;;  %v12326_v53 = vpop.f32.mrf.mxu0  ;;  %v6904_v49 = vadd.f32 %v13471_v38, %v6791_v62  ;;  %v13472_v43 = vld [vmem:[#allocation61_spill] sm:$0xff]  ;;  %v13473_v39 = vld [vmem:[#allocation103_spill] sm:$0xff] }
 0x442   :  { %v10034_v17 = vpop.eup %10033  ;;  %v7115_v1 = vpop.f32.mrf.mxu1  ;;  %v6795_v44 = vadd.f32 %v13473_v39, %v12148_v13 }
 0x443   :  { %8138 = vst [vmem:[#allocation14 + $0x130] sm:$0xff] %v10034_v17  ;;  %10047 = vtanh.f32 %v7114_v23  ;;  %v7116_v41 = vadd.f32 %v7115_v1, %v7003_v32  ;;  %v12332_v5 = vpop.f32.mrf.mxu0  ;;  %7770 = vmatmul.mubr.bf16.gmra.mxu1 %v13463_v31  ;;  %v7013_v23 = vadd.f32 %v13475_v51, %v6900_v57  ;;  %v13476_v17 = vld [vmem:[#allocation101_spill] sm:$0xff]  ;;  %v13492_v51 = vld [vmem:[#allocation63_spill] sm:$0xff] }
 0x444   :  { %v10036_v16 = vpop.eup %10035  ;;  %13462 = vst [vmem:[#allocation110_spill] sm:$0xff] %v12332_v5  ;;  %v7119_v7 = vpop.f32.mrf.mxu1  ;;  %7777 = vmatprep.mubr.bf16.mxu1 %v13466_v3  ;;  %v6906_v60 = vadd.f32 %v13476_v17, %v6793_v33  ;;  %v6908_v62 = vadd.f32 %v13480_v18, %v6795_v44  ;;  %v13484_v3 = vld [vmem:[#allocation124_spill] sm:$0xff]  ;;  %v13491_v44 = vld [vmem:[#allocation131_spill] sm:$0xff] }
 0x445   :  { %8144 = vst [vmem:[#allocation14 + $0x160] sm:$0xff] %v10036_v16  ;;  %10049 = vtanh.f32 %v7116_v41  ;;  %v7120_v22 = vadd.f32 %v7119_v7, %v7007_v42  ;;  %v12340_v4 = vpop.f32.mrf.mxu0  ;;  %7867 = vmatmul.mubr.bf16.gmra.mxu0 %v13469_v52  ;;  %v6797_v42 = vadd.f32 %v13477_v48, %v12156_v46  ;;  %v13479_v41 = vld [vmem:[#allocation123_spill] sm:$0xff] }
 0x446   :  { %v10038_v47 = vpop.eup %10037  ;;  %13468 = vst [vmem:[#allocation23_spill] sm:$0xff] %v12340_v4  ;;  %v7121_v63 = vpop.f32.mrf.mxu1  ;;  %7874 = vmatprep.mubr.bf16.mxu0 %v13472_v43  ;;  %v7017_v16 = vadd.f32 %v13479_v41, %v6904_v49  ;;  %v13489_v43 = vld [vmem:[#allocation62_spill] sm:$0xff]  ;;  %v13496_v41 = vld [vmem:[#allocation129_spill] sm:$0xff]  ;;  %v13529_v4 = vld [vmem:[#allocation76_spill] sm:$0xff] }
 0x447   :  { %8145 = vst [vmem:[#allocation14 + $0x168] sm:$0xff] %v10038_v47  ;;  %10051 = vtanh.f32 %v7120_v22  ;;  %v7122_v34 = vadd.f32 %v7121_v63, %v7009_v30  ;;  %v12348_v32 = vpop.f32.mrf.mxu0  ;;  %v6801_v30 = vadd.f32 %v13481_v59, %v12148_v13  ;;  %v13483_v22 = vld [vmem:[#allocation48_spill] sm:$0xff]  ;;  %v7019_v47 = vadd.f32 %v13484_v3, %v6906_v60  ;;  %v13486_v63 = vld [vmem:[#allocation49_spill] sm:$0xff]  ;;  %v13493_v60 = vld [vmem:[#allocation118_spill] sm:$0xff] }
 0x448   :  { %v10040_v37 = vpop.eup %10039  ;;  %13474 = vst [vmem:[#allocation21_spill] sm:$0xff] %v12348_v32  ;;  %v7123_v21 = vpop.f32.mrf.mxu1  ;;  %v6910_v33 = vadd.f32 %v13485_v0, %v6797_v42  ;;  %v13495_v42 = vld [vmem:[#allocation128_spill] sm:$0xff] }
 0x449   :  { %8151 = vst [vmem:[#allocation14 + $0x198] sm:$0xff] %v10040_v37  ;;  %10053 = vtanh.f32 %v7122_v34  ;;  %v7124_v9 = vadd.f32 %v7123_v21, %v7011_v8  ;;  %v12354_v29 = vpop.f32.mrf.mxu0  ;;  %v13487_v8 = vld [vmem:[#allocation105_spill] sm:$0xff]  ;;  %v13490_v37 = vld [vmem:[#allocation130_spill] sm:$0xff]  ;;  %v6914_v21 = vadd.f32 %v13491_v44, %v6801_v30 }
 0x44a   :  { %v10042_v1 = vpop.eup %10041  ;;  %13478 = vst [vmem:[#allocation33_spill] sm:$0xff] %v12354_v29  ;;  %v7125_v24 = vpop.f32.mrf.mxu1  ;;  %v6803_v38 = vadd.f32 %v13487_v8, %v12156_v46  ;;  %v7021_v39 = vadd.f32 %v13490_v37, %v6908_v62 }
 0x44b   :  { %8152 = vst [vmem:[#allocation14 + $0x1a0] sm:$0xff] %v10042_v1  ;;  %10055 = vtanh.f32 %v7124_v9  ;;  %v7126_v7 = vadd.f32 %v7125_v24, %v7013_v23  ;;  %v12360_v6 = vpop.f32.mrf.mxu0  ;;  %7778 = vmatmul.mubr.bf16.gmra.mxu1 %v13483_v22  ;;  %v6805_v9 = vadd.f32 %v13493_v60, %v12148_v13  ;;  %v7023_v24 = vadd.f32 %v13495_v42, %v6910_v33 }
 0x44c   :  { %v10044_v31 = vpop.eup %10043  ;;  %13482 = vst [vmem:[#allocation133_spill] sm:$0xff] %v12360_v6  ;;  %v7129_v57 = vpop.f32.mrf.mxu1  ;;  %7785 = vmatprep.mubr.bf16.mxu1 %v13486_v63  ;;  %v13502_v63 = vld [vmem:[#allocation108_spill] sm:$0xff] }
 0x44d   :  { %8158 = vst [vmem:[#allocation14 + $0x1d0] sm:$0xff] %v10044_v31  ;;  %10057 = vtanh.f32 %v7126_v7  ;;  %v7130_v52 = vadd.f32 %v7129_v57, %v7017_v16  ;;  %v12368_v49 = vpop.f32.mrf.mxu0  ;;  %7875 = vmatmul.mubr.bf16.gmra.mxu0 %v13489_v43  ;;  %v6916_v16 = vadd.f32 %v13496_v41, %v6803_v38  ;;  %v13497_v7 = vld [vmem:[#allocation90_spill] sm:$0xff]  ;;  %v6918_v13 = vadd.f32 %v12177_v15, %v6805_v9  ;;  %v13503_v38 = vld [vmem:[#allocation65_spill] sm:$0xff] }
 0x44e   :  { %v10046_v61 = vpop.eup %10045  ;;  %13488 = vst [vmem:[#allocation34_spill] sm:$0xff] %v12368_v49  ;;  %v7131_v34 = vpop.f32.mrf.mxu1  ;;  %7882 = vmatprep.mubr.bf16.mxu0 %v13492_v51  ;;  %v6807_v31 = vadd.f32 %v13497_v7, %v12156_v46  ;;  %v13499_v57 = vld [vmem:[#allocation106_spill] sm:$0xff] }
 0x44f   :  { %8159 = vst [vmem:[#allocation14 + $0x1d8] sm:$0xff] %v10046_v61  ;;  %10059 = vtanh.f32 %v7130_v52  ;;  %v7132_v23 = vadd.f32 %v7131_v34, %v7019_v47  ;;  %v12376_v1 = vpop.f32.mrf.mxu0  ;;  %v7027_v22 = vadd.f32 %v13499_v57, %v6914_v21  ;;  %v13501_v52 = vld [vmem:[#allocation50_spill] sm:$0xff]  ;;  %v7029_v61 = vadd.f32 %v13502_v63, %v6916_v16  ;;  %v13505_v34 = vld [vmem:[#allocation64_spill] sm:$0xff] }
 0x450   :  { %v10048_v17 = vpop.eup %10047  ;;  %13494 = vst [vmem:[#allocation35_spill] sm:$0xff] %v12376_v1  ;;  %v7133_v48 = vpop.f32.mrf.mxu1  ;;  %v6920_v46 = vadd.f32 %v12184_v26, %v6807_v31 }
 0x451   :  { %8165 = vst [vmem:[#allocation14 + $0x208] sm:$0xff] %v10048_v17  ;;  %10061 = vtanh.f32 %v7132_v23  ;;  %v7134_v18 = vadd.f32 %v7133_v48, %v7021_v39  ;;  %v12382_v59 = vpop.f32.mrf.mxu0  ;;  %v13506_v39 = vld [vmem:[#allocation132_spill] sm:$0xff] }
 0x452   :  { %v10050_v62 = vpop.eup %10049  ;;  %13498 = vst [vmem:[#allocation36_spill] sm:$0xff] %v12382_v59  ;;  %v7135_v30 = vpop.f32.mrf.mxu1  ;;  %v7031_v44 = vadd.f32 %v13506_v39, %v6918_v13  ;;  %v7033_v17 = vadd.f32 %v12190_v56, %v6920_v46  ;;  %v13511_v56 = vld [vmem:[#allocation67_spill] sm:$0xff]  ;;  %v13512_v46 = vld [vmem:[#allocation68_spill] sm:$0xff] }
 0x453   :  { %8166 = vst [vmem:[#allocation14 + $0x210] sm:$0xff] %v10050_v62  ;;  %10063 = vtanh.f32 %v7134_v18  ;;  %v7136_v3 = vadd.f32 %v7135_v30, %v7023_v24  ;;  %v12386_v0 = vpop.f32.mrf.mxu0  ;;  %7786 = vmatmul.mubr.bf16.gmra.mxu1 %v13501_v52  ;;  %v13510_v62 = vld [vmem:[#allocation66_spill] sm:$0xff] }
 0x454   :  { %v10052_v47 = vpop.eup %10051  ;;  %13500 = vst [vmem:[#allocation37_spill] sm:$0xff] %v12386_v0  ;;  %v7139_v33 = vpop.f32.mrf.mxu1  ;;  %7923 = vmatprep.mubr.bf16.mxu1 %v13503_v38 }
 0x455   :  { %8172 = vst [vmem:[#allocation14 + $0x240] sm:$0xff] %v10052_v47  ;;  %10065 = vtanh.f32 %v7136_v3  ;;  %v7140_v8 = vadd.f32 %v7139_v33, %v7027_v22  ;;  %v12392_v15 = vpop.f32.mrf.mxu0  ;;  %7883 = vmatmul.mubr.bf16.gmra.mxu0 %v13505_v34 }
 0x456   :  { %v10054_v43 = vpop.eup %10053  ;;  %13504 = vst [vmem:[#allocation39_spill] sm:$0xff] %v12392_v15  ;;  %v7141_v37 = vpop.f32.mrf.mxu1  ;;  %v13519_v15 = vld [vmem:[#allocation74_spill] sm:$0xff] }
 0x457   :  { %8173 = vst [vmem:[#allocation14 + $0x248] sm:$0xff] %v10054_v43  ;;  %10067 = vtanh.f32 %v7140_v8  ;;  %v7142_v21 = vadd.f32 %v7141_v37, %v7029_v61  ;;  %v12396_v23 = vpop.f32.mrf.mxu0  ;;  %v13513_v8 = vld [vmem:[#allocation69_spill] sm:$0xff] }
 0x458   :  { %v10056_v51 = vpop.eup %10055  ;;  %13507 = vst [vmem:[#allocation40_spill] sm:$0xff] %v12396_v23  ;;  %v7143_v26 = vpop.f32.mrf.mxu1 }
 0x459   :  { %8179 = vst [vmem:[#allocation14 + $0x278] sm:$0xff] %v10056_v51  ;;  %10069 = vtanh.f32 %v7142_v21  ;;  %v7144_v60 = vadd.f32 %v7143_v26, %v7031_v44  ;;  %v12399_v48 = vpop.f32.mrf.mxu0 }
 0x45a   :  { %v10058_v9 = vpop.eup %10057  ;;  %13508 = vst [vmem:[#allocation41_spill] sm:$0xff] %v12399_v48  ;;  %v7145_v42 = vpop.f32.mrf.mxu1 }
 0x45b   :  { %8180 = vst [vmem:[#allocation14 + $0x280] sm:$0xff] %v10058_v9  ;;  %10071 = vtanh.f32 %v7144_v60  ;;  %v7146_v24 = vadd.f32 %v7145_v42, %v7033_v17  ;;  %v12401_v16 = vpop.f32.mrf.mxu0  ;;  %7924 = vmatmul.mubr.bf16.vlgmr.msra.gmra.mxu1 %v13510_v62  ;;  %v13514_v9 = vld [vmem:[#allocation70_spill] sm:$0xff]  ;;  %v13515_v42 = vld [vmem:[#allocation71_spill] sm:$0xff] }
 0x45c   :  { %v10060_v41 = vpop.eup %10059  ;;  %13509 = vst [vmem:[#allocation42_spill] sm:$0xff] %v12401_v16  ;;  %v12403_v18 = vpop.f32.mrf.mxu1  ;;  %7931 = vmatprep.mubr.bf16.mxu1 %v13511_v56 }
 0x45d   :  { %8186 = vst [vmem:[#allocation14 + $0x2b0] sm:$0xff] %v10060_v41  ;;  %10073 = vtanh.f32 %v7146_v24  ;;  %v12407_v31 = vpop.f32.mrf.mxu0 }
 0x45e   :  { %v10062_v7 = vpop.eup %10061  ;;  %v12409_v30 = vpop.f32.mrf.mxu1 }
 0x45f   :  { %8187 = vst [vmem:[#allocation14 + $0x2b8] sm:$0xff] %v10062_v7  ;;  %v12411_v22 = vpop.f32.mrf.mxu0 }
 0x460   :  { %v10064_v57 = vpop.eup %10063  ;;  %v12413_v13 = vpop.f32.mrf.mxu1 }
 0x461   :  { %8193 = vst [vmem:[#allocation14 + $0x2e8] sm:$0xff] %v10064_v57  ;;  %v12415_v47 = vpop.f32.mrf.mxu0 }
 0x462   :  { %v10066_v3 = vpop.eup %10065  ;;  %v12417_v33 = vpop.f32.mrf.mxu1 }
 0x463   :  { %8194 = vst [vmem:[#allocation14 + $0x2f0] sm:$0xff] %v10066_v3  ;;  %v12419_v63 = vpop.f32.mrf.mxu0  ;;  %7932 = vmatmul.mubr.bf16.gmra.mxu1 %v13512_v46  ;;  %v13516_v46 = vld [vmem:[#allocation72_spill] sm:$0xff] }
 0x464   :  { %v10068_v52 = vpop.eup %10067  ;;  %v12421_v61 = vpop.f32.mrf.mxu1  ;;  %7939 = vmatprep.mubr.bf16.mxu1 %v13513_v8  ;;  %v13517_v8 = vld [vmem:[#allocation73_spill] sm:$0xff] }
 0x465   :  { %8200 = vst [vmem:[#allocation14 + $0x320] sm:$0xff] %v10068_v52  ;;  %v12425_v43 = vpop.f32.mrf.mxu0 }
 0x466   :  { %v10070_v38 = vpop.eup %10069  ;;  %v12427_v34 = vpop.f32.mrf.mxu1 }
 0x467   :  { %8201 = vst [vmem:[#allocation14 + $0x328] sm:$0xff] %v10070_v38  ;;  %v12429_v39 = vpop.f32.mrf.mxu0 }
 0x468   :  { %v10072_v37 = vpop.eup %10071  ;;  %v12431_v44 = vpop.f32.mrf.mxu1 }
 0x469   :  { %8207 = vst [vmem:[#allocation14 + $0x358] sm:$0xff] %v10072_v37  ;;  %v12433_v51 = vpop.f32.mrf.mxu0 }
 0x46a   :  { %v10074_v21 = vpop.eup %10073  ;;  %v12435_v26 = vpop.f32.mrf.mxu1 }
 0x46b   :  { %8208 = vst [vmem:[#allocation14 + $0x360] sm:$0xff] %v10074_v21  ;;  %v12437_v17 = vpop.f32.mrf.mxu0  ;;  %7940 = vmatmul.mubr.bf16.gmra.mxu1 %v13514_v9 }
 0x46c   :  { %v12439_v60 = vpop.f32.mrf.mxu1  ;;  %7947 = vmatprep.mubr.bf16.mxu1 %v13515_v42 }
 0x46d   :  { %v12443_v24 = vpop.f32.mrf.mxu0 }
 0x46e   :  { %v12445_v41 = vpop.f32.mrf.mxu1 }
 0x46f   :  { %v12447_v62 = vpop.f32.mrf.mxu0 }
 0x470   :  { %v12449_v56 = vpop.f32.mrf.mxu1 }
 0x471   :  { %v12451_v7 = vpop.f32.mrf.mxu0 }
 0x472   :  { %v12453_v57 = vpop.f32.mrf.mxu1 }
 0x473   :  { %v12455_v3 = vpop.f32.mrf.mxu0  ;;  %7948 = vmatmul.mubr.bf16.gmra.mxu1 %v13516_v46  ;;  %v13520_v46 = vld [vmem:[#allocation75_spill] sm:$0xff] }
 0x474   :  { %v12457_v52 = vpop.f32.mrf.mxu1  ;;  %7955 = vmatprep.mubr.bf16.mxu1 %v13517_v8 }
 0x475   :  { %v12461_v38 = vpop.f32.mrf.mxu0 }
 0x476   :  { %v12463_v37 = vpop.f32.mrf.mxu1 }
 0x477   :  { %v12465_v21 = vpop.f32.mrf.mxu0 }
 0x478   :  { %v12467_v9 = vpop.f32.mrf.mxu1 }
 0x479   :  { %v12469_v42 = vpop.f32.mrf.mxu0 }
 0x47a   :  { %v12471_v16 = vpop.f32.mrf.mxu1 }
 0x47b   :  { %v12473_v48 = vpop.f32.mrf.mxu0  ;;  %7956 = vmatmul.mubr.bf16.gmra.mxu1 %v13519_v15  ;;  %v13530_v15 = vld [vmem:[#allocation77_spill] sm:$0xff] }
 0x47c   :  { %13518 = vst [vmem:[#allocation28_spill] sm:$0xff] %v12473_v48  ;;  %v12475_v23 = vpop.f32.mrf.mxu1  ;;  %7963 = vmatprep.mubr.bf16.mxu1 %v13520_v46 }
 0x47d   :  { %v12479_v8 = vpop.f32.mrf.mxu0 }
 0x47e   :  { %13521 = vst [vmem:[#allocation27_spill] sm:$0xff] %v12479_v8  ;;  %v12481_v0 = vpop.f32.mrf.mxu1 }
 0x47f   :  { %13522 = vst [vmem:[#allocation25_spill] sm:$0xff] %v12481_v0  ;;  %v12483_v59 = vpop.f32.mrf.mxu0  ;;  %v13547_v0 = vld [vmem:[#allocation127_spill] sm:$0xff] }
 0x480   :  { %13523 = vst [vmem:[#allocation29_spill] sm:$0xff] %v12483_v59  ;;  %v12485_v1 = vpop.f32.mrf.mxu1 }
 0x481   :  { %13524 = vst [vmem:[#allocation31_spill] sm:$0xff] %v12485_v1  ;;  %v12487_v49 = vpop.f32.mrf.mxu0 }
 0x482   :  { %13525 = vst [vmem:[#allocation32_spill] sm:$0xff] %v12487_v49  ;;  %v12489_v6 = vpop.f32.mrf.mxu1 }
 0x483   :  { %13526 = vst [vmem:[#allocation24_spill] sm:$0xff] %v12489_v6  ;;  %v12491_v29 = vpop.f32.mrf.mxu0  ;;  %7964 = vmatmul.mubr.bf16.gmra.mxu1 %v13529_v4  ;;  %v13540_v4 = vld [vmem:[#allocation79_spill] sm:$0xff] }
 0x484   :  { %13527 = vst [vmem:[#allocation22_spill] sm:$0xff] %v12491_v29  ;;  %v12493_v32 = vpop.f32.mrf.mxu1  ;;  %7971 = vmatprep.mubr.bf16.mxu1 %v13530_v15 }
 0x485   :  { %13528 = vst [vmem:[#allocation38_spill] sm:$0xff] %v12493_v32  ;;  %v12497_v46 = vpop.f32.mrf.mxu0  ;;  %v13539_v32 = vld [vmem:[#allocation78_spill] sm:$0xff] }
 0x486   :  { %13531 = vst [vmem:[#allocation45_spill] sm:$0xff] %v12497_v46  ;;  %v12499_v8 = vpop.f32.mrf.mxu1 }
 0x487   :  { %13532 = vst [vmem:[#allocation51_spill] sm:$0xff] %v12499_v8  ;;  %v12501_v5 = vpop.f32.mrf.mxu0 }
 0x488   :  { %13533 = vst [vmem:[#allocation81_spill] sm:$0xff] %v12501_v5  ;;  %v12503_v59 = vpop.f32.mrf.mxu1 }
 0x489   :  { %13534 = vst [vmem:[#allocation107_spill] sm:$0xff] %v12503_v59  ;;  %v12505_v1 = vpop.f32.mrf.mxu0  ;;  %v13545_v59 = vld [vmem:[#allocation20_spill] sm:$0xff] }
 0x48a   :  { %13535 = vst [vmem:[#allocation82_spill] sm:$0xff] %v12505_v1  ;;  %v12507_v49 = vpop.f32.mrf.mxu1  ;;  %v13546_v1 = vsub.s32 4, %v13545_v59 }
 0x48b   :  { %13536 = vst [vmem:[#allocation91_spill] sm:$0xff] %v12507_v49  ;;  %v12509_v6 = vpop.f32.mrf.mxu0  ;;  %7972 = vmatmul.mubr.bf16.gmra.mxu1 %v13539_v32  ;;  %v13549_v32 = vsub.s32 5, %v13545_v59 }
 0x48c   :  { %13537 = vst [vmem:[#allocation92_spill] sm:$0xff] %v12509_v6  ;;  %v12511_v29 = vpop.f32.mrf.mxu1  ;;  %7979 = vmatprep.mubr.bf16.mxu1 %v13540_v4  ;;  %v12526_v49 = vrot.slane %v13547_v0, %v13546_v1 }
 0x48d   :  { %13538 = vst [vmem:[#allocation83_spill] sm:$0xff] %v12511_v29  ;;  %v12515_v15 = vpop.f32.mrf.mxu0  ;;  %v12535_v4 = vrot.slane %v13547_v0, %v13549_v32 }
 0x48e   :  { %13541 = vst [vmem:[#allocation26_spill] sm:$0xff] %v12515_v15  ;;  %v12517_v46 = vpop.f32.mrf.mxu1 }
 0x48f   :  { %13542 = vst [vmem:[#allocation109_spill] sm:$0xff] %v12517_v46  ;;  %v12519_v8 = vpop.f32.mrf.mxu0 }
 0x490   :  { %13543 = vst [vmem:[#allocation121_spill] sm:$0xff] %v12519_v8  ;;  %v12521_v5 = vpop.f32.mrf.mxu1  ;;  %v13552_v8 = vld [vmem:[#allocation80_spill] sm:$0xff] }
 0x491   :  { %13544 = vst [vmem:[#allocation30_spill] sm:$0xff] %v12521_v5  ;;  %v12528_v6 = vpop.f32.mrf.mxu0  ;;  %v7183_v5 = vadd.f32 %v12200_v2, %v12526_v49 }
 0x492   :  { %13548 = vst [vmem:[#allocation52_spill] sm:$0xff] %v12528_v6  ;;  %v12530_v29 = vpop.f32.mrf.mxu1  ;;  %v7185_v6 = vadd.f32 %v12208_v58, %v12535_v4 }
 0x493   :  { %v12537_v15 = vpop.f32.mrf.mxu0  ;;  %7980 = vmatmul.mubr.bf16.gmra.mxu1 %v13552_v8  ;;  %v7296_v59 = vadd.f32 %v12403_v18, %v7183_v5 }
 0x494   :  { %13550 = vst [vmem:[#allocation56_spill] sm:$0xff] %v12537_v15  ;;  %v12539_v46 = vpop.f32.mrf.mxu1  ;;  %v7187_v15 = vadd.f32 %v12214_v45, %v12526_v49  ;;  %v7298_v8 = vadd.f32 %v12409_v30, %v7185_v6 }
 0x495   :  { %13551 = vst [vmem:[#allocation111_spill] sm:$0xff] %v12539_v46  ;;  %v12544_v1 = vpop.f32.mrf.mxu0  ;;  %v7409_v58 = vadd.f32 %v12407_v31, %v7296_v59 }
 0x496   :  { %13553 = vst [vmem:[#allocation112_spill] sm:$0xff] %v12544_v1  ;;  %v12546_v48 = vpop.f32.mrf.mxu1  ;;  %v7189_v1 = vadd.f32 %v12220_v19, %v12535_v4  ;;  %v7300_v5 = vadd.f32 %v12413_v13, %v7187_v15  ;;  %v7411_v45 = vadd.f32 %v12411_v22, %v7298_v8 }
 0x497   :  { %v12551_v0 = vpop.f32.mrf.mxu0 }
 0x498   :  { %13554 = vst [vmem:[#allocation57_spill] sm:$0xff] %v12551_v0  ;;  %v12553_v32 = vpop.f32.mrf.mxu1  ;;  %v7302_v6 = vadd.f32 %v12417_v33, %v7189_v1  ;;  %v7413_v59 = vadd.f32 %v12415_v47, %v7300_v5 }
 0x499   :  { %13555 = vst [vmem:[#allocation53_spill] sm:$0xff] %v12553_v32  ;;  %v12558_v46 = vpop.f32.mrf.mxu0  ;;  %v7193_v32 = vadd.f32 %v12228_v20, %v12526_v49  ;;  %v7197_v20 = vadd.f32 %v12242_v14, %v12526_v49 }
 0x49a   :  { %13556 = vst [vmem:[#allocation93_spill] sm:$0xff] %v12558_v46  ;;  %v12560_v2 = vpop.f32.mrf.mxu1  ;;  %v7195_v46 = vadd.f32 %v12236_v27, %v12535_v4  ;;  %v7415_v33 = vadd.f32 %v12419_v63, %v7302_v6 }
 0x49b   :  { %13557 = vst [vmem:[#allocation94_spill] sm:$0xff] %v12560_v2  ;;  %v12566_v18 = vpop.f32.mrf.mxu0  ;;  %v7306_v31 = vadd.f32 %v12421_v61, %v7193_v32  ;;  %v7310_v8 = vadd.f32 %v12431_v44, %v7197_v20 }
 0x49c   :  { %v7521_v0 = vpop.f32.mrf.mxu1  ;;  %v7308_v1 = vadd.f32 %v12427_v34, %v7195_v46 }
 0x49d   :  { %v7522_v30 = vadd.f32 %v7521_v0, %v7409_v58  ;;  %v12574_v2 = vpop.f32.mrf.mxu0  ;;  %v7199_v0 = vadd.f32 %v12248_v50, %v12535_v4  ;;  %v7419_v32 = vadd.f32 %v12425_v43, %v7306_v31  ;;  %v7203_v58 = vadd.f32 %v12256_v54, %v12526_v49 }
 0x49e   :  { %v7523_v19 = vpop.f32.mrf.mxu1  ;;  %v7421_v46 = vadd.f32 %v12429_v39, %v7308_v1  ;;  %v7423_v6 = vadd.f32 %v12433_v51, %v7310_v8 }
 0x49f   :  { %10075 = vtanh.f32 %v7522_v30  ;;  %v7524_v13 = vadd.f32 %v7523_v19, %v7411_v45  ;;  %v12580_v15 = vpop.f32.mrf.mxu0  ;;  %v7312_v5 = vadd.f32 %v12435_v26, %v7199_v0  ;;  %v7205_v45 = vadd.f32 %v12264_v36, %v12535_v4 }
 0x4a0   :  { %v7525_v22 = vpop.f32.mrf.mxu1  ;;  %v7316_v30 = vadd.f32 %v12439_v60, %v7203_v58  ;;  %v7207_v19 = vadd.f32 %v12270_v35, %v12526_v49 }
 0x4a1   :  { %10077 = vtanh.f32 %v7524_v13  ;;  %v7526_v27 = vadd.f32 %v7525_v22, %v7413_v59  ;;  %v12586_v47 = vpop.f32.mrf.mxu0  ;;  %v7425_v59 = vadd.f32 %v12437_v17, %v7312_v5  ;;  %v7318_v31 = vadd.f32 %v12445_v41, %v7205_v45 }
 0x4a2   :  { %v7527_v61 = vpop.f32.mrf.mxu1  ;;  %v7209_v13 = vadd.f32 %v12276_v12, %v12535_v4  ;;  %v7429_v20 = vadd.f32 %v12443_v24, %v7316_v30  ;;  %v7320_v22 = vadd.f32 %v12449_v56, %v7207_v19  ;;  %v7213_v17 = vadd.f32 %v12284_v40, %v12526_v49 }
 0x4a3   :  { %10079 = vtanh.f32 %v7526_v27  ;;  %v7528_v14 = vadd.f32 %v7527_v61, %v7415_v33  ;;  %v12592_v63 = vpop.f32.mrf.mxu0  ;;  %v7431_v27 = vadd.f32 %v12447_v62, %v7318_v31  ;;  %v7215_v24 = vadd.f32 %v12292_v10, %v12535_v4 }
 0x4a4   :  { %v7531_v34 = vpop.f32.mrf.mxu1  ;;  %v7322_v12 = vadd.f32 %v12453_v57, %v7209_v13  ;;  %v7433_v8 = vadd.f32 %v12451_v7, %v7320_v22  ;;  %v7326_v40 = vadd.f32 %v12457_v52, %v7213_v17  ;;  %v7217_v57 = vadd.f32 %v12298_v25, %v12526_v49  ;;  %v13558_v22 = vld [vmem:[#allocation28_spill] sm:$0xff] }
 0x4a5   :  { %10081 = vtanh.f32 %v7528_v14  ;;  %v7532_v50 = vadd.f32 %v7531_v34, %v7419_v32  ;;  %v12598_v43 = vpop.f32.mrf.mxu0  ;;  %v7328_v10 = vadd.f32 %v12463_v37, %v7215_v24  ;;  %v7219_v52 = vadd.f32 %v12304_v11, %v12535_v4 }
 0x4a6   :  { %v7533_v44 = vpop.f32.mrf.mxu1  ;;  %v7330_v25 = vadd.f32 %v12467_v9, %v7217_v57  ;;  %v7223_v37 = vadd.f32 %v12312_v55, %v12526_v49  ;;  %v7225_v9 = vadd.f32 %v12320_v28, %v12535_v4  ;;  %v13559_v28 = vld [vmem:[#allocation25_spill] sm:$0xff] }
 0x4a7   :  { %10083 = vtanh.f32 %v7532_v50  ;;  %v7534_v54 = vadd.f32 %v7533_v44, %v7421_v46  ;;  %v12604_v39 = vpop.f32.mrf.mxu0  ;;  %v7435_v46 = vadd.f32 %v12455_v3, %v7322_v12  ;;  %v7439_v44 = vadd.f32 %v12461_v38, %v7326_v40  ;;  %v13563_v40 = vld [vmem:[#allocation23_spill] sm:$0xff] }
 0x4a8   :  { %v7535_v26 = vpop.f32.mrf.mxu1  ;;  %v7441_v19 = vadd.f32 %v12465_v21, %v7328_v10  ;;  %v7332_v11 = vadd.f32 %v12471_v16, %v7219_v52  ;;  %v7336_v55 = vadd.f32 %v12475_v23, %v7223_v37  ;;  %v7227_v16 = vadd.f32 %v12326_v53, %v12526_v49  ;;  %v13560_v23 = vld [vmem:[#allocation110_spill] sm:$0xff]  ;;  %v13562_v53 = vld [vmem:[#allocation31_spill] sm:$0xff]  ;;  %v13565_v10 = vld [vmem:[#allocation24_spill] sm:$0xff] }
 0x4a9   :  { %10085 = vtanh.f32 %v7534_v54  ;;  %v7536_v36 = vadd.f32 %v7535_v26, %v7423_v6  ;;  %v12610_v51 = vpop.f32.mrf.mxu0 }
 0x4aa   :  { %v7537_v60 = vpop.f32.mrf.mxu1  ;;  %v7340_v24 = vadd.f32 %v13562_v53, %v7227_v16  ;;  %v13575_v53 = vld [vmem:[#allocation34_spill] sm:$0xff] }
 0x4ab   :  { %10087 = vtanh.f32 %v7536_v36  ;;  %v7538_v35 = vadd.f32 %v7537_v60, %v7425_v59  ;;  %v12616_v1 = vpop.f32.mrf.mxu0  ;;  %v7443_v36 = vadd.f32 %v12469_v42, %v7330_v25 }
 0x4ac   :  { %v10076_v33 = vpop.eup %10075  ;;  %v7541_v41 = vpop.f32.mrf.mxu1 }
 0x4ad   :  { %8104 = vst [vmem:[#allocation14 + $0x20] sm:$0xff] %v10076_v33  ;;  %10089 = vtanh.f32 %v7538_v35  ;;  %v7542_v0 = vadd.f32 %v7541_v41, %v7429_v20  ;;  %v12622_v56 = vpop.f32.mrf.mxu0  ;;  %v7445_v35 = vadd.f32 %v13558_v22, %v7332_v11  ;;  %v7338_v33 = vadd.f32 %v13559_v28, %v7225_v9 }
 0x4ae   :  { %v10078_v61 = vpop.eup %10077  ;;  %v7543_v32 = vpop.f32.mrf.mxu1  ;;  %v7229_v41 = vadd.f32 %v13560_v23, %v12535_v4 }
 0x4af   :  { %8105 = vst [vmem:[#allocation14 + $0x28] sm:$0xff] %v10078_v61  ;;  %10091 = vtanh.f32 %v7542_v0  ;;  %v7544_v14 = vadd.f32 %v7543_v32, %v7431_v27  ;;  %v12628_v58 = vpop.f32.mrf.mxu0  ;;  %v13561_v0 = vld [vmem:[#allocation27_spill] sm:$0xff] }
 0x4b0   :  { %v10080_v62 = vpop.eup %10079  ;;  %v7545_v34 = vpop.f32.mrf.mxu1  ;;  %v7449_v61 = vadd.f32 %v13561_v0, %v7336_v55  ;;  %v13570_v55 = vld [vmem:[#allocation22_spill] sm:$0xff] }
 0x4b1   :  { %8111 = vst [vmem:[#allocation14 + $0x58] sm:$0xff] %v10080_v62  ;;  %10093 = vtanh.f32 %v7544_v14  ;;  %v7546_v5 = vadd.f32 %v7545_v34, %v7433_v8  ;;  %v12634_v50 = vpop.f32.mrf.mxu0  ;;  %v7233_v14 = vadd.f32 %v13563_v40, %v12526_v49  ;;  %v13564_v34 = vld [vmem:[#allocation29_spill] sm:$0xff] }
 0x4b2   :  { %v10082_v7 = vpop.eup %10081  ;;  %v7547_v45 = vpop.f32.mrf.mxu1  ;;  %v13577_v40 = vld [vmem:[#allocation81_spill] sm:$0xff] }
 0x4b3   :  { %8112 = vst [vmem:[#allocation14 + $0x60] sm:$0xff] %v10082_v7  ;;  %10095 = vtanh.f32 %v7546_v5  ;;  %v7548_v6 = vadd.f32 %v7547_v45, %v7435_v46  ;;  %v12640_v30 = vpop.f32.mrf.mxu0  ;;  %v7451_v46 = vadd.f32 %v13564_v34, %v7338_v33  ;;  %v7342_v5 = vadd.f32 %v13565_v10, %v7229_v41  ;;  %v13566_v45 = vld [vmem:[#allocation21_spill] sm:$0xff]  ;;  %v13574_v41 = vld [vmem:[#allocation107_spill] sm:$0xff] }
 0x4b4   :  { %v10084_v3 = vpop.eup %10083  ;;  %v7551_v54 = vpop.f32.mrf.mxu1 }
 0x4b5   :  { %8118 = vst [vmem:[#allocation14 + $0x90] sm:$0xff] %v10084_v3  ;;  %10097 = vtanh.f32 %v7548_v6  ;;  %v7552_v26 = vadd.f32 %v7551_v54, %v7439_v44  ;;  %v12646_v59 = vpop.f32.mrf.mxu0  ;;  %v7235_v44 = vadd.f32 %v13566_v45, %v12535_v4  ;;  %v13567_v3 = vld [vmem:[#allocation32_spill] sm:$0xff]  ;;  %v13568_v54 = vld [vmem:[#allocation38_spill] sm:$0xff] }
 0x4b6   :  { %v10086_v38 = vpop.eup %10085  ;;  %v7553_v31 = vpop.f32.mrf.mxu1  ;;  %v7453_v37 = vadd.f32 %v13567_v3, %v7340_v24  ;;  %v7243_v24 = vadd.f32 %v13575_v53, %v12526_v49  ;;  %v13582_v3 = vld [vmem:[#allocation83_spill] sm:$0xff] }
 0x4b7   :  { %8119 = vst [vmem:[#allocation14 + $0x98] sm:$0xff] %v10086_v38  ;;  %10099 = vtanh.f32 %v7552_v26  ;;  %v7554_v13 = vadd.f32 %v7553_v31, %v7441_v19  ;;  %v12652_v60 = vpop.f32.mrf.mxu0  ;;  %v7346_v19 = vadd.f32 %v13568_v54, %v7233_v14  ;;  %v13569_v38 = vld [vmem:[#allocation33_spill] sm:$0xff]  ;;  %v13591_v53 = vld [vmem:[#allocation39_spill] sm:$0xff] }
 0x4b8   :  { %v10088_v21 = vpop.eup %10087  ;;  %v7555_v20 = vpop.f32.mrf.mxu1  ;;  %v7237_v9 = vadd.f32 %v13569_v38, %v12526_v49 }
 0x4b9   :  { %8125 = vst [vmem:[#allocation14 + $0xc8] sm:$0xff] %v10088_v21  ;;  %10101 = vtanh.f32 %v7554_v13  ;;  %v7556_v17 = vadd.f32 %v7555_v20, %v7443_v36  ;;  %v12658_v27 = vpop.f32.mrf.mxu0  ;;  %v7455_v13 = vadd.f32 %v13570_v55, %v7342_v5  ;;  %v13571_v21 = vld [vmem:[#allocation51_spill] sm:$0xff] }
 0x4ba   :  { %v10090_v42 = vpop.eup %10089  ;;  %v7557_v12 = vpop.f32.mrf.mxu1  ;;  %v7348_v16 = vadd.f32 %v13571_v21, %v7235_v44  ;;  %v13579_v5 = vld [vmem:[#allocation35_spill] sm:$0xff]  ;;  %v13581_v44 = vld [vmem:[#allocation82_spill] sm:$0xff] }
 0x4bb   :  { %8126 = vst [vmem:[#allocation14 + $0xd0] sm:$0xff] %v10090_v42  ;;  %10103 = vtanh.f32 %v7556_v17  ;;  %v7558_v32 = vadd.f32 %v7557_v12, %v7445_v35  ;;  %v12664_v62 = vpop.f32.mrf.mxu0  ;;  %v13572_v35 = vld [vmem:[#allocation133_spill] sm:$0xff]  ;;  %v7350_v12 = vadd.f32 %v13574_v41, %v7237_v9  ;;  %v13590_v41 = vld [vmem:[#allocation30_spill] sm:$0xff] }
 0x4bc   :  { %v10092_v8 = vpop.eup %10091  ;;  %v7561_v57 = vpop.f32.mrf.mxu1  ;;  %v7239_v28 = vadd.f32 %v13572_v35, %v12535_v4  ;;  %v13573_v42 = vld [vmem:[#allocation45_spill] sm:$0xff]  ;;  %v7461_v14 = vadd.f32 %v13577_v40, %v7348_v16 }
 0x4bd   :  { %8132 = vst [vmem:[#allocation14 + $0x100] sm:$0xff] %v10092_v8  ;;  %10105 = vtanh.f32 %v7558_v32  ;;  %v7562_v7 = vadd.f32 %v7561_v57, %v7449_v61  ;;  %v12670_v25 = vpop.f32.mrf.mxu0  ;;  %v7459_v23 = vadd.f32 %v13573_v42, %v7346_v19  ;;  %v13578_v57 = vld [vmem:[#allocation91_spill] sm:$0xff]  ;;  %v13589_v42 = vld [vmem:[#allocation26_spill] sm:$0xff] }
 0x4be   :  { %v10094_v52 = vpop.eup %10093  ;;  %v7563_v6 = vpop.f32.mrf.mxu1  ;;  %v7352_v34 = vadd.f32 %v13578_v57, %v7239_v28 }
 0x4bf   :  { %8133 = vst [vmem:[#allocation14 + $0x108] sm:$0xff] %v10094_v52  ;;  %10107 = vtanh.f32 %v7562_v7  ;;  %v7564_v11 = vadd.f32 %v7563_v6, %v7451_v46  ;;  %v12676_v31 = vpop.f32.mrf.mxu0  ;;  %v7245_v7 = vadd.f32 %v13579_v5, %v12535_v4  ;;  %v7463_v6 = vadd.f32 %v13581_v44, %v7350_v12  ;;  %v13594_v5 = vld [vmem:[#allocation40_spill] sm:$0xff] }
 0x4c0   :  { %v10096_v26 = vpop.eup %10095  ;;  %v7565_v36 = vpop.f32.mrf.mxu1 }
 0x4c1   :  { %8139 = vst [vmem:[#allocation14 + $0x138] sm:$0xff] %v10096_v26  ;;  %10109 = vtanh.f32 %v7564_v11  ;;  %v7566_v20 = vadd.f32 %v7565_v36, %v7453_v37  ;;  %v12682_v33 = vpop.f32.mrf.mxu0  ;;  %v7356_v37 = vadd.f32 %v13582_v3, %v7243_v24  ;;  %v13583_v11 = vld [vmem:[#allocation36_spill] sm:$0xff]  ;;  %v7253_v24 = vadd.f32 %v13591_v53, %v12526_v49 }
 0x4c2   :  { %v10098_v22 = vpop.eup %10097  ;;  %v7567_v17 = vpop.f32.mrf.mxu1  ;;  %v7247_v26 = vadd.f32 %v13583_v11, %v12526_v49  ;;  %v13585_v36 = vld [vmem:[#allocation92_spill] sm:$0xff] }
 0x4c3   :  { %8140 = vst [vmem:[#allocation14 + $0x140] sm:$0xff] %v10098_v22  ;;  %10111 = vtanh.f32 %v7566_v20  ;;  %v7568_v0 = vadd.f32 %v7567_v17, %v7455_v13  ;;  %v12688_v32 = vpop.f32.mrf.mxu0  ;;  %v7465_v55 = vadd.f32 %v13585_v36, %v7352_v34  ;;  %v13586_v13 = vld [vmem:[#allocation109_spill] sm:$0xff] }
 0x4c4   :  { %v10100_v61 = vpop.eup %10099  ;;  %13576 = vst [vmem:[#allocation84_spill] sm:$0xff] %v12688_v32  ;;  %v7571_v8 = vpop.f32.mrf.mxu1  ;;  %v7358_v21 = vadd.f32 %v13586_v13, %v7245_v7  ;;  %v13587_v22 = vld [vmem:[#allocation37_spill] sm:$0xff]  ;;  %v7360_v12 = vadd.f32 %v13590_v41, %v7247_v26  ;;  %v7255_v7 = vadd.f32 %v13594_v5, %v12535_v4 }
 0x4c5   :  { %8146 = vst [vmem:[#allocation14 + $0x170] sm:$0xff] %v10100_v61  ;;  %10113 = vtanh.f32 %v7568_v0  ;;  %v7572_v46 = vadd.f32 %v7571_v8, %v7459_v23  ;;  %v12694_v52 = vpop.f32.mrf.mxu0  ;;  %v7249_v35 = vadd.f32 %v13587_v22, %v12535_v4  ;;  %v7469_v23 = vadd.f32 %v13589_v42, %v7356_v37  ;;  %v13597_v37 = vld [vmem:[#allocation111_spill] sm:$0xff]  ;;  %v13601_v22 = vld [vmem:[#allocation42_spill] sm:$0xff]  ;;  %v13609_v5 = vld [vmem:[#allocation93_spill] sm:$0xff] }
 0x4c6   :  { %v10102_v10 = vpop.eup %10101  ;;  %13580 = vst [vmem:[#allocation122_spill] sm:$0xff] %v12694_v52  ;;  %v7573_v45 = vpop.f32.mrf.mxu1 }
 0x4c7   :  { %8147 = vst [vmem:[#allocation14 + $0x178] sm:$0xff] %v10102_v10  ;;  %10115 = vtanh.f32 %v7572_v46  ;;  %v7574_v54 = vadd.f32 %v7573_v45, %v7461_v14  ;;  %v12700_v38 = vpop.f32.mrf.mxu0  ;;  %v13593_v14 = vld [vmem:[#allocation121_spill] sm:$0xff]  ;;  %v7362_v34 = vadd.f32 %v12530_v29, %v7249_v35  ;;  %v7259_v35 = vadd.f32 %v13601_v22, %v12535_v4 }
 0x4c8   :  { %v10104_v19 = vpop.eup %10103  ;;  %13584 = vst [vmem:[#allocation95_spill] sm:$0xff] %v12700_v38  ;;  %v7575_v9 = vpop.f32.mrf.mxu1  ;;  %v7471_v57 = vadd.f32 %v13593_v14, %v7358_v21  ;;  %v13598_v29 = vld [vmem:[#allocation41_spill] sm:$0xff]  ;;  %v7368_v21 = vadd.f32 %v12546_v48, %v7255_v7  ;;  %v13607_v14 = vld [vmem:[#allocation94_spill] sm:$0xff] }
 0x4c9   :  { %8153 = vst [vmem:[#allocation14 + $0x1a8] sm:$0xff] %v10104_v19  ;;  %10117 = vtanh.f32 %v7574_v54  ;;  %v7576_v16 = vadd.f32 %v7575_v9, %v7463_v6  ;;  %v12706_v28 = vpop.f32.mrf.mxu0  ;;  %v13596_v6 = vld [vmem:[#allocation52_spill] sm:$0xff]  ;;  %v7366_v54 = vadd.f32 %v13597_v37, %v7253_v24  ;;  %v7257_v26 = vadd.f32 %v13598_v29, %v12526_v49  ;;  %v13604_v49 = vld [vmem:[#allocation53_spill] sm:$0xff] }
 0x4ca   :  { %v10106_v20 = vpop.eup %10105  ;;  %13588 = vst [vmem:[#allocation85_spill] sm:$0xff] %v12706_v28  ;;  %v7577_v17 = vpop.f32.mrf.mxu1  ;;  %v7473_v3 = vadd.f32 %v13596_v6, %v7360_v12  ;;  %v13606_v24 = vld [vmem:[#allocation57_spill] sm:$0xff] }
 0x4cb   :  { %8154 = vst [vmem:[#allocation14 + $0x1b0] sm:$0xff] %v10106_v20  ;;  %10119 = vtanh.f32 %v7576_v16  ;;  %v7578_v0 = vadd.f32 %v7577_v17, %v7465_v55  ;;  %v12712_v8 = vpop.f32.mrf.mxu0  ;;  %v13600_v55 = vld [vmem:[#allocation56_spill] sm:$0xff]  ;;  %v7370_v12 = vadd.f32 %v13604_v49, %v7257_v26 }
 0x4cc   :  { %v10108_v61 = vpop.eup %10107  ;;  %13592 = vst [vmem:[#allocation43_spill] sm:$0xff] %v12712_v8  ;;  %v7581_v40 = vpop.f32.mrf.mxu1  ;;  %v7475_v13 = vadd.f32 %v13600_v55, %v7362_v34 }
 0x4cd   :  { %8160 = vst [vmem:[#allocation14 + $0x1e0] sm:$0xff] %v10108_v61  ;;  %10121 = vtanh.f32 %v7578_v0  ;;  %v7582_v46 = vadd.f32 %v7581_v40, %v7469_v23  ;;  %v12718_v45 = vpop.f32.mrf.mxu0  ;;  %v13603_v23 = vld [vmem:[#allocation112_spill] sm:$0xff]  ;;  %v7481_v40 = vadd.f32 %v13606_v24, %v7368_v21  ;;  %v7483_v7 = vadd.f32 %v13609_v5, %v7370_v12 }
 0x4ce   :  { %v10110_v10 = vpop.eup %10109  ;;  %13595 = vst [vmem:[#allocation113_spill] sm:$0xff] %v12718_v45  ;;  %v7583_v44 = vpop.f32.mrf.mxu1  ;;  %v7479_v41 = vadd.f32 %v13603_v23, %v7366_v54 }
 0x4cf   :  { %8161 = vst [vmem:[#allocation14 + $0x1e8] sm:$0xff] %v10110_v10  ;;  %10123 = vtanh.f32 %v7582_v46  ;;  %v7584_v19 = vadd.f32 %v7583_v44, %v7471_v57  ;;  %v12724_v9 = vpop.f32.mrf.mxu0  ;;  %v7372_v57 = vadd.f32 %v13607_v14, %v7259_v35 }
 0x4d0   :  { %v10112_v11 = vpop.eup %10111  ;;  %13599 = vst [vmem:[#allocation96_spill] sm:$0xff] %v12724_v9  ;;  %v7585_v36 = vpop.f32.mrf.mxu1 }
 0x4d1   :  { %8167 = vst [vmem:[#allocation14 + $0x218] sm:$0xff] %v10112_v11  ;;  %10125 = vtanh.f32 %v7584_v19  ;;  %v7586_v16 = vadd.f32 %v7585_v36, %v7473_v3  ;;  %v12730_v17 = vpop.f32.mrf.mxu0  ;;  %v7485_v54 = vadd.f32 %v12566_v18, %v7372_v57 }
 0x4d2   :  { %v10114_v20 = vpop.eup %10113  ;;  %13602 = vst [vmem:[#allocation44_spill] sm:$0xff] %v12730_v17  ;;  %v7587_v42 = vpop.f32.mrf.mxu1 }
 0x4d3   :  { %8168 = vst [vmem:[#allocation14 + $0x220] sm:$0xff] %v10114_v20  ;;  %10127 = vtanh.f32 %v7586_v16  ;;  %v7588_v0 = vadd.f32 %v7587_v42, %v7475_v13  ;;  %v12734_v53 = vpop.f32.mrf.mxu0 }
 0x4d4   :  { %v10116_v61 = vpop.eup %10115  ;;  %13605 = vst [vmem:[#allocation86_spill] sm:$0xff] %v12734_v53  ;;  %v7591_v48 = vpop.f32.mrf.mxu1 }
 0x4d5   :  { %8174 = vst [vmem:[#allocation14 + $0x250] sm:$0xff] %v10116_v61  ;;  %10129 = vtanh.f32 %v7588_v0  ;;  %v7592_v4 = vadd.f32 %v7591_v48, %v7479_v41  ;;  %v12738_v46 = vpop.f32.mrf.mxu0 }
 0x4d6   :  { %v10118_v34 = vpop.eup %10117  ;;  %13608 = vst [vmem:[#allocation58_spill] sm:$0xff] %v12738_v46  ;;  %v7593_v10 = vpop.f32.mrf.mxu1 }
 0x4d7   :  { %8175 = vst [vmem:[#allocation14 + $0x258] sm:$0xff] %v10118_v34  ;;  %10131 = vtanh.f32 %v7592_v4  ;;  %v7594_v44 = vadd.f32 %v7593_v10, %v7481_v40  ;;  %v12741_v3 = vpop.f32.mrf.mxu0 }
 0x4d8   :  { %v10120_v6 = vpop.eup %10119  ;;  %13610 = vst [vmem:[#allocation114_spill] sm:$0xff] %v12741_v3  ;;  %v7595_v37 = vpop.f32.mrf.mxu1 }
 0x4d9   :  { %8181 = vst [vmem:[#allocation14 + $0x288] sm:$0xff] %v10120_v6  ;;  %10133 = vtanh.f32 %v7594_v44  ;;  %v7596_v19 = vadd.f32 %v7595_v37, %v7483_v7  ;;  %v12744_v29 = vpop.f32.mrf.mxu0 }
 0x4da   :  { %v10122_v11 = vpop.eup %10121  ;;  %13611 = vst [vmem:[#allocation125_spill] sm:$0xff] %v12744_v29  ;;  %v7597_v26 = vpop.f32.mrf.mxu1 }
 0x4db   :  { %8182 = vst [vmem:[#allocation14 + $0x290] sm:$0xff] %v10122_v11  ;;  %10135 = vtanh.f32 %v7596_v19  ;;  %v7598_v36 = vadd.f32 %v7597_v26, %v7485_v54  ;;  %v12746_v13 = vpop.f32.mrf.mxu0 }
 0x4dc   :  { %v10124_v55 = vpop.eup %10123  ;;  %13612 = vst [vmem:[#allocation59_spill] sm:$0xff] %v12746_v13  ;;  %v12748_v21 = vpop.f32.mrf.mxu1 }
 0x4dd   :  { %8188 = vst [vmem:[#allocation14 + $0x2c0] sm:$0xff] %v10124_v55  ;;  %10137 = vtanh.f32 %v7598_v36  ;;  %v12750_v20 = vpop.f32.mrf.mxu0 }
 0x4de   :  { %v10126_v16 = vpop.eup %10125  ;;  %v9057_v18 = vpop.f32.mrf.mxu1 }
 0x4df   :  { %8189 = vst [vmem:[#allocation14 + $0x2c8] sm:$0xff] %v10126_v16  ;;  %v12752_v35 = vpop.f32.mrf.mxu0 }
 0x4e0   :  { %v10128_v22 = vpop.eup %10127  ;;  %v9059_v42 = vpop.f32.mrf.mxu1 }
 0x4e1   :  { %8195 = vst [vmem:[#allocation14 + $0x2f8] sm:$0xff] %v10128_v22  ;;  %v12754_v41 = vpop.f32.mrf.mxu0 }
 0x4e2   :  { %v10130_v23 = vpop.eup %10129  ;;  %v9060_v49 = vpop.f32.mrf.mxu1 }
 0x4e3   :  { %8196 = vst [vmem:[#allocation14 + $0x300] sm:$0xff] %v10130_v23  ;;  %v12758_v48 = vpop.f32.mrf.mxu0  ;;  %v9061_v32 = vadd.f32 %v9060_v49, %v9059_v42 }
 0x4e4   :  { %v10132_v12 = vpop.eup %10131  ;;  %v12756_v0 = vpop.f32.mrf.mxu1 }
 0x4e5   :  { %8202 = vst [vmem:[#allocation14 + $0x330] sm:$0xff] %v10132_v12  ;;  %v12762_v4 = vpop.f32.mrf.mxu0 }
 0x4e6   :  { %v10134_v61 = vpop.eup %10133  ;;  %v9063_v24 = vpop.f32.mrf.mxu1 }
 0x4e7   :  { %8203 = vst [vmem:[#allocation14 + $0x338] sm:$0xff] %v10134_v61  ;;  %v12768_v5 = vpop.f32.mrf.mxu0  ;;  %v9064_v42 = vadd.f32 %v9063_v24, %v12756_v0 }
 0x4e8   :  { %v10136_v40 = vpop.eup %10135  ;;  %v12760_v14 = vpop.f32.mrf.mxu1 }
 0x4e9   :  { %8209 = vst [vmem:[#allocation14 + $0x368] sm:$0xff] %v10136_v40  ;;  %v12774_v6 = vpop.f32.mrf.mxu0 }
 0x4ea   :  { %v10138_v57 = vpop.eup %10137  ;;  %v12764_v34 = vpop.f32.mrf.mxu1 }
 0x4eb   :  { %8210 = vst [vmem:[#allocation14 + $0x370] sm:$0xff] %v10138_v57  ;;  %v12780_v19 = vpop.f32.mrf.mxu0 }
 0x4ec   :  { %v12766_v10 = vpop.f32.mrf.mxu1 }
 0x4ed   :  { %v12786_v36 = vpop.f32.mrf.mxu0 }
 0x4ee   :  { %v12770_v7 = vpop.f32.mrf.mxu1 }
 0x4ef   :  { %v12792_v22 = vpop.f32.mrf.mxu0 }
 0x4f0   :  { %v12772_v44 = vpop.f32.mrf.mxu1 }
 0x4f1   :  { %v12798_v61 = vpop.f32.mrf.mxu0 }
 0x4f2   :  { %v12776_v37 = vpop.f32.mrf.mxu1 }
 0x4f3   :  { %v12804_v13 = vpop.f32.mrf.mxu0 }
 0x4f4   :  { %v12778_v54 = vpop.f32.mrf.mxu1 }
 0x4f5   :  { %v12810_v46 = vpop.f32.mrf.mxu0 }
 0x4f6   :  { %v12782_v11 = vpop.f32.mrf.mxu1 }
 0x4f7   :  { %v12816_v9 = vpop.f32.mrf.mxu0 }
 0x4f8   :  { %v12784_v26 = vpop.f32.mrf.mxu1 }
 0x4f9   :  { %v12822_v28 = vpop.f32.mrf.mxu0 }
 0x4fa   :  { %v12788_v55 = vpop.f32.mrf.mxu1 }
 0x4fc   :  { %v12790_v16 = vpop.f32.mrf.mxu1 }
 0x4fe   :  { %v12794_v23 = vpop.f32.mrf.mxu1 }
 0x500   :  { %v12796_v12 = vpop.f32.mrf.mxu1 }
 0x501   :  { %13613 = vst [vmem:[#allocation87_spill] sm:$0xff] %v12796_v12 }
 0x502   :  { %v12800_v40 = vpop.f32.mrf.mxu1 }
 0x503   :  { %13614 = vst [vmem:[#allocation115_spill] sm:$0xff] %v12800_v40 }
 0x504   :  { %v12802_v57 = vpop.f32.mrf.mxu1 }
 0x505   :  { %13615 = vst [vmem:[#allocation116_spill] sm:$0xff] %v12802_v57 }
 0x506   :  { %v12806_v29 = vpop.f32.mrf.mxu1 }
 0x507   :  { %13616 = vst [vmem:[#allocation54_spill] sm:$0xff] %v12806_v29  ;;  %v10173_v29 = vld [vmem:[#allocation13] sm:$0xff] }
 0x508   :  { %v12808_v3 = vpop.f32.mrf.mxu1 }
 0x509   :  { %13617 = vst [vmem:[#allocation97_spill] sm:$0xff] %v12808_v3  ;;  %v13624_v3 = vld [vmem:[#allocation20_spill] sm:$0xff] }
 0x50a   :  { %v12812_v53 = vpop.f32.mrf.mxu1  ;;  %v13625_v52 = vsub.s32 6, %v13624_v3 }
 0x50b   :  { %13618 = vst [vmem:[#allocation98_spill] sm:$0xff] %v12812_v53  ;;  %v12834_v53 = vpop.f32.mrf.mxu0 }
 0x50c   :  { %v12814_v17 = vpop.f32.mrf.mxu1  ;;  %v12830_v40 = vrot.slane %v10173_v29, %v13625_v52 }
 0x50d   :  { %13619 = vst [vmem:[#allocation55_spill] sm:$0xff] %v12814_v17  ;;  %v8994_v17 = vadd.f32 %v12580_v15, %v12574_v2  ;;  %v12844_v3 = vpop.f32.mrf.mxu0 }
 0x50e   :  { %v12818_v45 = vpop.f32.mrf.mxu1 }
 0x50f   :  { %13620 = vst [vmem:[#allocation46_spill] sm:$0xff] %v12818_v45  ;;  %v8997_v45 = vadd.f32 %v12592_v63, %v12586_v47  ;;  %v12853_v63 = vpop.f32.mrf.mxu0 }
 0x510   :  { %v12820_v8 = vpop.f32.mrf.mxu1 }
 0x511   :  { %13621 = vst [vmem:[#allocation126_spill] sm:$0xff] %v12820_v8  ;;  %v9058_v8 = vadd.f32 %v9057_v18, %v12748_v21  ;;  %v7638_v2 = vadd.f32 %v8997_v45, %v12830_v40  ;;  %v9122_v21 = vadd.f32 %v12752_v35, %v12750_v20  ;;  %v12861_v20 = vpop.f32.mrf.mxu0 }
 0x512   :  { %v12824_v57 = vpop.f32.mrf.mxu1 }
 0x513   :  { %13622 = vst [vmem:[#allocation99_spill] sm:$0xff] %v12824_v57  ;;  %v7735_v47 = vadd.f32 %v9061_v32, %v7638_v2  ;;  %v12872_v2 = vpop.f32.mrf.mxu0 }
 0x514   :  { %v12826_v38 = vpop.f32.mrf.mxu1 }
 0x515   :  { %13623 = vst [vmem:[#allocation47_spill] sm:$0xff] %v12826_v38  ;;  %v7635_v38 = vadd.f32 %v8994_v17, %v12830_v40 }
 0x516   :  { %v12836_v12 = vpop.f32.mrf.mxu1 }
 0x517   :  { %13626 = vst [vmem:[#allocation88_spill] sm:$0xff] %v12836_v12  ;;  %v7732_v29 = vadd.f32 %v9058_v8, %v7635_v38  ;;  %v9000_v12 = vadd.f32 %v12604_v39, %v12598_v43  ;;  %v9125_v38 = vadd.f32 %v12758_v48, %v12754_v41  ;;  %v9003_v43 = vadd.f32 %v12616_v1, %v12610_v51 }
 0x518   :  { %v12841_v57 = vpop.f32.mrf.mxu1  ;;  %v9006_v41 = vadd.f32 %v12628_v58, %v12622_v56  ;;  %v9128_v51 = vadd.f32 %v12768_v5, %v12762_v4  ;;  %v9009_v58 = vadd.f32 %v12640_v30, %v12634_v50  ;;  %v9131_v4 = vadd.f32 %v12780_v19, %v12774_v6 }
 0x519   :  { %v7829_v17 = vadd.f32 %v9122_v21, %v7732_v29  ;;  %v7643_v45 = vadd.f32 %v9000_v12, %v12830_v40  ;;  %v9067_v29 = vadd.f32 %v12764_v34, %v12760_v14  ;;  %v7646_v24 = vadd.f32 %v9003_v43, %v12830_v40 }
 0x51a   :  { %v12846_v52 = vpop.f32.mrf.mxu1  ;;  %v9070_v12 = vadd.f32 %v12770_v7, %v12766_v10  ;;  %v7654_v50 = vadd.f32 %v9009_v58, %v12830_v40  ;;  %v9012_v30 = vadd.f32 %v12652_v60, %v12646_v59  ;;  %v9137_v59 = vadd.f32 %v12804_v13, %v12798_v61 }
 0x51b   :  { %13627 = vst [vmem:[#allocation60_spill] sm:$0xff] %v12846_v52  ;;  %v7832_v52 = vadd.f32 %v9125_v38, %v7735_v47  ;;  %v7740_v35 = vadd.f32 %v9064_v42, %v7643_v45  ;;  %v7743_v14 = vadd.f32 %v9067_v29, %v7646_v24  ;;  %v7651_v47 = vadd.f32 %v9006_v41, %v12830_v40 }
 0x51c   :  { %v9184_v15 = vpop.f32.mrf.mxu1  ;;  %v9018_v24 = vadd.f32 %v12676_v31, %v12670_v25  ;;  %v9140_v13 = vadd.f32 %v12816_v9, %v12810_v46  ;;  %v13628_v9 = vld [vmem:[#allocation84_spill] sm:$0xff] }
 0x51d   :  { %v7837_v21 = vadd.f32 %v9128_v51, %v7740_v35  ;;  %v7840_v7 = vadd.f32 %v9131_v4, %v7743_v14  ;;  %v9079_v35 = vadd.f32 %v12788_v55, %v12784_v26  ;;  %v9143_v14 = vadd.f32 %v12834_v53, %v12822_v28  ;;  %v13631_v28 = vld [vmem:[#allocation122_spill] sm:$0xff]  ;;  %v13632_v53 = vld [vmem:[#allocation95_spill] sm:$0xff] }
 0x51e   :  { %v9185_v18 = vpop.f32.mrf.mxu1  ;;  %v7667_v31 = vadd.f32 %v9018_v24, %v12830_v40  ;;  %v9021_v46 = vadd.f32 %v13628_v9, %v12682_v33  ;;  %v9146_v33 = vadd.f32 %v12853_v63, %v12844_v3  ;;  %v9149_v3 = vadd.f32 %v12872_v2, %v12861_v20  ;;  %v13640_v20 = vld [vmem:[#allocation96_spill] sm:$0xff] }
 0x51f   :  { %v9186_v49 = vadd.f32 %v9185_v18, %v9184_v15  ;;  %v12879_v18 = vpop.f32.mrf.mxu0 }
 0x520   :  { %v9187_v8 = vpop.f32.mrf.mxu1 }
 0x521   :  { %v7926_v39 = vadd.f32 %v9186_v49, %v7829_v17  ;;  %v9073_v17 = vadd.f32 %v12776_v37, %v12772_v44  ;;  %v9134_v49 = vadd.f32 %v12792_v22, %v12786_v36  ;;  %v9076_v44 = vadd.f32 %v12782_v11, %v12778_v54 }
 0x522   :  { %v9188_v32 = vpop.f32.mrf.mxu1  ;;  %v9015_v36 = vadd.f32 %v12664_v62, %v12658_v27 }
 0x523   :  { %10139 = vtanh.f32 %v7926_v39  ;;  %v9189_v0 = vadd.f32 %v9188_v32, %v9187_v8  ;;  %v12888_v8 = vpop.f32.mrf.mxu0  ;;  %v7751_v43 = vadd.f32 %v9073_v17, %v7654_v50  ;;  %v7659_v32 = vadd.f32 %v9012_v30, %v12830_v40  ;;  %v13634_v50 = vld [vmem:[#allocation54_spill] sm:$0xff] }
 0x524   :  { %v9190_v48 = vpop.f32.mrf.mxu1  ;;  %v7662_v27 = vadd.f32 %v9015_v36, %v12830_v40  ;;  %v9152_v24 = vadd.f32 %v12888_v8, %v12879_v18  ;;  %v13644_v18 = vld [vmem:[#allocation86_spill] sm:$0xff] }
 0x525   :  { %v7929_v1 = vadd.f32 %v9189_v0, %v7832_v52  ;;  %v7748_v52 = vadd.f32 %v9070_v12, %v7651_v47  ;;  %v12899_v29 = vpop.f32.mrf.mxu0  ;;  %v7848_v11 = vadd.f32 %v9137_v59, %v7751_v43  ;;  %v7756_v0 = vadd.f32 %v9076_v44, %v7659_v32  ;;  %v13636_v32 = vld [vmem:[#allocation43_spill] sm:$0xff] }
 0x526   :  { %v9191_v15 = vpop.f32.mrf.mxu1  ;;  %v7759_v26 = vadd.f32 %v9079_v35, %v7662_v27  ;;  %v9082_v12 = vadd.f32 %v12794_v23, %v12790_v16  ;;  %v13629_v16 = vld [vmem:[#allocation87_spill] sm:$0xff] }
 0x527   :  { %10141 = vtanh.f32 %v7929_v1  ;;  %v9192_v34 = vadd.f32 %v9191_v15, %v9190_v48  ;;  %v7845_v19 = vadd.f32 %v9134_v49, %v7748_v52  ;;  %v12906_v55 = vpop.f32.mrf.mxu0  ;;  %v7853_v1 = vadd.f32 %v9140_v13, %v7756_v0  ;;  %v13630_v23 = vld [vmem:[#allocation115_spill] sm:$0xff]  ;;  %v13637_v0 = vld [vmem:[#allocation97_spill] sm:$0xff] }
 0x528   :  { %v9193_v56 = vpop.f32.mrf.mxu1  ;;  %v7856_v47 = vadd.f32 %v9143_v14, %v7759_v26  ;;  %v7764_v4 = vadd.f32 %v9082_v12, %v7667_v31  ;;  %v13639_v26 = vld [vmem:[#allocation113_spill] sm:$0xff]  ;;  %v13641_v14 = vld [vmem:[#allocation55_spill] sm:$0xff] }
 0x529   :  { %v7934_v5 = vadd.f32 %v9192_v34, %v7837_v21  ;;  %v9030_v2 = vadd.f32 %v13640_v20, %v13639_v26 }
 0x52a   :  { %v9194_v10 = vpop.f32.mrf.mxu1 }
 0x52b   :  { %10143 = vtanh.f32 %v7934_v5  ;;  %v9195_v42 = vadd.f32 %v9194_v10, %v9193_v56  ;;  %v12915_v56 = vpop.f32.mrf.mxu0  ;;  %v9085_v5 = vadd.f32 %v13630_v23, %v13629_v16  ;;  %v13645_v23 = vld [vmem:[#allocation126_spill] sm:$0xff] }
 0x52c   :  { %v9196_v38 = vpop.f32.mrf.mxu1 }
 0x52d   :  { %v7937_v6 = vadd.f32 %v9195_v42, %v7840_v7  ;;  %v9024_v7 = vadd.f32 %v13632_v53, %v13631_v28  ;;  %v7670_v42 = vadd.f32 %v9021_v46, %v12830_v40 }
 0x52e   :  { %v9197_v45 = vpop.f32.mrf.mxu1 }
 0x52f   :  { %10145 = vtanh.f32 %v7937_v6  ;;  %v9198_v37 = vadd.f32 %v9197_v45, %v9196_v38  ;;  %v13633_v38 = vld [vmem:[#allocation116_spill] sm:$0xff]  ;;  %v9157_v6 = vpop.f32.mrf.mxu0  ;;  %v7861_v45 = vadd.f32 %v9146_v33, %v7764_v4  ;;  %v7767_v43 = vadd.f32 %v9085_v5, %v7670_v42  ;;  %v13646_v5 = vld [vmem:[#allocation99_spill] sm:$0xff] }
 0x530   :  { %v10140_v39 = vpop.eup %10139  ;;  %v9199_v22 = vpop.f32.mrf.mxu1  ;;  %v9088_v30 = vadd.f32 %v13634_v50, %v13633_v38  ;;  %v9155_v4 = vadd.f32 %v12906_v55, %v12899_v29  ;;  %v13647_v38 = vld [vmem:[#allocation58_spill] sm:$0xff]  ;;  %v9158_v29 = vadd.f32 %v9157_v6, %v12915_v56 }
 0x531   :  { %8106 = vst [vmem:[#allocation14 + $0x30] sm:$0xff] %v10140_v39  ;;  %v7942_v60 = vadd.f32 %v9198_v37, %v7845_v19  ;;  %v7675_v39 = vadd.f32 %v9024_v7, %v12830_v40  ;;  %v9159_v35 = vpop.f32.mrf.mxu0  ;;  %v13648_v50 = vld [vmem:[#allocation114_spill] sm:$0xff] }
 0x532   :  { %v9200_v54 = vpop.f32.mrf.mxu1 }
 0x533   :  { %10147 = vtanh.f32 %v7942_v60  ;;  %v9201_v41 = vadd.f32 %v9200_v54, %v9199_v22  ;;  %v13635_v22 = vld [vmem:[#allocation85_spill] sm:$0xff]  ;;  %v7772_v60 = vadd.f32 %v9088_v30, %v7675_v39  ;;  %v9160_v12 = vpop.f32.mrf.mxu0  ;;  %v9036_v30 = vadd.f32 %v13648_v50, %v13647_v38  ;;  %v13650_v39 = vld [vmem:[#allocation88_spill] sm:$0xff] }
 0x534   :  { %v10142_v48 = vpop.eup %10141  ;;  %v9202_v62 = vpop.f32.mrf.mxu1  ;;  %v9027_v59 = vadd.f32 %v13636_v32, %v13635_v22 }
 0x535   :  { %8113 = vst [vmem:[#allocation14 + $0x68] sm:$0xff] %v10142_v48  ;;  %v7945_v61 = vadd.f32 %v9201_v41, %v7848_v11  ;;  %v7864_v11 = vadd.f32 %v9149_v3, %v7767_v43  ;;  %v13638_v41 = vld [vmem:[#allocation98_spill] sm:$0xff] }
 0x536   :  { %v9203_v51 = vpop.f32.mrf.mxu1  ;;  %v9091_v48 = vadd.f32 %v13638_v41, %v13637_v0 }
 0x537   :  { %10149 = vtanh.f32 %v7945_v61  ;;  %v9204_v15 = vadd.f32 %v9203_v51, %v9202_v62  ;;  %v7678_v61 = vadd.f32 %v9027_v59, %v12830_v40  ;;  %v9161_v59 = vadd.f32 %v9160_v12, %v9159_v35 }
 0x538   :  { %v10144_v21 = vpop.eup %10143  ;;  %v9205_v25 = vpop.f32.mrf.mxu1 }
 0x539   :  { %8120 = vst [vmem:[#allocation14 + $0xa0] sm:$0xff] %v10144_v21  ;;  %v7950_v34 = vadd.f32 %v9204_v15, %v7853_v1  ;;  %v7869_v1 = vadd.f32 %v9152_v24, %v7772_v60  ;;  %v7775_v21 = vadd.f32 %v9091_v48, %v7678_v61  ;;  %v13651_v60 = vld [vmem:[#allocation125_spill] sm:$0xff] }
 0x53a   :  { %v9206_v58 = vpop.f32.mrf.mxu1 }
 0x53b   :  { %10151 = vtanh.f32 %v7950_v34  ;;  %v9207_v52 = vadd.f32 %v9206_v58, %v9205_v25  ;;  %v13642_v25 = vld [vmem:[#allocation46_spill] sm:$0xff]  ;;  %v13643_v34 = vld [vmem:[#allocation44_spill] sm:$0xff]  ;;  %v7683_v58 = vadd.f32 %v9030_v2, %v12830_v40  ;;  %v7872_v53 = vadd.f32 %v9155_v4, %v7775_v21 }
 0x53c   :  { %v10146_v10 = vpop.eup %10145  ;;  %v9208_v17 = vpop.f32.mrf.mxu1  ;;  %v9094_v31 = vadd.f32 %v13642_v25, %v13641_v14  ;;  %v9033_v8 = vadd.f32 %v13644_v18, %v13643_v34 }
 0x53d   :  { %8127 = vst [vmem:[#allocation14 + $0xd8] sm:$0xff] %v10146_v10  ;;  %v7953_v49 = vadd.f32 %v9207_v52, %v7856_v47  ;;  %v9097_v52 = vadd.f32 %v13646_v5, %v13645_v23  ;;  %v9162_v10 = vpop.f32.mrf.mxu0 }
 0x53e   :  { %v9209_v19 = vpop.f32.mrf.mxu1  ;;  %v7780_v7 = vadd.f32 %v9094_v31, %v7683_v58  ;;  %v7686_v33 = vadd.f32 %v9033_v8, %v12830_v40 }
 0x53f   :  { %10153 = vtanh.f32 %v7953_v49  ;;  %v9210_v44 = vadd.f32 %v9209_v19, %v9208_v17 }
 0x540   :  { %v10148_v37 = vpop.eup %10147  ;;  %v9211_v36 = vpop.f32.mrf.mxu1  ;;  %v7783_v19 = vadd.f32 %v9097_v52, %v7686_v33 }
 0x541   :  { %8134 = vst [vmem:[#allocation14 + $0x110] sm:$0xff] %v10148_v37  ;;  %v7958_v63 = vadd.f32 %v9210_v44, %v7861_v45  ;;  %v9163_v45 = vpop.f32.mrf.mxu0  ;;  %v7877_v44 = vadd.f32 %v9158_v29, %v7780_v7  ;;  %v13649_v37 = vld [vmem:[#allocation47_spill] sm:$0xff] }
 0x542   :  { %v9212_v54 = vpop.f32.mrf.mxu1  ;;  %v7880_v6 = vadd.f32 %v9161_v59, %v7783_v19  ;;  %v9164_v26 = vadd.f32 %v9163_v45, %v9162_v10 }
 0x543   :  { %10155 = vtanh.f32 %v7958_v63  ;;  %v9213_v27 = vadd.f32 %v9212_v54, %v9211_v36  ;;  %v9100_v36 = vadd.f32 %v13650_v39, %v13649_v37  ;;  %v7691_v63 = vadd.f32 %v9036_v30, %v12830_v40  ;;  %v13652_v54 = vld [vmem:[#allocation59_spill] sm:$0xff]  ;;  %v9165_v0 = vpop.f32.mrf.mxu0 }
 0x544   :  { %v10150_v62 = vpop.eup %10149  ;;  %v9214_v13 = vpop.f32.mrf.mxu1 }
 0x545   :  { %8141 = vst [vmem:[#allocation14 + $0x148] sm:$0xff] %v10150_v62  ;;  %v7961_v51 = vadd.f32 %v9213_v27, %v7864_v11  ;;  %v9039_v11 = vadd.f32 %v13652_v54, %v13651_v60  ;;  %v7788_v48 = vadd.f32 %v9100_v36, %v7691_v63  ;;  %v13653_v27 = vld [vmem:[#allocation60_spill] sm:$0xff]  ;;  %v9166_v2 = vpop.f32.mrf.mxu0 }
 0x546   :  { %v9215_v15 = vpop.f32.mrf.mxu1  ;;  %v9103_v62 = vadd.f32 %v13653_v27, %v12841_v57  ;;  %v9167_v25 = vadd.f32 %v9166_v2, %v9165_v0 }
 0x547   :  { %10157 = vtanh.f32 %v7961_v51  ;;  %v9216_v9 = vadd.f32 %v9215_v15, %v9214_v13  ;;  %v7694_v35 = vadd.f32 %v9039_v11, %v12830_v40 }
 0x548   :  { %v10152_v46 = vpop.eup %10151  ;;  %v9217_v47 = vpop.f32.mrf.mxu1 }
 0x549   :  { %8148 = vst [vmem:[#allocation14 + $0x180] sm:$0xff] %v10152_v46  ;;  %v7966_v16 = vadd.f32 %v9216_v9, %v7869_v1  ;;  %v7885_v1 = vadd.f32 %v9164_v26, %v7788_v48  ;;  %v7791_v12 = vadd.f32 %v9103_v62, %v7694_v35 }
 0x54a   :  { %v9218_v28 = vpop.f32.mrf.mxu1 }
 0x54b   :  { %10159 = vtanh.f32 %v7966_v16  ;;  %v9219_v17 = vadd.f32 %v9218_v28, %v9217_v47  ;;  %v7888_v9 = vadd.f32 %v9167_v25, %v7791_v12 }
 0x54c   :  { %v10154_v42 = vpop.eup %10153  ;;  %v9220_v49 = vpop.f32.mrf.mxu1 }
 0x54d   :  { %8155 = vst [vmem:[#allocation14 + $0x1b8] sm:$0xff] %v10154_v42  ;;  %v7969_v55 = vadd.f32 %v9219_v17, %v7872_v53 }
 0x54e   :  { %v9221_v43 = vpop.f32.mrf.mxu1 }
 0x54f   :  { %10161 = vtanh.f32 %v7969_v55  ;;  %v9222_v22 = vadd.f32 %v9221_v43, %v9220_v49 }
 0x550   :  { %v10156_v32 = vpop.eup %10155  ;;  %v9223_v3 = vpop.f32.mrf.mxu1 }
 0x551   :  { %8162 = vst [vmem:[#allocation14 + $0x1f0] sm:$0xff] %v10156_v32  ;;  %v7974_v56 = vadd.f32 %v9222_v22, %v7877_v44 }
 0x552   :  { %v9224_v41 = vpop.f32.mrf.mxu1 }
 0x553   :  { %10163 = vtanh.f32 %v7974_v56  ;;  %v9225_v24 = vadd.f32 %v9224_v41, %v9223_v3 }
 0x554   :  { %v10158_v13 = vpop.eup %10157  ;;  %v9226_v61 = vpop.f32.mrf.mxu1 }
 0x555   :  { %8169 = vst [vmem:[#allocation14 + $0x228] sm:$0xff] %v10158_v13  ;;  %v7977_v20 = vadd.f32 %v9225_v24, %v7880_v6 }
 0x556   :  { %v9227_v51 = vpop.f32.mrf.mxu1 }
 0x557   :  { %10165 = vtanh.f32 %v7977_v20  ;;  %v9228_v15 = vadd.f32 %v9227_v51, %v9226_v61 }
 0x558   :  { %v10160_v21 = vpop.eup %10159  ;;  %v9229_v14 = vpop.f32.mrf.mxu1 }
 0x559   :  { %8176 = vst [vmem:[#allocation14 + $0x260] sm:$0xff] %v10160_v21  ;;  %v7982_v57 = vadd.f32 %v9228_v15, %v7885_v1 }
 0x55a   :  { %v9230_v31 = vpop.f32.mrf.mxu1 }
 0x55b   :  { %10167 = vtanh.f32 %v7982_v57  ;;  %v9231_v46 = vadd.f32 %v9230_v31, %v9229_v14 }
 0x55c   :  { %v10162_v34 = vpop.eup %10161 }
 0x55d   :  { %8183 = vst [vmem:[#allocation14 + $0x298] sm:$0xff] %v10162_v34  ;;  %v7985_v40 = vadd.f32 %v9231_v46, %v7888_v9 }
 0x55f   :  { %10169 = vtanh.f32 %v7985_v40 }
 0x560   :  { %v10164_v18 = vpop.eup %10163 }
 0x561   :  { %8190 = vst [vmem:[#allocation14 + $0x2d0] sm:$0xff] %v10164_v18 }
 0x564   :  { %v10166_v8 = vpop.eup %10165 }
 0x565   :  { %8197 = vst [vmem:[#allocation14 + $0x308] sm:$0xff] %v10166_v8 }
 0x568   :  { %v10168_v47 = vpop.eup %10167 }
 0x569   :  { %8204 = vst [vmem:[#allocation14 + $0x340] sm:$0xff] %v10168_v47 }
 0x56c   :  { %v10170_v58 = vpop.eup %10169 }
 0x56d   :  { %8211 = vst [vmem:[#allocation14 + $0x378] sm:$0xff] %v10170_v58 }
 0x56e   :  { %10325 = shalt.err (!%p10322_p11)
}
 0x56f   :  { %s10361_s17 = smov 896   ;;  %s10362_s18 = smov 56  }
 0x570   :  { %8223 = dma.vmem_to_hbm [thread:$0]  %s8218_s6, 14336, %s12969_s7, [#allocation4], %s10361_s17, %s10361_s17, %s10362_s18  }
 0x571   :  { %10342 = dma.done.wait [#allocation4], 14336  }
 0x572   :  { %10343 = vsyncadd [#allocation4], 4294952960 }
 0x573   :  { %8227 = vsyncpa [#allocation3], 1 }
 0x574   :  { %8228 = vsyncpa [#allocation6], 1 }
 0x575   :  { %8229 = vsyncpa [#allocation9], 1 }
 0x576   :  { %8230 = vsyncpa [#allocation12], 1 }
 0x577   :  { %8231 = vsyncpa [#allocation4], 1 }

</bundles_post_ra>
